<compile_context>
chip_gen: v6e
topology: v6e:2x2x1
jax: 0.10.0
libtpu: 0.0.40
codegen_flags: <defaults>
</compile_context>

<pallas_src>
import jax
import jax.numpy as jnp
from jax import lax
from jax.experimental import pallas as pl
from jax.experimental.pallas import tpu as pltpu

EPS = 1e-5


def _make_kernel(H, W, C, pack_taps, compute_dtype):
    """Builds the per-image kernel body."""
    HW = H * W
    # Scratch holding the reflect-H-padded image, rows flattened row-major:
    #   pad_ref[BASE + (r + 1) * W + j, :] == padded_row_r[j, :],  r in [-1, H].
    # BASE > 0 gives the (dh=0, col-offset -1) tap slice a legal start; BASE = 8 also keeps
    # the interior store sublane-aligned whenever W is a multiple of 8.
    BASE = 8
    PAD_ROWS = BASE + (H + 2) * W + 8          # +8 trailing slack for the (dh=2, +1) slice

    def write_h_padded(pad_ref, src):
        # src: (H*W, C).  Reflection along H only (W reflection handled via lane masks).
        pad_ref[BASE + W:BASE + W + HW, :] = src                                   # rows 0..H-1
        pad_ref[BASE:BASE + W, :] = src[W:2 * W, :]                                # row -1 = row 1
        pad_ref[BASE + (H + 1) * W:BASE + (H + 2) * W, :] = \
            src[(H - 2) * W:(H - 1) * W, :]                                        # row H = row H-2

    def conv3x3(pad_ref, patch_ref, w_ref, mask_l, mask_r):
        """Reflect-padded 3x3 cross-correlation (PyTorch Conv2d semantics), bias-free."""
        def taps_for(dh):
            s = BASE + dh * W
            a = pad_ref[s - 1:s - 1 + HW, :]   # column offset -1 (wrong at j == 0)
            b = pad_ref[s:s + HW, :]           # column offset  0
            c = pad_ref[s + 1:s + 1 + HW, :]   # column offset +1 (wrong at j == W-1)
            left = jnp.where(mask_l, c, a)     # reflect: j == 0   reads column +1
            right = jnp.where(mask_r, a, c)    # reflect: j == W-1 reads column -1
            return left, b, right

        if pack_taps:
            # im2col: one matmul with K = 9C (dominant fix when C is small).
            for dh in range(3):
                for k, tap in enumerate(taps_for(dh)):
                    t = 3 * dh + k
                    patch_ref[:, t * C:(t + 1) * C] = tap.astype(compute_dtype)
            return jnp.dot(patch_ref[...], w_ref[...],
                           preferred_element_type=jnp.float32)
        else:
            # Large C: nine K=C matmuls already keep the MXU busy; no im2col buffer.
            acc = None
            for dh in range(3):
                for k, tap in enumerate(taps_for(dh)):
                    t = 3 * dh + k
                    d = jnp.dot(tap.astype(compute_dtype),
                                w_ref[t * C:(t + 1) * C, :],
                                preferred_element_type=jnp.float32)
                    acc = d if acc is None else acc + d
            return acc

    def instance_norm(a):
        # InstanceNorm2d(affine=False): per-channel stats over H*W, one-pass variance.
        mean = jnp.mean(a, axis=0, keepdims=True)
        mean_sq = jnp.mean(a * a, axis=0, keepdims=True)
        var = mean_sq - mean * mean
        return (a - mean) * lax.rsqrt(var + EPS)

    def body(x_ref, w1_ref, w2_ref, o_ref, pad_ref, patch_ref):
        x = x_ref[0]                                          # (H*W, C) f32

        # Column-index masks for the reflect-W corrections (hoisted, reused by both convs).
        row_idx = lax.broadcasted_iota(jnp.int32, (HW, C), 0)
        if (W & (W - 1)) == 0:
            col = jnp.bitwise_and(row_idx, W - 1)
        else:
            col = lax.rem(row_idx, W)
        mask_l = col == 0
        mask_r = col == (W - 1)

        write_h_padded(pad_ref, x)
        h = instance_norm(conv3x3(pad_ref, patch_ref, w1_ref, mask_l, mask_r))
        h = jnp.maximum(h, 0.0)

        write_h_padded(pad_ref, h)
        h = instance_norm(conv3x3(pad_ref, patch_ref, w2_ref, mask_l, mask_r))

        o_ref[0] = x + h

    if pack_taps:
        def kernel(x_ref, w1_ref, w2_ref, o_ref, pad_ref, patch_ref):
            body(x_ref, w1_ref, w2_ref, o_ref, pad_ref, patch_ref)
    else:
        def kernel(x_ref, w1_ref, w2_ref, o_ref, pad_ref):
            body(x_ref, w1_ref, w2_ref, o_ref, pad_ref, None)

    return kernel, PAD_ROWS


def resnet_block(x_nhwc, w1_hwio, w2_hwio, *, use_bf16_matmul=False):
    """x_nhwc: (N, H, W, C) f32.  w*_hwio: (3,3,C,C), w[kh,kw,ci,co] == w_torch[co,ci,kh,kw].

    Conv biases are intentionally not taken: with InstanceNorm2d(affine=False) immediately
    after each conv they cancel exactly (verified against the biased reference below).
    """
    N, H, W, C = x_nhwc.shape
    HW = H * W
    assert H >= 2 and W >= 2, "reflection padding needs H, W >= 2"

    pack_taps = C < 128
    compute_dtype = jnp.bfloat16 if use_bf16_matmul else jnp.float32
    kernel, pad_rows = _make_kernel(H, W, C, pack_taps, compute_dtype)

    # Layout plumbing outside the kernel: flat (H*W, C) slabs, tap-packed (9C, C) weights
    # (row index = (kh*3 + kw)*C + ci, matching the in-kernel tap order).
    x_flat = x_nhwc.reshape(N, HW, C).astype(jnp.float32)
    w1p = w1_hwio.reshape(9 * C, C).astype(compute_dtype)
    w2p = w2_hwio.reshape(9 * C, C).astype(compute_dtype)

    scratch = [pltpu.VMEM((pad_rows, C), jnp.float32)]            # reflect-H padded image
    if pack_taps:
        scratch.append(pltpu.VMEM((HW, 9 * C), compute_dtype))    # im2col patches

    # NOTE: the weight index_maps are constant, so Pallas DMAs them once; at large C,
    # pipeline_mode=pl.Buffered(1) on those specs (and an explicit vmem_limit_bytes for
    # v7x's 64 MiB) would further trim the VMEM budget.
    out_flat = pl.pallas_call(
        kernel,
        out_shape=jax.ShapeDtypeStruct((N, HW, C), jnp.float32),
        grid_spec=pltpu.PrefetchScalarGridSpec(
            num_scalar_prefetch=0,
            grid=(N,),
            in_specs=[
                pl.BlockSpec((1, HW, C), lambda n: (n, 0, 0)),
                pl.BlockSpec((9 * C, C), lambda n: (0, 0)),
                pl.BlockSpec((9 * C, C), lambda n: (0, 0)),
            ],
            out_specs=pl.BlockSpec((1, HW, C), lambda n: (n, 0, 0)),
            scratch_shapes=tuple(scratch),
        ),
        compiler_params=pltpu.CompilerParams(
            dimension_semantics=("parallel",)),    # batch across TensorCores (v7x: N % 2 == 0)
    )(x_flat, w1p, w2p)

    return out_flat.reshape(N, H, W, C)


def _reference(x_nhwc, w1, b1, w2, b2):
    """Plain-JAX reference with the conv biases kept (proves they are inert before IN)."""
    dn = lax.conv_dimension_numbers(x_nhwc.shape, w1.shape, ("NHWC", "HWIO", "NHWC"))

    def conv(a, w, b):
        ap = jnp.pad(a, ((0, 0), (1, 1), (1, 1), (0, 0)), mode="reflect")
        y = lax.conv_general_dilated(ap, w, (1, 1), "VALID", dimension_numbers=dn)
        return y + b[None, None, None, :]

    def inorm(a):
        m = jnp.mean(a, axis=(1, 2), keepdims=True)
        v = jnp.mean((a - m) ** 2, axis=(1, 2), keepdims=True)
        return (a - m) * lax.rsqrt(v + EPS)

    h = jnp.maximum(inorm(conv(x_nhwc, w1, b1)), 0.0)
    h = inorm(conv(h, w2, b2))
    return x_nhwc + h


if __name__ == "__main__":
    N, C, H, W = 2, 4, 16, 16   # small shapes consistent with Conv2d(dim, dim, 3)
    key = jax.random.PRNGKey(0)
    kx, kw1, kb1, kw2, kb2 = jax.random.split(key, 5)

    # Input in PyTorch NCHW convention, transposed to NHWC for the kernel.
    x_nchw = jax.random.normal(kx, (N, C, H, W), dtype=jnp.float32)
    x_nhwc = jnp.transpose(x_nchw, (0, 2, 3, 1))

    # Conv2d weights stored directly in HWIO: w[kh, kw, ci, co] == w_torch[co, ci, kh, kw].
    w1 = 0.1 * jax.random.normal(kw1, (3, 3, C, C), dtype=jnp.float32)
    b1 = 0.1 * jax.random.normal(kb1, (C,), dtype=jnp.float32)
    w2 = 0.1 * jax.random.normal(kw2, (3, 3, C, C), dtype=jnp.float32)
    b2 = 0.1 * jax.random.normal(kb2, (C,), dtype=jnp.float32)

    out = jax.block_until_ready(resnet_block(x_nhwc, w1, w2))

    # Reference keeps the biases; they are cancelled by the affine-less InstanceNorm.
    ref = jax.block_until_ready(_reference(x_nhwc, w1, b1, w2, b2))
    assert out.shape == (N, H, W, C)
    err = float(jnp.max(jnp.abs(out - ref)))
    # Tolerance accounts for TPU f32 matmul default precision + summation-order differences.
    assert jnp.allclose(out, ref, atol=5e-4, rtol=5e-4), err

    # Back to NCHW if a caller wants PyTorch layout:
    _ = jnp.transpose(out, (0, 3, 1, 2))

    print("KERNEL_OK")
</pallas_src>

<mosaic_0001>
module attributes {stable_mosaic.version = 11 : i64} {
  func.func @kernel(%arg0: i32, %arg1: memref<1x256x4xf32, #tpu.memory_space<vmem>>, %arg2: memref<36x4xf32, #tpu.memory_space<vmem>>, %arg3: memref<36x4xf32, #tpu.memory_space<vmem>>, %arg4: memref<1x256x4xf32, #tpu.memory_space<vmem>>, %arg5: memref<304x4xf32, #tpu.memory_space<vmem>>, %arg6: memref<256x36xf32, #tpu.memory_space<vmem>>) attributes {dimension_semantics = [#tpu.dimension_semantics<parallel>], iteration_bounds = array<i64: 2>, scalar_prefetch = 0 : i64, scratch_operands = 2 : i64, tpu.core_type = #tpu.core_type<tc>, window_params = [{transform_indices = @transform_0, window_bounds = array<i64: 1, 256, 4>}, {pipeline_mode = #tpu.pipeline_mode<synchronous>, transform_indices = @transform_1, window_bounds = array<i64: 36, 4>}, {pipeline_mode = #tpu.pipeline_mode<synchronous>, transform_indices = @transform_2, window_bounds = array<i64: 36, 4>}, {transform_indices = @transform_3, window_bounds = array<i64: 1, 256, 4>}]} {
    %c0 = arith.constant 0 : index
    %c0_0 = arith.constant 0 : index
    %c0_1 = arith.constant 0 : index
    %0 = vector.load %arg1[%c0, %c0_0, %c0_1] : memref<1x256x4xf32, #tpu.memory_space<vmem>>, vector<1x256x4xf32>
    %1 = vector.shape_cast %0 : vector<1x256x4xf32> to vector<256x4xf32>
    %2 = tpu.iota {dimensions = array<i32: 0>} : vector<256x4xi32>
    %c15_i32 = arith.constant 15 : i32
    %3 = vector.broadcast %c15_i32 : i32 to vector<256x4xi32>
    %4 = arith.andi %2, %3 : vector<256x4xi32>
    %c0_i32 = arith.constant 0 : i32
    %5 = vector.broadcast %c0_i32 : i32 to vector<256x4xi32>
    %6 = arith.cmpi eq, %4, %5 : vector<256x4xi32>
    %c15_i32_2 = arith.constant 15 : i32
    %7 = vector.broadcast %c15_i32_2 : i32 to vector<256x4xi32>
    %8 = arith.cmpi eq, %4, %7 : vector<256x4xi32>
    %c24 = arith.constant 24 : index
    %c0_3 = arith.constant 0 : index
    %9 = vector.load %arg5[%c24, %c0_3] : memref<304x4xf32, #tpu.memory_space<vmem>>, vector<256x4xf32>
    tpu.vector_store %arg5[%c24, %c0_3], %1 {strides = array<i32>} : memref<304x4xf32, #tpu.memory_space<vmem>>, vector<256x4xf32>,
    %10 = vector.extract_strided_slice %1 {offsets = [16, 0], sizes = [16, 4], strides = [1, 1]} : vector<256x4xf32> to vector<16x4xf32>
    %c8 = arith.constant 8 : index
    %c0_4 = arith.constant 0 : index
    %11 = vector.load %arg5[%c8, %c0_4] : memref<304x4xf32, #tpu.memory_space<vmem>>, vector<16x4xf32>
    tpu.vector_store %arg5[%c8, %c0_4], %10 {strides = array<i32>} : memref<304x4xf32, #tpu.memory_space<vmem>>, vector<16x4xf32>,
    %12 = vector.extract_strided_slice %1 {offsets = [224, 0], sizes = [16, 4], strides = [1, 1]} : vector<256x4xf32> to vector<16x4xf32>
    %c280 = arith.constant 280 : index
    %c0_5 = arith.constant 0 : index
    %13 = vector.load %arg5[%c280, %c0_5] : memref<304x4xf32, #tpu.memory_space<vmem>>, vector<16x4xf32>
    tpu.vector_store %arg5[%c280, %c0_5], %12 {strides = array<i32>} : memref<304x4xf32, #tpu.memory_space<vmem>>, vector<16x4xf32>,
    %c7 = arith.constant 7 : index
    %c0_6 = arith.constant 0 : index
    %14 = vector.load %arg5[%c7, %c0_6] : memref<304x4xf32, #tpu.memory_space<vmem>>, vector<256x4xf32>
    %c8_7 = arith.constant 8 : index
    %c0_8 = arith.constant 0 : index
    %15 = vector.load %arg5[%c8_7, %c0_8] : memref<304x4xf32, #tpu.memory_space<vmem>>, vector<256x4xf32>
    %c9 = arith.constant 9 : index
    %c0_9 = arith.constant 0 : index
    %16 = vector.load %arg5[%c9, %c0_9] : memref<304x4xf32, #tpu.memory_space<vmem>>, vector<256x4xf32>
    %17 = arith.select %6, %16, %14 : vector<256x4xi1>, vector<256x4xf32>
    %18 = arith.select %8, %14, %16 : vector<256x4xi1>, vector<256x4xf32>
    %c0_10 = arith.constant 0 : index
    %c0_11 = arith.constant 0 : index
    %19 = vector.load %arg6[%c0_10, %c0_11] : memref<256x36xf32, #tpu.memory_space<vmem>>, vector<256x4xf32>
    tpu.vector_store %arg6[%c0_10, %c0_11], %17 {strides = array<i32>} : memref<256x36xf32, #tpu.memory_space<vmem>>, vector<256x4xf32>,
    %c0_12 = arith.constant 0 : index
    %c4 = arith.constant 4 : index
    %20 = vector.load %arg6[%c0_12, %c4] : memref<256x36xf32, #tpu.memory_space<vmem>>, vector<256x4xf32>
    tpu.vector_store %arg6[%c0_12, %c4], %15 {strides = array<i32>} : memref<256x36xf32, #tpu.memory_space<vmem>>, vector<256x4xf32>,
    %c0_13 = arith.constant 0 : index
    %c8_14 = arith.constant 8 : index
    %21 = vector.load %arg6[%c0_13, %c8_14] : memref<256x36xf32, #tpu.memory_space<vmem>>, vector<256x4xf32>
    tpu.vector_store %arg6[%c0_13, %c8_14], %18 {strides = array<i32>} : memref<256x36xf32, #tpu.memory_space<vmem>>, vector<256x4xf32>,
    %c23 = arith.constant 23 : index
    %c0_15 = arith.constant 0 : index
    %22 = vector.load %arg5[%c23, %c0_15] : memref<304x4xf32, #tpu.memory_space<vmem>>, vector<256x4xf32>
    %c24_16 = arith.constant 24 : index
    %c0_17 = arith.constant 0 : index
    %23 = vector.load %arg5[%c24_16, %c0_17] : memref<304x4xf32, #tpu.memory_space<vmem>>, vector<256x4xf32>
    %c25 = arith.constant 25 : index
    %c0_18 = arith.constant 0 : index
    %24 = vector.load %arg5[%c25, %c0_18] : memref<304x4xf32, #tpu.memory_space<vmem>>, vector<256x4xf32>
    %25 = arith.select %6, %24, %22 : vector<256x4xi1>, vector<256x4xf32>
    %26 = arith.select %8, %22, %24 : vector<256x4xi1>, vector<256x4xf32>
    %c0_19 = arith.constant 0 : index
    %c12 = arith.constant 12 : index
    %27 = vector.load %arg6[%c0_19, %c12] : memref<256x36xf32, #tpu.memory_space<vmem>>, vector<256x4xf32>
    tpu.vector_store %arg6[%c0_19, %c12], %25 {strides = array<i32>} : memref<256x36xf32, #tpu.memory_space<vmem>>, vector<256x4xf32>,
    %c0_20 = arith.constant 0 : index
    %c16 = arith.constant 16 : index
    %28 = vector.load %arg6[%c0_20, %c16] : memref<256x36xf32, #tpu.memory_space<vmem>>, vector<256x4xf32>
    tpu.vector_store %arg6[%c0_20, %c16], %23 {strides = array<i32>} : memref<256x36xf32, #tpu.memory_space<vmem>>, vector<256x4xf32>,
    %c0_21 = arith.constant 0 : index
    %c20 = arith.constant 20 : index
    %29 = vector.load %arg6[%c0_21, %c20] : memref<256x36xf32, #tpu.memory_space<vmem>>, vector<256x4xf32>
    tpu.vector_store %arg6[%c0_21, %c20], %26 {strides = array<i32>} : memref<256x36xf32, #tpu.memory_space<vmem>>, vector<256x4xf32>,
    %c39 = arith.constant 39 : index
    %c0_22 = arith.constant 0 : index
    %30 = vector.load %arg5[%c39, %c0_22] : memref<304x4xf32, #tpu.memory_space<vmem>>, vector<256x4xf32>
    %c40 = arith.constant 40 : index
    %c0_23 = arith.constant 0 : index
    %31 = vector.load %arg5[%c40, %c0_23] : memref<304x4xf32, #tpu.memory_space<vmem>>, vector<256x4xf32>
    %c41 = arith.constant 41 : index
    %c0_24 = arith.constant 0 : index
    %32 = vector.load %arg5[%c41, %c0_24] : memref<304x4xf32, #tpu.memory_space<vmem>>, vector<256x4xf32>
    %33 = arith.select %6, %32, %30 : vector<256x4xi1>, vector<256x4xf32>
    %34 = arith.select %8, %30, %32 : vector<256x4xi1>, vector<256x4xf32>
    %c0_25 = arith.constant 0 : index
    %c24_26 = arith.constant 24 : index
    %35 = vector.load %arg6[%c0_25, %c24_26] : memref<256x36xf32, #tpu.memory_space<vmem>>, vector<256x4xf32>
    tpu.vector_store %arg6[%c0_25, %c24_26], %33 {strides = array<i32>} : memref<256x36xf32, #tpu.memory_space<vmem>>, vector<256x4xf32>,
    %c0_27 = arith.constant 0 : index
    %c28 = arith.constant 28 : index
    %36 = vector.load %arg6[%c0_27, %c28] : memref<256x36xf32, #tpu.memory_space<vmem>>, vector<256x4xf32>
    tpu.vector_store %arg6[%c0_27, %c28], %31 {strides = array<i32>} : memref<256x36xf32, #tpu.memory_space<vmem>>, vector<256x4xf32>,
    %c0_28 = arith.constant 0 : index
    %c32 = arith.constant 32 : index
    %37 = vector.load %arg6[%c0_28, %c32] : memref<256x36xf32, #tpu.memory_space<vmem>>, vector<256x4xf32>
    tpu.vector_store %arg6[%c0_28, %c32], %34 {strides = array<i32>} : memref<256x36xf32, #tpu.memory_space<vmem>>, vector<256x4xf32>,
    %c0_29 = arith.constant 0 : index
    %c0_30 = arith.constant 0 : index
    %38 = vector.load %arg6[%c0_29, %c0_30] : memref<256x36xf32, #tpu.memory_space<vmem>>, vector<256x36xf32>
    %c0_31 = arith.constant 0 : index
    %c0_32 = arith.constant 0 : index
    %39 = vector.load %arg2[%c0_31, %c0_32] : memref<36x4xf32, #tpu.memory_space<vmem>>, vector<36x4xf32>
    %cst = arith.constant dense<0.000000e+00> : vector<256x4xf32>
    %40 = tpu.matmul %38, %39, %cst {dimension_numbers = #tpu.dot_dimension_numbers<[1], [0], [0], [1], [0, 0, 1, 1], [], []>} : vector<256x36xf32>, vector<36x4xf32>, vector<256x4xf32> -> vector<256x4xf32>
    %cst_33 = arith.constant dense<0.000000e+00> : vector<4xf32>
    %41 = vector.multi_reduction <add>, %40, %cst_33 [0] : vector<256x4xf32> to vector<4xf32>
    %42 = vector.shape_cast %41 : vector<4xf32> to vector<1x4xf32>
    %cst_34 = arith.constant 2.560000e+02 : f32
    %43 = vector.broadcast %cst_34 : f32 to vector<1x4xf32>
    %44 = arith.divf %42, %43 : vector<1x4xf32>
    %45 = arith.mulf %40, %40 : vector<256x4xf32>
    %cst_35 = arith.constant dense<0.000000e+00> : vector<4xf32>
    %46 = vector.multi_reduction <add>, %45, %cst_35 [0] : vector<256x4xf32> to vector<4xf32>
    %47 = vector.shape_cast %46 : vector<4xf32> to vector<1x4xf32>
    %cst_36 = arith.constant 2.560000e+02 : f32
    %48 = vector.broadcast %cst_36 : f32 to vector<1x4xf32>
    %49 = arith.divf %47, %48 : vector<1x4xf32>
    %50 = arith.mulf %44, %44 : vector<1x4xf32>
    %51 = arith.subf %49, %50 : vector<1x4xf32>
    %52 = vector.broadcast %44 : vector<1x4xf32> to vector<256x4xf32>
    %53 = arith.subf %40, %52 : vector<256x4xf32>
    %cst_37 = arith.constant 9.99999974E-6 : f32
    %54 = vector.broadcast %cst_37 : f32 to vector<1x4xf32>
    %55 = arith.addf %51, %54 : vector<1x4xf32>
    %56 = math.rsqrt %55 : vector<1x4xf32>
    %57 = vector.broadcast %56 : vector<1x4xf32> to vector<256x4xf32>
    %58 = arith.mulf %53, %57 : vector<256x4xf32>
    %cst_38 = arith.constant 0.000000e+00 : f32
    %59 = vector.broadcast %cst_38 : f32 to vector<256x4xf32>
    %60 = arith.maximumf %58, %59 : vector<256x4xf32>
    %c24_39 = arith.constant 24 : index
    %c0_40 = arith.constant 0 : index
    %61 = vector.load %arg5[%c24_39, %c0_40] : memref<304x4xf32, #tpu.memory_space<vmem>>, vector<256x4xf32>
    tpu.vector_store %arg5[%c24_39, %c0_40], %60 {strides = array<i32>} : memref<304x4xf32, #tpu.memory_space<vmem>>, vector<256x4xf32>,
    %62 = vector.extract_strided_slice %60 {offsets = [16, 0], sizes = [16, 4], strides = [1, 1]} : vector<256x4xf32> to vector<16x4xf32>
    %c8_41 = arith.constant 8 : index
    %c0_42 = arith.constant 0 : index
    %63 = vector.load %arg5[%c8_41, %c0_42] : memref<304x4xf32, #tpu.memory_space<vmem>>, vector<16x4xf32>
    tpu.vector_store %arg5[%c8_41, %c0_42], %62 {strides = array<i32>} : memref<304x4xf32, #tpu.memory_space<vmem>>, vector<16x4xf32>,
    %64 = vector.extract_strided_slice %60 {offsets = [224, 0], sizes = [16, 4], strides = [1, 1]} : vector<256x4xf32> to vector<16x4xf32>
    %c280_43 = arith.constant 280 : index
    %c0_44 = arith.constant 0 : index
    %65 = vector.load %arg5[%c280_43, %c0_44] : memref<304x4xf32, #tpu.memory_space<vmem>>, vector<16x4xf32>
    tpu.vector_store %arg5[%c280_43, %c0_44], %64 {strides = array<i32>} : memref<304x4xf32, #tpu.memory_space<vmem>>, vector<16x4xf32>,
    %c7_45 = arith.constant 7 : index
    %c0_46 = arith.constant 0 : index
    %66 = vector.load %arg5[%c7_45, %c0_46] : memref<304x4xf32, #tpu.memory_space<vmem>>, vector<256x4xf32>
    %c8_47 = arith.constant 8 : index
    %c0_48 = arith.constant 0 : index
    %67 = vector.load %arg5[%c8_47, %c0_48] : memref<304x4xf32, #tpu.memory_space<vmem>>, vector<256x4xf32>
    %c9_49 = arith.constant 9 : index
    %c0_50 = arith.constant 0 : index
    %68 = vector.load %arg5[%c9_49, %c0_50] : memref<304x4xf32, #tpu.memory_space<vmem>>, vector<256x4xf32>
    %69 = arith.select %6, %68, %66 : vector<256x4xi1>, vector<256x4xf32>
    %70 = arith.select %8, %66, %68 : vector<256x4xi1>, vector<256x4xf32>
    %c0_51 = arith.constant 0 : index
    %c0_52 = arith.constant 0 : index
    %71 = vector.load %arg6[%c0_51, %c0_52] : memref<256x36xf32, #tpu.memory_space<vmem>>, vector<256x4xf32>
    tpu.vector_store %arg6[%c0_51, %c0_52], %69 {strides = array<i32>} : memref<256x36xf32, #tpu.memory_space<vmem>>, vector<256x4xf32>,
    %c0_53 = arith.constant 0 : index
    %c4_54 = arith.constant 4 : index
    %72 = vector.load %arg6[%c0_53, %c4_54] : memref<256x36xf32, #tpu.memory_space<vmem>>, vector<256x4xf32>
    tpu.vector_store %arg6[%c0_53, %c4_54], %67 {strides = array<i32>} : memref<256x36xf32, #tpu.memory_space<vmem>>, vector<256x4xf32>,
    %c0_55 = arith.constant 0 : index
    %c8_56 = arith.constant 8 : index
    %73 = vector.load %arg6[%c0_55, %c8_56] : memref<256x36xf32, #tpu.memory_space<vmem>>, vector<256x4xf32>
    tpu.vector_store %arg6[%c0_55, %c8_56], %70 {strides = array<i32>} : memref<256x36xf32, #tpu.memory_space<vmem>>, vector<256x4xf32>,
    %c23_57 = arith.constant 23 : index
    %c0_58 = arith.constant 0 : index
    %74 = vector.load %arg5[%c23_57, %c0_58] : memref<304x4xf32, #tpu.memory_space<vmem>>, vector<256x4xf32>
    %c24_59 = arith.constant 24 : index
    %c0_60 = arith.constant 0 : index
    %75 = vector.load %arg5[%c24_59, %c0_60] : memref<304x4xf32, #tpu.memory_space<vmem>>, vector<256x4xf32>
    %c25_61 = arith.constant 25 : index
    %c0_62 = arith.constant 0 : index
    %76 = vector.load %arg5[%c25_61, %c0_62] : memref<304x4xf32, #tpu.memory_space<vmem>>, vector<256x4xf32>
    %77 = arith.select %6, %76, %74 : vector<256x4xi1>, vector<256x4xf32>
    %78 = arith.select %8, %74, %76 : vector<256x4xi1>, vector<256x4xf32>
    %c0_63 = arith.constant 0 : index
    %c12_64 = arith.constant 12 : index
    %79 = vector.load %arg6[%c0_63, %c12_64] : memref<256x36xf32, #tpu.memory_space<vmem>>, vector<256x4xf32>
    tpu.vector_store %arg6[%c0_63, %c12_64], %77 {strides = array<i32>} : memref<256x36xf32, #tpu.memory_space<vmem>>, vector<256x4xf32>,
    %c0_65 = arith.constant 0 : index
    %c16_66 = arith.constant 16 : index
    %80 = vector.load %arg6[%c0_65, %c16_66] : memref<256x36xf32, #tpu.memory_space<vmem>>, vector<256x4xf32>
    tpu.vector_store %arg6[%c0_65, %c16_66], %75 {strides = array<i32>} : memref<256x36xf32, #tpu.memory_space<vmem>>, vector<256x4xf32>,
    %c0_67 = arith.constant 0 : index
    %c20_68 = arith.constant 20 : index
    %81 = vector.load %arg6[%c0_67, %c20_68] : memref<256x36xf32, #tpu.memory_space<vmem>>, vector<256x4xf32>
    tpu.vector_store %arg6[%c0_67, %c20_68], %78 {strides = array<i32>} : memref<256x36xf32, #tpu.memory_space<vmem>>, vector<256x4xf32>,
    %c39_69 = arith.constant 39 : index
    %c0_70 = arith.constant 0 : index
    %82 = vector.load %arg5[%c39_69, %c0_70] : memref<304x4xf32, #tpu.memory_space<vmem>>, vector<256x4xf32>
    %c40_71 = arith.constant 40 : index
    %c0_72 = arith.constant 0 : index
    %83 = vector.load %arg5[%c40_71, %c0_72] : memref<304x4xf32, #tpu.memory_space<vmem>>, vector<256x4xf32>
    %c41_73 = arith.constant 41 : index
    %c0_74 = arith.constant 0 : index
    %84 = vector.load %arg5[%c41_73, %c0_74] : memref<304x4xf32, #tpu.memory_space<vmem>>, vector<256x4xf32>
    %85 = arith.select %6, %84, %82 : vector<256x4xi1>, vector<256x4xf32>
    %86 = arith.select %8, %82, %84 : vector<256x4xi1>, vector<256x4xf32>
    %c0_75 = arith.constant 0 : index
    %c24_76 = arith.constant 24 : index
    %87 = vector.load %arg6[%c0_75, %c24_76] : memref<256x36xf32, #tpu.memory_space<vmem>>, vector<256x4xf32>
    tpu.vector_store %arg6[%c0_75, %c24_76], %85 {strides = array<i32>} : memref<256x36xf32, #tpu.memory_space<vmem>>, vector<256x4xf32>,
    %c0_77 = arith.constant 0 : index
    %c28_78 = arith.constant 28 : index
    %88 = vector.load %arg6[%c0_77, %c28_78] : memref<256x36xf32, #tpu.memory_space<vmem>>, vector<256x4xf32>
    tpu.vector_store %arg6[%c0_77, %c28_78], %83 {strides = array<i32>} : memref<256x36xf32, #tpu.memory_space<vmem>>, vector<256x4xf32>,
    %c0_79 = arith.constant 0 : index
    %c32_80 = arith.constant 32 : index
    %89 = vector.load %arg6[%c0_79, %c32_80] : memref<256x36xf32, #tpu.memory_space<vmem>>, vector<256x4xf32>
    tpu.vector_store %arg6[%c0_79, %c32_80], %86 {strides = array<i32>} : memref<256x36xf32, #tpu.memory_space<vmem>>, vector<256x4xf32>,
    %c0_81 = arith.constant 0 : index
    %c0_82 = arith.constant 0 : index
    %90 = vector.load %arg6[%c0_81, %c0_82] : memref<256x36xf32, #tpu.memory_space<vmem>>, vector<256x36xf32>
    %c0_83 = arith.constant 0 : index
    %c0_84 = arith.constant 0 : index
    %91 = vector.load %arg3[%c0_83, %c0_84] : memref<36x4xf32, #tpu.memory_space<vmem>>, vector<36x4xf32>
    %cst_85 = arith.constant dense<0.000000e+00> : vector<256x4xf32>
    %92 = tpu.matmul %90, %91, %cst_85 {dimension_numbers = #tpu.dot_dimension_numbers<[1], [0], [0], [1], [0, 0, 1, 1], [], []>} : vector<256x36xf32>, vector<36x4xf32>, vector<256x4xf32> -> vector<256x4xf32>
    %cst_86 = arith.constant dense<0.000000e+00> : vector<4xf32>
    %93 = vector.multi_reduction <add>, %92, %cst_86 [0] : vector<256x4xf32> to vector<4xf32>
    %94 = vector.shape_cast %93 : vector<4xf32> to vector<1x4xf32>
    %cst_87 = arith.constant 2.560000e+02 : f32
    %95 = vector.broadcast %cst_87 : f32 to vector<1x4xf32>
    %96 = arith.divf %94, %95 : vector<1x4xf32>
    %97 = arith.mulf %92, %92 : vector<256x4xf32>
    %cst_88 = arith.constant dense<0.000000e+00> : vector<4xf32>
    %98 = vector.multi_reduction <add>, %97, %cst_88 [0] : vector<256x4xf32> to vector<4xf32>
    %99 = vector.shape_cast %98 : vector<4xf32> to vector<1x4xf32>
    %cst_89 = arith.constant 2.560000e+02 : f32
    %100 = vector.broadcast %cst_89 : f32 to vector<1x4xf32>
    %101 = arith.divf %99, %100 : vector<1x4xf32>
    %102 = arith.mulf %96, %96 : vector<1x4xf32>
    %103 = arith.subf %101, %102 : vector<1x4xf32>
    %104 = vector.broadcast %96 : vector<1x4xf32> to vector<256x4xf32>
    %105 = arith.subf %92, %104 : vector<256x4xf32>
    %cst_90 = arith.constant 9.99999974E-6 : f32
    %106 = vector.broadcast %cst_90 : f32 to vector<1x4xf32>
    %107 = arith.addf %103, %106 : vector<1x4xf32>
    %108 = math.rsqrt %107 : vector<1x4xf32>
    %109 = vector.broadcast %108 : vector<1x4xf32> to vector<256x4xf32>
    %110 = arith.mulf %105, %109 : vector<256x4xf32>
    %111 = arith.addf %1, %110 : vector<256x4xf32>
    %c0_91 = arith.constant 0 : index
    %c0_92 = arith.constant 0 : index
    %c0_93 = arith.constant 0 : index
    %112 = vector.load %arg4[%c0_91, %c0_92, %c0_93] : memref<1x256x4xf32, #tpu.memory_space<vmem>>, vector<1x256x4xf32>
    %113 = vector.shape_cast %112 : vector<1x256x4xf32> to vector<256x4xf32>
    %114 = vector.shape_cast %111 : vector<256x4xf32> to vector<1x256x4xf32>
    tpu.vector_store %arg4[%c0_91, %c0_92, %c0_93], %114 {strides = array<i32>} : memref<1x256x4xf32, #tpu.memory_space<vmem>>, vector<1x256x4xf32>,
    return
  }
  func.func @transform_0(%arg0: i32) -> (i32, i32, i32) {
    %c0_i32 = arith.constant 0 : i32
    %c0_i32_0 = arith.constant 0 : i32
    %c0_i32_1 = arith.constant 0 : i32
    return %arg0, %c0_i32, %c0_i32_0 : i32, i32, i32
  }
  func.func @transform_1(%arg0: i32) -> (i32, i32) {
    %c0_i32 = arith.constant 0 : i32
    %c0_i32_0 = arith.constant 0 : i32
    %c0_i32_1 = arith.constant 0 : i32
    return %c0_i32, %c0_i32_0 : i32, i32
  }
  func.func @transform_2(%arg0: i32) -> (i32, i32) {
    %c0_i32 = arith.constant 0 : i32
    %c0_i32_0 = arith.constant 0 : i32
    %c0_i32_1 = arith.constant 0 : i32
    return %c0_i32, %c0_i32_0 : i32, i32
  }
  func.func @transform_3(%arg0: i32) -> (i32, i32, i32) {
    %c0_i32 = arith.constant 0 : i32
    %c0_i32_0 = arith.constant 0 : i32
    %c0_i32_1 = arith.constant 0 : i32
    return %arg0, %c0_i32, %c0_i32_0 : i32, i32, i32
  }
}

</mosaic_0001>

<bundles_post_ra>
// kernel: tpu_custom_call.1
= control target key start
LH: loop header
LB: loop body
LE: loop exit
PB: predicated region body
PF: predicated region fallthrough
CT: control target
= control target key end

     0   :  { %s5703_s12 = smov 0   ;;  %s9086_s0 = inlined_call_operand.vmem [shape: f32[2,256,4], index: 0, kind: input, shape index: {}]   ;;  %s9087_s1 = inlined_call_operand.vmem [shape: f32[36,4], index: 1, kind: input, shape index: {}]   ;;  %s9088_s2 = inlined_call_operand.vmem [shape: f32[36,4], index: 2, kind: input, shape index: {}]   ;;  %s9089_s3 = inlined_call_operand.vmem [shape: f32[2,256,4], index: 3, kind: output, shape index: {}]  }
   0x1 LB: > { %s5353_s13 = sadd.s32 4294967295, %s5673_s12   ;;  %p5357_p0 = scmp.ge.s32.totalorder %s5673_s12, 1  ;;  %s5673_s12 = sphi %s5703_s12, %s13_s12  }
   0x2   : > { %p137_p1 = scmp.lt.s32.totalorder %s5673_s12, 3 }
   0x4   : > { %p138_p2 = pnand %p5357_p0, %p137_p1 }
   0x6   : > { %141 = sbr.rel (%p138_p2) target bundleno = 1836 (0x72c), region = 32 }
   0xb   : > { %p161_p3 = scmp.lt.s32.totalorder %s5353_s13, 1  ;;  %vm9145_vm0 = vcmask 31744   ;;  %s5675_s18 = smov 4   ;;  %v203_v38 = vlaneseq }
   0xc   : > { %s5676_s19 = smov 8   ;;  %s5677_s20 = smov 12  }
   0xd   : > { %s10233_s13 = smov (!%p161_p3, %s5353_s13), 1  ;;  %v5897_v44 = vshrl.u32 %v203_v38, 7  ;;  %s5678_s21 = smov 16  }
   0xe   : > { %s5430_s14 = sshll.u32 %s10233_s13, 8  ;;  %s5679_s22 = smov 20  }
   0xf   : > { %s5719_s17 = scalar_lea.vmem %s9086_s0, %s5430_s14  ;;  %v206_v48 = vadd.s32 16, %v5897_v44  ;;  %v208_v51 = vadd.s32 32, %v5897_v44  ;;  %v236_v53 = vand.u32 15, %v5897_v44  ;;  %v210_v54 = vadd.s32 48, %v5897_v44  ;;  %s5680_s27 = smov 24  }
  0x10   : > { %v5722_v0 = vld [vmem:[%s5719_s17 + $0x10] sm:$0xff]  ;;  %v5725_v1 = vld [vmem:[%s5719_s17] sm:$0xff]  ;;  %v5728_v2 = vld [vmem:[%s5719_s17 + $0x18] sm:$0xff]  ;;  %v212_v57 = vadd.s32 64, %v5897_v44  ;;  %v214_v58 = vadd.s32 80, %v5897_v44  ;;  %v216_v59 = vadd.s32 96, %v5897_v44 }
  0x11   : > { %9307 = vst [vmem:[#allocation4_spill] sm:$0xff] %v5722_v0  ;;  %9308 = vst [vmem:[#allocation5_spill] sm:$0xff] %v5725_v1  ;;  %v5741_v3 = vld [vmem:[%s5719_s17 + $0x8] sm:$0xff]  ;;  %v5744_v4 = vld [vmem:[%s5719_s17 + $0x20] sm:$0xff]  ;;  %v238_v56 = vand.u32 15, %v206_v48  ;;  %v5935_v61 = vadd.s32 112, %v5897_v44 }
  0x12   : > { %9309 = vst [vmem:[#allocation6_spill] sm:$0xff] %v5728_v2  ;;  %365 = vst.msk [vmem:[#allocation2 + $0x8] sm:$0xff] %vm9145_vm0, %v5722_v0  ;;  %v5747_v5 = vld [vmem:[%s5719_s17 + $0x28] sm:$0xff]  ;;  %v5756_v6 = vld [vmem:[%s5719_s17 + $0x30] sm:$0xff]  ;;  %v5938_v62 = vadd.s32 128, %v5897_v44  ;;  %vm5954_vm1 = vcmp.eq.s32.totalorder %v236_v53, 0 }
  0x13   : > { %335 = vst.msk [vmem:[#allocation2 + $0x28] sm:$0xff] %vm9145_vm0, %v5722_v0  ;;  %333 = vst.msk [vmem:[#allocation2 + $0x18] sm:$0xff] %vm9145_vm0, %v5725_v1  ;;  %v5759_v7 = vld [vmem:[%s5719_s17 + $0x38] sm:$0xff]  ;;  %v5762_v8 = vld [vmem:[%s5719_s17 + $0x40] sm:$0xff]  ;;  %vm5962_vm2 = vcmp.eq.s32.totalorder %v238_v56, 0  ;;  %v250_v56 = vand.u32 15, %v5935_v61 }
  0x14   : > { %366 = vst.msk [vmem:[#allocation2 + $0x10] sm:$0xff] %vm9145_vm0, %v5728_v2  ;;  %336 = vst.msk [vmem:[#allocation2 + $0x30] sm:$0xff] %vm9145_vm0, %v5728_v2  ;;  %v5771_v9 = vld [vmem:[%s5719_s17 + $0x48] sm:$0xff]  ;;  %v5774_v10 = vld [vmem:[%s5719_s17 + $0x50] sm:$0xff]  ;;  %s5681_s5 = smov 28   ;;  %s5682_s8 = smov 32  }
  0x15   : > { %9310 = vst [vmem:[#allocation7_spill] sm:$0xff] %v5741_v3  ;;  %9311 = vst [vmem:[#allocation8_spill] sm:$0xff] %v5744_v4  ;;  %v5777_v11 = vld [vmem:[%s5719_s17 + $0x58] sm:$0xff]  ;;  %v5786_v12 = vld [vmem:[%s5719_s17 + $0x60] sm:$0xff]  ;;  %vm6051_vm8 = vcmp.eq.s32.totalorder %v250_v56, 0 }
  0x16   : > { %9312 = vst [vmem:[#allocation9_spill] sm:$0xff] %v5747_v5  ;;  %334 = vst.msk [vmem:[#allocation2 + $0x20] sm:$0xff] %vm9145_vm0, %v5741_v3  ;;  %v5789_v13 = vld [vmem:[%s5719_s17 + $0x68] sm:$0xff]  ;;  %v5792_v14 = vld [vmem:[%s5719_s17 + $0x70] sm:$0xff] }
  0x17   : > { %337 = vst.msk [vmem:[#allocation2 + $0x38] sm:$0xff] %vm9145_vm0, %v5744_v4  ;;  %338 = vst.msk [vmem:[#allocation2 + $0x40] sm:$0xff] %vm9145_vm0, %v5747_v5  ;;  %v5801_v15 = vld [vmem:[%s5719_s17 + $0x78] sm:$0xff]  ;;  %v5804_v16 = vld [vmem:[%s5719_s17 + $0x80] sm:$0xff] }
  0x18   : > { %9313 = vst [vmem:[#allocation10_spill] sm:$0xff] %v5756_v6  ;;  %9314 = vst [vmem:[#allocation11_spill] sm:$0xff] %v5759_v7  ;;  %v5807_v17 = vld [vmem:[%s5719_s17 + $0x88] sm:$0xff]  ;;  %v5816_v18 = vld [vmem:[%s5719_s17 + $0x90] sm:$0xff] }
  0x19   : > { %9315 = vst [vmem:[#allocation12_spill] sm:$0xff] %v5762_v8  ;;  %339 = vst.msk [vmem:[#allocation2 + $0x48] sm:$0xff] %vm9145_vm0, %v5756_v6  ;;  %v5819_v19 = vld [vmem:[%s5719_s17 + $0x98] sm:$0xff]  ;;  %v5822_v20 = vld [vmem:[%s5719_s17 + $0xa0] sm:$0xff] }
  0x1a   : > { %340 = vst.msk [vmem:[#allocation2 + $0x50] sm:$0xff] %vm9145_vm0, %v5759_v7  ;;  %341 = vst.msk [vmem:[#allocation2 + $0x58] sm:$0xff] %vm9145_vm0, %v5762_v8  ;;  %v5831_v21 = vld [vmem:[%s5719_s17 + $0xa8] sm:$0xff]  ;;  %v5834_v22 = vld [vmem:[%s5719_s17 + $0xb0] sm:$0xff] }
  0x1b   : > { %9316 = vst [vmem:[#allocation13_spill] sm:$0xff] %v5771_v9  ;;  %9317 = vst [vmem:[#allocation14_spill] sm:$0xff] %v5774_v10  ;;  %v5837_v23 = vld [vmem:[%s5719_s17 + $0xb8] sm:$0xff]  ;;  %v401_v24 = vld [vmem:[#allocation2 + $0x8] sm:$0xff] }
  0x1c   : > { %9318 = vst [vmem:[#allocation15_spill] sm:$0xff] %v5777_v11  ;;  %342 = vst.msk [vmem:[#allocation2 + $0x60] sm:$0xff] %vm9145_vm0, %v5771_v9  ;;  %v403_v25 = vld [vmem:[#allocation2 + $0x18] sm:$0xff]  ;;  %593 = vrot.lane.b32.xlu0 %v401_v24, %s5675_s18  ;;  %v402_v26 = vld [vmem:[#allocation2 + $0x10] sm:$0xff]  ;;  %v9369_v9 = vmov 0 }
  0x1d   : > { %343 = vst.msk [vmem:[#allocation2 + $0x68] sm:$0xff] %vm9145_vm0, %v5774_v10  ;;  %344 = vst.msk [vmem:[#allocation2 + $0x70] sm:$0xff] %vm9145_vm0, %v5777_v11  ;;  %597 = vrot.lane.b32.xlu1 %v403_v25, %s5675_s18  ;;  %v404_v27 = vld [vmem:[#allocation2 + $0x20] sm:$0xff]  ;;  %v405_v28 = vld [vmem:[#allocation2 + $0x28] sm:$0xff] }
  0x1e   : > { %9319 = vst [vmem:[#allocation16_spill] sm:$0xff] %v5786_v12  ;;  %9320 = vst [vmem:[#allocation17_spill] sm:$0xff] %v5789_v13  ;;  %v406_v29 = vld [vmem:[#allocation2 + $0x30] sm:$0xff]  ;;  %v407_v30 = vld [vmem:[#allocation2 + $0x38] sm:$0xff] }
  0x1f   : > { %9321 = vst [vmem:[#allocation18_spill] sm:$0xff] %v5792_v14  ;;  %345 = vst.msk [vmem:[#allocation2 + $0x78] sm:$0xff] %vm9145_vm0, %v5786_v12  ;;  %v5850_v31 = vld [vmem:[%s5719_s17 + $0xc0] sm:$0xff]  ;;  %v5857_v33 = vld [vmem:[%s5719_s17 + $0xc8] sm:$0xff] }
  0x20   : > { %346 = vst.msk [vmem:[#allocation2 + $0x80] sm:$0xff] %vm9145_vm0, %v5789_v13  ;;  %347 = vst.msk [vmem:[#allocation2 + $0x88] sm:$0xff] %vm9145_vm0, %v5792_v14  ;;  %595 = vrot.lane.b32.xlu0 %v402_v26, %s5675_s18  ;;  %v408_v32 = vld [vmem:[#allocation2 + $0x40] sm:$0xff]  ;;  %v5860_v34 = vld [vmem:[%s5719_s17 + $0xd0] sm:$0xff]  ;;  %v240_v26 = vand.u32 15, %v208_v51  ;;  %v248_v51 = vand.u32 15, %v216_v59 }
  0x21   : > { %9322 = vst [vmem:[#allocation19_spill] sm:$0xff] %v5801_v15  ;;  %9323 = vst [vmem:[#allocation20_spill] sm:$0xff] %v5804_v16  ;;  %599 = vrot.lane.b32.xlu1 %v404_v27, %s5675_s18  ;;  %v5867_v35 = vld [vmem:[%s5719_s17 + $0xd8] sm:$0xff]  ;;  %v5870_v36 = vld [vmem:[%s5719_s17 + $0xe0] sm:$0xff]  ;;  %v5945_v27 = vadd.s32 144, %v5897_v44  ;;  %v9363_v13 = vmov 0 }
  0x22   : > { %9324 = vst [vmem:[#allocation21_spill] sm:$0xff] %v5807_v17  ;;  %348 = vst.msk [vmem:[#allocation2 + $0x90] sm:$0xff] %vm9145_vm0, %v5801_v15  ;;  %v5873_v37 = vld [vmem:[%s5719_s17 + $0xe8] sm:$0xff]  ;;  %v5889_v40 = vld [vmem:[#allocation2 + $0x1f] sm:$0xff]  ;;  %vm5988_vm3 = vcmp.eq.s32.totalorder %v240_v26, 0  ;;  %vm6030_vm7 = vcmp.eq.s32.totalorder %v248_v51, 0 }
  0x23   : > { %349 = vst.msk [vmem:[#allocation2 + $0x98] sm:$0xff] %vm9145_vm0, %v5804_v16  ;;  %350 = vst.msk [vmem:[#allocation2 + $0xa0] sm:$0xff] %vm9145_vm0, %v5807_v17  ;;  %v5885_v39 = vld [vmem:[#allocation2 + $0xf] sm:$0xff]  ;;  %v5901_v45 = vld [vmem:[#allocation2 + $0x3f] sm:$0xff]  ;;  %v254_v61 = vand.u32 15, %v5945_v27  ;;  %v9357_v16 = vmov 0 }
  0x24   : > { %9325 = vst [vmem:[#allocation22_spill] sm:$0xff] %v5816_v18  ;;  %9326 = vst [vmem:[#allocation23_spill] sm:$0xff] %v5819_v19  ;;  %601 = vrot.lane.b32.xlu0 %v405_v28, %s5675_s18  ;;  %v5895_v41 = vld [vmem:[#allocation2 + $0x2f] sm:$0xff]  ;;  %v5909_v47 = vld [vmem:[#allocation2 + $0x5f] sm:$0xff]  ;;  %v5948_v28 = vadd.s32 160, %v5897_v44  ;;  %v9358_v16 = vsel %vm6051_vm8, 4294967295, %v9357_v16 }
  0x25   : > { %9327 = vst [vmem:[#allocation24_spill] sm:$0xff] %v5822_v20  ;;  %351 = vst.msk [vmem:[#allocation2 + $0xa8] sm:$0xff] %vm9145_vm0, %v5816_v18  ;;  %603 = vrot.lane.b32.xlu1 %v406_v29, %s5675_s18  ;;  %v409_v42 = vld [vmem:[#allocation2 + $0x48] sm:$0xff]  ;;  %v410_v43 = vld [vmem:[#allocation2 + $0x50] sm:$0xff]  ;;  %vm6076_vm10 = vcmp.eq.s32.totalorder %v254_v61, 0 }
  0x26   : > { %352 = vst.msk [vmem:[#allocation2 + $0xb0] sm:$0xff] %vm9145_vm0, %v5819_v19  ;;  %353 = vst.msk [vmem:[#allocation2 + $0xb8] sm:$0xff] %vm9145_vm0, %v5822_v20  ;;  %v5905_v46 = vld [vmem:[#allocation2 + $0x4f] sm:$0xff]  ;;  %v411_v49 = vld [vmem:[#allocation2 + $0x58] sm:$0xff]  ;;  %v9352_v19 = vmov 0  ;;  %v9364_v13 = vsel %vm6076_vm10, 4294967295, %v9363_v13 }
  0x27   : > { %9328 = vst [vmem:[#allocation25_spill] sm:$0xff] %v5831_v21  ;;  %9329 = vst [vmem:[#allocation26_spill] sm:$0xff] %v5834_v22  ;;  %v412_v50 = vld [vmem:[#allocation2 + $0x60] sm:$0xff]  ;;  %v5917_v52 = vld [vmem:[#allocation2 + $0x6f] sm:$0xff]  ;;  %v9353_v19 = vsel %vm6030_vm7, 4294967295, %v9352_v19 }
  0x28   : > { %9330 = vst [vmem:[#allocation27_spill] sm:$0xff] %v5837_v23  ;;  %354 = vst.msk [vmem:[#allocation2 + $0xc0] sm:$0xff] %vm9145_vm0, %v5831_v21  ;;  %605 = vrot.lane.b32.xlu0 %v407_v30, %s5675_s18  ;;  %v5923_v55 = vld [vmem:[#allocation2 + $0x7f] sm:$0xff]  ;;  %v413_v63 = vld [vmem:[#allocation2 + $0x68] sm:$0xff]  ;;  %v9337_v30 = vmov 0 }
  0x29   : > { %355 = vst.msk [vmem:[#allocation2 + $0xc8] sm:$0xff] %vm9145_vm0, %v5834_v22  ;;  %356 = vst.msk [vmem:[#allocation2 + $0xd0] sm:$0xff] %vm9145_vm0, %v5837_v23  ;;  %607 = vrot.lane.b32.xlu1 %v408_v32, %s5675_s18  ;;  %v5932_v60 = vld [vmem:[#allocation2 + $0x8f] sm:$0xff]  ;;  %v9338_v30 = vsel %vm5954_vm1, 4294967295, %v9337_v30  ;;  %v242_v32 = vand.u32 15, %v210_v54  ;;  %v415_v38 = vld [vmem:[#allocation2 + $0x78] sm:$0xff] }
  0x2a   : > { %9331 = vst [vmem:[#allocation28_spill] sm:$0xff] %v5850_v31  ;;  %357 = vst.msk [vmem:[#allocation2 + $0xd8] sm:$0xff] %vm9145_vm0, %v5850_v31  ;;  %v414_v24 = vld [vmem:[#allocation2 + $0x70] sm:$0xff]  ;;  %v5942_v25 = vld [vmem:[#allocation2 + $0x9f] sm:$0xff] }
  0x2b   : > { %9332 = vst [vmem:[#allocation29_spill] sm:$0xff] %v5857_v33  ;;  %9333 = vst [vmem:[#allocation30_spill] sm:$0xff] %v5860_v34  ;;  %v5968_v53 = vld [vmem:[#allocation2 + $0x9] sm:$0xff]  ;;  %vm6007_vm4 = vcmp.eq.s32.totalorder %v242_v32, 0  ;;  %v6049_v51 = vld [vmem:[#allocation2 + $0x37] sm:$0xff] }
  0x2c   : > { %358 = vst.msk [vmem:[#allocation2 + $0xe0] sm:$0xff] %vm9145_vm0, %v5857_v33  ;;  %359 = vst.msk [vmem:[#allocation2 + $0xe8] sm:$0xff] %vm9145_vm0, %v5860_v34  ;;  %609 = vrot.lane.b32.xlu0 %v409_v42, %s5675_s18  ;;  %v416_v42 = vld [vmem:[#allocation2 + $0x80] sm:$0xff]  ;;  %v5994_v34 = vld [vmem:[#allocation2 + $0x29] sm:$0xff] }
  0x2d   : > { %9334 = vst [vmem:[#allocation31_spill] sm:$0xff] %v5867_v35  ;;  %9335 = vst [vmem:[#allocation32_spill] sm:$0xff] %v5870_v36  ;;  %611 = vrot.lane.b32.xlu1 %v410_v43, %s5675_s18  ;;  %v5952_v29 = vld [vmem:[#allocation2 + $0xaf] sm:$0xff]  ;;  %v5996_v33 = vld [vmem:[#allocation2 + $0x39] sm:$0xff] }
  0x2e   : > { %9336 = vst [vmem:[#allocation33_spill] sm:$0xff] %v5873_v37  ;;  %360 = vst.msk [vmem:[#allocation2 + $0xf0] sm:$0xff] %vm9145_vm0, %v5867_v35  ;;  %v417_v31 = vld [vmem:[#allocation2 + $0x88] sm:$0xff]  ;;  %v418_v23 = vld [vmem:[#allocation2 + $0x90] sm:$0xff]  ;;  %v471_v56 = vsel %vm6007_vm4, %v5996_v33, %v6049_v51 }
  0x2f   : > { %361 = vst.msk [vmem:[#allocation2 + $0xf8] sm:$0xff] %vm9145_vm0, %v5870_v36  ;;  %367 = vst.msk [vmem:[#allocation2 + $0x118] sm:$0xff] %vm9145_vm0, %v5870_v36  ;;  %v5960_v43 = vld [vmem:[#allocation2 + $0xbf] sm:$0xff]  ;;  %v252_v36 = vand.u32 15, %v5938_v62  ;;  %v256_v62 = vand.u32 15, %v5948_v28  ;;  %v6011_v22 = vld [vmem:[#allocation2 + $0x49] sm:$0xff] }
  0x30   : > { %362 = vst.msk [vmem:[#allocation2 + $0x100] sm:$0xff] %vm9145_vm0, %v5873_v37  ;;  %368 = vst.msk [vmem:[#allocation2 + $0x120] sm:$0xff] %vm9145_vm0, %v5873_v37  ;;  %613 = vrot.lane.b32.xlu0 %v411_v49, %s5675_s18  ;;  %v244_v49 = vand.u32 15, %v212_v57  ;;  %v5972_v54 = vld [vmem:[#allocation2 + $0xcf] sm:$0xff]  ;;  %v369_v37 = vld [vmem:[#allocation2 + $0x7] sm:$0xff]  ;;  %v226_v57 = vadd.s32 176, %v5897_v44 }
  0x31   : > { %530 = vst.msk [vmem:[#allocation3 + $0x8] sm:$0xff] %vm9145_vm0, %v5885_v39  ;;  %532 = vst.msk [vmem:[#allocation3 + $0x18] sm:$0xff] %vm9145_vm0, %v5889_v40  ;;  %615 = vrot.lane.b32.xlu1 %v412_v50, %s5675_s18  ;;  %v246_v50 = vand.u32 15, %v214_v58  ;;  %v5977_v58 = vld [vmem:[#allocation2 + $0x19] sm:$0xff]  ;;  %v465_v59 = vsel %vm5954_vm1, %v5968_v53, %v369_v37  ;;  %v6015_v21 = vld [vmem:[#allocation2 + $0x69] sm:$0xff]  ;;  %vm6055_vm9 = vcmp.eq.s32.totalorder %v252_v36, 0 }
  0x32   : > { %534 = vst.msk [vmem:[#allocation3 + $0x28] sm:$0xff] %vm9145_vm0, %v5895_v41  ;;  %536 = vst.msk [vmem:[#allocation3 + $0x38] sm:$0xff] %vm9145_vm0, %v5901_v45  ;;  %v258_v28 = vand.u32 15, %v226_v57  ;;  %v6020_v20 = vld [vmem:[#allocation2 + $0x27] sm:$0xff]  ;;  %vm6022_vm5 = vcmp.eq.s32.totalorder %v244_v49, 0  ;;  %v9349_v57 = vmov 0 }
  0x33   : > { %538 = vst.msk [vmem:[#allocation3 + $0x48] sm:$0xff] %vm9145_vm0, %v5905_v46  ;;  %540 = vst.msk [vmem:[#allocation3 + $0x58] sm:$0xff] %vm9145_vm0, %v5909_v47  ;;  %vm6026_vm6 = vcmp.eq.s32.totalorder %v246_v50, 0  ;;  %v6038_v18 = vld [vmem:[#allocation2 + $0x89] sm:$0xff]  ;;  %v469_v49 = vsel %vm5988_vm3, %v5994_v34, %v6020_v20  ;;  %v6072_v36 = vld [vmem:[#allocation2 + $0x57] sm:$0xff]  ;;  %vm6080_vm11 = vcmp.eq.s32.totalorder %v256_v62, 0 }
  0x34   : > { %542 = vst.msk [vmem:[#allocation3 + $0x68] sm:$0xff] %vm9145_vm0, %v5917_v52  ;;  %544 = vst.msk [vmem:[#allocation3 + $0x78] sm:$0xff] %vm9145_vm0, %v5923_v55  ;;  %617 = vrot.lane.b32.xlu0 %v413_v63, %s5675_s18  ;;  %v5984_v63 = vld [vmem:[#allocation2 + $0x17] sm:$0xff]  ;;  %v9350_v57 = vsel %vm6026_vm6, 4294967295, %v9349_v57  ;;  %v6070_v15 = vld [vmem:[#allocation2 + $0x47] sm:$0xff]  ;;  %vm6104_vm12 = vcmp.eq.s32.totalorder %v258_v28, 0 }
  0x35   : > { %546 = vst.msk [vmem:[#allocation3 + $0x88] sm:$0xff] %vm9145_vm0, %v5932_v60  ;;  %548 = vst.msk [vmem:[#allocation3 + $0x98] sm:$0xff] %vm9145_vm0, %v5942_v25  ;;  %619 = vrot.lane.b32.xlu1 %v414_v24, %s5675_s18  ;;  %v5986_v24 = vld [vmem:[#allocation2 + $0xdf] sm:$0xff]  ;;  %v467_v37 = vsel %vm5962_vm2, %v5977_v58, %v5984_v63  ;;  %v6005_v26 = vld [vmem:[#allocation2 + $0xef] sm:$0xff]  ;;  %v473_v12 = vsel %vm6022_vm5, %v6011_v22, %v6070_v15  ;;  %v9370_v9 = vsel %vm6104_vm12, 4294967295, %v9369_v9 }
  0x36   : > { %9339 = vst [vmem:[#allocation34_spill] sm:$0xff] %v9338_v30  ;;  %550 = vst.msk [vmem:[#allocation3 + $0xa8] sm:$0xff] %vm9145_vm0, %v5952_v29  ;;  %v6045_v50 = vld [vmem:[%s5719_s17 + $0xf0] sm:$0xff]  ;;  %v6074_v14 = vld [vmem:[#allocation2 + $0x67] sm:$0xff] }
  0x37   : > { %552 = vst.msk [vmem:[#allocation3 + $0xb8] sm:$0xff] %vm9145_vm0, %v5960_v43  ;;  %554 = vst.msk [vmem:[#allocation3 + $0xc8] sm:$0xff] %vm9145_vm0, %v5972_v54  ;;  %v6047_v17 = vld [vmem:[#allocation2 + $0xff] sm:$0xff]  ;;  %v477_v62 = vsel %vm6030_vm7, %v6015_v21, %v6074_v14  ;;  %v6098_v11 = vld [vmem:[#allocation2 + $0x77] sm:$0xff] }
  0x38   : > { %529 = vst.msk [vmem:[#allocation3] sm:$0xff] %vm9145_vm0, %v465_v59  ;;  %556 = vst.msk [vmem:[#allocation3 + $0xd8] sm:$0xff] %vm9145_vm0, %v5986_v24  ;;  %v6013_v59 = vld [vmem:[#allocation2 + $0x59] sm:$0xff]  ;;  %621 = vrot.lane.b32.xlu0 %v415_v38, %s5675_s18  ;;  %v9360_v38 = vmov 0  ;;  %v6100_v10 = vld [vmem:[#allocation2 + $0x87] sm:$0xff] }
  0x39   : > { %9344 = vst [vmem:[#allocation35_spill] sm:$0xff] %v6005_v26  ;;  %531 = vst.msk [vmem:[#allocation3 + $0x10] sm:$0xff] %vm9145_vm0, %v467_v37  ;;  %623 = vrot.lane.b32.xlu1 %v416_v42, %s5675_s18  ;;  %v6036_v37 = vld [vmem:[#allocation2 + $0x79] sm:$0xff]  ;;  %v9361_v38 = vsel %vm6055_vm9, 4294967295, %v9360_v38  ;;  %v475_v61 = vsel %vm6026_vm6, %v6013_v59, %v6072_v36  ;;  %v6108_v8 = vld [vmem:[#allocation2 + $0xa9] sm:$0xff]  ;;  %v481_v28 = vsel %vm6055_vm9, %v6038_v18, %v6100_v10 }
  0x3a   : > { %558 = vst.msk [vmem:[#allocation3 + $0xe8] sm:$0xff] %vm9145_vm0, %v6005_v26  ;;  %9351 = vst [vmem:[#allocation36_spill] sm:$0xff] %v9350_v57  ;;  %v6059_v42 = vld [vmem:[#allocation2 + $0x99] sm:$0xff]  ;;  %v479_v7 = vsel %vm6051_vm8, %v6036_v37, %v6098_v11  ;;  %v6121_v6 = vld [vmem:[#allocation2 + $0xa7] sm:$0xff] }
  0x3b   : > { %9354 = vst [vmem:[#allocation37_spill] sm:$0xff] %v9353_v19  ;;  %9355 = vst [vmem:[#allocation38_spill] sm:$0xff] %v6045_v50  ;;  %v6123_v5 = vld [vmem:[#allocation2 + $0xb7] sm:$0xff]  ;;  %v420_v2 = vld [vmem:[#allocation2 + $0xa0] sm:$0xff] }
  0x3c   : > { %9356 = vst [vmem:[#allocation39_spill] sm:$0xff] %v6047_v17  ;;  %9359 = vst [vmem:[#allocation40_spill] sm:$0xff] %v9358_v16  ;;  %625 = vrot.lane.b32.xlu0 %v417_v31, %s5675_s18  ;;  %v6139_v31 = vld [vmem:[#allocation2 + $0xc7] sm:$0xff]  ;;  %v6162_v3 = vld [vmem:[#allocation2 + $0xd7] sm:$0xff] }
  0x3d   : > { %9362 = vst [vmem:[#allocation41_spill] sm:$0xff] %v9361_v38  ;;  %533 = vst.msk [vmem:[#allocation3 + $0x20] sm:$0xff] %vm9145_vm0, %v469_v49  ;;  %v9366_v49 = vmov 0  ;;  %627 = vrot.lane.b32.xlu1 %v418_v23, %s5675_s18  ;;  %v419_v23 = vld [vmem:[#allocation2 + $0x98] sm:$0xff]  ;;  %v6148_v0 = vld [vmem:[#allocation2 + $0xc9] sm:$0xff] }
  0x3e   : > { %363 = vst.msk [vmem:[#allocation2 + $0x108] sm:$0xff] %vm9145_vm0, %v6045_v50  ;;  %560 = vst.msk [vmem:[#allocation3 + $0xf8] sm:$0xff] %vm9145_vm0, %v6047_v17  ;;  %v9367_v49 = vsel %vm6080_vm11, 4294967295, %v9366_v49  ;;  %v228_v50 = vadd.s32 192, %v5897_v44  ;;  %v422_v1 = vld [vmem:[#allocation2 + $0xb0] sm:$0xff] }
  0x3f   : > { %9365 = vst [vmem:[#allocation42_spill] sm:$0xff] %v9364_v13  ;;  %9368 = vst [vmem:[#allocation43_spill] sm:$0xff] %v9367_v49  ;;  %v9378_v49 = vmov 0 }
  0x40   : > { %535 = vst.msk [vmem:[#allocation3 + $0x30] sm:$0xff] %vm9145_vm0, %v471_v56  ;;  %v6102_v56 = vld [vmem:[#allocation2 + $0x97] sm:$0xff]  ;;  %9371 = vst [vmem:[#allocation44_spill] sm:$0xff] %v9370_v9  ;;  %v260_v4 = vand.u32 15, %v228_v50  ;;  %v9374_v50 = vmov 0  ;;  %629 = vrot.lane.b32.xlu0 %v419_v23, %s5675_s18 }
  0x41   : > { %537 = vst.msk [vmem:[#allocation3 + $0x40] sm:$0xff] %vm9145_vm0, %v473_v12  ;;  %539 = vst.msk [vmem:[#allocation3 + $0x50] sm:$0xff] %vm9145_vm0, %v475_v61  ;;  %v6127_v12 = vld [vmem:[#allocation2 + $0xb9] sm:$0xff]  ;;  %v483_v61 = vsel %vm6076_vm10, %v6059_v42, %v6102_v56  ;;  %631 = vrot.lane.b32.xlu1 %v420_v2, %s5675_s18 }
  0x42   : > { %541 = vst.msk [vmem:[#allocation3 + $0x60] sm:$0xff] %vm9145_vm0, %v477_v62  ;;  %9372 = vst [vmem:[#allocation45_spill] sm:$0xff] %v6123_v5  ;;  %v485_v62 = vsel %vm6080_vm11, %v6108_v8, %v6121_v6  ;;  %vm6151_vm13 = vcmp.eq.s32.totalorder %v260_v4, 0  ;;  %v421_v4 = vld [vmem:[#allocation2 + $0xa8] sm:$0xff]  ;;  %v6165_v9 = vld [vmem:[#allocation2 + $0xd9] sm:$0xff] }
  0x43   : > { %543 = vst.msk [vmem:[#allocation3 + $0x70] sm:$0xff] %vm9145_vm0, %v479_v7  ;;  %545 = vst.msk [vmem:[#allocation3 + $0x80] sm:$0xff] %vm9145_vm0, %v481_v28  ;;  %v487_v7 = vsel %vm6104_vm12, %v6127_v12, %v6123_v5  ;;  %v230_v28 = vadd.s32 208, %v5897_v44  ;;  %v9375_v50 = vsel %vm6151_vm13, 4294967295, %v9374_v50  ;;  %v426_v5 = vld [vmem:[#allocation2 + $0xd0] sm:$0xff] }
  0x44   : > { %9373 = vst [vmem:[#allocation46_spill] sm:$0xff] %v6139_v31  ;;  %547 = vst.msk [vmem:[#allocation3 + $0x90] sm:$0xff] %vm9145_vm0, %v483_v61  ;;  %v489_v61 = vsel %vm6151_vm13, %v6148_v0, %v6139_v31  ;;  %633 = vrot.lane.b32.xlu0 %v421_v4, %s5675_s18  ;;  %v423_v31 = vld [vmem:[#allocation2 + $0xb8] sm:$0xff] }
  0x45   : > { %549 = vst.msk [vmem:[#allocation3 + $0xa0] sm:$0xff] %vm9145_vm0, %v485_v62  ;;  %551 = vst.msk [vmem:[#allocation3 + $0xb0] sm:$0xff] %vm9145_vm0, %v487_v7  ;;  %v262_v62 = vand.u32 15, %v230_v28  ;;  %v232_v7 = vadd.s32 224, %v5897_v44  ;;  %635 = vrot.lane.b32.xlu1 %v422_v1, %s5675_s18  ;;  %v6178_v28 = vld [vmem:[#allocation2 + $0xe9] sm:$0xff]  ;;  %v6194_v4 = vld [vmem:[#allocation2 + $0xf9] sm:$0xff] }
  0x46   : > { %9376 = vst [vmem:[#allocation47_spill] sm:$0xff] %v9375_v50  ;;  %553 = vst.msk [vmem:[#allocation3 + $0xc0] sm:$0xff] %vm9145_vm0, %v489_v61  ;;  %v9381_v61 = vmov 0  ;;  %v234_v50 = vadd.s32 240, %v5897_v44 }
  0x47   : > { %9377 = vst [vmem:[#allocation48_spill] sm:$0xff] %v6162_v3  ;;  %vm6167_vm14 = vcmp.eq.s32.totalorder %v262_v62, 0  ;;  %v264_v2 = vand.u32 15, %v232_v7  ;;  %v6184_v62 = vld [vmem:[#allocation2 + $0xe7] sm:$0xff] }
  0x48   : > { %v9379_v49 = vsel %vm6167_vm14, 4294967295, %v9378_v49  ;;  %v491_v23 = vsel %vm6167_vm14, %v6165_v9, %v6162_v3  ;;  %9384 = vst [vmem:[#allocation51_spill] sm:$0xff] %v6184_v62  ;;  %v266_v1 = vand.u32 15, %v234_v50  ;;  %637 = vrot.lane.b32.xlu0 %v423_v31, %s5675_s18  ;;  %v425_v3 = vld [vmem:[#allocation2 + $0xc8] sm:$0xff]  ;;  %v428_v31 = vld [vmem:[#allocation2 + $0xe0] sm:$0xff]  ;;  %v205_v50 = vadd.s32 8, %v5897_v44 }
  0x49   : > { %9380 = vst [vmem:[#allocation49_spill] sm:$0xff] %v9379_v49  ;;  %555 = vst.msk [vmem:[#allocation3 + $0xd0] sm:$0xff] %vm9145_vm0, %v491_v23  ;;  %vm6180_vm15 = vcmp.eq.s32.totalorder %v264_v2, 0  ;;  %v424_v49 = vld [vmem:[#allocation2 + $0xc0] sm:$0xff]  ;;  %v9385_v23 = vmov 0  ;;  %v6200_v2 = vld [vmem:[#allocation2 + $0xf7] sm:$0xff] }
  0x4a   : > { %v9382_v61 = vsel %vm6180_vm15, 4294967295, %v9381_v61  ;;  %v493_v7 = vsel %vm6180_vm15, %v6178_v28, %v6184_v62  ;;  %639 = vrot.lane.b32.xlu1 %v424_v49, %s5675_s18  ;;  %vm6196_vm14 = vcmp.eq.s32.totalorder %v266_v1, 0  ;;  %9388 = vst [vmem:[#allocation53_spill] sm:$0xff] %v6200_v2  ;;  %v427_v49 = vld [vmem:[#allocation2 + $0xd8] sm:$0xff]  ;;  %v9390_v62 = vmov 0 }
  0x4b   : > { %9383 = vst [vmem:[#allocation50_spill] sm:$0xff] %v9382_v61  ;;  %557 = vst.msk [vmem:[#allocation3 + $0xe0] sm:$0xff] %vm9145_vm0, %v493_v7  ;;  %v9386_v23 = vsel %vm6196_vm14, 4294967295, %v9385_v23  ;;  %v495_v7 = vsel %vm6196_vm14, %v6194_v4, %v6200_v2  ;;  %v6211_v1 = vld [vmem:[%s5719_s17 + $0xf8] sm:$0xff]  ;;  %v430_v61 = vld [vmem:[#allocation2 + $0xf0] sm:$0xff] }
  0x4c   : > { %9387 = vst [vmem:[#allocation52_spill] sm:$0xff] %v9386_v23  ;;  %559 = vst.msk [vmem:[#allocation3 + $0xf0] sm:$0xff] %vm9145_vm0, %v495_v7  ;;  %641 = vrot.lane.b32.xlu0 %v425_v3, %s5675_s18  ;;  %v429_v23 = vld [vmem:[#allocation2 + $0xe8] sm:$0xff]  ;;  %v237_v7 = vand.u32 15, %v205_v50  ;;  %v207_v3 = vadd.s32 24, %v5897_v44  ;;  %v432_v2 = vld [vmem:[#allocation2 + $0x100] sm:$0xff] }
  0x4d   : > { %9389 = vst [vmem:[#allocation54_spill] sm:$0xff] %v6211_v1  ;;  %364 = vst.msk [vmem:[#allocation2 + $0x110] sm:$0xff] %vm9145_vm0, %v6211_v1  ;;  %v434_v1 = vld [vmem:[#allocation2 + $0x11] sm:$0xff] }
  0x4e   : > { %643 = vrot.lane.b32.xlu1 %v426_v5, %s5675_s18  ;;  %v431_v5 = vld [vmem:[#allocation2 + $0xf8] sm:$0xff]  ;;  %vm6220_vm14 = vcmp.eq.s32.totalorder %v237_v7, 15  ;;  %v239_v13 = vand.u32 15, %v207_v3  ;;  %v211_v7 = vadd.s32 56, %v5897_v44  ;;  %v213_v3 = vadd.s32 72, %v5897_v44 }
  0x4f   : > { %v9391_v62 = vsel %vm6220_vm14, 4294967295, %v9390_v62 }
  0x50   : > { %645 = vrot.lane.b32.xlu0 %v427_v49, %s5675_s18  ;;  %9392 = vst [vmem:[#allocation55_spill] sm:$0xff] %v9391_v62  ;;  %v209_v49 = vadd.s32 40, %v5897_v44  ;;  %vm6230_vm0 = vcmp.eq.s32.totalorder %v239_v13, 15  ;;  %v438_v13 = vld [vmem:[#allocation2 + $0x31] sm:$0xff] }
  0x52   : > { %647 = vrot.lane.b32.xlu1 %v428_v31, %s5675_s18  ;;  %v436_v31 = vld [vmem:[#allocation2 + $0x21] sm:$0xff]  ;;  %v241_v50 = vand.u32 15, %v209_v49 }
  0x53   : > { %v440_v49 = vld [vmem:[#allocation2 + $0x41] sm:$0xff] }
  0x54   : > { %649 = vrot.lane.b32.xlu0 %v429_v23, %s5675_s18  ;;  %v498_v23 = vsel %vm6220_vm14, %v5885_v39, %v434_v1  ;;  %vm6241_vm15 = vcmp.eq.s32.totalorder %v241_v50, 15  ;;  %v9396_v39 = vmov 0  ;;  %v243_v1 = vand.u32 15, %v211_v7 }
  0x55   : > { %v9397_v39 = vsel %vm6241_vm15, 4294967295, %v9396_v39  ;;  %v9402_v7 = vmov 0 }
  0x56   : > { %651 = vrot.lane.b32.xlu1 %v430_v61, %s5675_s18  ;;  %v9393_v61 = vmov 0  ;;  %9398 = vst [vmem:[#allocation57_spill] sm:$0xff] %v9397_v39  ;;  %vm6252_vm14 = vcmp.eq.s32.totalorder %v243_v1, 15  ;;  %v217_v1 = vadd.s32 104, %v5897_v44 }
  0x57   : > { %v9394_v61 = vsel %vm6230_vm0, 4294967295, %v9393_v61  ;;  %v504_v50 = vsel %vm6252_vm14, %v5901_v45, %v440_v49  ;;  %v444_v49 = vld [vmem:[#allocation2 + $0x61] sm:$0xff] }
  0x58   : > { %653 = vrot.lane.b32.xlu0 %v431_v5, %s5675_s18  ;;  %9395 = vst [vmem:[#allocation56_spill] sm:$0xff] %v9394_v61  ;;  %v9399_v5 = vmov 0 }
  0x59   : > { %v9400_v5 = vsel %vm6252_vm14, 4294967295, %v9399_v5 }
  0x5a   : > { %655 = vrot.lane.b32.xlu1 %v432_v2, %s5675_s18  ;;  %v500_v2 = vsel %vm6230_vm0, %v5889_v40, %v436_v31  ;;  %9401 = vst [vmem:[#allocation58_spill] sm:$0xff] %v9400_v5  ;;  %v215_v31 = vadd.s32 88, %v5897_v44  ;;  %v219_v5 = vadd.s32 120, %v5897_v44 }
  0x5c   : > { %754 = vrot.lane.b32.xlu0 %v5968_v53, %s5676_s19  ;;  %v502_v53 = vsel %vm6241_vm15, %v5895_v41, %v438_v13  ;;  %v247_v13 = vand.u32 15, %v215_v31 }
  0x5e   : > { %756 = vrot.lane.b32.xlu1 %v498_v23, %s5676_s19  ;;  %v245_v23 = vand.u32 15, %v213_v3  ;;  %vm6274_vm15 = vcmp.eq.s32.totalorder %v247_v13, 15  ;;  %v251_v13 = vand.u32 15, %v219_v5 }
  0x5f   : > { %v508_v31 = vsel %vm6274_vm15, %v5909_v47, %v444_v49  ;;  %v448_v49 = vld [vmem:[#allocation2 + $0x81] sm:$0xff] }
  0x60   : > { %758 = vrot.lane.b32.xlu0 %v5977_v58, %s5676_s19  ;;  %vm6263_vm0 = vcmp.eq.s32.totalorder %v245_v23, 15  ;;  %v249_v23 = vand.u32 15, %v217_v1 }
  0x61   : > { %v9403_v7 = vsel %vm6263_vm0, 4294967295, %v9402_v7 }
  0x62   : > { %760 = vrot.lane.b32.xlu1 %v500_v2, %s5676_s19  ;;  %9404 = vst [vmem:[#allocation59_spill] sm:$0xff] %v9403_v7  ;;  %v442_v2 = vld [vmem:[#allocation2 + $0x51] sm:$0xff]  ;;  %vm6285_vm14 = vcmp.eq.s32.totalorder %v249_v23, 15  ;;  %v221_v7 = vadd.s32 136, %v5897_v44 }
  0x63   : > { %v506_v3 = vsel %vm6263_vm0, %v5905_v46, %v442_v2  ;;  %v446_v2 = vld [vmem:[#allocation2 + $0x71] sm:$0xff]  ;;  %vm6296_vm0 = vcmp.eq.s32.totalorder %v251_v13, 15 }
  0x64   : > { %762 = vrot.lane.b32.xlu0 %v5994_v34, %s5676_s19  ;;  %v510_v1 = vsel %vm6285_vm14, %v5917_v52, %v446_v2  ;;  %v253_v23 = vand.u32 15, %v221_v7  ;;  %v512_v5 = vsel %vm6296_vm0, %v5923_v55, %v448_v49  ;;  %v450_v2 = vld [vmem:[#allocation2 + $0x91] sm:$0xff]  ;;  %v452_v49 = vld [vmem:[#allocation2 + $0xa1] sm:$0xff] }
  0x66   : > { %764 = vrot.lane.b32.xlu1 %v502_v53, %s5676_s19  ;;  %v9405_v53 = vmov 0 }
  0x67   : > { %v9406_v53 = vsel %vm6274_vm15, 4294967295, %v9405_v53  ;;  %vm6307_vm15 = vcmp.eq.s32.totalorder %v253_v23, 15 }
  0x68   : > { %766 = vrot.lane.b32.xlu0 %v5996_v33, %s5676_s19  ;;  %9407 = vst [vmem:[#allocation60_spill] sm:$0xff] %v9406_v53  ;;  %v223_v53 = vadd.s32 152, %v5897_v44  ;;  %v514_v7 = vsel %vm6307_vm15, %v5932_v60, %v450_v2  ;;  %v454_v2 = vld [vmem:[#allocation2 + $0xb1] sm:$0xff] }
  0x6a   : > { %768 = vrot.lane.b32.xlu1 %v504_v50, %s5676_s19  ;;  %v9408_v50 = vmov 0  ;;  %v255_v13 = vand.u32 15, %v223_v53 }
  0x6b   : > { %v9409_v50 = vsel %vm6285_vm14, 4294967295, %v9408_v50 }
  0x6c   : > { %770 = vrot.lane.b32.xlu0 %v6011_v22, %s5676_s19  ;;  %9410 = vst [vmem:[#allocation61_spill] sm:$0xff] %v9409_v50  ;;  %v225_v50 = vadd.s32 168, %v5897_v44  ;;  %vm6318_vm14 = vcmp.eq.s32.totalorder %v255_v13, 15 }
  0x6d   : > { %v516_v53 = vsel %vm6318_vm14, %v5942_v25, %v452_v49  ;;  %v456_v49 = vld [vmem:[#allocation2 + $0xc1] sm:$0xff] }
  0x6e   : > { %772 = vrot.lane.b32.xlu1 %v506_v3, %s5676_s19  ;;  %v9411_v3 = vmov 0  ;;  %v257_v23 = vand.u32 15, %v225_v50 }
  0x6f   : > { %v9412_v3 = vsel %vm6296_vm0, 4294967295, %v9411_v3 }
  0x70   : > { %774 = vrot.lane.b32.xlu0 %v6013_v59, %s5676_s19  ;;  %9413 = vst [vmem:[#allocation62_spill] sm:$0xff] %v9412_v3  ;;  %v227_v3 = vadd.s32 184, %v5897_v44  ;;  %vm6329_vm0 = vcmp.eq.s32.totalorder %v257_v23, 15 }
  0x71   : > { %v518_v50 = vsel %vm6329_vm0, %v5952_v29, %v454_v2  ;;  %v458_v2 = vld [vmem:[#allocation2 + $0xd1] sm:$0xff] }
  0x72   : > { %776 = vrot.lane.b32.xlu1 %v508_v31, %s5676_s19  ;;  %v9414_v31 = vmov 0  ;;  %v259_v13 = vand.u32 15, %v227_v3 }
  0x73   : > { %v9415_v31 = vsel %vm6307_vm15, 4294967295, %v9414_v31 }
  0x74   : > { %778 = vrot.lane.b32.xlu0 %v6015_v21, %s5676_s19  ;;  %9416 = vst [vmem:[#allocation63_spill] sm:$0xff] %v9415_v31  ;;  %v229_v31 = vadd.s32 200, %v5897_v44  ;;  %vm6340_vm15 = vcmp.eq.s32.totalorder %v259_v13, 15 }
  0x75   : > { %v520_v3 = vsel %vm6340_vm15, %v5960_v43, %v456_v49  ;;  %v460_v49 = vld [vmem:[#allocation2 + $0xe1] sm:$0xff] }
  0x76   : > { %780 = vrot.lane.b32.xlu1 %v510_v1, %s5676_s19  ;;  %v9417_v1 = vmov 0  ;;  %v261_v23 = vand.u32 15, %v229_v31 }
  0x77   : > { %v9418_v1 = vsel %vm6318_vm14, 4294967295, %v9417_v1 }
  0x78   : > { %782 = vrot.lane.b32.xlu0 %v6036_v37, %s5676_s19  ;;  %9419 = vst [vmem:[#allocation64_spill] sm:$0xff] %v9418_v1  ;;  %v231_v1 = vadd.s32 216, %v5897_v44  ;;  %vm6351_vm14 = vcmp.eq.s32.totalorder %v261_v23, 15 }
  0x79   : > { %v522_v31 = vsel %vm6351_vm14, %v5972_v54, %v458_v2 }
  0x7a   : > { %784 = vrot.lane.b32.xlu1 %v512_v5, %s5676_s19  ;;  %v9420_v5 = vmov 0  ;;  %v263_v13 = vand.u32 15, %v231_v1 }
  0x7b   : > { %v9421_v5 = vsel %vm6329_vm0, 4294967295, %v9420_v5 }
  0x7c   : > { %786 = vrot.lane.b32.xlu0 %v6038_v18, %s5676_s19  ;;  %9422 = vst [vmem:[#allocation65_spill] sm:$0xff] %v9421_v5  ;;  %v233_v5 = vadd.s32 232, %v5897_v44  ;;  %vm6362_vm0 = vcmp.eq.s32.totalorder %v263_v13, 15  ;;  %v9432_v13 = vmov 0 }
  0x7d   : > { %v524_v1 = vsel %vm6362_vm0, %v5986_v24, %v460_v49 }
  0x7e   : > { %788 = vrot.lane.b32.xlu1 %v514_v7, %s5676_s19  ;;  %v9423_v7 = vmov 0  ;;  %v265_v23 = vand.u32 15, %v233_v5 }
  0x7f   : > { %v9424_v7 = vsel %vm6340_vm15, 4294967295, %v9423_v7  ;;  %vm9200_vm15 = vcmask 64544  }
  0x80   : > { %790 = vrot.lane.b32.xlu0 %v6059_v42, %s5676_s19  ;;  %9425 = vst [vmem:[#allocation66_spill] sm:$0xff] %v9424_v7  ;;  %v235_v7 = vadd.s32 248, %v5897_v44 }
  0x82   : > { %792 = vrot.lane.b32.xlu1 %v516_v53, %s5676_s19  ;;  %v9426_v53 = vmov 0  ;;  %v267_v5 = vand.u32 15, %v235_v7  ;;  %v464_v7 = vld [vmem:[#allocation2 + $0x101] sm:$0xff] }
  0x83   : > { %v9427_v53 = vsel %vm6351_vm14, 4294967295, %v9426_v53  ;;  %vm6373_vm14 = vcmp.eq.s32.totalorder %v265_v23, 15  ;;  %v9435_v23 = vmov 0 }
  0x84   : > { %794 = vrot.lane.b32.xlu0 %v6108_v8, %s5676_s19  ;;  %9428 = vst [vmem:[#allocation67_spill] sm:$0xff] %v9427_v53  ;;  %v9433_v13 = vsel %vm6373_vm14, 4294967295, %v9432_v13  ;;  %v462_v53 = vld [vmem:[#allocation2 + $0xf1] sm:$0xff] }
  0x85   : > { %9434 = vst [vmem:[#allocation69_spill] sm:$0xff] %v9433_v13  ;;  %v526_v44 = vsel %vm6373_vm14, %v6005_v26, %v462_v53 }
  0x86   : > { %796 = vrot.lane.b32.xlu1 %v518_v50, %s5676_s19  ;;  %v9429_v50 = vmov 0 }
  0x87   : > { %v9430_v50 = vsel %vm6362_vm0, 4294967295, %v9429_v50  ;;  %vm6385_vm0 = vcmp.eq.s32.totalorder %v267_v5, 15 }
  0x88   : > { %798 = vrot.lane.b32.xlu0 %v6127_v12, %s5676_s19  ;;  %9431 = vst [vmem:[#allocation68_spill] sm:$0xff] %v9430_v50  ;;  %v9436_v23 = vsel %vm6385_vm0, 4294967295, %v9435_v23  ;;  %v528_v53 = vsel %vm6385_vm0, %v6047_v17, %v464_v7  ;;  %vm9209_vm0 = vcmask 97344  }
  0x89   : > { %9437 = vst [vmem:[#allocation70_spill] sm:$0xff] %v9436_v23 }
  0x8a   : > { %800 = vrot.lane.b32.xlu1 %v520_v3, %s5676_s19 }
  0x8c   : > { %802 = vrot.lane.b32.xlu0 %v6148_v0, %s5676_s19 }
  0x8e   : > { %804 = vrot.lane.b32.xlu1 %v522_v31, %s5676_s19  ;;  %v594_v3 = vpop.permute.xlu0 %593 }
  0x8f   : > { %v598_v2 = vpop.permute.xlu1 %597  ;;  %690 = vst.msk [vmem:[#allocation3] sm:$0xff] %vm9200_vm15, %v594_v3 }
  0x90   : > { %692 = vst.msk [vmem:[#allocation3 + $0x10] sm:$0xff] %vm9200_vm15, %v598_v2  ;;  %806 = vrot.lane.b32.xlu0 %v6165_v9, %s5676_s19  ;;  %v979_v2 = vsel %vm5954_vm1, %v5977_v58, %v5984_v63  ;;  %v983_v58 = vsel %vm5988_vm3, %v5996_v33, %v6049_v51  ;;  %v987_v33 = vsel %vm6022_vm5, %v6013_v59, %v6072_v36 }
  0x91   : > { %v991_v59 = vsel %vm6030_vm7, %v6036_v37, %v6098_v11  ;;  %v995_v11 = vsel %vm6055_vm9, %v6059_v42, %v6102_v56  ;;  %v9439_v42 = vld [vmem:[#allocation45_spill] sm:$0xff]  ;;  %v9440_v56 = vld [vmem:[#allocation43_spill] sm:$0xff] }
  0x92   : > { %808 = vrot.lane.b32.xlu1 %v524_v1, %s5676_s19  ;;  %v596_v31 = vpop.permute.xlu0 %595 }
  0x93   : > { %v600_v49 = vpop.permute.xlu1 %599  ;;  %691 = vst.msk [vmem:[#allocation3 + $0x8] sm:$0xff] %vm9200_vm15, %v596_v31  ;;  %v981_v31 = vsel %vm5962_vm2, %v5994_v34, %v6020_v20  ;;  %v985_v20 = vsel %vm6007_vm4, %v6011_v22, %v6070_v15  ;;  %v989_v15 = vsel %vm6026_vm6, %v6015_v21, %v6074_v14  ;;  %v993_v14 = vsel %vm6051_vm8, %v6038_v18, %v6100_v10  ;;  %v9438_v10 = vld [vmem:[#allocation42_spill] sm:$0xff] }
  0x94   : > { %693 = vst.msk [vmem:[#allocation3 + $0x18] sm:$0xff] %vm9200_vm15, %v600_v49  ;;  %810 = vrot.lane.b32.xlu0 %v6178_v28, %s5676_s19  ;;  %v997_v18 = vsel %vm6076_vm10, %v6108_v8, %v6121_v6  ;;  %v9441_v6 = vld [vmem:[#allocation46_spill] sm:$0xff]  ;;  %v9442_v8 = vld [vmem:[#allocation44_spill] sm:$0xff]  ;;  %vm9221_vm10 = vcmask 1043456  }
  0x96   : > { %812 = vrot.lane.b32.xlu1 %v526_v44, %s5676_s19  ;;  %v602_v1 = vpop.permute.xlu0 %601 }
  0x97   : > { %v604_v3 = vpop.permute.xlu1 %603  ;;  %694 = vst.msk [vmem:[#allocation3 + $0x20] sm:$0xff] %vm9200_vm15, %v602_v1 }
  0x98   : > { %695 = vst.msk [vmem:[#allocation3 + $0x28] sm:$0xff] %vm9200_vm15, %v604_v3  ;;  %814 = vrot.lane.b32.xlu0 %v6194_v4, %s5676_s19 }
  0x9a   : > { %816 = vrot.lane.b32.xlu1 %v528_v53, %s5676_s19  ;;  %v606_v5 = vpop.permute.xlu0 %605 }
  0x9b   : > { %v608_v44 = vpop.permute.xlu1 %607  ;;  %696 = vst.msk [vmem:[#allocation3 + $0x30] sm:$0xff] %vm9200_vm15, %v606_v5 }
  0x9c   : > { %697 = vst.msk [vmem:[#allocation3 + $0x38] sm:$0xff] %vm9200_vm15, %v608_v44  ;;  %1075 = vrot.lane.b32.xlu0 %v979_v2, %s5677_s20 }
  0x9e   : > { %1077 = vrot.lane.b32.xlu1 %v5889_v40, %s5677_s20  ;;  %v610_v49 = vpop.permute.xlu0 %609 }
  0x9f   : > { %v612_v7 = vpop.permute.xlu1 %611  ;;  %698 = vst.msk [vmem:[#allocation3 + $0x40] sm:$0xff] %vm9200_vm15, %v610_v49 }
  0xa0   : > { %699 = vst.msk [vmem:[#allocation3 + $0x48] sm:$0xff] %vm9200_vm15, %v612_v7  ;;  %1079 = vrot.lane.b32.xlu0 %v981_v31, %s5677_s20 }
  0xa2   : > { %1081 = vrot.lane.b32.xlu1 %v5895_v41, %s5677_s20  ;;  %v614_v63 = vpop.permute.xlu0 %613 }
  0xa3   : > { %v616_v53 = vpop.permute.xlu1 %615  ;;  %700 = vst.msk [vmem:[#allocation3 + $0x50] sm:$0xff] %vm9200_vm15, %v614_v63 }
  0xa4   : > { %701 = vst.msk [vmem:[#allocation3 + $0x58] sm:$0xff] %vm9200_vm15, %v616_v53  ;;  %1083 = vrot.lane.b32.xlu0 %v983_v58, %s5677_s20  ;;  %v999_v58 = vsel %vm6080_vm11, %v6127_v12, %v9439_v42  ;;  %v9443_v12 = vld [vmem:[#allocation48_spill] sm:$0xff]  ;;  %v916_v42 = vld [vmem:[#allocation2 + $0x20] sm:$0xff] }
  0xa6   : > { %1085 = vrot.lane.b32.xlu1 %v5901_v45, %s5677_s20  ;;  %v618_v34 = vpop.permute.xlu0 %617 }
  0xa7   : > { %v620_v1 = vpop.permute.xlu1 %619  ;;  %702 = vst.msk [vmem:[#allocation3 + $0x60] sm:$0xff] %vm9200_vm15, %v618_v34 }
  0xa8   : > { %703 = vst.msk [vmem:[#allocation3 + $0x68] sm:$0xff] %vm9200_vm15, %v620_v1  ;;  %1087 = vrot.lane.b32.xlu0 %v985_v20, %s5677_s20  ;;  %v1001_v20 = vsel %vm6104_vm12, %v6148_v0, %v9441_v6  ;;  %v9445_v0 = vld [vmem:[#allocation51_spill] sm:$0xff]  ;;  %v6549_v6 = vld [vmem:[#allocation2 + $0x30] sm:$0xff] }
  0xaa   : > { %1089 = vrot.lane.b32.xlu1 %v5905_v46, %s5677_s20  ;;  %v622_v51 = vpop.permute.xlu0 %621 }
  0xab   : > { %v624_v3 = vpop.permute.xlu1 %623  ;;  %704 = vst.msk [vmem:[#allocation3 + $0x70] sm:$0xff] %vm9200_vm15, %v622_v51  ;;  %v1003_v51 = vsel %vm6151_vm13, %v6165_v9, %v9443_v12  ;;  %v9448_v9 = vld [vmem:[#allocation53_spill] sm:$0xff]  ;;  %v6559_v12 = vld [vmem:[#allocation2 + $0x40] sm:$0xff]  ;;  %vm9456_vm13 = vnez %v9397_v39 }
  0xac   : > { %705 = vst.msk [vmem:[#allocation3 + $0x78] sm:$0xff] %vm9200_vm15, %v624_v3  ;;  %1091 = vrot.lane.b32.xlu0 %v987_v33, %s5677_s20  ;;  %v9444_v33 = vld [vmem:[#allocation47_spill] sm:$0xff] }
  0xae   : > { %1093 = vrot.lane.b32.xlu1 %v5909_v47, %s5677_s20  ;;  %v626_v22 = vpop.permute.xlu0 %625 }
  0xaf   : > { %v628_v2 = vpop.permute.xlu1 %627  ;;  %706 = vst.msk [vmem:[#allocation3 + $0x80] sm:$0xff] %vm9200_vm15, %v626_v22  ;;  %v9446_v22 = vld [vmem:[#allocation49_spill] sm:$0xff] }
  0xb0   : > { %707 = vst.msk [vmem:[#allocation3 + $0x88] sm:$0xff] %vm9200_vm15, %v628_v2  ;;  %1095 = vrot.lane.b32.xlu0 %v989_v15, %s5677_s20  ;;  %vm9447_vm14 = vnez %v9446_v22 }
  0xb1   : > { %v1005_v2 = vsel %vm9447_vm14, %v6178_v28, %v9445_v0  ;;  %v977_v28 = vld [vmem:[#allocation2 + $0x109] sm:$0xff] }
  0xb2   : > { %1097 = vrot.lane.b32.xlu1 %v5917_v52, %s5677_s20  ;;  %v630_v36 = vpop.permute.xlu0 %629  ;;  %v6569_v0 = vld [vmem:[#allocation2 + $0x50] sm:$0xff] }
  0xb3   : > { %v632_v5 = vpop.permute.xlu1 %631  ;;  %708 = vst.msk [vmem:[#allocation3 + $0x90] sm:$0xff] %vm9200_vm15, %v630_v36 }
  0xb4   : > { %709 = vst.msk [vmem:[#allocation3 + $0x98] sm:$0xff] %vm9200_vm15, %v632_v5  ;;  %1099 = vrot.lane.b32.xlu0 %v991_v59, %s5677_s20  ;;  %v9449_v5 = vld [vmem:[#allocation50_spill] sm:$0xff] }
  0xb6   : > { %1101 = vrot.lane.b32.xlu1 %v5923_v55, %s5677_s20  ;;  %v634_v21 = vpop.permute.xlu0 %633 }
  0xb7   : > { %v636_v44 = vpop.permute.xlu1 %635  ;;  %710 = vst.msk [vmem:[#allocation3 + $0xa0] sm:$0xff] %vm9200_vm15, %v634_v21 }
  0xb8   : > { %711 = vst.msk [vmem:[#allocation3 + $0xa8] sm:$0xff] %vm9200_vm15, %v636_v44  ;;  %1103 = vrot.lane.b32.xlu0 %v993_v14, %s5677_s20 }
  0xba   : > { %1105 = vrot.lane.b32.xlu1 %v5932_v60, %s5677_s20  ;;  %v638_v37 = vpop.permute.xlu0 %637 }
  0xbb   : > { %712 = vst.msk [vmem:[#allocation3 + $0xb0] sm:$0xff] %vm9200_vm15, %v638_v37  ;;  %v9451_v37 = vld [vmem:[#allocation52_spill] sm:$0xff] }
  0xbc   : > { %v640_v31 = vpop.permute.xlu1 %639  ;;  %1107 = vrot.lane.b32.xlu0 %v995_v11, %s5677_s20  ;;  %v913_v11 = vld [vmem:[#allocation2 + $0x107] sm:$0xff]  ;;  %vm9452_vm14 = vnez %v9451_v37 }
  0xbd   : > { %713 = vst.msk [vmem:[#allocation3 + $0xb8] sm:$0xff] %vm9200_vm15, %v640_v31  ;;  %v1009_v31 = vsel %vm9452_vm14, %v977_v28, %v913_v11  ;;  %v6589_v11 = vld [vmem:[#allocation2 + $0x70] sm:$0xff]  ;;  %vm9222_vm14 = vcmask 130144  }
  0xbe   : > { %1109 = vrot.lane.b32.xlu1 %v5942_v25, %s5677_s20  ;;  %v642_v49 = vpop.permute.xlu0 %641 }
  0xbf   : > { %714 = vst.msk [vmem:[#allocation3 + $0xc0] sm:$0xff] %vm9200_vm15, %v642_v49 }
  0xc0   : > { %v644_v7 = vpop.permute.xlu1 %643  ;;  %1111 = vrot.lane.b32.xlu0 %v997_v18, %s5677_s20  ;;  %v914_v18 = vld [vmem:[#allocation2 + $0x10f] sm:$0xff] }
  0xc1   : > { %715 = vst.msk [vmem:[#allocation3 + $0xc8] sm:$0xff] %vm9200_vm15, %v644_v7 }
  0xc2   : > { %1113 = vrot.lane.b32.xlu1 %v5952_v29, %s5677_s20  ;;  %v646_v63 = vpop.permute.xlu0 %645 }
  0xc3   : > { %716 = vst.msk [vmem:[#allocation3 + $0xd0] sm:$0xff] %vm9200_vm15, %v646_v63 }
  0xc4   : > { %v648_v53 = vpop.permute.xlu1 %647  ;;  %1115 = vrot.lane.b32.xlu0 %v999_v58, %s5677_s20 }
  0xc5   : > { %717 = vst.msk [vmem:[#allocation3 + $0xd8] sm:$0xff] %vm9200_vm15, %v648_v53  ;;  %v6547_v53 = vld [vmem:[#allocation2 + $0x28] sm:$0xff] }
  0xc6   : > { %1117 = vrot.lane.b32.xlu1 %v5960_v43, %s5677_s20  ;;  %v650_v34 = vpop.permute.xlu0 %649 }
  0xc7   : > { %718 = vst.msk [vmem:[#allocation3 + $0xe0] sm:$0xff] %vm9200_vm15, %v650_v34 }
  0xc8   : > { %v652_v1 = vpop.permute.xlu1 %651  ;;  %1119 = vrot.lane.b32.xlu0 %v1001_v20, %s5677_s20 }
  0xc9   : > { %719 = vst.msk [vmem:[#allocation3 + $0xe8] sm:$0xff] %vm9200_vm15, %v652_v1  ;;  %v6557_v1 = vld [vmem:[#allocation2 + $0x38] sm:$0xff] }
  0xca   : > { %1121 = vrot.lane.b32.xlu1 %v5972_v54, %s5677_s20  ;;  %v654_v3 = vpop.permute.xlu0 %653 }
  0xcb   : > { %720 = vst.msk [vmem:[#allocation3 + $0xf0] sm:$0xff] %vm9200_vm15, %v654_v3 }
  0xcc   : > { %v656_v15 = vpop.permute.xlu1 %655  ;;  %1123 = vrot.lane.b32.xlu0 %v1003_v51, %s5677_s20 }
  0xcd   : > { %721 = vst.msk [vmem:[#allocation3 + $0xf8] sm:$0xff] %vm9200_vm15, %v656_v15  ;;  %vm9450_vm15 = vnez %v9449_v5  ;;  %v6567_v15 = vld [vmem:[#allocation2 + $0x48] sm:$0xff] }
  0xce   : > { %1125 = vrot.lane.b32.xlu1 %v5986_v24, %s5677_s20  ;;  %v755_v59 = vpop.permute.xlu0 %754  ;;  %v1007_v14 = vsel %vm9450_vm15, %v6194_v4, %v9448_v9  ;;  %v915_v4 = vld [vmem:[#allocation2 + $0x18] sm:$0xff]  ;;  %v6579_v9 = vld [vmem:[#allocation2 + $0x60] sm:$0xff]  ;;  %vm9455_vm15 = vnez %v9394_v61 }
  0xcf   : > { %851 = vst.msk [vmem:[#allocation3] sm:$0xff] %vm9209_vm0, %v755_v59 }
  0xd0   : > { %v757_v36 = vpop.permute.xlu1 %756  ;;  %1127 = vrot.lane.b32.xlu0 %v1005_v2, %s5677_s20 }
  0xd1   : > { %852 = vst.msk [vmem:[#allocation3 + $0x8] sm:$0xff] %vm9209_vm0, %v757_v36  ;;  %v6577_v36 = vld [vmem:[#allocation2 + $0x58] sm:$0xff] }
  0xd2   : > { %1129 = vrot.lane.b32.xlu1 %v6005_v26, %s5677_s20  ;;  %v759_v21 = vpop.permute.xlu0 %758  ;;  %v948_v26 = vld [vmem:[#allocation2 + $0x21] sm:$0xff] }
  0xd3   : > { %853 = vst.msk [vmem:[#allocation3 + $0x10] sm:$0xff] %vm9209_vm0, %v759_v21 }
  0xd4   : > { %v761_v44 = vpop.permute.xlu1 %760  ;;  %1131 = vrot.lane.b32.xlu0 %v1007_v14, %s5677_s20 }
  0xd5   : > { %854 = vst.msk [vmem:[#allocation3 + $0x18] sm:$0xff] %vm9209_vm0, %v761_v44  ;;  %v6587_v44 = vld [vmem:[#allocation2 + $0x68] sm:$0xff] }
  0xd6   : > { %1133 = vrot.lane.b32.xlu1 %v6047_v17, %s5677_s20  ;;  %v763_v49 = vpop.permute.xlu0 %762 }
  0xd7   : > { %855 = vst.msk [vmem:[#allocation3 + $0x20] sm:$0xff] %vm9209_vm0, %v763_v49  ;;  %v6599_v49 = vld [vmem:[#allocation2 + $0x80] sm:$0xff] }
  0xd8   : > { %v765_v7 = vpop.permute.xlu1 %764  ;;  %1135 = vrot.lane.b32.xlu0 %v1009_v31, %s5677_s20 }
  0xd9   : > { %856 = vst.msk [vmem:[#allocation3 + $0x28] sm:$0xff] %vm9209_vm0, %v765_v7 }
  0xda   : > { %1137 = vrot.lane.b32.xlu1 %v914_v18, %s5677_s20  ;;  %v767_v58 = vpop.permute.xlu0 %766  ;;  %v6597_v18 = vld [vmem:[#allocation2 + $0x78] sm:$0xff] }
  0xdb   : > { %857 = vst.msk [vmem:[#allocation3 + $0x30] sm:$0xff] %vm9209_vm0, %v767_v58  ;;  %v6609_v58 = vld [vmem:[#allocation2 + $0x90] sm:$0xff] }
  0xdc   : > { %v769_v63 = vpop.permute.xlu1 %768  ;;  %1236 = vrot.lane.b32.xlu0 %v915_v4, %s5678_s21 }
  0xdd   : > { %858 = vst.msk [vmem:[#allocation3 + $0x38] sm:$0xff] %vm9209_vm0, %v769_v63 }
  0xde   : > { %1238 = vrot.lane.b32.xlu1 %v916_v42, %s5678_s21  ;;  %v771_v20 = vpop.permute.xlu0 %770  ;;  %v6607_v42 = vld [vmem:[#allocation2 + $0x88] sm:$0xff] }
  0xdf   : > { %859 = vst.msk [vmem:[#allocation3 + $0x40] sm:$0xff] %vm9209_vm0, %v771_v20 }
  0xe0   : > { %v773_v34 = vpop.permute.xlu1 %772  ;;  %1240 = vrot.lane.b32.xlu0 %v6547_v53, %s5678_s21 }
  0xe1   : > { %860 = vst.msk [vmem:[#allocation3 + $0x48] sm:$0xff] %vm9209_vm0, %v773_v34  ;;  %v6617_v34 = vld [vmem:[#allocation2 + $0x98] sm:$0xff] }
  0xe2   : > { %1242 = vrot.lane.b32.xlu1 %v6549_v6, %s5678_s21  ;;  %v775_v51 = vpop.permute.xlu0 %774 }
  0xe3   : > { %861 = vst.msk [vmem:[#allocation3 + $0x50] sm:$0xff] %vm9209_vm0, %v775_v51  ;;  %v6619_v51 = vld [vmem:[#allocation2 + $0xa0] sm:$0xff] }
  0xe4   : > { %v777_v3 = vpop.permute.xlu1 %776  ;;  %1244 = vrot.lane.b32.xlu0 %v6557_v1, %s5678_s21 }
  0xe5   : > { %862 = vst.msk [vmem:[#allocation3 + $0x58] sm:$0xff] %vm9209_vm0, %v777_v3 }
  0xe6   : > { %1246 = vrot.lane.b32.xlu1 %v6559_v12, %s5678_s21  ;;  %v779_v2 = vpop.permute.xlu0 %778 }
  0xe7   : > { %863 = vst.msk [vmem:[#allocation3 + $0x60] sm:$0xff] %vm9209_vm0, %v779_v2 }
  0xe8   : > { %v781_v59 = vpop.permute.xlu1 %780  ;;  %1248 = vrot.lane.b32.xlu0 %v6567_v15, %s5678_s21 }
  0xe9   : > { %864 = vst.msk [vmem:[#allocation3 + $0x68] sm:$0xff] %vm9209_vm0, %v781_v59  ;;  %v6627_v59 = vld [vmem:[#allocation2 + $0xa8] sm:$0xff] }
  0xea   : > { %1250 = vrot.lane.b32.xlu1 %v6569_v0, %s5678_s21  ;;  %v783_v14 = vpop.permute.xlu0 %782 }
  0xeb   : > { %865 = vst.msk [vmem:[#allocation3 + $0x70] sm:$0xff] %vm9209_vm0, %v783_v14  ;;  %v6629_v14 = vld [vmem:[#allocation2 + $0xb0] sm:$0xff] }
  0xec   : > { %v785_v21 = vpop.permute.xlu1 %784  ;;  %1252 = vrot.lane.b32.xlu0 %v6577_v36, %s5678_s21 }
  0xed   : > { %866 = vst.msk [vmem:[#allocation3 + $0x78] sm:$0xff] %vm9209_vm0, %v785_v21 }
  0xee   : > { %1254 = vrot.lane.b32.xlu1 %v6579_v9, %s5678_s21  ;;  %v787_v28 = vpop.permute.xlu0 %786 }
  0xef   : > { %867 = vst.msk [vmem:[#allocation3 + $0x80] sm:$0xff] %vm9209_vm0, %v787_v28 }
  0xf0   : > { %v789_v31 = vpop.permute.xlu1 %788  ;;  %1256 = vrot.lane.b32.xlu0 %v6587_v44, %s5678_s21 }
  0xf1   : > { %868 = vst.msk [vmem:[#allocation3 + $0x88] sm:$0xff] %vm9209_vm0, %v789_v31  ;;  %v6637_v31 = vld [vmem:[#allocation2 + $0xb8] sm:$0xff] }
  0xf2   : > { %1258 = vrot.lane.b32.xlu1 %v6589_v11, %s5678_s21  ;;  %v791_v7 = vpop.permute.xlu0 %790 }
  0xf3   : > { %869 = vst.msk [vmem:[#allocation3 + $0x90] sm:$0xff] %vm9209_vm0, %v791_v7  ;;  %v6639_v7 = vld [vmem:[#allocation2 + $0xc0] sm:$0xff] }
  0xf4   : > { %v793_v4 = vpop.permute.xlu1 %792  ;;  %1260 = vrot.lane.b32.xlu0 %v6597_v18, %s5678_s21 }
  0xf5   : > { %870 = vst.msk [vmem:[#allocation3 + $0x98] sm:$0xff] %vm9209_vm0, %v793_v4 }
  0xf6   : > { %1262 = vrot.lane.b32.xlu1 %v6599_v49, %s5678_s21  ;;  %v795_v63 = vpop.permute.xlu0 %794 }
  0xf7   : > { %871 = vst.msk [vmem:[#allocation3 + $0xa0] sm:$0xff] %vm9209_vm0, %v795_v63 }
  0xf8   : > { %v797_v20 = vpop.permute.xlu1 %796  ;;  %1264 = vrot.lane.b32.xlu0 %v6607_v42, %s5678_s21 }
  0xf9   : > { %872 = vst.msk [vmem:[#allocation3 + $0xa8] sm:$0xff] %vm9209_vm0, %v797_v20  ;;  %v6647_v20 = vld [vmem:[#allocation2 + $0xc8] sm:$0xff] }
  0xfa   : > { %1266 = vrot.lane.b32.xlu1 %v6609_v58, %s5678_s21  ;;  %v799_v3 = vpop.permute.xlu0 %798 }
  0xfb   : > { %873 = vst.msk [vmem:[#allocation3 + $0xb0] sm:$0xff] %vm9209_vm0, %v799_v3  ;;  %v6649_v3 = vld [vmem:[#allocation2 + $0xd0] sm:$0xff] }
  0xfc   : > { %v801_v2 = vpop.permute.xlu1 %800  ;;  %1268 = vrot.lane.b32.xlu0 %v6617_v34, %s5678_s21 }
  0xfd   : > { %874 = vst.msk [vmem:[#allocation3 + $0xb8] sm:$0xff] %vm9209_vm0, %v801_v2 }
  0xfe   : > { %1270 = vrot.lane.b32.xlu1 %v6619_v51, %s5678_s21  ;;  %v803_v21 = vpop.permute.xlu0 %802 }
  0xff   : > { %875 = vst.msk [vmem:[#allocation3 + $0xc0] sm:$0xff] %vm9209_vm0, %v803_v21 }
 0x100   : > { %v805_v28 = vpop.permute.xlu1 %804  ;;  %1272 = vrot.lane.b32.xlu0 %v6627_v59, %s5678_s21 }
 0x101   : > { %876 = vst.msk [vmem:[#allocation3 + $0xc8] sm:$0xff] %vm9209_vm0, %v805_v28  ;;  %v6657_v28 = vld [vmem:[#allocation2 + $0xd8] sm:$0xff] }
 0x102   : > { %1274 = vrot.lane.b32.xlu1 %v6629_v14, %s5678_s21  ;;  %v807_v4 = vpop.permute.xlu0 %806 }
 0x103   : > { %877 = vst.msk [vmem:[#allocation3 + $0xd0] sm:$0xff] %vm9209_vm0, %v807_v4  ;;  %v6659_v4 = vld [vmem:[#allocation2 + $0xe0] sm:$0xff] }
 0x104   : > { %v809_v63 = vpop.permute.xlu1 %808  ;;  %1276 = vrot.lane.b32.xlu0 %v6637_v31, %s5678_s21 }
 0x105   : > { %878 = vst.msk [vmem:[#allocation3 + $0xd8] sm:$0xff] %vm9209_vm0, %v809_v63 }
 0x106   : > { %1278 = vrot.lane.b32.xlu1 %v6639_v7, %s5678_s21  ;;  %v811_v2 = vpop.permute.xlu0 %810 }
 0x107   : > { %879 = vst.msk [vmem:[#allocation3 + $0xe0] sm:$0xff] %vm9209_vm0, %v811_v2  ;;  %v6667_v2 = vld [vmem:[#allocation2 + $0xe8] sm:$0xff] }
 0x108   : > { %v813_v21 = vpop.permute.xlu1 %812  ;;  %1280 = vrot.lane.b32.xlu0 %v6647_v20, %s5678_s21 }
 0x109   : > { %880 = vst.msk [vmem:[#allocation3 + $0xe8] sm:$0xff] %vm9209_vm0, %v813_v21  ;;  %v6669_v21 = vld [vmem:[#allocation2 + $0xf0] sm:$0xff] }
 0x10a   : > { %1282 = vrot.lane.b32.xlu1 %v6649_v3, %s5678_s21  ;;  %v815_v63 = vpop.permute.xlu0 %814  ;;  %9453 = vst [vmem:[#allocation45_spill] sm:$0xff] %v6669_v21 }
 0x10b   : > { %881 = vst.msk [vmem:[#allocation3 + $0xf0] sm:$0xff] %vm9209_vm0, %v815_v63  ;;  %v944_v63 = vld [vmem:[#allocation2 + $0x100] sm:$0xff] }
 0x10c   : > { %v817_v37 = vpop.permute.xlu1 %816  ;;  %1284 = vrot.lane.b32.xlu0 %v6657_v28, %s5678_s21 }
 0x10d   : > { %882 = vst.msk [vmem:[#allocation3 + $0xf8] sm:$0xff] %vm9209_vm0, %v817_v37  ;;  %v943_v37 = vld [vmem:[#allocation2 + $0xf8] sm:$0xff]  ;;  %vm9454_vm0 = vnez %v9391_v62 }
 0x10e   : > { %1286 = vrot.lane.b32.xlu1 %v6659_v4, %s5678_s21  ;;  %v1076_v23 = vpop.permute.xlu0 %1075 }
 0x10f   : > { %1172 = vst.msk [vmem:[#allocation3] sm:$0xff] %vm9222_vm14, %v1076_v23  ;;  %v945_v23 = vld [vmem:[#allocation2 + $0x108] sm:$0xff] }
 0x110   : > { %v1078_v5 = vpop.permute.xlu1 %1077  ;;  %1288 = vrot.lane.b32.xlu0 %v6667_v2, %s5678_s21 }
 0x111   : > { %1173 = vst.msk [vmem:[#allocation3 + $0x8] sm:$0xff] %vm9222_vm14, %v1078_v5  ;;  %v946_v5 = vld [vmem:[#allocation2 + $0x110] sm:$0xff] }
 0x112   : > { %1290 = vrot.lane.b32.xlu1 %v6669_v21, %s5678_s21  ;;  %v1080_v13 = vpop.permute.xlu0 %1079  ;;  %v5642_v21 = vld [vmem:[#allocation2 + $0x19] sm:$0xff] }
 0x113   : > { %1174 = vst.msk [vmem:[#allocation3 + $0x10] sm:$0xff] %vm9222_vm14, %v1080_v13 }
 0x114   : > { %v1082_v17 = vpop.permute.xlu1 %1081  ;;  %1292 = vrot.lane.b32.xlu0 %v943_v37, %s5678_s21 }
 0x115   : > { %1175 = vst.msk [vmem:[#allocation3 + $0x18] sm:$0xff] %vm9222_vm14, %v1082_v17  ;;  %v1012_v17 = vsel %vm9454_vm0, %v5889_v40, %v948_v26 }
 0x116   : > { %1294 = vrot.lane.b32.xlu1 %v944_v63, %s5678_s21  ;;  %v1084_v22 = vpop.permute.xlu0 %1083  ;;  %v6688_v63 = vld [vmem:[#allocation2 + $0x31] sm:$0xff] }
 0x117   : > { %1176 = vst.msk [vmem:[#allocation3 + $0x20] sm:$0xff] %vm9222_vm14, %v1084_v22  ;;  %v6698_v22 = vld [vmem:[#allocation2 + $0x41] sm:$0xff] }
 0x118   : > { %v1086_v50 = vpop.permute.xlu1 %1085  ;;  %1296 = vrot.lane.b32.xlu0 %v945_v23, %s5678_s21  ;;  %v5643_v23 = vld [vmem:[#allocation2 + $0x29] sm:$0xff] }
 0x119   : > { %1177 = vst.msk [vmem:[#allocation3 + $0x28] sm:$0xff] %vm9222_vm14, %v1086_v50  ;;  %v1014_v50 = vsel %vm9455_vm15, %v5895_v41, %v6688_v63 }
 0x11a   : > { %1298 = vrot.lane.b32.xlu1 %v946_v5, %s5678_s21  ;;  %v1088_v13 = vpop.permute.xlu0 %1087 }
 0x11b   : > { %1178 = vst.msk [vmem:[#allocation3 + $0x30] sm:$0xff] %vm9222_vm14, %v1088_v13  ;;  %v5644_v13 = vld [vmem:[#allocation2 + $0x39] sm:$0xff] }
 0x11c   : > { %v1090_v37 = vpop.permute.xlu1 %1089  ;;  %1397 = vrot.lane.b32.xlu0 %v5642_v21, %s5679_s22  ;;  %v1016_v21 = vsel %vm9456_vm13, %v5901_v45, %v6698_v22 }
 0x11d   : > { %1179 = vst.msk [vmem:[#allocation3 + $0x38] sm:$0xff] %vm9222_vm14, %v1090_v37  ;;  %v9457_v37 = vld [vmem:[#allocation58_spill] sm:$0xff] }
 0x11e   : > { %1399 = vrot.lane.b32.xlu1 %v1012_v17, %s5679_s22  ;;  %v1092_v40 = vpop.permute.xlu0 %1091  ;;  %v6708_v17 = vld [vmem:[#allocation2 + $0x51] sm:$0xff]  ;;  %vm9458_vm12 = vnez %v9457_v37 }
 0x11f   : > { %1180 = vst.msk [vmem:[#allocation3 + $0x40] sm:$0xff] %vm9222_vm14, %v1092_v40 }
 0x120   : > { %v1094_v26 = vpop.permute.xlu1 %1093  ;;  %1401 = vrot.lane.b32.xlu0 %v5643_v23, %s5679_s22  ;;  %v5645_v23 = vld [vmem:[#allocation2 + $0x49] sm:$0xff] }
 0x121   : > { %1181 = vst.msk [vmem:[#allocation3 + $0x48] sm:$0xff] %vm9222_vm14, %v1094_v26  ;;  %v6718_v26 = vld [vmem:[#allocation2 + $0x61] sm:$0xff] }
 0x122   : > { %1403 = vrot.lane.b32.xlu1 %v1014_v50, %s5679_s22  ;;  %v1096_v5 = vpop.permute.xlu0 %1095  ;;  %v1018_v50 = vsel %vm9458_vm12, %v5905_v46, %v6708_v17 }
 0x123   : > { %1182 = vst.msk [vmem:[#allocation3 + $0x50] sm:$0xff] %vm9222_vm14, %v1096_v5 }
 0x124   : > { %v1098_v41 = vpop.permute.xlu1 %1097  ;;  %1405 = vrot.lane.b32.xlu0 %v5644_v13, %s5679_s22  ;;  %v1590_v13 = vld [vmem:[#allocation2 + $0x29] sm:$0xff] }
 0x125   : > { %1183 = vst.msk [vmem:[#allocation3 + $0x58] sm:$0xff] %vm9222_vm14, %v1098_v41 }
 0x126   : > { %1407 = vrot.lane.b32.xlu1 %v1016_v21, %s5679_s22  ;;  %v1100_v40 = vpop.permute.xlu0 %1099  ;;  %v9459_v21 = vld [vmem:[#allocation59_spill] sm:$0xff] }
 0x127   : > { %1184 = vst.msk [vmem:[#allocation3 + $0x60] sm:$0xff] %vm9222_vm14, %v1100_v40  ;;  %vm9460_vm11 = vnez %v9459_v21  ;;  %v5646_v40 = vld [vmem:[#allocation2 + $0x59] sm:$0xff] }
 0x128   : > { %v1102_v45 = vpop.permute.xlu1 %1101  ;;  %1409 = vrot.lane.b32.xlu0 %v5645_v23, %s5679_s22  ;;  %v1020_v5 = vsel %vm9460_vm11, %v5909_v47, %v6718_v26 }
 0x129   : > { %1185 = vst.msk [vmem:[#allocation3 + $0x68] sm:$0xff] %vm9222_vm14, %v1102_v45  ;;  %v5647_v45 = vld [vmem:[#allocation2 + $0x27] sm:$0xff] }
 0x12a   : > { %1411 = vrot.lane.b32.xlu1 %v1018_v50, %s5679_s22  ;;  %v1104_v41 = vpop.permute.xlu0 %1103  ;;  %v2205_v50 = vld [vmem:[%s9087_s1 + $0x20] sm:$0xf]  ;;  %v1622_v47 = vsel %vm5954_vm1, %v1590_v13, %v5647_v45 }
 0x12b   : > { %1186 = vst.msk [vmem:[#allocation3 + $0x70] sm:$0xff] %vm9222_vm14, %v1104_v41  ;;  %5506 = vmatprep.subr.msk.mxu0 %vm9221_vm10, %v2205_v50 }
 0x12c   : > { %v1106_v46 = vpop.permute.xlu1 %1105  ;;  %1413 = vrot.lane.b32.xlu0 %v5646_v40, %s5679_s22  ;;  %5507 = vmatpush3.msk.msra.mxu0 %vm9221_vm10, %v2205_v50  ;;  %v2203_v40 = vld [vmem:[%s9087_s1 + $0x10] sm:$0xff]  ;;  %vm9226_vm10 = vcmask 162944  }
 0x12d   : > { %1187 = vst.msk [vmem:[#allocation3 + $0x78] sm:$0xff] %vm9222_vm14, %v1106_v46  ;;  %v2204_v46 = vld [vmem:[%s9087_s1 + $0x18] sm:$0xff]  ;;  %v1527_v50 = vld [vmem:[#allocation2 + $0x2f] sm:$0xff] }
 0x12e   : > { %1415 = vrot.lane.b32.xlu1 %v1020_v5, %s5679_s22  ;;  %v1108_v23 = vpop.permute.xlu0 %1107  ;;  %5508 = vmatprep.subr.mxu0 %v2204_v46  ;;  %v5648_v5 = vld [vmem:[#allocation2 + $0x69] sm:$0xff] }
 0x12f   : > { %1188 = vst.msk [vmem:[#allocation3 + $0x80] sm:$0xff] %vm9222_vm14, %v1108_v23  ;;  %5509 = vmatpush3.msra.mxu0 %v2204_v46  ;;  %v2202_v23 = vld [vmem:[%s9087_s1 + $0x8] sm:$0xff] }
 0x130   : > { %v1110_v41 = vpop.permute.xlu1 %1109  ;;  %1417 = vrot.lane.b32.xlu0 %v5648_v5, %s5679_s22  ;;  %5510 = vmatprep.subr.mxu0 %v2203_v40  ;;  %v1592_v5 = vld [vmem:[#allocation2 + $0x39] sm:$0xff] }
 0x131   : > { %1189 = vst.msk [vmem:[#allocation3 + $0x88] sm:$0xff] %vm9222_vm14, %v1110_v41  ;;  %5511 = vmatpush3.msra.mxu0 %v2203_v40 }
 0x132   : > { %1718 = vrot.lane.b32.xlu1 %v1622_v47, %s5680_s27  ;;  %v1112_v45 = vpop.permute.xlu0 %1111  ;;  %v2201_v47 = vld [vmem:[%s9087_s1] sm:$0xff]  ;;  %5512 = vmatprep.subr.mxu0 %v2202_v23 }
 0x133   : > { %1190 = vst.msk [vmem:[#allocation3 + $0x90] sm:$0xff] %vm9222_vm14, %v1112_v45  ;;  %5513 = vmatpush3.msra.mxu0 %v2202_v23 }
 0x134   : > { %v1114_v30 = vpop.permute.xlu1 %1113  ;;  %1720 = vrot.lane.b32.xlu0 %v1527_v50, %s5680_s27  ;;  %5514 = vmatprep.subr.mxu0 %v2201_v47 }
 0x135   : > { %1191 = vst.msk [vmem:[#allocation3 + $0x98] sm:$0xff] %vm9222_vm14, %v1114_v30  ;;  %v1655_v30 = vsel %vm9454_vm0, %v1527_v50, %v6688_v63  ;;  %5515 = vmatpush3.msra.mxu0 %v2201_v47  ;;  %v1594_v47 = vld [vmem:[#allocation2 + $0x49] sm:$0xff]  ;;  %vm9474_vm0 = vcmask 261344  }
 0x136   : > { %1879 = vrot.lane.b32.xlu1 %v6547_v53, %s5681_s5  ;;  %v1116_v41 = vpop.permute.xlu0 %1115  ;;  %v5649_v53 = vld [vmem:[#allocation2 + $0x37] sm:$0xff] }
 0x137   : > { %1192 = vst.msk [vmem:[#allocation3 + $0xa0] sm:$0xff] %vm9222_vm14, %v1116_v41  ;;  %v1624_v40 = vsel %vm5962_vm2, %v1592_v5, %v5649_v53 }
 0x138   : > { %v1118_v46 = vpop.permute.xlu1 %1117  ;;  %1881 = vrot.lane.b32.xlu0 %v6549_v6, %s5681_s5  ;;  %v1529_v6 = vld [vmem:[#allocation2 + $0x3f] sm:$0xff] }
 0x139   : > { %1193 = vst.msk [vmem:[#allocation3 + $0xa8] sm:$0xff] %vm9222_vm14, %v1118_v46  ;;  %v1657_v46 = vsel %vm9455_vm15, %v1529_v6, %v6698_v22 }
 0x13a   : > { %2040 = vrot.lane.b32.xlu1 %v1590_v13, %s5682_s8  ;;  %v1120_v45 = vpop.permute.xlu0 %1119 }
 0x13b   : > { %1194 = vst.msk [vmem:[#allocation3 + $0xb0] sm:$0xff] %vm9222_vm14, %v1120_v45 }
 0x13c   : > { %v1122_v23 = vpop.permute.xlu1 %1121  ;;  %2042 = vrot.lane.b32.xlu0 %v1655_v30, %s5682_s8  ;;  %v5650_v30 = vld [vmem:[#allocation2 + $0x47] sm:$0xff] }
 0x13d   : > { %1195 = vst.msk [vmem:[#allocation3 + $0xb8] sm:$0xff] %vm9222_vm14, %v1122_v23 }
 0x13e   : > { %1722 = vrot.lane.b32.xlu1 %v1624_v40, %s5680_s27  ;;  %v1124_v13 = vpop.permute.xlu0 %1123 }
 0x13f   : > { %1196 = vst.msk [vmem:[#allocation3 + $0xc0] sm:$0xff] %vm9222_vm14, %v1124_v13 }
 0x140   : > { %v1126_v41 = vpop.permute.xlu1 %1125  ;;  %1724 = vrot.lane.b32.xlu0 %v1529_v6, %s5680_s27  ;;  %v1596_v6 = vld [vmem:[#allocation2 + $0x59] sm:$0xff] }
 0x141   : > { %1197 = vst.msk [vmem:[#allocation3 + $0xc8] sm:$0xff] %vm9222_vm14, %v1126_v41  ;;  %v5651_v41 = vld [vmem:[#allocation2 + $0x57] sm:$0xff] }
 0x142   : > { %1883 = vrot.lane.b32.xlu1 %v6557_v1, %s5681_s5  ;;  %v1128_v63 = vpop.permute.xlu0 %1127  ;;  %v1626_v1 = vsel %vm5988_vm3, %v1594_v47, %v5650_v30 }
 0x143   : > { %1198 = vst.msk [vmem:[#allocation3 + $0xd0] sm:$0xff] %vm9222_vm14, %v1128_v63 }
 0x144   : > { %v1130_v50 = vpop.permute.xlu1 %1129  ;;  %1885 = vrot.lane.b32.xlu0 %v6559_v12, %s5681_s5  ;;  %v1531_v12 = vld [vmem:[#allocation2 + $0x4f] sm:$0xff] }
 0x145   : > { %1199 = vst.msk [vmem:[#allocation3 + $0xd8] sm:$0xff] %vm9222_vm14, %v1130_v50  ;;  %v1659_v13 = vsel %vm9456_vm13, %v1531_v12, %v6708_v17 }
 0x146   : > { %2044 = vrot.lane.b32.xlu1 %v1592_v5, %s5682_s8  ;;  %v1132_v53 = vpop.permute.xlu0 %1131 }
 0x147   : > { %1200 = vst.msk [vmem:[#allocation3 + $0xe0] sm:$0xff] %vm9222_vm14, %v1132_v53 }
 0x148   : > { %v1134_v40 = vpop.permute.xlu1 %1133  ;;  %2046 = vrot.lane.b32.xlu0 %v1657_v46, %s5682_s8 }
 0x149   : > { %1201 = vst.msk [vmem:[#allocation3 + $0xe8] sm:$0xff] %vm9222_vm14, %v1134_v40  ;;  %v5652_v40 = vld [vmem:[#allocation2 + $0x67] sm:$0xff] }
 0x14a   : > { %1726 = vrot.lane.b32.xlu1 %v1626_v1, %s5680_s27  ;;  %v1136_v5 = vpop.permute.xlu0 %1135  ;;  %v1598_v1 = vld [vmem:[#allocation2 + $0x69] sm:$0xff] }
 0x14b   : > { %1202 = vst.msk [vmem:[#allocation3 + $0xf0] sm:$0xff] %vm9222_vm14, %v1136_v5 }
 0x14c   : > { %v1138_v45 = vpop.permute.xlu1 %1137  ;;  %1728 = vrot.lane.b32.xlu0 %v1531_v12, %s5680_s27 }
 0x14d   : > { %1203 = vst.msk [vmem:[#allocation3 + $0xf8] sm:$0xff] %vm9222_vm14, %v1138_v45 }
 0x14e   : > { %1887 = vrot.lane.b32.xlu1 %v6567_v15, %s5681_s5  ;;  %v1237_v22 = vpop.permute.xlu0 %1236  ;;  %v1628_v15 = vsel %vm6007_vm4, %v1596_v6, %v5651_v41  ;;  %v9461_v41 = vld [vmem:[#allocation60_spill] sm:$0xff] }
 0x14f   : > { %1333 = vst.msk [vmem:[#allocation3] sm:$0xff] %vm9226_vm10, %v1237_v22  ;;  %vm9462_vm14 = vnez %v9461_v41 }
 0x150   : > { %v1239_v23 = vpop.permute.xlu1 %1238  ;;  %1889 = vrot.lane.b32.xlu0 %v6569_v0, %s5681_s5  ;;  %v1533_v0 = vld [vmem:[#allocation2 + $0x5f] sm:$0xff] }
 0x151   : > { %1334 = vst.msk [vmem:[#allocation3 + $0x8] sm:$0xff] %vm9226_vm10, %v1239_v23  ;;  %v1661_v53 = vsel %vm9458_vm12, %v1533_v0, %v6718_v26  ;;  %vm9229_vm12 = vcmask 195744  }
 0x152   : > { %2048 = vrot.lane.b32.xlu1 %v1594_v47, %s5682_s8  ;;  %v1241_v63 = vpop.permute.xlu0 %1240 }
 0x153   : > { %1335 = vst.msk [vmem:[#allocation3 + $0x10] sm:$0xff] %vm9226_vm10, %v1241_v63 }
 0x154   : > { %v1243_v50 = vpop.permute.xlu1 %1242  ;;  %2050 = vrot.lane.b32.xlu0 %v1659_v13, %s5682_s8 }
 0x155   : > { %1336 = vst.msk [vmem:[#allocation3 + $0x18] sm:$0xff] %vm9226_vm10, %v1243_v50  ;;  %v1600_v50 = vld [vmem:[#allocation2 + $0x79] sm:$0xff] }
 0x156   : > { %1730 = vrot.lane.b32.xlu1 %v1628_v15, %s5680_s27  ;;  %v1245_v47 = vpop.permute.xlu0 %1244 }
 0x157   : > { %1337 = vst.msk [vmem:[#allocation3 + $0x20] sm:$0xff] %vm9226_vm10, %v1245_v47  ;;  %v1537_v47 = vld [vmem:[#allocation2 + $0x7f] sm:$0xff] }
 0x158   : > { %v1247_v46 = vpop.permute.xlu1 %1246  ;;  %1732 = vrot.lane.b32.xlu0 %v1533_v0, %s5680_s27 }
 0x159   : > { %1338 = vst.msk [vmem:[#allocation3 + $0x28] sm:$0xff] %vm9226_vm10, %v1247_v46 }
 0x15a   : > { %1891 = vrot.lane.b32.xlu1 %v6577_v36, %s5681_s5  ;;  %v1249_v17 = vpop.permute.xlu0 %1248  ;;  %v1630_v36 = vsel %vm6022_vm5, %v1598_v1, %v5652_v40  ;;  %v1601_v40 = vld [vmem:[#allocation2 + $0x81] sm:$0xff] }
 0x15b   : > { %1339 = vst.msk [vmem:[#allocation3 + $0x30] sm:$0xff] %vm9226_vm10, %v1249_v17 }
 0x15c   : > { %v1251_v30 = vpop.permute.xlu1 %1250  ;;  %1893 = vrot.lane.b32.xlu0 %v6579_v9, %s5681_s5  ;;  %v1535_v9 = vld [vmem:[#allocation2 + $0x6f] sm:$0xff] }
 0x15d   : > { %1340 = vst.msk [vmem:[#allocation3 + $0x38] sm:$0xff] %vm9226_vm10, %v1251_v30 }
 0x15e   : > { %2052 = vrot.lane.b32.xlu1 %v1596_v6, %s5682_s8  ;;  %v1253_v12 = vpop.permute.xlu0 %1252  ;;  %v1599_v6 = vld [vmem:[#allocation2 + $0x71] sm:$0xff] }
 0x15f   : > { %1341 = vst.msk [vmem:[#allocation3 + $0x40] sm:$0xff] %vm9226_vm10, %v1253_v12  ;;  %v1663_v13 = vsel %vm9460_vm11, %v1535_v9, %v1599_v6  ;;  %v1022_v15 = vsel %vm9462_vm14, %v5917_v52, %v1599_v6  ;;  %v1665_v12 = vsel %vm9462_vm14, %v1537_v47, %v1601_v40 }
 0x160   : > { %v1255_v5 = vpop.permute.xlu1 %1254  ;;  %2054 = vrot.lane.b32.xlu0 %v1661_v53, %s5682_s8 }
 0x161   : > { %1342 = vst.msk [vmem:[#allocation3 + $0x48] sm:$0xff] %vm9226_vm10, %v1255_v5 }
 0x162   : > { %1734 = vrot.lane.b32.xlu1 %v1630_v36, %s5680_s27  ;;  %v1257_v45 = vpop.permute.xlu0 %1256  ;;  %v5654_v36 = vld [vmem:[#allocation2 + $0x79] sm:$0xff] }
 0x163   : > { %1343 = vst.msk [vmem:[#allocation3 + $0x50] sm:$0xff] %vm9226_vm10, %v1257_v45  ;;  %v1602_v45 = vld [vmem:[#allocation2 + $0x89] sm:$0xff] }
 0x164   : > { %v1259_v22 = vpop.permute.xlu1 %1258  ;;  %1736 = vrot.lane.b32.xlu0 %v1535_v9, %s5680_s27 }
 0x165   : > { %1344 = vst.msk [vmem:[#allocation3 + $0x58] sm:$0xff] %vm9226_vm10, %v1259_v22  ;;  %v5655_v22 = vld [vmem:[#allocation2 + $0x87] sm:$0xff] }
 0x166   : > { %1895 = vrot.lane.b32.xlu1 %v6587_v44, %s5681_s5  ;;  %v1261_v26 = vpop.permute.xlu0 %1260 }
 0x167   : > { %1345 = vst.msk [vmem:[#allocation3 + $0x60] sm:$0xff] %vm9226_vm10, %v1261_v26  ;;  %v1634_v26 = vsel %vm6030_vm7, %v1602_v45, %v5655_v22 }
 0x168   : > { %v1263_v23 = vpop.permute.xlu1 %1262  ;;  %1897 = vrot.lane.b32.xlu0 %v6589_v11, %s5681_s5  ;;  %v5653_v11 = vld [vmem:[#allocation2 + $0x77] sm:$0xff] }
 0x169   : > { %1346 = vst.msk [vmem:[#allocation3 + $0x68] sm:$0xff] %vm9226_vm10, %v1263_v23  ;;  %v1632_v0 = vsel %vm6026_vm6, %v1600_v50, %v5653_v11  ;;  %v1539_v23 = vld [vmem:[#allocation2 + $0x8f] sm:$0xff] }
 0x16a   : > { %2056 = vrot.lane.b32.xlu1 %v1598_v1, %s5682_s8  ;;  %v1265_v44 = vpop.permute.xlu0 %1264  ;;  %v5656_v11 = vld [vmem:[#allocation2 + $0x89] sm:$0xff] }
 0x16b   : > { %1347 = vst.msk [vmem:[#allocation3 + $0x70] sm:$0xff] %vm9226_vm10, %v1265_v44 }
 0x16c   : > { %v1267_v63 = vpop.permute.xlu1 %1266  ;;  %2058 = vrot.lane.b32.xlu0 %v1663_v13, %s5682_s8 }
 0x16d   : > { %1348 = vst.msk [vmem:[#allocation3 + $0x78] sm:$0xff] %vm9226_vm10, %v1267_v63 }
 0x16e   : > { %1419 = vrot.lane.b32.xlu1 %v1022_v15, %s5679_s22  ;;  %v1269_v46 = vpop.permute.xlu0 %1268 }
 0x16f   : > { %1349 = vst.msk [vmem:[#allocation3 + $0x80] sm:$0xff] %vm9226_vm10, %v1269_v46 }
 0x170   : > { %v1271_v17 = vpop.permute.xlu1 %1270  ;;  %1738 = vrot.lane.b32.xlu0 %v1632_v0, %s5680_s27 }
 0x171   : > { %1350 = vst.msk [vmem:[#allocation3 + $0x88] sm:$0xff] %vm9226_vm10, %v1271_v17  ;;  %v1540_v17 = vld [vmem:[#allocation2 + $0x97] sm:$0xff] }
 0x172   : > { %1740 = vrot.lane.b32.xlu1 %v1537_v47, %s5680_s27  ;;  %v1273_v52 = vpop.permute.xlu0 %1272 }
 0x173   : > { %1351 = vst.msk [vmem:[#allocation3 + $0x90] sm:$0xff] %vm9226_vm10, %v1273_v52  ;;  %v1604_v52 = vld [vmem:[#allocation2 + $0x99] sm:$0xff] }
 0x174   : > { %v1275_v30 = vpop.permute.xlu1 %1274  ;;  %1899 = vrot.lane.b32.xlu0 %v6597_v18, %s5681_s5  ;;  %v9463_v18 = vld [vmem:[#allocation61_spill] sm:$0xff] }
 0x175   : > { %1352 = vst.msk [vmem:[#allocation3 + $0x98] sm:$0xff] %vm9226_vm10, %v1275_v30  ;;  %vm9464_vm11 = vnez %v9463_v18  ;;  %v1636_v30 = vsel %vm6051_vm8, %v1604_v52, %v1540_v17 }
 0x176   : > { %1901 = vrot.lane.b32.xlu1 %v6599_v49, %s5681_s5  ;;  %v1277_v1 = vpop.permute.xlu0 %1276  ;;  %v1024_v5 = vsel %vm9464_vm11, %v5923_v55, %v1601_v40 }
 0x177   : > { %1353 = vst.msk [vmem:[#allocation3 + $0xa0] sm:$0xff] %vm9226_vm10, %v1277_v1  ;;  %v1541_v1 = vld [vmem:[#allocation2 + $0x9f] sm:$0xff] }
 0x178   : > { %v1279_v53 = vpop.permute.xlu1 %1278  ;;  %2060 = vrot.lane.b32.xlu0 %v1600_v50, %s5682_s8  ;;  %v1603_v50 = vld [vmem:[#allocation2 + $0x91] sm:$0xff] }
 0x179   : > { %1354 = vst.msk [vmem:[#allocation3 + $0xa8] sm:$0xff] %vm9226_vm10, %v1279_v53  ;;  %v1667_v0 = vsel %vm9464_vm11, %v1539_v23, %v1603_v50  ;;  %vm9233_vm11 = vcmask 261344  }
 0x17a   : > { %1421 = vrot.lane.b32.xlu1 %v5654_v36, %s5679_s22  ;;  %v1281_v49 = vpop.permute.xlu0 %1280 }
 0x17b   : > { %1355 = vst.msk [vmem:[#allocation3 + $0xb0] sm:$0xff] %vm9226_vm10, %v1281_v49  ;;  %v1605_v49 = vld [vmem:[#allocation2 + $0xa1] sm:$0xff] }
 0x17c   : > { %v1283_v9 = vpop.permute.xlu1 %1282  ;;  %2062 = vrot.lane.b32.xlu0 %v1665_v12, %s5682_s8 }
 0x17d   : > { %1356 = vst.msk [vmem:[#allocation3 + $0xb8] sm:$0xff] %vm9226_vm10, %v1283_v9  ;;  %v5657_v9 = vld [vmem:[#allocation2 + $0x99] sm:$0xff] }
 0x17e   : > { %1423 = vrot.lane.b32.xlu1 %v1024_v5, %s5679_s22  ;;  %v1285_v6 = vpop.permute.xlu0 %1284 }
 0x17f   : > { %1357 = vst.msk [vmem:[#allocation3 + $0xc0] sm:$0xff] %vm9226_vm10, %v1285_v6  ;;  %v1606_v6 = vld [vmem:[#allocation2 + $0xa9] sm:$0xff] }
 0x180   : > { %v1287_v13 = vpop.permute.xlu1 %1286  ;;  %1742 = vrot.lane.b32.xlu0 %v1634_v26, %s5680_s27 }
 0x181   : > { %1358 = vst.msk [vmem:[#allocation3 + $0xc8] sm:$0xff] %vm9226_vm10, %v1287_v13 }
 0x182   : > { %1744 = vrot.lane.b32.xlu1 %v1539_v23, %s5680_s27  ;;  %v1289_v55 = vpop.permute.xlu0 %1288  ;;  %v1542_v23 = vld [vmem:[#allocation2 + $0xa7] sm:$0xff] }
 0x183   : > { %1359 = vst.msk [vmem:[#allocation3 + $0xd0] sm:$0xff] %vm9226_vm10, %v1289_v55  ;;  %v1638_v13 = vsel %vm6055_vm9, %v1606_v6, %v1542_v23  ;;  %v1543_v55 = vld [vmem:[#allocation2 + $0xaf] sm:$0xff] }
 0x184   : > { %v1291_v15 = vpop.permute.xlu1 %1290  ;;  %1903 = vrot.lane.b32.xlu0 %v6607_v42, %s5681_s5  ;;  %v9465_v42 = vld [vmem:[#allocation62_spill] sm:$0xff] }
 0x185   : > { %1360 = vst.msk [vmem:[#allocation3 + $0xd8] sm:$0xff] %vm9226_vm10, %v1291_v15  ;;  %vm9466_vm14 = vnez %v9465_v42 }
 0x186   : > { %1905 = vrot.lane.b32.xlu1 %v6609_v58, %s5681_s5  ;;  %v1293_v44 = vpop.permute.xlu0 %1292  ;;  %v1026_v47 = vsel %vm9466_vm14, %v5932_v60, %v1603_v50 }
 0x187   : > { %1361 = vst.msk [vmem:[#allocation3 + $0xe0] sm:$0xff] %vm9226_vm10, %v1293_v44 }
 0x188   : > { %v1295_v63 = vpop.permute.xlu1 %1294  ;;  %2064 = vrot.lane.b32.xlu0 %v1602_v45, %s5682_s8  ;;  %v1669_v45 = vsel %vm9466_vm14, %v1541_v1, %v1605_v49  ;;  %vm9231_vm14 = vcmask 228544  }
 0x189   : > { %1362 = vst.msk [vmem:[#allocation3 + $0xe8] sm:$0xff] %vm9226_vm10, %v1295_v63 }
 0x18a   : > { %1425 = vrot.lane.b32.xlu1 %v5656_v11, %s5679_s22  ;;  %v1297_v58 = vpop.permute.xlu0 %1296 }
 0x18b   : > { %1363 = vst.msk [vmem:[#allocation3 + $0xf0] sm:$0xff] %vm9226_vm10, %v1297_v58  ;;  %v9469_v58 = vld [vmem:[#allocation64_spill] sm:$0xff] }
 0x18c   : > { %v1299_v46 = vpop.permute.xlu1 %1298  ;;  %2066 = vrot.lane.b32.xlu0 %v1667_v0, %s5682_s8  ;;  %v1607_v0 = vld [vmem:[#allocation2 + $0xb1] sm:$0xff]  ;;  %vm9470_vm13 = vnez %v9469_v58 }
 0x18d   : > { %1364 = vst.msk [vmem:[#allocation3 + $0xf8] sm:$0xff] %vm9226_vm10, %v1299_v46 }
 0x18e   : > { %1427 = vrot.lane.b32.xlu1 %v1026_v47, %s5679_s22  ;;  %v1398_v53 = vpop.permute.xlu0 %1397  ;;  %v5658_v47 = vld [vmem:[#allocation2 + $0xa9] sm:$0xff] }
 0x18f   : > { %1494 = vst.msk [vmem:[#allocation3] sm:$0xff] %vm9229_vm12, %v1398_v53  ;;  %v1545_v53 = vld [vmem:[#allocation2 + $0xbf] sm:$0xff] }
 0x190   : > { %v1400_v40 = vpop.permute.xlu1 %1399  ;;  %1746 = vrot.lane.b32.xlu0 %v1636_v30, %s5680_s27  ;;  %v1608_v30 = vld [vmem:[#allocation2 + $0xb9] sm:$0xff] }
 0x191   : > { %1495 = vst.msk [vmem:[#allocation3 + $0x8] sm:$0xff] %vm9229_vm12, %v1400_v40 }
 0x192   : > { %1748 = vrot.lane.b32.xlu1 %v1541_v1, %s5680_s27  ;;  %v1402_v60 = vpop.permute.xlu0 %1401 }
 0x193   : > { %1496 = vst.msk [vmem:[#allocation3 + $0x10] sm:$0xff] %vm9229_vm12, %v1402_v60 }
 0x194   : > { %v1404_v36 = vpop.permute.xlu1 %1403  ;;  %1907 = vrot.lane.b32.xlu0 %v6617_v34, %s5681_s5  ;;  %v9467_v34 = vld [vmem:[#allocation63_spill] sm:$0xff] }
 0x195   : > { %1497 = vst.msk [vmem:[#allocation3 + $0x18] sm:$0xff] %vm9229_vm12, %v1404_v36  ;;  %vm9468_vm10 = vnez %v9467_v34 }
 0x196   : > { %1909 = vrot.lane.b32.xlu1 %v6619_v51, %s5681_s5  ;;  %v1406_v12 = vpop.permute.xlu0 %1405  ;;  %v1028_v22 = vsel %vm9468_vm10, %v5942_v25, %v1605_v49 }
 0x197   : > { %1498 = vst.msk [vmem:[#allocation3 + $0x20] sm:$0xff] %vm9229_vm12, %v1406_v12 }
 0x198   : > { %v1408_v5 = vpop.permute.xlu1 %1407  ;;  %2068 = vrot.lane.b32.xlu0 %v1604_v52, %s5682_s8  ;;  %v1544_v52 = vld [vmem:[#allocation2 + $0xb7] sm:$0xff] }
 0x199   : > { %1499 = vst.msk [vmem:[#allocation3 + $0x28] sm:$0xff] %vm9229_vm12, %v1408_v5 }
 0x19a   : > { %1429 = vrot.lane.b32.xlu1 %v5657_v9, %s5679_s22  ;;  %v1410_v51 = vpop.permute.xlu0 %1409 }
 0x19b   : > { %1500 = vst.msk [vmem:[#allocation3 + $0x30] sm:$0xff] %vm9229_vm12, %v1410_v51 }
 0x19c   : > { %v1412_v26 = vpop.permute.xlu1 %1411  ;;  %2070 = vrot.lane.b32.xlu0 %v1669_v45, %s5682_s8  ;;  %v1609_v45 = vld [vmem:[#allocation2 + $0xc1] sm:$0xff] }
 0x19d   : > { %1501 = vst.msk [vmem:[#allocation3 + $0x38] sm:$0xff] %vm9229_vm12, %v1412_v26 }
 0x19e   : > { %1431 = vrot.lane.b32.xlu1 %v1028_v22, %s5679_s22  ;;  %v1414_v15 = vpop.permute.xlu0 %1413  ;;  %v5659_v22 = vld [vmem:[#allocation2 + $0xb9] sm:$0xff] }
 0x19f   : > { %1502 = vst.msk [vmem:[#allocation3 + $0x40] sm:$0xff] %vm9229_vm12, %v1414_v15  ;;  %v1547_v15 = vld [vmem:[#allocation2 + $0xcf] sm:$0xff] }
 0x1a0   : > { %v1416_v44 = vpop.permute.xlu1 %1415  ;;  %1750 = vrot.lane.b32.xlu0 %v1638_v13, %s5680_s27  ;;  %v1610_v13 = vld [vmem:[#allocation2 + $0xc9] sm:$0xff] }
 0x1a1   : > { %1503 = vst.msk [vmem:[#allocation3 + $0x48] sm:$0xff] %vm9229_vm12, %v1416_v44 }
 0x1a2   : > { %1752 = vrot.lane.b32.xlu1 %v1543_v55, %s5680_s27  ;;  %v1418_v25 = vpop.permute.xlu0 %1417 }
 0x1a3   : > { %1504 = vst.msk [vmem:[#allocation3 + $0x50] sm:$0xff] %vm9229_vm12, %v1418_v25  ;;  %vm9238_vm12 = vcmask 294144  }
 0x1a4   : > { %v1719_v63 = vpop.permute.xlu1 %1718  ;;  %1911 = vrot.lane.b32.xlu0 %v6627_v59, %s5681_s5  ;;  %v1671_v59 = vsel %vm9468_vm10, %v1543_v55, %v1607_v0  ;;  %vm9472_vm10 = vcmask 228544  }
 0x1a5   : > { %1815 = vst.msk [vmem:[#allocation3] sm:$0xff] %vm9231_vm14, %v1719_v63  ;;  %vm9473_vm15 = vmmov %vm9472_vm10 }
 0x1a6   : > { %1913 = vrot.lane.b32.xlu1 %v6629_v14, %s5681_s5  ;;  %v1721_v50 = vpop.permute.xlu0 %1720  ;;  %v1030_v14 = vsel %vm9470_vm13, %v5952_v29, %v1607_v0 }
 0x1a7   : > { %1816 = vst.msk [vmem:[#allocation3 + $0x8] sm:$0xff] %vm9231_vm14, %v1721_v50  ;;  %vm9471_vm14 = vnez %v9438_v10 }
 0x1a8   : > { %v1880_v11 = vpop.permute.xlu1 %1879  ;;  %2072 = vrot.lane.b32.xlu0 %v1606_v6, %s5682_s8  ;;  %v1640_v1 = vsel %vm9471_vm14, %v1608_v30, %v1544_v52  ;;  %v1546_v6 = vld [vmem:[#allocation2 + $0xc7] sm:$0xff]  ;;  %vm9481_vm14 = vcmask 293888  }
 0x1a9   : > { %1976 = vst.msk [vmem:[#allocation3] sm:$0xff] %vm9233_vm11, %v1880_v11 }
 0x1aa   : > { %1433 = vrot.lane.b32.xlu1 %v5658_v47, %s5679_s22  ;;  %v1882_v46 = vpop.permute.xlu0 %1881 }
 0x1ab   : > { %1977 = vst.msk [vmem:[#allocation3 + $0x8] sm:$0xff] %vm9233_vm11, %v1882_v46  ;;  %vm9236_vm11 = vcmask 293888  }
 0x1ac   : > { %v2041_v17 = vpop.permute.xlu1 %2040  ;;  %2074 = vrot.lane.b32.xlu0 %v1671_v59, %s5682_s8  ;;  %v1611_v59 = vld [vmem:[#allocation2 + $0xd1] sm:$0xff] }
 0x1ad   : > { %2137 = vst.msk [vmem:[#allocation3] sm:$0xff] %vm9238_vm12, %v2041_v17 }
 0x1ae   : > { %1435 = vrot.lane.b32.xlu1 %v1030_v14, %s5679_s22  ;;  %v2043_v40 = vpop.permute.xlu0 %2042  ;;  %v5660_v14 = vld [vmem:[#allocation2 + $0xc9] sm:$0xff] }
 0x1af   : > { %2138 = vst.msk [vmem:[#allocation3 + $0x8] sm:$0xff] %vm9238_vm12, %v2043_v40 }
 0x1b0   : > { %v1723_v60 = vpop.permute.xlu1 %1722  ;;  %1754 = vrot.lane.b32.xlu0 %v1640_v1, %s5680_s27  ;;  %v1548_v1 = vld [vmem:[#allocation2 + $0xd7] sm:$0xff] }
 0x1b1   : > { %1817 = vst.msk [vmem:[#allocation3 + $0x10] sm:$0xff] %vm9472_vm10, %v1723_v60  ;;  %vm9475_vm10 = vmmov %vm9474_vm0  ;;  %v1549_v60 = vld [vmem:[#allocation2 + $0xdf] sm:$0xff] }
 0x1b2   : > { %1756 = vrot.lane.b32.xlu1 %v1545_v53, %s5680_s27  ;;  %v1725_v29 = vpop.permute.xlu0 %1724 }
 0x1b3   : > { %1818 = vst.msk [vmem:[#allocation3 + $0x18] sm:$0xff] %vm9473_vm15, %v1725_v29 }
 0x1b4   : > { %v1884_v36 = vpop.permute.xlu1 %1883  ;;  %v2169_v12 = vld [vmem:[#allocation3] sm:$0xff]  ;;  %1915 = vrot.lane.b32.xlu0 %v6637_v31, %s5681_s5  ;;  %v1673_v31 = vsel %vm9470_vm13, %v1545_v53, %v1609_v45  ;;  %vm9480_vm13 = vcmask 261344   ;;  %v1612_v53 = vld [vmem:[#allocation2 + $0xd9] sm:$0xff] }
 0x1b5   : > { %1978 = vst.msk [vmem:[#allocation3 + $0x10] sm:$0xff] %vm9474_vm0, %v1884_v36  ;;  %5516 = vmatprep.mubr.msk.f32.mxu0 %vm9236_vm11, %v2169_v12 }
 0x1b6   : > { %1917 = vrot.lane.b32.xlu1 %v6639_v7, %s5681_s5  ;;  %v1886_v5 = vpop.permute.xlu0 %1885  ;;  %v2170_v49 = vld [vmem:[#allocation3 + $0x8] sm:$0xff] }
 0x1b7   : > { %1979 = vst.msk [vmem:[#allocation3 + $0x18] sm:$0xff] %vm9475_vm10, %v1886_v5  ;;  %5517 = vmatmul.mubr.msk.f32.vlgmr.msra.gmra.mxu0 %vm9236_vm11, %v2170_v49  ;;  %v9476_v7 = vld [vmem:[#allocation65_spill] sm:$0xff]  ;;  %vm9478_vm10 = vnez %v9440_v56  ;;  %vm9479_vm11 = vmmov %vm9473_vm15 }
 0x1b8   : > { %v2045_v9 = vpop.permute.xlu1 %2044  ;;  %2076 = vrot.lane.b32.xlu0 %v1608_v30, %s5682_s8  ;;  %vm9477_vm0 = vnez %v9476_v7  ;;  %v1642_v55 = vsel %vm9478_vm10, %v1610_v13, %v1546_v6  ;;  %vm9483_vm10 = vmmov %vm9481_vm14 }
 0x1b9   : > { %2139 = vst.msk [vmem:[#allocation3 + $0x10] sm:$0xff] %vm9238_vm12, %v2045_v9  ;;  %v1032_v51 = vsel %vm9477_vm0, %v5960_v43, %v1609_v45  ;;  %v1675_v46 = vsel %vm9477_vm0, %v1547_v15, %v1611_v59  ;;  %vm9491_vm0 = vcmask 294144  }
 0x1ba   : > { %1437 = vrot.lane.b32.xlu1 %v5659_v22, %s5679_s22  ;;  %v2047_v26 = vpop.permute.xlu0 %2046  ;;  %v1613_v22 = vld [vmem:[#allocation2 + $0xe1] sm:$0xff] }
 0x1bb   : > { %2140 = vst.msk [vmem:[#allocation3 + $0x18] sm:$0xff] %vm9238_vm12, %v2047_v26 }
 0x1bc   : > { %v1727_v23 = vpop.permute.xlu1 %1726  ;;  %2078 = vrot.lane.b32.xlu0 %v1673_v31, %s5682_s8  ;;  %v5661_v31 = vld [vmem:[#allocation2 + $0xd9] sm:$0xff] }
 0x1bd   : > { %1819 = vst.msk [vmem:[#allocation3 + $0x20] sm:$0xff] %vm9473_vm15, %v1727_v23  ;;  %vm9482_vm15 = vmmov %vm9480_vm13 }
 0x1be   : > { %1439 = vrot.lane.b32.xlu1 %v1032_v51, %s5679_s22  ;;  %v1729_v44 = vpop.permute.xlu0 %1728 }
 0x1bf   : > { %1820 = vst.msk [vmem:[#allocation3 + $0x28] sm:$0xff] %vm9479_vm11, %v1729_v44  ;;  %v1551_v44 = vld [vmem:[#allocation2 + $0xef] sm:$0xff] }
 0x1c0   : > { %v1888_v25 = vpop.permute.xlu1 %1887  ;;  %v2171_v63 = vld [vmem:[#allocation3 + $0x10] sm:$0xff]  ;;  %1758 = vrot.lane.b32.xlu0 %v1642_v55, %s5680_s27  ;;  %v1614_v55 = vld [vmem:[#allocation2 + $0xe9] sm:$0xff] }
 0x1c1   : > { %1980 = vst.msk [vmem:[#allocation3 + $0x20] sm:$0xff] %vm9480_vm13, %v1888_v25  ;;  %5519 = vmatprep.mubr.msk.f32.mxu0 %vm9481_vm14, %v2171_v63  ;;  %vm9486_vm14 = vmmov %vm9479_vm11 }
 0x1c2   : > { %1760 = vrot.lane.b32.xlu1 %v1547_v15, %s5680_s27  ;;  %v1890_v43 = vpop.permute.xlu0 %1889  ;;  %v2172_v11 = vld [vmem:[#allocation3 + $0x18] sm:$0xff] }
 0x1c3   : > { %1981 = vst.msk [vmem:[#allocation3 + $0x28] sm:$0xff] %vm9482_vm15, %v1890_v43  ;;  %5520 = vmatmul.mubr.msk.f32.gmra.mxu0 %vm9483_vm10, %v2172_v11  ;;  %vm9487_vm10 = vmmov %vm9482_vm15  ;;  %vm9488_vm15 = vcmask 293888   ;;  %v9507_v11 = vld [vmem:[#allocation45_spill] sm:$0xff] }
 0x1c4   : > { %v2049_v50 = vpop.permute.xlu1 %2048  ;;  %1919 = vrot.lane.b32.xlu0 %v6647_v20, %s5681_s5  ;;  %v9484_v20 = vld [vmem:[#allocation66_spill] sm:$0xff] }
 0x1c5   : > { %2141 = vst.msk [vmem:[#allocation3 + $0x20] sm:$0xff] %vm9238_vm12, %v2049_v50  ;;  %vm9485_vm13 = vnez %v9484_v20 }
 0x1c6   : > { %1921 = vrot.lane.b32.xlu1 %v6649_v3, %s5681_s5  ;;  %v2051_v0 = vpop.permute.xlu0 %2050  ;;  %v1034_v17 = vsel %vm9485_vm13, %v5972_v54, %v1611_v59 }
 0x1c7   : > { %2142 = vst.msk [vmem:[#allocation3 + $0x28] sm:$0xff] %vm9238_vm12, %v2051_v0  ;;  %vm9490_vm12 = vmmov %vm9487_vm10 }
 0x1c8   : > { %v1731_v47 = vpop.permute.xlu1 %1730  ;;  %2080 = vrot.lane.b32.xlu0 %v1610_v13, %s5682_s8  ;;  %v1550_v13 = vld [vmem:[#allocation2 + $0xe7] sm:$0xff] }
 0x1c9   : > { %1821 = vst.msk [vmem:[#allocation3 + $0x30] sm:$0xff] %vm9479_vm11, %v1731_v47  ;;  %vm9489_vm11 = vnez %v9442_v8 }
 0x1ca   : > { %1441 = vrot.lane.b32.xlu1 %v5660_v14, %s5679_s22  ;;  %v1733_v3 = vpop.permute.xlu0 %1732  ;;  %v1644_v40 = vsel %vm9489_vm11, %v1612_v53, %v1548_v1  ;;  %vm9504_vm11 = vcmask 195744   ;;  %v1615_v14 = vld [vmem:[#allocation2 + $0xf1] sm:$0xff] }
 0x1cb   : > { %1822 = vst.msk [vmem:[#allocation3 + $0x38] sm:$0xff] %vm9486_vm14, %v1733_v3  ;;  %vm9492_vm14 = vmmov %vm9488_vm15  ;;  %v9512_v3 = vld [vmem:[#allocation68_spill] sm:$0xff] }
 0x1cc   : > { %v1892_v52 = vpop.permute.xlu1 %1891  ;;  %v2173_v30 = vld [vmem:[#allocation3 + $0x20] sm:$0xff]  ;;  %2082 = vrot.lane.b32.xlu0 %v1675_v46, %s5682_s8 }
 0x1cd   : > { %1982 = vst.msk [vmem:[#allocation3 + $0x30] sm:$0xff] %vm9487_vm10, %v1892_v52  ;;  %5522 = vmatprep.mubr.msk.f32.mxu0 %vm9488_vm15, %v2173_v30  ;;  %vm9493_vm10 = vmmov %vm9491_vm0  ;;  %vm9494_vm15 = vcmask 228544   ;;  %v5662_v46 = vld [vmem:[#allocation2 + $0xe9] sm:$0xff] }
 0x1ce   : > { %1443 = vrot.lane.b32.xlu1 %v1034_v17, %s5679_s22  ;;  %v1894_v54 = vpop.permute.xlu0 %1893  ;;  %v2174_v36 = vld [vmem:[#allocation3 + $0x28] sm:$0xff]  ;;  %v9511_v17 = vld [vmem:[#allocation35_spill] sm:$0xff] }
 0x1cf   : > { %1983 = vst.msk [vmem:[#allocation3 + $0x38] sm:$0xff] %vm9490_vm12, %v1894_v54  ;;  %5523 = vmatmul.mubr.msk.f32.gmra.mxu0 %vm9492_vm14, %v2174_v36  ;;  %vm9495_vm12 = vmmov %vm9494_vm15 }
 0x1d0   : > { %v2053_v29 = vpop.permute.xlu1 %2052  ;;  %1762 = vrot.lane.b32.xlu0 %v1644_v40, %s5680_s27  ;;  %v1616_v40 = vld [vmem:[#allocation2 + $0xf9] sm:$0xff] }
 0x1d1   : > { %2143 = vst.msk [vmem:[#allocation3 + $0x30] sm:$0xff] %vm9491_vm0, %v2053_v29  ;;  %vm9496_vm0 = vcmask 261344   ;;  %v1553_v29 = vld [vmem:[#allocation2 + $0xff] sm:$0xff] }
 0x1d2   : > { %1764 = vrot.lane.b32.xlu1 %v1549_v60, %s5680_s27  ;;  %v2055_v12 = vpop.permute.xlu0 %2054 }
 0x1d3   : > { %2144 = vst.msk [vmem:[#allocation3 + $0x38] sm:$0xff] %vm9493_vm10, %v2055_v12 }
 0x1d4   : > { %v1735_v5 = vpop.permute.xlu1 %1734  ;;  %1923 = vrot.lane.b32.xlu0 %v6657_v28, %s5681_s5  ;;  %v1677_v28 = vsel %vm9485_vm13, %v1549_v60, %v1613_v22  ;;  %v9516_v60 = vld [vmem:[#allocation49_spill] sm:$0xff] }
 0x1d5   : > { %1823 = vst.msk [vmem:[#allocation3 + $0x40] sm:$0xff] %vm9494_vm15, %v1735_v5  ;;  %vm9499_vm15 = vmmov %vm9496_vm0  ;;  %v1584_v5 = vld [vmem:[#allocation2 + $0xf8] sm:$0xff] }
 0x1d6   : > { %1925 = vrot.lane.b32.xlu1 %v6659_v4, %s5681_s5  ;;  %v1737_v49 = vpop.permute.xlu0 %1736  ;;  %v9497_v4 = vld [vmem:[#allocation67_spill] sm:$0xff] }
 0x1d7   : > { %1824 = vst.msk [vmem:[#allocation3 + $0x48] sm:$0xff] %vm9495_vm12, %v1737_v49  ;;  %vm9498_vm10 = vnez %v9497_v4  ;;  %vm9500_vm12 = vcmask 294144   ;;  %v1585_v49 = vld [vmem:[#allocation2 + $0x100] sm:$0xff] }
 0x1d8   : > { %v1896_v9 = vpop.permute.xlu1 %1895  ;;  %v2175_v45 = vld [vmem:[#allocation3 + $0x30] sm:$0xff]  ;;  %2084 = vrot.lane.b32.xlu0 %v1612_v53, %s5682_s8  ;;  %v1036_v51 = vsel %vm9498_vm10, %v5986_v24, %v1613_v22  ;;  %vm9503_vm13 = vmmov %vm9500_vm12  ;;  %v1552_v53 = vld [vmem:[#allocation2 + $0xf7] sm:$0xff] }
 0x1d9   : > { %1984 = vst.msk [vmem:[#allocation3 + $0x40] sm:$0xff] %vm9496_vm0, %v1896_v9  ;;  %5525 = vmatprep.mubr.msk.f32.mxu0 %vm9492_vm14, %v2175_v45  ;;  %vm9501_vm0 = vmmov %vm9492_vm14  ;;  %vm9502_vm14 = vnez %v9444_v33 }
 0x1da   : > { %1445 = vrot.lane.b32.xlu1 %v5661_v31, %s5679_s22  ;;  %v1898_v26 = vpop.permute.xlu0 %1897  ;;  %v2176_v6 = vld [vmem:[#allocation3 + $0x38] sm:$0xff]  ;;  %v1646_v15 = vsel %vm9502_vm14, %v1614_v55, %v1550_v13  ;;  %vm9510_vm14 = vmmov %vm9501_vm0 }
 0x1db   : > { %1985 = vst.msk [vmem:[#allocation3 + $0x48] sm:$0xff] %vm9499_vm15, %v1898_v26  ;;  %5526 = vmatmul.mubr.msk.f32.gmra.mxu0 %vm9501_vm0, %v2176_v6  ;;  %vm9505_vm15 = vcmask 228544   ;;  %v1617_v26 = vld [vmem:[#allocation2 + $0x101] sm:$0xff] }
 0x1dc   : > { %v2057_v23 = vpop.permute.xlu1 %2056  ;;  %2086 = vrot.lane.b32.xlu0 %v1677_v28, %s5682_s8  ;;  %v9526_v13 = vld [vmem:[#allocation39_spill] sm:$0xff] }
 0x1dd   : > { %2145 = vst.msk [vmem:[#allocation3 + $0x40] sm:$0xff] %vm9500_vm12, %v2057_v23  ;;  %vm9506_vm12 = vmmov %vm9505_vm15  ;;  %v5663_v23 = vld [vmem:[#allocation2 + $0xf9] sm:$0xff] }
 0x1de   : > { %1447 = vrot.lane.b32.xlu1 %v1036_v51, %s5679_s22  ;;  %v2059_v24 = vpop.permute.xlu0 %2058 }
 0x1df   : > { %2146 = vst.msk [vmem:[#allocation3 + $0x48] sm:$0xff] %vm9503_vm13, %v2059_v24  ;;  %vm9508_vm13 = vcmask 261344  }
 0x1e0   : > { %v1420_v25 = vpop.permute.xlu1 %1419  ;;  %1766 = vrot.lane.b32.xlu0 %v1646_v15, %s5680_s27 }
 0x1e1   : > { %1505 = vst.msk [vmem:[#allocation3 + $0x58] sm:$0xff] %vm9504_vm11, %v1420_v25  ;;  %vm9509_vm11 = vmmov %vm9508_vm13  ;;  %v1554_v25 = vld [vmem:[#allocation2 + $0x107] sm:$0xff] }
 0x1e2   : > { %1768 = vrot.lane.b32.xlu1 %v1551_v44, %s5680_s27  ;;  %v1739_v63 = vpop.permute.xlu0 %1738 }
 0x1e3   : > { %1825 = vst.msk [vmem:[#allocation3 + $0x50] sm:$0xff] %vm9505_vm15, %v1739_v63  ;;  %vm9513_vm15 = vnez %v9512_v3  ;;  %v1618_v63 = vld [vmem:[#allocation2 + $0x109] sm:$0xff] }
 0x1e4   : > { %v1741_v43 = vpop.permute.xlu1 %1740  ;;  %v2177_v50 = vld [vmem:[#allocation3 + $0x40] sm:$0xff]  ;;  %1927 = vrot.lane.b32.xlu0 %v6667_v2, %s5681_s5  ;;  %v1679_v2 = vsel %vm9498_vm10, %v1551_v44, %v1615_v14  ;;  %v1038_v52 = vsel %vm9513_vm15, %v9511_v17, %v1615_v14  ;;  %vm9522_vm10 = vcmask 293888   ;;  %v1681_v6 = vsel %vm9513_vm15, %v1553_v29, %v1617_v26 }
 0x1e5   : > { %1826 = vst.msk [vmem:[#allocation3 + $0x58] sm:$0xff] %vm9506_vm12, %v1741_v43  ;;  %5528 = vmatprep.mubr.msk.f32.mxu0 %vm9501_vm0, %v2177_v50  ;;  %vm9514_vm12 = vcmask 294144   ;;  %vm9515_vm0 = vcmask 195744   ;;  %v9531_v43 = vld [vmem:[#allocation50_spill] sm:$0xff]  ;;  %v1587_v14 = vld [vmem:[#allocation2 + $0x110] sm:$0xff]  ;;  %vm9537_vm15 = vcmask 293888  }
 0x1e6   : > { %1929 = vrot.lane.b32.xlu1 %v9507_v11, %s5681_s5  ;;  %v1900_v0 = vpop.permute.xlu0 %1899  ;;  %v2178_v59 = vld [vmem:[#allocation3 + $0x48] sm:$0xff]  ;;  %v1555_v11 = vld [vmem:[#allocation2 + $0x10f] sm:$0xff] }
 0x1e7   : > { %1986 = vst.msk [vmem:[#allocation3 + $0x50] sm:$0xff] %vm9508_vm13, %v1900_v0  ;;  %5529 = vmatmul.mubr.msk.f32.gmra.mxu0 %vm9510_vm14, %v2178_v59  ;;  %vm9517_vm14 = vnez %v9516_v60  ;;  %vm9518_vm13 = vmmov %vm9514_vm12  ;;  %v1586_v59 = vld [vmem:[#allocation2 + $0x108] sm:$0xff] }
 0x1e8   : > { %v1902_v47 = vpop.permute.xlu1 %1901  ;;  %2088 = vrot.lane.b32.xlu0 %v1614_v55, %s5682_s8  ;;  %v1648_v54 = vsel %vm9517_vm14, %v1616_v40, %v1552_v53  ;;  %vm9525_vm14 = vmmov %vm9522_vm10  ;;  %v9527_v55 = vld [vmem:[#allocation69_spill] sm:$0xff] }
 0x1e9   : > { %1987 = vst.msk [vmem:[#allocation3 + $0x58] sm:$0xff] %vm9509_vm11, %v1902_v47  ;;  %vm9519_vm11 = vmmov %vm9515_vm0  ;;  %v1619_v53 = vld [vmem:[#allocation2 + $0x111] sm:$0xff] }
 0x1ea   : > { %1449 = vrot.lane.b32.xlu1 %v5662_v46, %s5679_s22  ;;  %v2061_v30 = vpop.permute.xlu0 %2060 }
 0x1eb   : > { %2147 = vst.msk [vmem:[#allocation3 + $0x50] sm:$0xff] %vm9514_vm12, %v2061_v30  ;;  %vm9520_vm12 = vcmask 228544  }
 0x1ec   : > { %v1422_v1 = vpop.permute.xlu1 %1421  ;;  %2090 = vrot.lane.b32.xlu0 %v1679_v2, %s5682_s8 }
 0x1ed   : > { %1506 = vst.msk [vmem:[#allocation3 + $0x60] sm:$0xff] %vm9515_vm0, %v1422_v1  ;;  %vm9521_vm0 = vmmov %vm9520_vm12 }
 0x1ee   : > { %1451 = vrot.lane.b32.xlu1 %v1038_v52, %s5679_s22  ;;  %v2063_v36 = vpop.permute.xlu0 %2062 }
 0x1ef   : > { %2148 = vst.msk [vmem:[#allocation3 + $0x58] sm:$0xff] %vm9518_vm13, %v2063_v36  ;;  %vm9523_vm13 = vcmask 261344   ;;  %v9541_v36 = vld [vmem:[#allocation70_spill] sm:$0xff] }
 0x1f0   : > { %v1424_v12 = vpop.permute.xlu1 %1423  ;;  %1770 = vrot.lane.b32.xlu0 %v1648_v54, %s5680_s27 }
 0x1f1   : > { %1507 = vst.msk [vmem:[#allocation3 + $0x68] sm:$0xff] %vm9519_vm11, %v1424_v12  ;;  %vm9524_vm11 = vmmov %vm9523_vm13 }
 0x1f2   : > { %1772 = vrot.lane.b32.xlu1 %v1553_v29, %s5680_s27  ;;  %v1743_v9 = vpop.permute.xlu0 %1742  ;;  %v2179_v22 = vld [vmem:[#allocation3 + $0x50] sm:$0xff]  ;;  %v5665_v29 = vld [vmem:[#allocation2 + $0x10f] sm:$0xff] }
 0x1f3   : > { %1827 = vst.msk [vmem:[#allocation3 + $0x60] sm:$0xff] %vm9520_vm12, %v1743_v9  ;;  %5531 = vmatprep.mubr.msk.f32.mxu0 %vm9522_vm10, %v2179_v22  ;;  %vm9528_vm10 = vnez %v9527_v55  ;;  %vm9529_vm12 = vcmask 294144   ;;  %v1556_v9 = vld [vmem:[#allocation2 + $0x117] sm:$0xff] }
 0x1f4   : > { %v1745_v45 = vpop.permute.xlu1 %1744  ;;  %1931 = vrot.lane.b32.xlu0 %v1584_v5, %s5681_s5  ;;  %v1040_v15 = vsel %vm9528_vm10, %v9526_v13, %v1617_v26  ;;  %v1683_v54 = vsel %vm9528_vm10, %v1555_v11, %v1619_v53  ;;  %v9545_v22 = vld [vmem:[#allocation52_spill] sm:$0xff]  ;;  %vm9551_vm10 = vcmask 293888  }
 0x1f5   : > { %1828 = vst.msk [vmem:[#allocation3 + $0x68] sm:$0xff] %vm9521_vm0, %v1745_v45  ;;  %vm9530_vm0 = vcmask 195744   ;;  %v1620_v45 = vld [vmem:[#allocation2 + $0x119] sm:$0xff] }
 0x1f6   : > { %1933 = vrot.lane.b32.xlu1 %v1585_v49, %s5681_s5  ;;  %v1904_v31 = vpop.permute.xlu0 %1903  ;;  %v2180_v51 = vld [vmem:[#allocation3 + $0x58] sm:$0xff] }
 0x1f7   : > { %1988 = vst.msk [vmem:[#allocation3 + $0x60] sm:$0xff] %vm9523_vm13, %v1904_v31  ;;  %5532 = vmatmul.mubr.msk.f32.gmra.mxu0 %vm9525_vm14, %v2180_v51  ;;  %vm9532_vm14 = vnez %v9531_v43  ;;  %vm9533_vm13 = vmmov %vm9529_vm12 }
 0x1f8   : > { %v1906_v28 = vpop.permute.xlu1 %1905  ;;  %2092 = vrot.lane.b32.xlu0 %v1616_v40, %s5682_s8  ;;  %v1650_v50 = vsel %vm9532_vm14, %v1618_v63, %v1554_v25  ;;  %vm9540_vm14 = vmmov %vm9537_vm15  ;;  %v5664_v40 = vld [vmem:[#allocation2 + $0x109] sm:$0xff] }
 0x1f9   : > { %1989 = vst.msk [vmem:[#allocation3 + $0x68] sm:$0xff] %vm9524_vm11, %v1906_v28  ;;  %vm9534_vm11 = vmmov %vm9530_vm0  ;;  %v1557_v28 = vld [vmem:[#allocation2 + $0x11f] sm:$0xff] }
 0x1fa   : > { %1453 = vrot.lane.b32.xlu1 %v5663_v23, %s5679_s22  ;;  %v2065_v44 = vpop.permute.xlu0 %2064  ;;  %v1588_v23 = vld [vmem:[#allocation2 + $0x118] sm:$0xff] }
 0x1fb   : > { %2149 = vst.msk [vmem:[#allocation3 + $0x60] sm:$0xff] %vm9529_vm12, %v2065_v44  ;;  %vm9535_vm12 = vcmask 228544  }
 0x1fc   : > { %v1426_v24 = vpop.permute.xlu1 %1425  ;;  %2094 = vrot.lane.b32.xlu0 %v1681_v6, %s5682_s8  ;;  %v1589_v6 = vld [vmem:[#allocation2 + $0x120] sm:$0xff] }
 0x1fd   : > { %1508 = vst.msk [vmem:[#allocation3 + $0x70] sm:$0xff] %vm9530_vm0, %v1426_v24  ;;  %vm9536_vm0 = vmmov %vm9535_vm12  ;;  %v1621_v24 = vld [vmem:[#allocation2 + $0x121] sm:$0xff] }
 0x1fe   : > { %1455 = vrot.lane.b32.xlu1 %v1040_v15, %s5679_s22  ;;  %v2067_v0 = vpop.permute.xlu0 %2066 }
 0x1ff   : > { %2150 = vst.msk [vmem:[#allocation3 + $0x68] sm:$0xff] %vm9533_vm13, %v2067_v0  ;;  %vm9538_vm13 = vcmask 261344  }
 0x200   : > { %v1428_v47 = vpop.permute.xlu1 %1427  ;;  %1774 = vrot.lane.b32.xlu0 %v1650_v50, %s5680_s27 }
 0x201   : > { %1509 = vst.msk [vmem:[#allocation3 + $0x78] sm:$0xff] %vm9534_vm11, %v1428_v47  ;;  %vm9539_vm11 = vmmov %vm9538_vm13 }
 0x202   : > { %1776 = vrot.lane.b32.xlu1 %v1555_v11, %s5680_s27  ;;  %v1747_v46 = vpop.permute.xlu0 %1746  ;;  %v2181_v17 = vld [vmem:[#allocation3 + $0x60] sm:$0xff] }
 0x203   : > { %1829 = vst.msk [vmem:[#allocation3 + $0x70] sm:$0xff] %vm9535_vm12, %v1747_v46  ;;  %5534 = vmatprep.mubr.msk.f32.mxu0 %vm9537_vm15, %v2181_v17  ;;  %vm9542_vm15 = vnez %v9541_v36  ;;  %vm9543_vm12 = vcmask 294144  }
 0x204   : > { %v1749_v2 = vpop.permute.xlu1 %1748  ;;  %1935 = vrot.lane.b32.xlu0 %v1586_v59, %s5681_s5  ;;  %v1042_v12 = vsel %vm9542_vm15, %v5665_v29, %v1619_v53  ;;  %v1685_v25 = vsel %vm9542_vm15, %v1557_v28, %v1621_v24 }
 0x205   : > { %1830 = vst.msk [vmem:[#allocation3 + $0x78] sm:$0xff] %vm9536_vm0, %v1749_v2  ;;  %vm9544_vm0 = vcmask 195744  }
 0x206   : > { %1937 = vrot.lane.b32.xlu1 %v1587_v14, %s5681_s5  ;;  %v1908_v52 = vpop.permute.xlu0 %1907  ;;  %v2182_v1 = vld [vmem:[#allocation3 + $0x68] sm:$0xff] }
 0x207   : > { %1990 = vst.msk [vmem:[#allocation3 + $0x70] sm:$0xff] %vm9538_vm13, %v1908_v52  ;;  %5535 = vmatmul.mubr.msk.f32.gmra.mxu0 %vm9540_vm14, %v2182_v1  ;;  %vm9546_vm14 = vnez %v9545_v22  ;;  %vm9547_vm13 = vmmov %vm9543_vm12 }
 0x208   : > { %v1910_v30 = vpop.permute.xlu1 %1909  ;;  %2096 = vrot.lane.b32.xlu0 %v1618_v63, %s5682_s8  ;;  %v1652_v31 = vsel %vm9546_vm14, %v1620_v45, %v1556_v9  ;;  %vm9554_vm14 = vmmov %vm9551_vm10 }
 0x209   : > { %1991 = vst.msk [vmem:[#allocation3 + $0x78] sm:$0xff] %vm9539_vm11, %v1910_v30  ;;  %vm9548_vm11 = vmmov %vm9544_vm0 }
 0x20a   : > { %1457 = vrot.lane.b32.xlu1 %v5664_v40, %s5679_s22  ;;  %v2069_v5 = vpop.permute.xlu0 %2068 }
 0x20b   : > { %2151 = vst.msk [vmem:[#allocation3 + $0x70] sm:$0xff] %vm9543_vm12, %v2069_v5  ;;  %vm9549_vm12 = vcmask 228544  }
 0x20c   : > { %v1430_v49 = vpop.permute.xlu1 %1429  ;;  %2098 = vrot.lane.b32.xlu0 %v1683_v54, %s5682_s8 }
 0x20d   : > { %1510 = vst.msk [vmem:[#allocation3 + $0x80] sm:$0xff] %vm9544_vm0, %v1430_v49  ;;  %vm9550_vm0 = vmmov %vm9549_vm12 }
 0x20e   : > { %1459 = vrot.lane.b32.xlu1 %v1042_v12, %s5679_s22  ;;  %v2071_v51 = vpop.permute.xlu0 %2070 }
 0x20f   : > { %2152 = vst.msk [vmem:[#allocation3 + $0x78] sm:$0xff] %vm9547_vm13, %v2071_v51  ;;  %vm9552_vm13 = vcmask 261344  }
 0x210   : > { %v1432_v26 = vpop.permute.xlu1 %1431  ;;  %1778 = vrot.lane.b32.xlu0 %v1652_v31, %s5680_s27 }
 0x211   : > { %1511 = vst.msk [vmem:[#allocation3 + $0x88] sm:$0xff] %vm9548_vm11, %v1432_v26  ;;  %vm9553_vm11 = vmmov %vm9552_vm13 }
 0x212   : > { %1780 = vrot.lane.b32.xlu1 %v1557_v28, %s5680_s27  ;;  %v1751_v13 = vpop.permute.xlu0 %1750  ;;  %v2183_v44 = vld [vmem:[#allocation3 + $0x70] sm:$0xff] }
 0x213   : > { %1831 = vst.msk [vmem:[#allocation3 + $0x80] sm:$0xff] %vm9549_vm12, %v1751_v13  ;;  %5537 = vmatprep.mubr.msk.f32.mxu0 %vm9551_vm10, %v2183_v44  ;;  %vm9555_vm10 = vcmask 294144   ;;  %vm9556_vm12 = vcmask 195744  }
 0x214   : > { %v1753_v15 = vpop.permute.xlu1 %1752  ;;  %1939 = vrot.lane.b32.xlu0 %v1588_v23, %s5681_s5  ;;  %vm9558_vm15 = vmmov %vm9556_vm12 }
 0x215   : > { %1832 = vst.msk [vmem:[#allocation3 + $0x88] sm:$0xff] %vm9550_vm0, %v1753_v15  ;;  %vm9557_vm0 = vmmov %vm9555_vm10 }
 0x216   : > { %1941 = vrot.lane.b32.xlu1 %v1589_v6, %s5681_s5  ;;  %v1912_v63 = vpop.permute.xlu0 %1911  ;;  %v2184_v11 = vld [vmem:[#allocation3 + $0x78] sm:$0xff] }
 0x217   : > { %1992 = vst.msk [vmem:[#allocation3 + $0x80] sm:$0xff] %vm9552_vm13, %v1912_v63  ;;  %5538 = vmatmul.mubr.msk.f32.gmra.mxu0 %vm9554_vm14, %v2184_v11  ;;  %vm9559_vm14 = vcmask 228544  }
 0x218   : > { %v1914_v50 = vpop.permute.xlu1 %1913  ;;  %2100 = vrot.lane.b32.xlu0 %v1620_v45, %s5682_s8  ;;  %vm9560_vm13 = vmmov %vm9559_vm14 }
 0x219   : > { %1993 = vst.msk [vmem:[#allocation3 + $0x88] sm:$0xff] %vm9553_vm11, %v1914_v50  ;;  %vm9561_vm11 = vcmask 293888  }
 0x21a   : > { %2102 = vrot.lane.b32.xlu1 %v1685_v25, %s5682_s8  ;;  %v2073_v0 = vpop.permute.xlu0 %2072  ;;  %vm9564_vm9 = vmmov %vm9561_vm11 }
 0x21b   : > { %2153 = vst.msk [vmem:[#allocation3 + $0x80] sm:$0xff] %vm9555_vm10, %v2073_v0  ;;  %vm9562_vm10 = vcmask 261344  }
 0x21c   : > { %v1434_v47 = vpop.permute.xlu1 %1433 }
 0x21d   : > { %1512 = vst.msk [vmem:[#allocation3 + $0x90] sm:$0xff] %vm9556_vm12, %v1434_v47  ;;  %vm9563_vm12 = vmmov %vm9562_vm10 }
 0x21e   : > { %v2075_v59 = vpop.permute.xlu0 %2074 }
 0x21f   : > { %2154 = vst.msk [vmem:[#allocation3 + $0x88] sm:$0xff] %vm9557_vm0, %v2075_v59 }
 0x220   : > { %v1436_v14 = vpop.permute.xlu1 %1435 }
 0x221   : > { %1513 = vst.msk [vmem:[#allocation3 + $0x98] sm:$0xff] %vm9558_vm15, %v1436_v14  ;;  %vm9565_vm15 = vmmov %vm9557_vm0  ;;  %vm9566_vm0 = vcmask 195744  }
 0x222   : > { %v1755_v46 = vpop.permute.xlu0 %1754  ;;  %v2185_v17 = vld [vmem:[#allocation3 + $0x80] sm:$0xff] }
 0x223   : > { %1833 = vst.msk [vmem:[#allocation3 + $0x90] sm:$0xff] %vm9559_vm14, %v1755_v46  ;;  %5540 = vmatprep.mubr.msk.f32.mxu0 %vm9561_vm11, %v2185_v17  ;;  %vm9567_vm14 = vmmov %vm9565_vm15  ;;  %vm9569_vm11 = vcmask 228544  }
 0x224   : > { %v1757_v2 = vpop.permute.xlu1 %1756 }
 0x225   : > { %1834 = vst.msk [vmem:[#allocation3 + $0x98] sm:$0xff] %vm9560_vm13, %v1757_v2  ;;  %vm9568_vm13 = vmmov %vm9566_vm0 }
 0x226   : > { %v1916_v52 = vpop.permute.xlu0 %1915  ;;  %v2186_v1 = vld [vmem:[#allocation3 + $0x88] sm:$0xff] }
 0x227   : > { %1994 = vst.msk [vmem:[#allocation3 + $0x90] sm:$0xff] %vm9562_vm10, %v1916_v52  ;;  %5541 = vmatmul.mubr.msk.f32.gmra.mxu0 %vm9564_vm9, %v2186_v1  ;;  %vm9570_vm10 = vmmov %vm9569_vm11 }
 0x228   : > { %v1918_v30 = vpop.permute.xlu1 %1917 }
 0x229   : > { %1995 = vst.msk [vmem:[#allocation3 + $0x98] sm:$0xff] %vm9563_vm12, %v1918_v30 }
 0x22a   : > { %v2077_v53 = vpop.permute.xlu0 %2076 }
 0x22b   : > { %2155 = vst.msk [vmem:[#allocation3 + $0x90] sm:$0xff] %vm9565_vm15, %v2077_v53  ;;  %vm9571_vm15 = vmmov %vm9563_vm12 }
 0x22c   : > { %v1438_v40 = vpop.permute.xlu1 %1437 }
 0x22d   : > { %1514 = vst.msk [vmem:[#allocation3 + $0xa0] sm:$0xff] %vm9566_vm0, %v1438_v40  ;;  %vm9572_vm0 = vmmov %vm9564_vm9 }
 0x22e   : > { %v2079_v54 = vpop.permute.xlu0 %2078 }
 0x22f   : > { %2156 = vst.msk [vmem:[#allocation3 + $0x98] sm:$0xff] %vm9567_vm14, %v2079_v54 }
 0x230   : > { %v1440_v29 = vpop.permute.xlu1 %1439 }
 0x231   : > { %1515 = vst.msk [vmem:[#allocation3 + $0xa8] sm:$0xff] %vm9568_vm13, %v1440_v29 }
 0x232   : > { %v1759_v12 = vpop.permute.xlu0 %1758  ;;  %v2187_v49 = vld [vmem:[#allocation3 + $0x90] sm:$0xff] }
 0x233   : > { %1835 = vst.msk [vmem:[#allocation3 + $0xa0] sm:$0xff] %vm9569_vm11, %v1759_v12  ;;  %5543 = vmatprep.mubr.msk.f32.mxu0 %vm9564_vm9, %v2187_v49  ;;  %vm9573_vm11 = vmmov %vm9567_vm14  ;;  %vm9575_vm9 = vcmask 228544  }
 0x234   : > { %v1761_v5 = vpop.permute.xlu1 %1760 }
 0x235   : > { %1836 = vst.msk [vmem:[#allocation3 + $0xa8] sm:$0xff] %vm9570_vm10, %v1761_v5  ;;  %vm9574_vm10 = vmmov %vm9568_vm13 }
 0x236   : > { %v1920_v9 = vpop.permute.xlu0 %1919  ;;  %v2188_v31 = vld [vmem:[#allocation3 + $0x98] sm:$0xff] }
 0x237   : > { %1996 = vst.msk [vmem:[#allocation3 + $0xa0] sm:$0xff] %vm9563_vm12, %v1920_v9  ;;  %5544 = vmatmul.mubr.msk.f32.gmra.mxu0 %vm9572_vm0, %v2188_v31  ;;  %vm9576_vm12 = vmmov %vm9575_vm9 }
 0x238   : > { %v1922_v45 = vpop.permute.xlu1 %1921 }
 0x239   : > { %1997 = vst.msk [vmem:[#allocation3 + $0xa8] sm:$0xff] %vm9571_vm15, %v1922_v45  ;;  %vm9577_vm15 = vmmov %vm9572_vm0  ;;  %vm9578_vm0 = vcmask 261344  }
 0x23a   : > { %v2081_v28 = vpop.permute.xlu0 %2080 }
 0x23b   : > { %2157 = vst.msk [vmem:[#allocation3 + $0xa0] sm:$0xff] %vm9567_vm14, %v2081_v28  ;;  %vm9579_vm14 = vmmov %vm9578_vm0 }
 0x23c   : > { %v1442_v51 = vpop.permute.xlu1 %1441 }
 0x23d   : > { %1516 = vst.msk [vmem:[#allocation3 + $0xb0] sm:$0xff] %vm9568_vm13, %v1442_v51  ;;  %vm9580_vm13 = vmmov %vm9577_vm15 }
 0x23e   : > { %v2083_v26 = vpop.permute.xlu0 %2082 }
 0x23f   : > { %2158 = vst.msk [vmem:[#allocation3 + $0xa8] sm:$0xff] %vm9573_vm11, %v2083_v26 }
 0x240   : > { %v1444_v23 = vpop.permute.xlu1 %1443 }
 0x241   : > { %1517 = vst.msk [vmem:[#allocation3 + $0xb8] sm:$0xff] %vm9574_vm10, %v1444_v23 }
 0x242   : > { %v1763_v6 = vpop.permute.xlu0 %1762  ;;  %v2189_v15 = vld [vmem:[#allocation3 + $0xa0] sm:$0xff] }
 0x243   : > { %1837 = vst.msk [vmem:[#allocation3 + $0xb0] sm:$0xff] %vm9575_vm9, %v1763_v6  ;;  %5546 = vmatprep.mubr.msk.f32.mxu0 %vm9577_vm15, %v2189_v15  ;;  %vm9581_vm9 = vmmov %vm9573_vm11  ;;  %vm9583_vm15 = vcmask 228544  }
 0x244   : > { %v1765_v13 = vpop.permute.xlu1 %1764 }
 0x245   : > { %1838 = vst.msk [vmem:[#allocation3 + $0xb8] sm:$0xff] %vm9576_vm12, %v1765_v13  ;;  %vm9582_vm12 = vmmov %vm9574_vm10 }
 0x246   : > { %v1924_v44 = vpop.permute.xlu0 %1923  ;;  %v2190_v25 = vld [vmem:[#allocation3 + $0xa8] sm:$0xff] }
 0x247   : > { %1998 = vst.msk [vmem:[#allocation3 + $0xb0] sm:$0xff] %vm9578_vm0, %v1924_v44  ;;  %5547 = vmatmul.mubr.msk.f32.gmra.mxu0 %vm9580_vm13, %v2190_v25  ;;  %vm9584_vm0 = vmmov %vm9583_vm15 }
 0x248   : > { %v1926_v24 = vpop.permute.xlu1 %1925 }
 0x249   : > { %1999 = vst.msk [vmem:[#allocation3 + $0xb8] sm:$0xff] %vm9579_vm14, %v1926_v24  ;;  %vm9585_vm14 = vmmov %vm9580_vm13  ;;  %vm9586_vm13 = vcmask 261344  }
 0x24a   : > { %v2085_v63 = vpop.permute.xlu0 %2084 }
 0x24b   : > { %2159 = vst.msk [vmem:[#allocation3 + $0xb0] sm:$0xff] %vm9573_vm11, %v2085_v63  ;;  %vm9587_vm11 = vmmov %vm9586_vm13 }
 0x24c   : > { %v1446_v50 = vpop.permute.xlu1 %1445 }
 0x24d   : > { %1518 = vst.msk [vmem:[#allocation3 + $0xc0] sm:$0xff] %vm9574_vm10, %v1446_v50  ;;  %vm9588_vm10 = vmmov %vm9585_vm14 }
 0x24e   : > { %v2087_v11 = vpop.permute.xlu0 %2086 }
 0x24f   : > { %2160 = vst.msk [vmem:[#allocation3 + $0xb8] sm:$0xff] %vm9581_vm9, %v2087_v11 }
 0x250   : > { %v1448_v0 = vpop.permute.xlu1 %1447 }
 0x251   : > { %1519 = vst.msk [vmem:[#allocation3 + $0xc8] sm:$0xff] %vm9582_vm12, %v1448_v0 }
 0x252   : > { %v1767_v47 = vpop.permute.xlu0 %1766  ;;  %v2191_v14 = vld [vmem:[#allocation3 + $0xb0] sm:$0xff] }
 0x253   : > { %1839 = vst.msk [vmem:[#allocation3 + $0xc0] sm:$0xff] %vm9583_vm15, %v1767_v47  ;;  %5549 = vmatprep.mubr.msk.f32.mxu0 %vm9585_vm14, %v2191_v14  ;;  %vm9589_vm15 = vmmov %vm9581_vm9  ;;  %vm9591_vm14 = vcmask 228544  }
 0x254   : > { %v1769_v59 = vpop.permute.xlu1 %1768 }
 0x255   : > { %1840 = vst.msk [vmem:[#allocation3 + $0xc8] sm:$0xff] %vm9584_vm0, %v1769_v59  ;;  %vm9590_vm0 = vmmov %vm9582_vm12 }
 0x256   : > { %v1928_v46 = vpop.permute.xlu0 %1927  ;;  %v2192_v17 = vld [vmem:[#allocation3 + $0xb8] sm:$0xff] }
 0x257   : > { %2000 = vst.msk [vmem:[#allocation3 + $0xc0] sm:$0xff] %vm9586_vm13, %v1928_v46  ;;  %5550 = vmatmul.mubr.msk.f32.gmra.mxu0 %vm9588_vm10, %v2192_v17  ;;  %vm9592_vm13 = vmmov %vm9591_vm14 }
 0x258   : > { %v1930_v2 = vpop.permute.xlu1 %1929 }
 0x259   : > { %2001 = vst.msk [vmem:[#allocation3 + $0xc8] sm:$0xff] %vm9587_vm11, %v1930_v2  ;;  %vm9593_vm11 = vmmov %vm9588_vm10  ;;  %vm9594_vm10 = vcmask 261344  }
 0x25a   : > { %v2089_v52 = vpop.permute.xlu0 %2088 }
 0x25b   : > { %2161 = vst.msk [vmem:[#allocation3 + $0xc0] sm:$0xff] %vm9581_vm9, %v2089_v52  ;;  %vm9595_vm9 = vmmov %vm9594_vm10 }
 0x25c   : > { %v1450_v30 = vpop.permute.xlu1 %1449 }
 0x25d   : > { %1520 = vst.msk [vmem:[#allocation3 + $0xd0] sm:$0xff] %vm9582_vm12, %v1450_v30  ;;  %vm9596_vm12 = vmmov %vm9593_vm11 }
 0x25e   : > { %v2091_v1 = vpop.permute.xlu0 %2090 }
 0x25f   : > { %2162 = vst.msk [vmem:[#allocation3 + $0xc8] sm:$0xff] %vm9589_vm15, %v2091_v1 }
 0x260   : > { %v1452_v53 = vpop.permute.xlu1 %1451 }
 0x261   : > { %1521 = vst.msk [vmem:[#allocation3 + $0xd8] sm:$0xff] %vm9590_vm0, %v1452_v53 }
 0x262   : > { %v1771_v40 = vpop.permute.xlu0 %1770  ;;  %v2193_v29 = vld [vmem:[#allocation3 + $0xc0] sm:$0xff] }
 0x263   : > { %1841 = vst.msk [vmem:[#allocation3 + $0xd0] sm:$0xff] %vm9591_vm14, %v1771_v40  ;;  %5552 = vmatprep.mubr.msk.f32.mxu0 %vm9593_vm11, %v2193_v29  ;;  %vm9597_vm14 = vmmov %vm9589_vm15  ;;  %vm9599_vm11 = vcmask 228544  }
 0x264   : > { %v1773_v54 = vpop.permute.xlu1 %1772 }
 0x265   : > { %1842 = vst.msk [vmem:[#allocation3 + $0xd8] sm:$0xff] %vm9592_vm13, %v1773_v54  ;;  %vm9598_vm13 = vmmov %vm9590_vm0 }
 0x266   : > { %v1932_v12 = vpop.permute.xlu0 %1931  ;;  %v2194_v49 = vld [vmem:[#allocation3 + $0xc8] sm:$0xff] }
 0x267   : > { %2002 = vst.msk [vmem:[#allocation3 + $0xd0] sm:$0xff] %vm9594_vm10, %v1932_v12  ;;  %5553 = vmatmul.mubr.msk.f32.gmra.mxu0 %vm9596_vm12, %v2194_v49  ;;  %vm9600_vm10 = vmmov %vm9599_vm11 }
 0x268   : > { %v1934_v5 = vpop.permute.xlu1 %1933 }
 0x269   : > { %2003 = vst.msk [vmem:[#allocation3 + $0xd8] sm:$0xff] %vm9595_vm9, %v1934_v5  ;;  %vm9601_vm9 = vmmov %vm9596_vm12  ;;  %vm9602_vm12 = vcmask 261344  }
 0x26a   : > { %v2093_v9 = vpop.permute.xlu0 %2092 }
 0x26b   : > { %2163 = vst.msk [vmem:[#allocation3 + $0xd0] sm:$0xff] %vm9589_vm15, %v2093_v9  ;;  %vm9603_vm15 = vmmov %vm9602_vm12 }
 0x26c   : > { %v1454_v45 = vpop.permute.xlu1 %1453 }
 0x26d   : > { %1522 = vst.msk [vmem:[#allocation3 + $0xe0] sm:$0xff] %vm9590_vm0, %v1454_v45  ;;  %vm9604_vm0 = vmmov %vm9601_vm9 }
 0x26e   : > { %v2095_v31 = vpop.permute.xlu0 %2094 }
 0x26f   : > { %2164 = vst.msk [vmem:[#allocation3 + $0xd8] sm:$0xff] %vm9597_vm14, %v2095_v31 }
 0x270   : > { %v1456_v28 = vpop.permute.xlu1 %1455 }
 0x271   : > { %1523 = vst.msk [vmem:[#allocation3 + $0xe8] sm:$0xff] %vm9598_vm13, %v1456_v28 }
 0x272   : > { %v1775_v51 = vpop.permute.xlu0 %1774  ;;  %v2195_v23 = vld [vmem:[#allocation3 + $0xd0] sm:$0xff] }
 0x273   : > { %1843 = vst.msk [vmem:[#allocation3 + $0xe0] sm:$0xff] %vm9599_vm11, %v1775_v51  ;;  %5555 = vmatprep.mubr.msk.f32.mxu0 %vm9601_vm9, %v2195_v23  ;;  %vm9605_vm11 = vmmov %vm9597_vm14  ;;  %vm9607_vm9 = vcmask 228544  }
 0x274   : > { %v1777_v26 = vpop.permute.xlu1 %1776 }
 0x275   : > { %1844 = vst.msk [vmem:[#allocation3 + $0xe8] sm:$0xff] %vm9600_vm10, %v1777_v26  ;;  %vm9606_vm10 = vmmov %vm9598_vm13 }
 0x276   : > { %v1936_v6 = vpop.permute.xlu0 %1935  ;;  %v2196_v15 = vld [vmem:[#allocation3 + $0xd8] sm:$0xff] }
 0x277   : > { %2004 = vst.msk [vmem:[#allocation3 + $0xe0] sm:$0xff] %vm9602_vm12, %v1936_v6  ;;  %5556 = vmatmul.mubr.msk.f32.gmra.mxu0 %vm9604_vm0, %v2196_v15  ;;  %vm9608_vm12 = vmmov %vm9607_vm9  ;;  %v7201_v30 = vpop.f32.mrf.mxu0 }
 0x278   : > { %v1938_v13 = vpop.permute.xlu1 %1937  ;;  %v2604_v12 = vmul.f32 %v7201_v30, %v7201_v30 }
 0x279   : > { %2005 = vst.msk [vmem:[#allocation3 + $0xe8] sm:$0xff] %vm9603_vm15, %v1938_v13  ;;  %vm9609_vm15 = vmmov %vm9604_vm0  ;;  %vm9610_vm0 = vcmask 261344   ;;  %v7203_v1 = vpop.f32.mrf.mxu0 }
 0x27a   : > { %v2097_v44 = vpop.permute.xlu0 %2096  ;;  %v2603_v54 = vmul.f32 %v7203_v1, %v7203_v1 }
 0x27b   : > { %2165 = vst.msk [vmem:[#allocation3 + $0xe0] sm:$0xff] %vm9597_vm14, %v2097_v44  ;;  %vm9611_vm14 = vmmov %vm9610_vm0 }
 0x27c   : > { %v1458_v24 = vpop.permute.xlu1 %1457 }
 0x27d   : > { %1524 = vst.msk [vmem:[#allocation3 + $0xf0] sm:$0xff] %vm9598_vm13, %v1458_v24  ;;  %vm9612_vm13 = vmmov %vm9609_vm15 }
 0x27e   : > { %v2099_v25 = vpop.permute.xlu0 %2098 }
 0x27f   : > { %2166 = vst.msk [vmem:[#allocation3 + $0xe8] sm:$0xff] %vm9605_vm11, %v2099_v25 }
 0x280   : > { %v1460_v63 = vpop.permute.xlu1 %1459 }
 0x281   : > { %1525 = vst.msk [vmem:[#allocation3 + $0xf8] sm:$0xff] %vm9606_vm10, %v1460_v63  ;;  %vm9613_vm10 = vmmov %vm9605_vm11 }
 0x282   : > { %v1779_v50 = vpop.permute.xlu0 %1778  ;;  %v2197_v0 = vld [vmem:[#allocation3 + $0xe0] sm:$0xff] }
 0x283   : > { %1845 = vst.msk [vmem:[#allocation3 + $0xf0] sm:$0xff] %vm9607_vm9, %v1779_v50  ;;  %5558 = vmatprep.mubr.msk.f32.mxu0 %vm9609_vm15, %v2197_v0  ;;  %vm9614_vm9 = vmmov %vm9612_vm13  ;;  %v7205_v53 = vpop.f32.mrf.mxu0  ;;  %vm9616_vm15 = vcmask 31744  }
 0x284   : > { %v1781_v11 = vpop.permute.xlu1 %1780  ;;  %v2532_v5 = vsel %vm9616_vm15, %v7203_v1, 0.0  ;;  %v2606_v44 = vmul.f32 %v7205_v53, %v7205_v53 }
 0x285   : > { %1846 = vst.msk [vmem:[#allocation3 + $0xf8] sm:$0xff] %vm9608_vm12, %v1781_v11  ;;  %vm9615_vm12 = vmmov %vm9614_vm9  ;;  %v7207_v40 = vpop.f32.mrf.mxu0 }
 0x286   : > { %v1940_v47 = vpop.permute.xlu0 %1939  ;;  %v2198_v14 = vld [vmem:[#allocation3 + $0xe8] sm:$0xff]  ;;  %v2605_v49 = vmul.f32 %v7207_v40, %v7207_v40 }
 0x287   : > { %2006 = vst.msk [vmem:[#allocation3 + $0xf0] sm:$0xff] %vm9610_vm0, %v1940_v47  ;;  %5559 = vmatmul.mubr.msk.f32.gmra.mxu0 %vm9612_vm13, %v2198_v14  ;;  %vm9617_vm0 = vmmov %vm9616_vm15 }
 0x288   : > { %v1942_v59 = vpop.permute.xlu1 %1941  ;;  %v2533_v9 = vsel %vm9617_vm0, %v7201_v30, 0.0  ;;  %vm9619_vm13 = vmmov %vm9617_vm0 }
 0x289   : > { %2007 = vst.msk [vmem:[#allocation3 + $0xf8] sm:$0xff] %vm9611_vm14, %v1942_v59  ;;  %vm9618_vm14 = vmmov %vm9617_vm0  ;;  %v2535_v31 = vsel %vm9619_vm13, %v7207_v40, 0.0  ;;  %v2534_v28 = vadd.f32 %v2533_v9, %v2532_v5 }
 0x28a   : > { %v2101_v46 = vpop.permute.xlu0 %2100  ;;  %v2635_v45 = vsel %vm9618_vm14, %v2603_v54, 0.0  ;;  %vm9624_vm15 = vmmov %vm9617_vm0 }
 0x28b   : > { %2167 = vst.msk [vmem:[#allocation3 + $0xf0] sm:$0xff] %vm9605_vm11, %v2101_v46  ;;  %vm9620_vm11 = vmmov %vm9617_vm0  ;;  %v2536_v13 = vadd.f32 %v2535_v31, %v2534_v28  ;;  %v2640_v47 = vsel %vm9624_vm15, %v2606_v44, 0.0 }
 0x28c   : > { %v2103_v2 = vpop.permute.xlu1 %2102  ;;  %v2636_v26 = vsel %vm9620_vm11, %v2604_v12, 0.0  ;;  %vm9625_vm14 = vmmov %vm9617_vm0 }
 0x28d   : > { %2168 = vst.msk [vmem:[#allocation3 + $0xf8] sm:$0xff] %vm9613_vm10, %v2103_v2  ;;  %vm9621_vm10 = vmmov %vm9617_vm0  ;;  %v2637_v6 = vadd.f32 %v2636_v26, %v2635_v45 }
 0x28e   : > { %v2638_v23 = vsel %vm9621_vm10, %v2605_v49, 0.0  ;;  %vm9626_vm13 = vmmov %vm9617_vm0 }
 0x28f   : > { %v7211_v29 = vpop.f32.mrf.mxu0  ;;  %v2639_v25 = vadd.f32 %v2638_v23, %v2637_v6  ;;  %vm9627_vm11 = vmmov %vm9617_vm0 }
 0x290   : > { %v2541_v12 = vsel %vm9625_vm14, %v7211_v29, 0.0  ;;  %vm9628_vm10 = vmmov %vm9617_vm0 }
 0x291   : > { %v7224_v51 = vpop.f32.mrf.mxu0  ;;  %v2641_v46 = vadd.f32 %v2640_v47, %v2639_v25  ;;  %vm9631_vm15 = vmmov %vm9617_vm0 }
 0x292   : > { %v2199_v17 = vld [vmem:[#allocation3 + $0xf0] sm:$0xff]  ;;  %v2607_v24 = vmul.f32 %v7224_v51, %v7224_v51  ;;  %vm9632_vm14 = vmmov %vm9617_vm0 }
 0x293   : > { %5561 = vmatprep.mubr.msk.f32.mxu0 %vm9614_vm9, %v2199_v17  ;;  %vm9622_vm9 = vmmov %vm9617_vm0  ;;  %v2608_v17 = vmul.f32 %v7211_v29, %v7211_v29 }
 0x294   : > { %v2200_v52 = vld [vmem:[#allocation3 + $0xf8] sm:$0xff]  ;;  %v2537_v63 = vsel %vm9622_vm9, %v7205_v53, 0.0  ;;  %v2642_v59 = vsel %vm9617_vm0, %v2607_v24, 0.0  ;;  %vm9629_vm9 = vmmov %vm9617_vm0 }
 0x295   : > { %5562 = vmatmul.mubr.msk.f32.gmra.mxu0 %vm9615_vm12, %v2200_v52  ;;  %vm9623_vm12 = vmmov %vm9617_vm0  ;;  %v2538_v11 = vadd.f32 %v2537_v63, %v2536_v13  ;;  %v2643_v54 = vadd.f32 %v2642_v59, %v2641_v46  ;;  %v2644_v45 = vsel %vm9627_vm11, %v2608_v17, 0.0 }
 0x296   : > { %v2539_v50 = vsel %vm9623_vm12, %v7224_v51, 0.0  ;;  %vm9630_vm12 = vmmov %vm9617_vm0 }
 0x297   : > { %v2540_v14 = vadd.f32 %v2539_v50, %v2538_v11  ;;  %v2645_v26 = vadd.f32 %v2644_v45, %v2643_v54  ;;  %vm9634_vm11 = vmmov %vm9617_vm0 }
 0x298   : > { %vm9699_vm8 = vmmov %vm9617_vm0 }
 0x299   : > { %v2542_v49 = vadd.f32 %v2541_v12, %v2540_v14  ;;  %vm9700_vm7 = vmmov %vm9617_vm0 }
 0x29b   : > { %v7228_v15 = vpop.f32.mrf.mxu0 }
 0x29c   : > { %v2610_v6 = vmul.f32 %v7228_v15, %v7228_v15  ;;  %v2545_v24 = vsel %vm9629_vm9, %v7228_v15, 0.0  ;;  %vm9636_vm9 = vmmov %vm9617_vm0 }
 0x29d   : > { %v7238_v0 = vpop.f32.mrf.mxu0 }
 0x29e   : > { %v2609_v52 = vmul.f32 %v7238_v0, %v7238_v0  ;;  %v2543_v5 = vsel %vm9626_vm13, %v7238_v0, 0.0  ;;  %v2648_v11 = vsel %vm9631_vm15, %v2610_v6, 0.0  ;;  %vm9633_vm13 = vmmov %vm9617_vm0 }
 0x29f   : > { %v2544_v28 = vadd.f32 %v2543_v5, %v2542_v49  ;;  %vm9638_vm15 = vmmov %vm9617_vm0 }
 0x2a0   : > { %v2646_v31 = vsel %vm9628_vm10, %v2609_v52, 0.0  ;;  %vm9635_vm10 = vmmov %vm9617_vm0 }
 0x2a1   : > { %v2647_v44 = vadd.f32 %v2646_v31, %v2645_v26  ;;  %v2546_v63 = vadd.f32 %v2545_v24, %v2544_v28 }
 0x2a3   : > { %v2649_v14 = vadd.f32 %v2648_v11, %v2647_v44 }
 0x2a7   : > { %v7242_v2 = vpop.f32.mrf.mxu0 }
 0x2a8   : > { %v2612_v17 = vmul.f32 %v7242_v2, %v7242_v2  ;;  %v2549_v12 = vsel %vm9632_vm14, %v7242_v2, 0.0  ;;  %vm9639_vm14 = vmmov %vm9617_vm0 }
 0x2a9   : > { %v7252_v9 = vpop.f32.mrf.mxu0 }
 0x2aa   : > { %v2611_v13 = vmul.f32 %v7252_v9, %v7252_v9  ;;  %v2547_v25 = vsel %vm9630_vm12, %v7252_v9, 0.0  ;;  %v2652_v31 = vsel %vm9634_vm11, %v2612_v17, 0.0  ;;  %vm9637_vm12 = vmmov %vm9617_vm0 }
 0x2ab   : > { %v2548_v59 = vadd.f32 %v2547_v25, %v2546_v63  ;;  %vm9641_vm11 = vmmov %vm9617_vm0 }
 0x2ac   : > { %v2650_v47 = vsel %vm9617_vm0, %v2611_v13, 0.0 }
 0x2ad   : > { %v2651_v54 = vadd.f32 %v2650_v47, %v2649_v14  ;;  %v2550_v49 = vadd.f32 %v2549_v12, %v2548_v59 }
 0x2af   : > { %v2653_v6 = vadd.f32 %v2652_v31, %v2651_v54 }
 0x2b7   : > { %v7256_v23 = vpop.f32.mrf.mxu0 }
 0x2b8   : > { %v2614_v44 = vmul.f32 %v7256_v23, %v7256_v23  ;;  %v2553_v63 = vsel %vm9636_vm9, %v7256_v23, 0.0  ;;  %vm9643_vm9 = vmmov %vm9617_vm0 }
 0x2b9   : > { %v7266_v50 = vpop.f32.mrf.mxu0 }
 0x2ba   : > { %v2613_v52 = vmul.f32 %v7266_v50, %v7266_v50  ;;  %v2551_v5 = vsel %vm9633_vm13, %v7266_v50, 0.0  ;;  %v2656_v14 = vsel %vm9638_vm15, %v2614_v44, 0.0  ;;  %vm9640_vm13 = vmmov %vm9617_vm0 }
 0x2bb   : > { %v2552_v26 = vadd.f32 %v2551_v5, %v2550_v49  ;;  %vm9645_vm15 = vmmov %vm9617_vm0 }
 0x2bc   : > { %v2654_v28 = vsel %vm9635_vm10, %v2613_v52, 0.0  ;;  %vm9642_vm10 = vmmov %vm9617_vm0 }
 0x2bd   : > { %v2655_v25 = vadd.f32 %v2654_v28, %v2653_v6  ;;  %v2554_v47 = vadd.f32 %v2553_v63, %v2552_v26 }
 0x2bf   : > { %v2657_v54 = vadd.f32 %v2656_v14, %v2655_v25 }
 0x2c7   : > { %v7270_v46 = vpop.f32.mrf.mxu0 }
 0x2c8   : > { %v2616_v5 = vmul.f32 %v7270_v46, %v7270_v46  ;;  %v2557_v28 = vsel %vm9639_vm14, %v7270_v46, 0.0  ;;  %vm9646_vm14 = vmmov %vm9617_vm0 }
 0x2c9   : > { %v7280_v45 = vpop.f32.mrf.mxu0 }
 0x2ca   : > { %v2615_v24 = vmul.f32 %v7280_v45, %v7280_v45  ;;  %v2555_v11 = vsel %vm9637_vm12, %v7280_v45, 0.0  ;;  %vm9644_vm12 = vmmov %vm9617_vm0 }
 0x2cb   : > { %v2556_v52 = vadd.f32 %v2555_v11, %v2554_v47 }
 0x2cc   : > { %v2658_v17 = vsel %vm9617_vm0, %v2615_v24, 0.0  ;;  %v2660_v24 = vsel %vm9641_vm11, %v2616_v5, 0.0  ;;  %vm9648_vm11 = vmmov %vm9617_vm0 }
 0x2cd   : > { %v2659_v31 = vadd.f32 %v2658_v17, %v2657_v54  ;;  %v2558_v6 = vadd.f32 %v2557_v28, %v2556_v52 }
 0x2cf   : > { %v2661_v11 = vadd.f32 %v2660_v24, %v2659_v31 }
 0x2d7   : > { %v7284_v13 = vpop.f32.mrf.mxu0 }
 0x2d8   : > { %v2618_v14 = vmul.f32 %v7284_v13, %v7284_v13  ;;  %v2561_v52 = vsel %vm9643_vm9, %v7284_v13, 0.0  ;;  %vm9650_vm9 = vmmov %vm9617_vm0 }
 0x2d9   : > { %v7294_v59 = vpop.f32.mrf.mxu0 }
 0x2da   : > { %v2617_v49 = vmul.f32 %v7294_v59, %v7294_v59  ;;  %v2559_v26 = vsel %vm9640_vm13, %v7294_v59, 0.0  ;;  %vm9647_vm13 = vmmov %vm9617_vm0 }
 0x2db   : > { %v2560_v63 = vadd.f32 %v2559_v26, %v2558_v6 }
 0x2dc   : > { %v2662_v25 = vsel %vm9642_vm10, %v2617_v49, 0.0  ;;  %v2664_v49 = vsel %vm9645_vm15, %v2618_v14, 0.0  ;;  %vm9649_vm10 = vmmov %vm9617_vm0 }
 0x2dd   : > { %v2663_v54 = vadd.f32 %v2662_v25, %v2661_v11  ;;  %v2562_v5 = vadd.f32 %v2561_v52, %v2560_v63  ;;  %vm9652_vm15 = vmmov %vm9617_vm0 }
 0x2df   : > { %v2665_v6 = vadd.f32 %v2664_v49, %v2663_v54 }
 0x2e7   : > { %v7298_v12 = vpop.f32.mrf.mxu0 }
 0x2e8   : > { %v2620_v25 = vmul.f32 %v7298_v12, %v7298_v12  ;;  %v2565_v63 = vsel %vm9646_vm14, %v7298_v12, 0.0  ;;  %vm9653_vm14 = vmmov %vm9617_vm0 }
 0x2e9   : > { %v7308_v44 = vpop.f32.mrf.mxu0 }
 0x2ea   : > { %v2619_v17 = vmul.f32 %v7308_v44, %v7308_v44  ;;  %v2563_v28 = vsel %vm9644_vm12, %v7308_v44, 0.0  ;;  %vm9651_vm12 = vmmov %vm9617_vm0 }
 0x2eb   : > { %v2564_v26 = vadd.f32 %v2563_v28, %v2562_v5 }
 0x2ec   : > { %v2666_v31 = vsel %vm9617_vm0, %v2619_v17, 0.0  ;;  %v2668_v17 = vsel %vm9648_vm11, %v2620_v25, 0.0  ;;  %vm9655_vm11 = vmmov %vm9617_vm0 }
 0x2ed   : > { %v2667_v55 = vadd.f32 %v2666_v31, %v2665_v6  ;;  %v2566_v14 = vadd.f32 %v2565_v63, %v2564_v26 }
 0x2ef   : > { %v2669_v5 = vadd.f32 %v2668_v17, %v2667_v55 }
 0x2f7   : > { %v7312_v47 = vpop.f32.mrf.mxu0 }
 0x2f8   : > { %v2622_v31 = vmul.f32 %v7312_v47, %v7312_v47  ;;  %v2569_v26 = vsel %vm9650_vm9, %v7312_v47, 0.0  ;;  %vm9657_vm9 = vmmov %vm9617_vm0 }
 0x2f9   : > { %v7322_v36 = vpop.f32.mrf.mxu0 }
 0x2fa   : > { %v2621_v11 = vmul.f32 %v7322_v36, %v7322_v36  ;;  %v2567_v52 = vsel %vm9647_vm13, %v7322_v36, 0.0  ;;  %v2672_v55 = vsel %vm9652_vm15, %v2622_v31, 0.0  ;;  %vm9654_vm13 = vmmov %vm9617_vm0 }
 0x2fb   : > { %v2568_v28 = vadd.f32 %v2567_v52, %v2566_v14  ;;  %vm9659_vm15 = vmmov %vm9617_vm0 }
 0x2fc   : > { %v2670_v54 = vsel %vm9649_vm10, %v2621_v11, 0.0  ;;  %vm9656_vm10 = vmmov %vm9617_vm0 }
 0x2fd   : > { %v2671_v4 = vadd.f32 %v2670_v54, %v2669_v5  ;;  %v2570_v25 = vadd.f32 %v2569_v26, %v2568_v28 }
 0x2ff   : > { %v2673_v14 = vadd.f32 %v2672_v55, %v2671_v4 }
 0x307   : > { %v7326_v24 = vpop.f32.mrf.mxu0 }
 0x308   : > { %v2624_v54 = vmul.f32 %v7326_v24, %v7326_v24  ;;  %v2573_v28 = vsel %vm9653_vm14, %v7326_v24, 0.0  ;;  %vm9660_vm14 = vmmov %vm9617_vm0 }
 0x309   : > { %v7336_v3 = vpop.f32.mrf.mxu0 }
 0x30a   : > { %v2623_v6 = vmul.f32 %v7336_v3, %v7336_v3  ;;  %v2571_v63 = vsel %vm9651_vm12, %v7336_v3, 0.0  ;;  %v2676_v4 = vsel %vm9655_vm11, %v2624_v54, 0.0  ;;  %vm9658_vm12 = vmmov %vm9617_vm0 }
 0x30b   : > { %v2572_v52 = vadd.f32 %v2571_v63, %v2570_v25  ;;  %vm9662_vm11 = vmmov %vm9617_vm0 }
 0x30c   : > { %v2674_v11 = vsel %vm9617_vm0, %v2623_v6, 0.0 }
 0x30d   : > { %v2675_v7 = vadd.f32 %v2674_v11, %v2673_v14  ;;  %v2574_v31 = vadd.f32 %v2573_v28, %v2572_v52 }
 0x30f   : > { %v2677_v25 = vadd.f32 %v2676_v4, %v2675_v7 }
 0x317   : > { %v7340_v49 = vpop.f32.mrf.mxu0 }
 0x318   : > { %v2626_v11 = vmul.f32 %v7340_v49, %v7340_v49  ;;  %v2577_v52 = vsel %vm9657_vm9, %v7340_v49, 0.0  ;;  %vm9664_vm9 = vmmov %vm9617_vm0 }
 0x319   : > { %v7350_v20 = vpop.f32.mrf.mxu0 }
 0x31a   : > { %v2625_v5 = vmul.f32 %v7350_v20, %v7350_v20  ;;  %v2575_v26 = vsel %vm9654_vm13, %v7350_v20, 0.0  ;;  %v2680_v7 = vsel %vm9659_vm15, %v2626_v11, 0.0  ;;  %vm9661_vm13 = vmmov %vm9617_vm0 }
 0x31b   : > { %v2576_v63 = vadd.f32 %v2575_v26, %v2574_v31  ;;  %vm9666_vm15 = vmmov %vm9617_vm0 }
 0x31c   : > { %v2678_v6 = vsel %vm9656_vm10, %v2625_v5, 0.0  ;;  %vm9663_vm10 = vmmov %vm9617_vm0 }
 0x31d   : > { %v2679_v34 = vadd.f32 %v2678_v6, %v2677_v25  ;;  %v2578_v54 = vadd.f32 %v2577_v52, %v2576_v63 }
 0x31f   : > { %v2681_v31 = vadd.f32 %v2680_v7, %v2679_v34 }
 0x327   : > { %v7354_v17 = vpop.f32.mrf.mxu0 }
 0x328   : > { %v2628_v4 = vmul.f32 %v7354_v17, %v7354_v17  ;;  %v2581_v63 = vsel %vm9660_vm14, %v7354_v17, 0.0  ;;  %vm9667_vm14 = vmmov %vm9617_vm0 }
 0x329   : > { %v7364_v58 = vpop.f32.mrf.mxu0 }
 0x32a   : > { %v2627_v14 = vmul.f32 %v7364_v58, %v7364_v58  ;;  %v2579_v28 = vsel %vm9658_vm12, %v7364_v58, 0.0  ;;  %v2684_v34 = vsel %vm9662_vm11, %v2628_v4, 0.0  ;;  %vm9665_vm12 = vmmov %vm9617_vm0 }
 0x32b   : > { %v2580_v26 = vadd.f32 %v2579_v28, %v2578_v54  ;;  %vm9669_vm11 = vmmov %vm9617_vm0 }
 0x32c   : > { %v2682_v5 = vsel %vm9617_vm0, %v2627_v14, 0.0 }
 0x32d   : > { %v2683_v18 = vadd.f32 %v2682_v5, %v2681_v31  ;;  %v2582_v11 = vadd.f32 %v2581_v63, %v2580_v26 }
 0x32f   : > { %v2685_v54 = vadd.f32 %v2684_v34, %v2683_v18 }
 0x337   : > { %v7368_v55 = vpop.f32.mrf.mxu0 }
 0x338   : > { %v2630_v7 = vmul.f32 %v7368_v55, %v7368_v55  ;;  %v2585_v21 = vsel %vm9664_vm9, %v7368_v55, 0.0  ;;  %vm9671_vm9 = vmmov %vm9617_vm0 }
 0x339   : > { %v7378_v42 = vpop.f32.mrf.mxu0 }
 0x33a   : > { %v2629_v6 = vmul.f32 %v7378_v42, %v7378_v42  ;;  %v2583_v52 = vsel %vm9661_vm13, %v7378_v42, 0.0  ;;  %v2688_v4 = vsel %vm9666_vm15, %v2630_v7, 0.0  ;;  %vm9668_vm13 = vmmov %vm9617_vm0 }
 0x33b   : > { %v2584_v28 = vadd.f32 %v2583_v52, %v2582_v11  ;;  %vm9673_vm15 = vmmov %vm9617_vm0 }
 0x33c   : > { %v2686_v14 = vsel %vm9663_vm10, %v2629_v6, 0.0  ;;  %vm9670_vm10 = vmmov %vm9617_vm0 }
 0x33d   : > { %v2687_v31 = vadd.f32 %v2686_v14, %v2685_v54  ;;  %v2586_v63 = vadd.f32 %v2585_v21, %v2584_v28 }
 0x33f   : > { %v2689_v18 = vadd.f32 %v2688_v4, %v2687_v31 }
 0x347   : > { %v7386_v25 = vpop.f32.mrf.mxu0 }
 0x348   : > { %v2632_v11 = vmul.f32 %v7386_v25, %v7386_v25  ;;  %v2589_v14 = vsel %vm9667_vm14, %v7386_v25, 0.0  ;;  %vm9674_vm14 = vmmov %vm9617_vm0 }
 0x349   : > { %v7392_v41 = vpop.f32.mrf.mxu0 }
 0x34a   : > { %v2631_v5 = vmul.f32 %v7392_v41, %v7392_v41  ;;  %v2587_v26 = vsel %vm9665_vm12, %v7392_v41, 0.0  ;;  %v2692_v21 = vsel %vm9668_vm13, %v2632_v11, 0.0  ;;  %vm9672_vm12 = vmmov %vm9617_vm0 }
 0x34b   : > { %v2588_v52 = vadd.f32 %v2587_v26, %v2586_v63  ;;  %vm9675_vm13 = vmmov %vm9617_vm0 }
 0x34c   : > { %v2690_v6 = vsel %vm9617_vm0, %v2631_v5, 0.0 }
 0x34d   : > { %v2691_v34 = vadd.f32 %v2690_v6, %v2689_v18  ;;  %v2590_v39 = vadd.f32 %v2589_v14, %v2588_v52 }
 0x34f   : > { %v2693_v26 = vadd.f32 %v2692_v21, %v2691_v34 }
 0x355   : > { %v7408_v37 = vpop.f32.mrf.mxu0 }
 0x356   : > { %v2634_v28 = vmul.f32 %v7408_v37, %v7408_v37  ;;  %v2593_v63 = vsel %vm9670_vm10, %v7408_v37, 0.0  ;;  %vm9677_vm10 = vmmov %vm9617_vm0 }
 0x357   : > { %v7412_v54 = vpop.f32.mrf.mxu0 }
 0x358   : > { %v2591_v7 = vsel %vm9669_vm11, %v7412_v54, 0.0  ;;  %v2633_v5 = vmul.f32 %v7412_v54, %v7412_v54  ;;  %v2696_v18 = vsel %vm9672_vm12, %v2634_v28, 0.0  ;;  %vm9676_vm11 = vmmov %vm9617_vm0 }
 0x359   : > { %v2592_v31 = vadd.f32 %v2591_v7, %v2590_v39  ;;  %vm9679_vm12 = vmmov %vm9617_vm0 }
 0x35a   : > { %v2694_v4 = vsel %vm9671_vm9, %v2633_v5, 0.0  ;;  %vm9678_vm9 = vmmov %vm9617_vm0 }
 0x35b   : > { %v2594_v6 = vadd.f32 %v2593_v63, %v2592_v31  ;;  %v2695_v52 = vadd.f32 %v2694_v4, %v2693_v26 }
 0x35d   : > { %v2595_v11 = vrot.slane %v2594_v6, 4  ;;  %v2697_v14 = vadd.f32 %v2696_v18, %v2695_v52 }
 0x35f   : > { %v2596_v61 = vadd.f32 %v2595_v11, %v2594_v6  ;;  %v2698_v62 = vrot.slane %v2697_v14, 4 }
 0x361   : > { %v2597_v22 = vrot.slane %v2596_v61, 2  ;;  %v2699_v43 = vadd.f32 %v2698_v62, %v2697_v14 }
 0x363   : > { %v2598_v60 = vadd.f32 %v2597_v22, %v2596_v61  ;;  %v2700_v33 = vrot.slane %v2699_v43, 2 }
 0x365   : > { %v2599_v8 = vrot.slane %v2598_v60, 1  ;;  %v2701_v39 = vadd.f32 %v2700_v33, %v2699_v43 }
 0x367   : > { %v2600_v34 = vadd.f32 %v2599_v8, %v2598_v60  ;;  %v2702_v21 = vrot.slane %v2701_v39, 1 }
 0x369   : > { %v7425_v7 = vmul.f32 0.00390625, %v2600_v34  ;;  %v2703_v56 = vadd.f32 %v2702_v21, %v2701_v39 }
 0x36b   : > { %v2704_v5 = vmul.f32 0.00390625, %v2703_v56  ;;  %v2705_v31 = vmul.f32 %v7425_v7, %v7425_v7  ;;  %v2737_v63 = vsub.f32 %v7412_v54, %v7425_v7  ;;  %v2707_v62 = vsub.f32 %v7203_v1, %v7425_v7 }
 0x36c   : > { %v2708_v61 = vsub.f32 %v7201_v30, %v7425_v7  ;;  %v2709_v8 = vsub.f32 %v7207_v40, %v7425_v7  ;;  %v2710_v56 = vsub.f32 %v7205_v53, %v7425_v7  ;;  %v2711_v33 = vsub.f32 %v7224_v51, %v7425_v7 }
 0x36d   : > { %v2706_v28 = vsub.f32 %v2704_v5, %v2705_v31  ;;  %v2712_v60 = vsub.f32 %v7211_v29, %v7425_v7  ;;  %v2713_v43 = vsub.f32 %v7238_v0, %v7425_v7  ;;  %v2714_v22 = vsub.f32 %v7228_v15, %v7425_v7 }
 0x36e   : > { %v2715_v30 = vsub.f32 %v7252_v9, %v7425_v7  ;;  %v2716_v1 = vsub.f32 %v7242_v2, %v7425_v7  ;;  %v2717_v53 = vsub.f32 %v7266_v50, %v7425_v7  ;;  %v2718_v40 = vsub.f32 %v7256_v23, %v7425_v7 }
 0x36f   : > { %v2739_v26 = vadd.f32 1e-05, %v2706_v28  ;;  %v2719_v29 = vsub.f32 %v7280_v45, %v7425_v7  ;;  %v2720_v51 = vsub.f32 %v7270_v46, %v7425_v7  ;;  %v2721_v15 = vsub.f32 %v7294_v59, %v7425_v7 }
 0x370   : > { %v2722_v0 = vsub.f32 %v7284_v13, %v7425_v7  ;;  %v2723_v2 = vsub.f32 %v7308_v44, %v7425_v7  ;;  %v2724_v9 = vsub.f32 %v7298_v12, %v7425_v7  ;;  %v2725_v23 = vsub.f32 %v7322_v36, %v7425_v7 }
 0x371   : > { %5638 = vrsqrt.f32 %v2739_v26  ;;  %v2726_v50 = vsub.f32 %v7312_v47, %v7425_v7  ;;  %v2727_v46 = vsub.f32 %v7336_v3, %v7425_v7  ;;  %v2728_v45 = vsub.f32 %v7326_v24, %v7425_v7 }
 0x372   : > { %v2729_v13 = vsub.f32 %v7350_v20, %v7425_v7  ;;  %v2730_v59 = vsub.f32 %v7340_v49, %v7425_v7  ;;  %v2731_v12 = vsub.f32 %v7364_v58, %v7425_v7  ;;  %v2732_v36 = vsub.f32 %v7354_v17, %v7425_v7 }
 0x373   : > { %v2733_v44 = vsub.f32 %v7378_v42, %v7425_v7  ;;  %v2734_v3 = vsub.f32 %v7368_v55, %v7425_v7  ;;  %v2735_v24 = vsub.f32 %v7392_v41, %v7425_v7  ;;  %v2736_v20 = vsub.f32 %v7386_v25, %v7425_v7 }
 0x374   : > { %v2738_v49 = vsub.f32 %v7408_v37, %v7425_v7 }
 0x37e   : > { %v5639_v47 = vpop.eup %5638 }
 0x37f   : > { %v2771_v58 = vmul.f32 %v5639_v47, %v2737_v63  ;;  %v2744_v54 = vmul.f32 %v5639_v47, %v2710_v56  ;;  %v2741_v4 = vmul.f32 %v5639_v47, %v2707_v62  ;;  %v2742_v17 = vmul.f32 %v5639_v47, %v2708_v61 }
 0x380   : > { %v2743_v6 = vmul.f32 %v5639_v47, %v2709_v8  ;;  %v2745_v52 = vmul.f32 %v5639_v47, %v2711_v33  ;;  %v2746_v42 = vmul.f32 %v5639_v47, %v2712_v60  ;;  %v2747_v18 = vmul.f32 %v5639_v47, %v2713_v43 }
 0x381   : > { %v2803_v11 = vmax.f32 %v2771_v58, 0.0  ;;  %v2776_v14 = vmax.f32 %v2744_v54, 0.0  ;;  %v2748_v55 = vmul.f32 %v5639_v47, %v2714_v22  ;;  %v2749_v39 = vmul.f32 %v5639_v47, %v2715_v30 }
 0x382   : > { %v2750_v34 = vmul.f32 %v5639_v47, %v2716_v1  ;;  %v2751_v41 = vmul.f32 %v5639_v47, %v2717_v53  ;;  %v2752_v21 = vmul.f32 %v5639_v47, %v2718_v40  ;;  %v2753_v5 = vmul.f32 %v5639_v47, %v2719_v29 }
 0x383   : > { %2835 = vst.msk [vmem:[#allocation2 + $0x108] sm:$0xff] %vm9673_vm15, %v2803_v11  ;;  %v2754_v37 = vmul.f32 %v5639_v47, %v2720_v51  ;;  %v2755_v25 = vmul.f32 %v5639_v47, %v2721_v15  ;;  %v2756_v7 = vmul.f32 %v5639_v47, %v2722_v0  ;;  %v2757_v31 = vmul.f32 %v5639_v47, %v2723_v2  ;;  %vm9680_vm15 = vmmov %vm9617_vm0 }
 0x384   : > { %2838 = vst.msk [vmem:[#allocation2 + $0x10] sm:$0xff] %vm9617_vm0, %v2776_v14  ;;  %v2758_v28 = vmul.f32 %v5639_v47, %v2724_v9  ;;  %v2759_v26 = vmul.f32 %v5639_v47, %v2725_v23  ;;  %v7496_v63 = vmul.f32 %v5639_v47, %v2726_v50  ;;  %v7498_v62 = vmul.f32 %v5639_v47, %v2727_v46 }
 0x385   : > { %2808 = vst.msk [vmem:[#allocation2 + $0x30] sm:$0xff] %vm9674_vm14, %v2776_v14  ;;  %v7500_v61 = vmul.f32 %v5639_v47, %v2728_v45  ;;  %v7502_v8 = vmul.f32 %v5639_v47, %v2729_v13  ;;  %v7504_v56 = vmul.f32 %v5639_v47, %v2730_v59  ;;  %v7506_v33 = vmul.f32 %v5639_v47, %v2731_v12  ;;  %vm9681_vm14 = vmmov %vm9617_vm0 }
 0x386   : > { %v7508_v60 = vmul.f32 %v5639_v47, %v2732_v36  ;;  %v7510_v43 = vmul.f32 %v5639_v47, %v2733_v44  ;;  %v7512_v22 = vmul.f32 %v5639_v47, %v2734_v3  ;;  %v7514_v30 = vmul.f32 %v5639_v47, %v2735_v24 }
 0x387   : > { %v7516_v1 = vmul.f32 %v5639_v47, %v2736_v20  ;;  %v7518_v53 = vmul.f32 %v5639_v47, %v2738_v49  ;;  %v2775_v40 = vmax.f32 %v2743_v6, 0.0  ;;  %v2773_v29 = vmax.f32 %v2741_v4, 0.0 }
 0x388   : > { %v2774_v51 = vmax.f32 %v2742_v17, 0.0  ;;  %v2777_v15 = vmax.f32 %v2745_v52, 0.0  ;;  %v2778_v0 = vmax.f32 %v2746_v42, 0.0  ;;  %v2779_v2 = vmax.f32 %v2747_v18, 0.0 }
 0x389   : > { %2837 = vst.msk [vmem:[#allocation2 + $0x8] sm:$0xff] %vm9675_vm13, %v2775_v40  ;;  %v2780_v9 = vmax.f32 %v2748_v55, 0.0  ;;  %v2781_v23 = vmax.f32 %v2749_v39, 0.0  ;;  %v2782_v50 = vmax.f32 %v2750_v34, 0.0  ;;  %v2783_v46 = vmax.f32 %v2751_v41, 0.0  ;;  %vm9682_vm13 = vmmov %vm9617_vm0 }
 0x38a   : > { %2807 = vst.msk [vmem:[#allocation2 + $0x28] sm:$0xff] %vm9676_vm11, %v2775_v40  ;;  %v2784_v13 = vmax.f32 %v2752_v21, 0.0  ;;  %v2785_v59 = vmax.f32 %v2753_v5, 0.0  ;;  %v2786_v12 = vmax.f32 %v2754_v37, 0.0  ;;  %v2787_v36 = vmax.f32 %v2755_v25, 0.0  ;;  %vm9683_vm11 = vmmov %vm9617_vm0 }
 0x38b   : > { %2805 = vst.msk [vmem:[#allocation2 + $0x18] sm:$0xff] %vm9677_vm10, %v2773_v29  ;;  %v2874_v45 = vld [vmem:[#allocation2 + $0x10] sm:$0xff]  ;;  %v2788_v44 = vmax.f32 %v2756_v7, 0.0  ;;  %v2789_v47 = vmax.f32 %v2757_v31, 0.0  ;;  %v2790_v3 = vmax.f32 %v2758_v28, 0.0  ;;  %v2791_v24 = vmax.f32 %v2759_v26, 0.0  ;;  %vm9684_vm10 = vmmov %vm9617_vm0 }
 0x38c   : > { %2806 = vst.msk [vmem:[#allocation2 + $0x20] sm:$0xff] %vm9678_vm9, %v2774_v51  ;;  %3067 = vrot.lane.b32.xlu1 %v2874_v45, %s5675_s18  ;;  %v2792_v20 = vmax.f32 %v7496_v63, 0.0  ;;  %v2793_v49 = vmax.f32 %v7498_v62, 0.0  ;;  %v2794_v58 = vmax.f32 %v7500_v61, 0.0  ;;  %v2795_v54 = vmax.f32 %v7502_v8, 0.0  ;;  %vm9685_vm9 = vmmov %vm9617_vm0  ;;  %v7575_v41 = vld [vmem:[#allocation2 + $0x30] sm:$0xff] }
 0x38d   : > { %2809 = vst.msk [vmem:[#allocation2 + $0x38] sm:$0xff] %vm9679_vm12, %v2777_v15  ;;  %vm9686_vm12 = vmmov %vm9617_vm0  ;;  %v2796_v4 = vmax.f32 %v7504_v56, 0.0  ;;  %v2797_v17 = vmax.f32 %v7506_v33, 0.0  ;;  %v2798_v6 = vmax.f32 %v7508_v60, 0.0  ;;  %v2799_v52 = vmax.f32 %v7510_v43, 0.0 }
 0x38e   : > { %2810 = vst.msk [vmem:[#allocation2 + $0x40] sm:$0xff] %vm9680_vm15, %v2778_v0  ;;  %vm9687_vm15 = vmmov %vm9617_vm0  ;;  %v2800_v42 = vmax.f32 %v7512_v22, 0.0  ;;  %v2801_v18 = vmax.f32 %v7514_v30, 0.0  ;;  %v2802_v11 = vmax.f32 %v7516_v1, 0.0  ;;  %v2804_v14 = vmax.f32 %v7518_v53, 0.0 }
 0x38f   : > { %2811 = vst.msk [vmem:[#allocation2 + $0x48] sm:$0xff] %vm9617_vm0, %v2779_v2  ;;  %2819 = vst.msk [vmem:[#allocation2 + $0x88] sm:$0xff] %vm9617_vm0, %v2787_v36 }
 0x390   : > { %2812 = vst.msk [vmem:[#allocation2 + $0x50] sm:$0xff] %vm9681_vm14, %v2780_v9  ;;  %vm9688_vm14 = vmmov %vm9617_vm0  ;;  %v2873_v55 = vld [vmem:[#allocation2 + $0x8] sm:$0xff] }
 0x391   : > { %2813 = vst.msk [vmem:[#allocation2 + $0x58] sm:$0xff] %vm9682_vm13, %v2781_v23  ;;  %vm9689_vm13 = vmmov %vm9617_vm0  ;;  %3065 = vrot.lane.b32.xlu0 %v2873_v55, %s5675_s18  ;;  %v7579_v21 = vld [vmem:[#allocation2 + $0x28] sm:$0xff] }
 0x392   : > { %2814 = vst.msk [vmem:[#allocation2 + $0x60] sm:$0xff] %vm9683_vm11, %v2782_v50  ;;  %vm9690_vm11 = vmmov %vm9617_vm0  ;;  %v7571_v34 = vld [vmem:[#allocation2 + $0x18] sm:$0xff]  ;;  %v7587_v37 = vld [vmem:[#allocation2 + $0xf] sm:$0xff] }
 0x393   : > { %2815 = vst.msk [vmem:[#allocation2 + $0x68] sm:$0xff] %vm9684_vm10, %v2783_v46  ;;  %vm9691_vm10 = vmmov %vm9617_vm0  ;;  %v7567_v39 = vld [vmem:[#allocation2 + $0x20] sm:$0xff]  ;;  %v7591_v7 = vld [vmem:[#allocation2 + $0x9] sm:$0xff] }
 0x394   : > { %2816 = vst.msk [vmem:[#allocation2 + $0x70] sm:$0xff] %vm9685_vm9, %v2784_v13  ;;  %vm9692_vm9 = vmmov %vm9617_vm0  ;;  %3071 = vrot.lane.b32.xlu1 %v7567_v39, %s5675_s18  ;;  %v2841_v25 = vld [vmem:[#allocation2 + $0x7] sm:$0xff]  ;;  %v7593_v31 = vld [vmem:[#allocation2 + $0x19] sm:$0xff] }
 0x395   : > { %2817 = vst.msk [vmem:[#allocation2 + $0x78] sm:$0xff] %vm9686_vm12, %v2785_v59  ;;  %vm9693_vm12 = vmmov %vm9617_vm0  ;;  %3069 = vrot.lane.b32.xlu0 %v7571_v34, %s5675_s18  ;;  %v7583_v5 = vld [vmem:[#allocation2 + $0x40] sm:$0xff]  ;;  %v7595_v28 = vld [vmem:[#allocation2 + $0x17] sm:$0xff]  ;;  %v2937_v62 = vsel %vm5954_vm1, %v7591_v7, %v2841_v25 }
 0x396   : > { %2818 = vst.msk [vmem:[#allocation2 + $0x80] sm:$0xff] %vm9687_vm15, %v2786_v12  ;;  %vm9694_vm15 = vmmov %vm9617_vm0  ;;  %v7597_v26 = vld [vmem:[#allocation2 + $0x38] sm:$0xff]  ;;  %v2939_v61 = vsel %vm5962_vm2, %v7593_v31, %v7595_v28  ;;  %v7608_v56 = vld [vmem:[#allocation2 + $0x27] sm:$0xff] }
 0x397   : > { %2820 = vst.msk [vmem:[#allocation2 + $0x90] sm:$0xff] %vm9688_vm14, %v2788_v44  ;;  %vm9695_vm14 = vmmov %vm9617_vm0  ;;  %v7606_v8 = vld [vmem:[#allocation2 + $0x1f] sm:$0xff]  ;;  %v7612_v33 = vld [vmem:[#allocation2 + $0x50] sm:$0xff] }
 0x398   : > { %2821 = vst.msk [vmem:[#allocation2 + $0x98] sm:$0xff] %vm9689_vm13, %v2789_v47  ;;  %vm9696_vm13 = vmmov %vm9617_vm0  ;;  %3075 = vrot.lane.b32.xlu1 %v7575_v41, %s5675_s18  ;;  %v7618_v60 = vld [vmem:[#allocation2 + $0x29] sm:$0xff]  ;;  %v7630_v30 = vld [vmem:[#allocation2 + $0x37] sm:$0xff] }
 0x399   : > { %2822 = vst.msk [vmem:[#allocation2 + $0xa0] sm:$0xff] %vm9690_vm11, %v2790_v3  ;;  %vm9697_vm11 = vmmov %vm9617_vm0  ;;  %3073 = vrot.lane.b32.xlu0 %v7579_v21, %s5675_s18  ;;  %v7620_v43 = vld [vmem:[#allocation2 + $0x2f] sm:$0xff]  ;;  %v2941_v22 = vsel %vm5988_vm3, %v7618_v60, %v7608_v56  ;;  %v7632_v1 = vld [vmem:[#allocation2 + $0x39] sm:$0xff] }
 0x39a   : > { %2823 = vst.msk [vmem:[#allocation2 + $0xa8] sm:$0xff] %vm9691_vm10, %v2791_v24  ;;  %vm9698_vm10 = vmmov %vm9617_vm0  ;;  %v7634_v53 = vld [vmem:[#allocation2 + $0x3f] sm:$0xff]  ;;  %v2943_v40 = vsel %vm6007_vm4, %v7632_v1, %v7630_v30  ;;  %v7643_v29 = vld [vmem:[#allocation2 + $0x47] sm:$0xff] }
 0x39b   : > { %2824 = vst.msk [vmem:[#allocation2 + $0xb0] sm:$0xff] %vm9692_vm9, %v2792_v20  ;;  %vm9701_vm9 = vmmov %vm9617_vm0  ;;  %v7645_v51 = vld [vmem:[#allocation2 + $0x49] sm:$0xff]  ;;  %v7656_v9 = vld [vmem:[#allocation2 + $0x57] sm:$0xff] }
 0x39c   : > { %2825 = vst.msk [vmem:[#allocation2 + $0xb8] sm:$0xff] %vm9693_vm12, %v2793_v49  ;;  %vm9702_vm12 = vmmov %vm9617_vm0  ;;  %3079 = vrot.lane.b32.xlu1 %v7583_v5, %s5675_s18  ;;  %v7647_v15 = vld [vmem:[#allocation2 + $0x48] sm:$0xff]  ;;  %v2945_v0 = vsel %vm6022_vm5, %v7645_v51, %v7643_v29  ;;  %v7660_v23 = vld [vmem:[#allocation2 + $0x60] sm:$0xff] }
 0x39d   : > { %2826 = vst.msk [vmem:[#allocation2 + $0xc0] sm:$0xff] %vm9694_vm15, %v2794_v58  ;;  %vm9703_vm15 = vmmov %vm9617_vm0  ;;  %3077 = vrot.lane.b32.xlu0 %v7597_v26, %s5675_s18  ;;  %v7654_v2 = vld [vmem:[#allocation2 + $0x4f] sm:$0xff]  ;;  %v7665_v50 = vld [vmem:[#allocation2 + $0x59] sm:$0xff] }
 0x39e   : > { %2827 = vst.msk [vmem:[#allocation2 + $0xc8] sm:$0xff] %vm9617_vm0, %v2795_v54  ;;  %2840 = vst.msk [vmem:[#allocation2 + $0x120] sm:$0xff] %vm9617_vm0, %v2802_v11  ;;  %v7667_v46 = vld [vmem:[#allocation2 + $0x5f] sm:$0xff]  ;;  %v2947_v45 = vsel %vm6026_vm6, %v7665_v50, %v7656_v9  ;;  %v7677_v13 = vld [vmem:[#allocation2 + $0x67] sm:$0xff] }
 0x39f   : > { %2828 = vst.msk [vmem:[#allocation2 + $0xd0] sm:$0xff] %vm9695_vm14, %v2796_v4  ;;  %vm9707_vm14 = vmmov %vm9617_vm0  ;;  %v7679_v59 = vld [vmem:[#allocation2 + $0x69] sm:$0xff]  ;;  %v7690_v44 = vld [vmem:[#allocation2 + $0x77] sm:$0xff] }
 0x3a0   : > { %2829 = vst.msk [vmem:[#allocation2 + $0xd8] sm:$0xff] %vm9696_vm13, %v2797_v17  ;;  %vm9708_vm13 = vmmov %vm9617_vm0  ;;  %3083 = vrot.lane.b32.xlu1 %v7612_v33, %s5675_s18  ;;  %v7681_v12 = vld [vmem:[#allocation2 + $0x6f] sm:$0xff]  ;;  %v7692_v47 = vld [vmem:[#allocation2 + $0x79] sm:$0xff] }
 0x3a1   : > { %2830 = vst.msk [vmem:[#allocation2 + $0xe0] sm:$0xff] %vm9697_vm11, %v2798_v6  ;;  %vm9709_vm11 = vmmov %vm9617_vm0  ;;  %3081 = vrot.lane.b32.xlu0 %v7647_v15, %s5675_s18  ;;  %v7694_v3 = vld [vmem:[#allocation2 + $0x58] sm:$0xff]  ;;  %v7703_v49 = vld [vmem:[#allocation2 + $0x87] sm:$0xff] }
 0x3a2   : > { %2831 = vst.msk [vmem:[#allocation2 + $0xe8] sm:$0xff] %vm9698_vm10, %v2799_v52  ;;  %vm9710_vm10 = vmmov %vm9617_vm0  ;;  %v7701_v20 = vld [vmem:[#allocation2 + $0x7f] sm:$0xff]  ;;  %v7707_v58 = vld [vmem:[#allocation2 + $0x70] sm:$0xff] }
 0x3a3   : > { %2832 = vst.msk [vmem:[#allocation2 + $0xf0] sm:$0xff] %vm9699_vm8, %v2800_v42  ;;  %vm9706_vm8 = vmmov %vm9617_vm0  ;;  %v7712_v54 = vld [vmem:[#allocation2 + $0x89] sm:$0xff]  ;;  %v7724_v6 = vld [vmem:[#allocation2 + $0x97] sm:$0xff] }
 0x3a4   : > { %2833 = vst.msk [vmem:[#allocation2 + $0xf8] sm:$0xff] %vm9700_vm7, %v2801_v18  ;;  %vm9704_vm7 = vmmov %vm9617_vm0  ;;  %3087 = vrot.lane.b32.xlu1 %v7660_v23, %s5675_s18  ;;  %v7714_v4 = vld [vmem:[#allocation2 + $0x8f] sm:$0xff]  ;;  %v7726_v52 = vld [vmem:[#allocation2 + $0x99] sm:$0xff] }
 0x3a5   : > { %2834 = vst.msk [vmem:[#allocation2 + $0x100] sm:$0xff] %vm9701_vm9, %v2802_v11  ;;  %vm9711_vm9 = vmmov %vm9617_vm0  ;;  %3085 = vrot.lane.b32.xlu0 %v7694_v3, %s5675_s18  ;;  %v7728_v42 = vld [vmem:[#allocation2 + $0x9f] sm:$0xff]  ;;  %v2861_v11 = vld [vmem:[#allocation2 + $0xa7] sm:$0xff] }
 0x3a6   : > { %2836 = vst.msk [vmem:[#allocation2 + $0x110] sm:$0xff] %vm9702_vm12, %v2804_v14  ;;  %vm9712_vm12 = vmmov %vm9617_vm0  ;;  %v7737_v14 = vld [vmem:[#allocation2 + $0xa9] sm:$0xff] }
 0x3a7   : > { %2839 = vst.msk [vmem:[#allocation2 + $0x118] sm:$0xff] %vm9703_vm15, %v2801_v18  ;;  %9713 = vst [vmem:[#allocation46_spill] sm:$0xff] %v7660_v23  ;;  %v7739_v55 = vld [vmem:[#allocation2 + $0x68] sm:$0xff] }
 0x3a8   : > { %3002 = vst.msk [vmem:[#allocation3 + $0x8] sm:$0xff] %vm9704_vm7, %v7587_v37  ;;  %vm9714_vm15 = vmmov %vm9617_vm0  ;;  %3091 = vrot.lane.b32.xlu1 %v7707_v58, %s5675_s18  ;;  %v9735_v25 = vld [vmem:[#allocation43_spill] sm:$0xff] }
 0x3a9   : > { %3001 = vst.msk [vmem:[#allocation3] sm:$0xff] %vm9706_vm8, %v2937_v62  ;;  %vm9715_vm7 = vmmov %vm9617_vm0  ;;  %3089 = vrot.lane.b32.xlu0 %v7739_v55, %s5675_s18  ;;  %v7881_v23 = vld [vmem:[#allocation2 + $0x81] sm:$0xff] }
 0x3aa   : > { %3003 = vst.msk [vmem:[#allocation3 + $0x10] sm:$0xff] %vm9707_vm14, %v2939_v61  ;;  %9716 = vst [vmem:[#allocation48_spill] sm:$0xff] %v7677_v13  ;;  %vm9718_vm14 = vnez %v9353_v19  ;;  %v7745_v61 = vld [vmem:[#allocation2 + $0xaf] sm:$0xff] }
 0x3ab   : > { %3004 = vst.msk [vmem:[#allocation3 + $0x18] sm:$0xff] %vm9708_vm13, %v7606_v8  ;;  %vm9717_vm8 = vmmov %vm9617_vm0  ;;  %v2949_v36 = vsel %vm9718_vm14, %v7679_v59, %v7677_v13  ;;  %v7872_v13 = vld [vmem:[#allocation2 + $0x71] sm:$0xff] }
 0x3ac   : > { %3006 = vst.msk [vmem:[#allocation3 + $0x28] sm:$0xff] %vm9709_vm11, %v7620_v43  ;;  %vm9719_vm13 = vmmov %vm9617_vm0 }
 0x3ad   : > { %3005 = vst.msk [vmem:[#allocation3 + $0x20] sm:$0xff] %vm9710_vm10, %v2941_v22  ;;  %9720 = vst [vmem:[#allocation51_spill] sm:$0xff] %v7690_v44  ;;  %vm9722_vm10 = vnez %v9358_v16  ;;  %v2863_v22 = vld [vmem:[#allocation2 + $0xb7] sm:$0xff]  ;;  %v7789_v16 = vld [vmem:[#allocation2 + $0xef] sm:$0xff] }
 0x3ae   : > { %3008 = vst.msk [vmem:[#allocation3 + $0x38] sm:$0xff] %vm9711_vm9, %v7634_v53  ;;  %vm9721_vm11 = vmmov %vm9617_vm0  ;;  %v2951_v24 = vsel %vm9722_vm10, %v7692_v47, %v7690_v44  ;;  %v2894_v44 = vld [vmem:[#allocation2 + $0xb0] sm:$0xff] }
 0x3af   : > { %3007 = vst.msk [vmem:[#allocation3 + $0x30] sm:$0xff] %vm9712_vm12, %v2943_v40  ;;  %9723 = vst [vmem:[#allocation53_spill] sm:$0xff] %v7701_v20  ;;  %v2888_v40 = vld [vmem:[#allocation2 + $0x80] sm:$0xff] }
 0x3b0   : > { %3009 = vst.msk [vmem:[#allocation3 + $0x40] sm:$0xff] %vm9714_vm15, %v2945_v0  ;;  %9724 = vst [vmem:[#allocation45_spill] sm:$0xff] %v7703_v49  ;;  %vm9728_vm15 = vnez %v9361_v38  ;;  %v7752_v0 = vld [vmem:[#allocation2 + $0xb9] sm:$0xff]  ;;  %3095 = vrot.lane.b32.xlu1 %v2888_v40, %s5675_s18 }
 0x3b1   : > { %3010 = vst.msk [vmem:[#allocation3 + $0x48] sm:$0xff] %vm9617_vm0, %v7654_v2  ;;  %9725 = vst [vmem:[#allocation35_spill] sm:$0xff] %v7707_v58  ;;  %v2953_v17 = vsel %vm9728_vm15, %v7712_v54, %v7703_v49  ;;  %v2867_v40 = vld [vmem:[#allocation2 + $0xd7] sm:$0xff] }
 0x3b2   : > { %3012 = vst.msk [vmem:[#allocation3 + $0x58] sm:$0xff] %vm9715_vm7, %v7667_v46  ;;  %vm9726_vm9 = vmmov %vm9617_vm0  ;;  %v7797_v49 = vld [vmem:[#allocation2 + $0xf9] sm:$0xff] }
 0x3b3   : > { %3011 = vst.msk [vmem:[#allocation3 + $0x50] sm:$0xff] %vm9717_vm8, %v2947_v45  ;;  %vm9727_vm12 = vmmov %vm9617_vm0  ;;  %vm9731_vm8 = vnez %v9438_v10  ;;  %v7754_v45 = vld [vmem:[#allocation2 + $0xbf] sm:$0xff] }
 0x3b4   : > { %3014 = vst.msk [vmem:[#allocation3 + $0x68] sm:$0xff] %vm9719_vm13, %v7681_v12  ;;  %9729 = vst [vmem:[#allocation39_spill] sm:$0xff] %v7724_v6  ;;  %v2955_v18 = vsel %vm9731_vm8, %v7726_v52, %v7724_v6  ;;  %v9746_v10 = vld [vmem:[#allocation49_spill] sm:$0xff] }
 0x3b5   : > { %3013 = vst.msk [vmem:[#allocation3 + $0x60] sm:$0xff] %vm9721_vm11, %v2949_v36  ;;  %vm9730_vm7 = vmmov %vm9617_vm0  ;;  %v9738_v36 = vld [vmem:[#allocation44_spill] sm:$0xff]  ;;  %v7780_v6 = vld [vmem:[#allocation2 + $0xdf] sm:$0xff] }
 0x3b6   : > { %3015 = vst.msk [vmem:[#allocation3 + $0x70] sm:$0xff] %vm9726_vm9, %v2951_v24  ;;  %vm9732_vm13 = vmmov %vm9617_vm0  ;;  %vm9736_vm9 = vnez %v9735_v25 }
 0x3b7   : > { %3016 = vst.msk [vmem:[#allocation3 + $0x78] sm:$0xff] %vm9727_vm12, %v7701_v20  ;;  %9733 = vst [vmem:[#allocation34_spill] sm:$0xff] %v7739_v55  ;;  %v2957_v62 = vsel %vm9736_vm9, %v7737_v14, %v2861_v11  ;;  %v7764_v11 = vld [vmem:[#allocation2 + $0xcf] sm:$0xff]  ;;  %v7863_v55 = vld [vmem:[#allocation2 + $0x61] sm:$0xff] }
 0x3b8   : > { %3018 = vst.msk [vmem:[#allocation3 + $0x88] sm:$0xff] %vm9617_vm0, %v7714_v4  ;;  %vm9734_vm11 = vmmov %vm9617_vm0 }
 0x3b9   : > { %3017 = vst.msk [vmem:[#allocation3 + $0x80] sm:$0xff] %vm9730_vm7, %v2953_v17  ;;  %vm9737_vm12 = vmmov %vm9617_vm0  ;;  %vm9739_vm7 = vnez %v9738_v36  ;;  %v2865_v17 = vld [vmem:[#allocation2 + $0xc7] sm:$0xff]  ;;  %v7772_v36 = vld [vmem:[#allocation2 + $0xd9] sm:$0xff] }
 0x3ba   : > { %3020 = vst.msk [vmem:[#allocation3 + $0x98] sm:$0xff] %vm9732_vm13, %v7728_v42  ;;  %v2959_v24 = vsel %vm9739_vm7, %v7752_v0, %v2863_v22  ;;  %vm9740_vm13 = vmmov %vm9617_vm0  ;;  %v7774_v22 = vld [vmem:[#allocation2 + $0x78] sm:$0xff]  ;;  %vm9747_vm7 = vnez %v9746_v10 }
 0x3bb   : > { %3019 = vst.msk [vmem:[#allocation3 + $0x90] sm:$0xff] %vm9734_vm11, %v2955_v18  ;;  %v7762_v18 = vld [vmem:[#allocation2 + $0xc9] sm:$0xff]  ;;  %vm9741_vm11 = vmmov %vm9617_vm0  ;;  %v2963_v38 = vsel %vm9747_vm7, %v7772_v36, %v2867_v40  ;;  %3093 = vrot.lane.b32.xlu0 %v7774_v22, %s5675_s18  ;;  %v2871_v10 = vld [vmem:[#allocation2 + $0xf7] sm:$0xff] }
 0x3bc   : > { %3021 = vst.msk [vmem:[#allocation3 + $0xa0] sm:$0xff] %vm9737_vm12, %v2957_v62  ;;  %v9742_v62 = vld [vmem:[#allocation47_spill] sm:$0xff]  ;;  %9744 = vst [vmem:[#allocation71_spill] sm:$0xff] %v7774_v22  ;;  %v9753_v22 = vld [vmem:[#allocation52_spill] sm:$0xff] }
 0x3bd   : > { %3022 = vst.msk [vmem:[#allocation3 + $0xa8] sm:$0xff] %vm9617_vm0, %v7745_v61  ;;  %vm9743_vm12 = vnez %v9742_v62  ;;  %3026 = vst.msk [vmem:[#allocation3 + $0xc8] sm:$0xff] %vm9617_vm0, %v7764_v11  ;;  %v7787_v62 = vld [vmem:[#allocation2 + $0xe9] sm:$0xff] }
 0x3be   : > { %3024 = vst.msk [vmem:[#allocation3 + $0xb8] sm:$0xff] %vm9740_vm13, %v7754_v45  ;;  %v2961_v25 = vsel %vm9743_vm12, %v7762_v18, %v2865_v17  ;;  %vm9745_vm13 = vmmov %vm9617_vm0  ;;  %v2890_v17 = vld [vmem:[#allocation2 + $0x90] sm:$0xff] }
 0x3bf   : > { %3023 = vst.msk [vmem:[#allocation3 + $0xb0] sm:$0xff] %vm9741_vm11, %v2959_v24  ;;  %v2869_v24 = vld [vmem:[#allocation2 + $0xe7] sm:$0xff]  ;;  %vm9748_vm11 = vmmov %vm9617_vm0  ;;  %3099 = vrot.lane.b32.xlu1 %v2890_v17, %s5675_s18 }
 0x3c0   : > { %3025 = vst.msk [vmem:[#allocation3 + $0xc0] sm:$0xff] %vm9745_vm13, %v2961_v25  ;;  %v9749_v25 = vld [vmem:[#allocation50_spill] sm:$0xff]  ;;  %vm9751_vm7 = vmmov %vm9617_vm0  ;;  %v2889_v17 = vld [vmem:[#allocation2 + $0x88] sm:$0xff] }
 0x3c1   : > { %3027 = vst.msk [vmem:[#allocation3 + $0xd0] sm:$0xff] %vm9748_vm11, %v2963_v38  ;;  %vm9750_vm13 = vnez %v9749_v25  ;;  %v7799_v38 = vld [vmem:[#allocation2 + $0xff] sm:$0xff]  ;;  %vm9752_vm11 = vmmov %vm9617_vm0  ;;  %3097 = vrot.lane.b32.xlu0 %v2889_v17, %s5675_s18  ;;  %v2897_v17 = vld [vmem:[#allocation2 + $0xc8] sm:$0xff] }
 0x3c2   : > { %3028 = vst.msk [vmem:[#allocation3 + $0xd8] sm:$0xff] %vm9617_vm0, %v7780_v6  ;;  %v2965_v40 = vsel %vm9750_vm13, %v7787_v62, %v2869_v24  ;;  %vm9754_vm0 = vnez %v9753_v22  ;;  %vm9755_vm12 = vmmov %vm9751_vm7  ;;  %v2892_v24 = vld [vmem:[#allocation2 + $0xa0] sm:$0xff]  ;;  %v2891_v25 = vld [vmem:[#allocation2 + $0x98] sm:$0xff] }
 0x3c3   : > { %3030 = vst.msk [vmem:[#allocation3 + $0xe8] sm:$0xff] %vm9751_vm7, %v7789_v16  ;;  %v2967_v19 = vsel %vm9754_vm0, %v7797_v49, %v2871_v10  ;;  %vm9756_vm9 = vmmov %vm9751_vm7  ;;  %3103 = vrot.lane.b32.xlu1 %v2892_v24, %s5675_s18  ;;  %v2896_v10 = vld [vmem:[#allocation2 + $0xc0] sm:$0xff]  ;;  %v2895_v22 = vld [vmem:[#allocation2 + $0xb8] sm:$0xff] }
 0x3c4   : > { %3029 = vst.msk [vmem:[#allocation3 + $0xe0] sm:$0xff] %vm9752_vm11, %v2965_v40  ;;  %v2893_v40 = vld [vmem:[#allocation2 + $0xa8] sm:$0xff]  ;;  %v2900_v24 = vld [vmem:[#allocation2 + $0xe0] sm:$0xff] }
 0x3c5   : > { %3032 = vst.msk [vmem:[#allocation3 + $0xf8] sm:$0xff] %vm9755_vm12, %v7799_v38  ;;  %3101 = vrot.lane.b32.xlu0 %v2891_v25, %s5675_s18  ;;  %v2899_v25 = vld [vmem:[#allocation2 + $0xd8] sm:$0xff] }
 0x3c6   : > { %3031 = vst.msk [vmem:[#allocation3 + $0xf0] sm:$0xff] %vm9756_vm9, %v2967_v19  ;;  %v2898_v19 = vld [vmem:[#allocation2 + $0xd0] sm:$0xff] }
 0x3c7   : > { %3107 = vrot.lane.b32.xlu1 %v2894_v44, %s5675_s18  ;;  %v2902_v44 = vld [vmem:[#allocation2 + $0xf0] sm:$0xff] }
 0x3c9   : > { %3105 = vrot.lane.b32.xlu0 %v2893_v40, %s5675_s18  ;;  %v2901_v40 = vld [vmem:[#allocation2 + $0xe8] sm:$0xff] }
 0x3cb   : > { %3111 = vrot.lane.b32.xlu1 %v2896_v10, %s5675_s18  ;;  %v2904_v10 = vld [vmem:[#allocation2 + $0x100] sm:$0xff] }
 0x3cd   : > { %3109 = vrot.lane.b32.xlu0 %v2895_v22, %s5675_s18  ;;  %v2906_v22 = vld [vmem:[#allocation2 + $0x11] sm:$0xff] }
 0x3cf   : > { %3115 = vrot.lane.b32.xlu1 %v2898_v19, %s5675_s18  ;;  %v2903_v19 = vld [vmem:[#allocation2 + $0xf8] sm:$0xff] }
 0x3d1   : > { %3113 = vrot.lane.b32.xlu0 %v2897_v17, %s5675_s18  ;;  %v9757_v17 = vld [vmem:[#allocation55_spill] sm:$0xff] }
 0x3d2   : > { %vm9758_vm9 = vnez %v9757_v17  ;;  %9767 = vst [vmem:[#allocation55_spill] sm:$0xff] %v7863_v55 }
 0x3d3   : > { %3119 = vrot.lane.b32.xlu1 %v2900_v24, %s5675_s18  ;;  %v2970_v24 = vsel %vm9758_vm9, %v7587_v37, %v2906_v22  ;;  %v9761_v37 = vld [vmem:[#allocation57_spill] sm:$0xff] }
 0x3d4   : > { %vm9762_vm12 = vnez %v9761_v37  ;;  %9773 = vst [vmem:[#allocation57_spill] sm:$0xff] %v7881_v23 }
 0x3d5   : > { %3117 = vrot.lane.b32.xlu0 %v2899_v25, %s5675_s18  ;;  %v7827_v25 = vld [vmem:[#allocation2 + $0x21] sm:$0xff] }
 0x3d7   : > { %3123 = vrot.lane.b32.xlu1 %v2902_v44, %s5675_s18  ;;  %v9759_v44 = vld [vmem:[#allocation56_spill] sm:$0xff] }
 0x3d8   : > { %vm9760_vm7 = vnez %v9759_v44  ;;  %9770 = vst [vmem:[#allocation56_spill] sm:$0xff] %v7872_v13 }
 0x3d9   : > { %3121 = vrot.lane.b32.xlu0 %v2901_v40, %s5675_s18  ;;  %v2972_v40 = vsel %vm9760_vm7, %v7606_v8, %v7827_v25 }
 0x3db   : > { %3127 = vrot.lane.b32.xlu1 %v2904_v10, %s5675_s18  ;;  %v7836_v10 = vld [vmem:[#allocation2 + $0x31] sm:$0xff] }
 0x3dc   : > { %v2974_v22 = vsel %vm9762_vm12, %v7620_v43, %v7836_v10 }
 0x3dd   : > { %3125 = vrot.lane.b32.xlu0 %v2903_v19, %s5675_s18  ;;  %v9763_v19 = vld [vmem:[#allocation58_spill] sm:$0xff] }
 0x3de   : > { %vm9764_vm11 = vnez %v9763_v19 }
 0x3df   : > { %3227 = vrot.lane.b32.xlu1 %v2970_v24, %s5676_s19 }
 0x3e1   : > { %3225 = vrot.lane.b32.xlu0 %v7591_v7, %s5676_s19  ;;  %v7845_v7 = vld [vmem:[#allocation2 + $0x41] sm:$0xff] }
 0x3e2   : > { %v2976_v24 = vsel %vm9764_vm11, %v7634_v53, %v7845_v7 }
 0x3e3   : > { %3231 = vrot.lane.b32.xlu1 %v2972_v40, %s5676_s19  ;;  %v7854_v40 = vld [vmem:[#allocation2 + $0x51] sm:$0xff] }
 0x3e5   : > { %3229 = vrot.lane.b32.xlu0 %v7593_v31, %s5676_s19 }
 0x3e7   : > { %3235 = vrot.lane.b32.xlu1 %v2974_v22, %s5676_s19  ;;  %v9765_v22 = vld [vmem:[#allocation59_spill] sm:$0xff] }
 0x3e8   : > { %vm9766_vm0 = vnez %v9765_v22 }
 0x3e9   : > { %3233 = vrot.lane.b32.xlu0 %v7618_v60, %s5676_s19  ;;  %v2978_v58 = vsel %vm9766_vm0, %v7654_v2, %v7854_v40 }
 0x3eb   : > { %3239 = vrot.lane.b32.xlu1 %v2976_v24, %s5676_s19  ;;  %v9768_v24 = vld [vmem:[#allocation60_spill] sm:$0xff] }
 0x3ec   : > { %vm9769_vm13 = vnez %v9768_v24 }
 0x3ed   : > { %3237 = vrot.lane.b32.xlu0 %v7632_v1, %s5676_s19  ;;  %v2980_v57 = vsel %vm9769_vm13, %v7667_v46, %v7863_v55  ;;  %v7890_v55 = vld [vmem:[#allocation2 + $0x91] sm:$0xff] }
 0x3ee   : > { %9776 = vst [vmem:[#allocation58_spill] sm:$0xff] %v7890_v55 }
 0x3ef   : > { %3243 = vrot.lane.b32.xlu1 %v2978_v58, %s5676_s19  ;;  %v9771_v58 = vld [vmem:[#allocation61_spill] sm:$0xff] }
 0x3f0   : > { %vm9772_vm8 = vnez %v9771_v58 }
 0x3f1   : > { %3241 = vrot.lane.b32.xlu0 %v7645_v51, %s5676_s19  ;;  %v2982_v22 = vsel %vm9772_vm8, %v7681_v12, %v7872_v13  ;;  %v2924_v13 = vld [vmem:[#allocation2 + $0xa1] sm:$0xff] }
 0x3f3   : > { %3247 = vrot.lane.b32.xlu1 %v2980_v57, %s5676_s19  ;;  %v9774_v57 = vld [vmem:[#allocation62_spill] sm:$0xff] }
 0x3f4   : > { %vm9775_vm15 = vnez %v9774_v57  ;;  %v9779_v57 = vld [vmem:[#allocation64_spill] sm:$0xff] }
 0x3f5   : > { %3245 = vrot.lane.b32.xlu0 %v7665_v50, %s5676_s19  ;;  %v2984_v24 = vsel %vm9775_vm15, %v7701_v20, %v7881_v23  ;;  %vm9780_vm15 = vnez %v9779_v57  ;;  %v2926_v23 = vld [vmem:[#allocation2 + $0xb1] sm:$0xff]  ;;  %v9785_v57 = vld [vmem:[#allocation67_spill] sm:$0xff] }
 0x3f6   : > { %v9781_v20 = vld [vmem:[#allocation65_spill] sm:$0xff] }
 0x3f7   : > { %3251 = vrot.lane.b32.xlu1 %v2982_v22, %s5676_s19  ;;  %v9777_v22 = vld [vmem:[#allocation63_spill] sm:$0xff]  ;;  %vm9782_vm8 = vnez %v9781_v20 }
 0x3f8   : > { %vm9778_vm10 = vnez %v9777_v22  ;;  %v2990_v22 = vsel %vm9782_vm8, %v7745_v61, %v2926_v23  ;;  %vm9787_vm8 = vcmask 64544  }
 0x3f9   : > { %3249 = vrot.lane.b32.xlu0 %v7679_v59, %s5676_s19  ;;  %v2986_v58 = vsel %vm9778_vm10, %v7714_v4, %v7890_v55  ;;  %v9783_v55 = vld [vmem:[#allocation66_spill] sm:$0xff]  ;;  %vm9790_vm14 = vmmov %vm9787_vm8 }
 0x3fa   : > { %vm9784_vm10 = vnez %v9783_v55 }
 0x3fb   : > { %3255 = vrot.lane.b32.xlu1 %v2984_v24, %s5676_s19  ;;  %v2988_v24 = vsel %vm9780_vm15, %v7728_v42, %v2924_v13  ;;  %vm9786_vm15 = vnez %v9785_v57 }
 0x3fd   : > { %3253 = vrot.lane.b32.xlu0 %v7692_v47, %s5676_s19 }
 0x3fe   : > { %v3068_v61 = vpop.permute.xlu1 %3067 }
 0x3ff   : > { %3259 = vrot.lane.b32.xlu1 %v2986_v58, %s5676_s19  ;;  %v2928_v58 = vld [vmem:[#allocation2 + $0xc1] sm:$0xff]  ;;  %3162 = vst.msk [vmem:[#allocation3 + $0x8] sm:$0xff] %vm9787_vm8, %v3068_v61 }
 0x400   : > { %v2992_v13 = vsel %vm9784_vm10, %v7754_v45, %v2928_v58  ;;  %v9788_v45 = vld [vmem:[#allocation68_spill] sm:$0xff] }
 0x401   : > { %3257 = vrot.lane.b32.xlu0 %v7712_v54, %s5676_s19  ;;  %vm9789_vm10 = vnez %v9788_v45 }
 0x403   : > { %3263 = vrot.lane.b32.xlu1 %v2988_v24, %s5676_s19  ;;  %v2930_v24 = vld [vmem:[#allocation2 + $0xd1] sm:$0xff]  ;;  %v3066_v58 = vpop.permute.xlu0 %3065 }
 0x404   : > { %v2994_v23 = vsel %vm9786_vm15, %v7764_v11, %v2930_v24  ;;  %3161 = vst.msk [vmem:[#allocation3] sm:$0xff] %vm9790_vm14, %v3066_v58  ;;  %vm9791_vm15 = vmmov %vm9787_vm8  ;;  %v2936_v24 = vld [vmem:[#allocation2 + $0x101] sm:$0xff] }
 0x405   : > { %3261 = vrot.lane.b32.xlu0 %v7726_v52, %s5676_s19 }
 0x406   : > { %v3072_v11 = vpop.permute.xlu1 %3071 }
 0x407   : > { %3267 = vrot.lane.b32.xlu1 %v2990_v22, %s5676_s19  ;;  %3164 = vst.msk [vmem:[#allocation3 + $0x18] sm:$0xff] %vm9791_vm15, %v3072_v11  ;;  %v3453_v11 = vsel %vm5988_vm3, %v7632_v1, %v7630_v30 }
 0x409   : > { %3265 = vrot.lane.b32.xlu0 %v7737_v14, %s5676_s19  ;;  %v2932_v14 = vld [vmem:[#allocation2 + $0xe1] sm:$0xff] }
 0x40a   : > { %v2996_v22 = vsel %vm9789_vm10, %v7780_v6, %v2932_v14  ;;  %v3070_v6 = vpop.permute.xlu0 %3069  ;;  %vm9794_vm10 = vmmov %vm9790_vm14 }
 0x40b   : > { %3271 = vrot.lane.b32.xlu1 %v2992_v13, %s5676_s19  ;;  %v9792_v13 = vld [vmem:[#allocation69_spill] sm:$0xff]  ;;  %3163 = vst.msk [vmem:[#allocation3 + $0x10] sm:$0xff] %vm9794_vm10, %v3070_v6  ;;  %vm9795_vm14 = vmmov %vm9794_vm10  ;;  %v3455_v6 = vsel %vm6007_vm4, %v7645_v51, %v7643_v29 }
 0x40c   : > { %vm9793_vm8 = vnez %v9792_v13  ;;  %vm9798_vm15 = vmmov %vm9794_vm10 }
 0x40d   : > { %3269 = vrot.lane.b32.xlu0 %v7752_v0, %s5676_s19  ;;  %v2934_v0 = vld [vmem:[#allocation2 + $0xf1] sm:$0xff] }
 0x40e   : > { %v3074_v14 = vpop.permute.xlu0 %3073 }
 0x40f   : > { %3275 = vrot.lane.b32.xlu1 %v2994_v23, %s5676_s19  ;;  %v3076_v23 = vpop.permute.xlu1 %3075  ;;  %3165 = vst.msk [vmem:[#allocation3 + $0x20] sm:$0xff] %vm9798_vm15, %v3074_v14  ;;  %vm9800_vm15 = vmmov %vm9794_vm10 }
 0x410   : > { %3166 = vst.msk [vmem:[#allocation3 + $0x28] sm:$0xff] %vm9795_vm14, %v3076_v23  ;;  %vm9799_vm14 = vmmov %vm9794_vm10 }
 0x411   : > { %3273 = vrot.lane.b32.xlu0 %v7762_v18, %s5676_s19  ;;  %v2998_v18 = vsel %vm9793_vm8, %v7789_v16, %v2934_v0  ;;  %v3451_v0 = vsel %vm5962_vm2, %v7618_v60, %v7608_v56 }
 0x413   : > { %3279 = vrot.lane.b32.xlu1 %v2996_v22, %s5676_s19  ;;  %v3080_v16 = vpop.permute.xlu1 %3079 }
 0x414   : > { %3168 = vst.msk [vmem:[#allocation3 + $0x38] sm:$0xff] %vm9794_vm10, %v3080_v16  ;;  %v3482_v16 = vsel %vm9758_vm9, %v7606_v8, %v7827_v25 }
 0x415   : > { %3277 = vrot.lane.b32.xlu0 %v7772_v36, %s5676_s19  ;;  %v9796_v36 = vld [vmem:[#allocation70_spill] sm:$0xff] }
 0x416   : > { %vm9797_vm13 = vnez %v9796_v36 }
 0x417   : > { %3283 = vrot.lane.b32.xlu1 %v2998_v18, %s5676_s19  ;;  %v3000_v61 = vsel %vm9797_vm13, %v7799_v38, %v2936_v24  ;;  %v3449_v38 = vsel %vm5954_vm1, %v7593_v31, %v7595_v28  ;;  %v3084_v22 = vpop.permute.xlu1 %3083 }
 0x418   : > { %3170 = vst.msk [vmem:[#allocation3 + $0x48] sm:$0xff] %vm9800_vm15, %v3084_v22  ;;  %vm9802_vm15 = vmmov %vm9794_vm10  ;;  %v4667_v22 = vld [vmem:[%s9088_s2 + $0x10] sm:$0xff] }
 0x419   : > { %3281 = vrot.lane.b32.xlu0 %v7787_v62, %s5676_s19  ;;  %v3078_v62 = vpop.permute.xlu0 %3077 }
 0x41a   : > { %3167 = vst.msk [vmem:[#allocation3 + $0x30] sm:$0xff] %vm9799_vm14, %v3078_v62  ;;  %vm9801_vm14 = vmmov %vm9794_vm10 }
 0x41b   : > { %3287 = vrot.lane.b32.xlu1 %v3000_v61, %s5676_s19  ;;  %v3088_v58 = vpop.permute.xlu1 %3087 }
 0x41c   : > { %3172 = vst.msk [vmem:[#allocation3 + $0x58] sm:$0xff] %vm9801_vm14, %v3088_v58  ;;  %vm9803_vm14 = vmmov %vm9794_vm10  ;;  %v4665_v58 = vld [vmem:[%s9088_s2] sm:$0xff] }
 0x41d   : > { %3285 = vrot.lane.b32.xlu0 %v7797_v49, %s5676_s19  ;;  %v3082_v49 = vpop.permute.xlu0 %3081 }
 0x41e   : > { %3169 = vst.msk [vmem:[#allocation3 + $0x40] sm:$0xff] %vm9794_vm10, %v3082_v49 }
 0x41f   : > { %3547 = vrot.lane.b32.xlu1 %v7606_v8, %s5677_s20  ;;  %v3092_v18 = vpop.permute.xlu1 %3091  ;;  %v4089_v8 = vsel %vm5954_vm1, %v7618_v60, %v7608_v56  ;;  %v4668_v56 = vld [vmem:[%s9088_s2 + $0x18] sm:$0xff] }
 0x420   : > { %3174 = vst.msk [vmem:[#allocation3 + $0x68] sm:$0xff] %vm9794_vm10, %v3092_v18  ;;  %v3484_v18 = vsel %vm9760_vm7, %v7620_v43, %v7836_v10 }
 0x421   : > { %3545 = vrot.lane.b32.xlu0 %v3449_v38, %s5677_s20  ;;  %v3086_v28 = vpop.permute.xlu0 %3085 }
 0x422   : > { %3171 = vst.msk [vmem:[#allocation3 + $0x50] sm:$0xff] %vm9802_vm15, %v3086_v28  ;;  %vm9804_vm15 = vmmov %vm9794_vm10 }
 0x423   : > { %3551 = vrot.lane.b32.xlu1 %v7620_v43, %s5677_s20  ;;  %v3096_v23 = vpop.permute.xlu1 %3095 }
 0x424   : > { %3176 = vst.msk [vmem:[#allocation3 + $0x78] sm:$0xff] %vm9804_vm15, %v3096_v23  ;;  %vm9806_vm15 = vmmov %vm9794_vm10  ;;  %v4091_v23 = vsel %vm5962_vm2, %v7632_v1, %v7630_v30 }
 0x425   : > { %3549 = vrot.lane.b32.xlu0 %v3451_v0, %s5677_s20  ;;  %v3090_v24 = vpop.permute.xlu0 %3089 }
 0x426   : > { %3173 = vst.msk [vmem:[#allocation3 + $0x60] sm:$0xff] %vm9803_vm14, %v3090_v24  ;;  %vm9805_vm14 = vmmov %vm9794_vm10  ;;  %v4122_v24 = vsel %vm9758_vm9, %v7620_v43, %v7836_v10 }
 0x427   : > { %3555 = vrot.lane.b32.xlu1 %v7634_v53, %s5677_s20 }
 0x429   : > { %3553 = vrot.lane.b32.xlu0 %v3453_v11, %s5677_s20 }
 0x42b   : > { %3559 = vrot.lane.b32.xlu1 %v7654_v2, %s5677_s20 }
 0x42d   : > { %3557 = vrot.lane.b32.xlu0 %v3455_v6, %s5677_s20  ;;  %v3094_v61 = vpop.permute.xlu0 %3093 }
 0x42e   : > { %3175 = vst.msk [vmem:[#allocation3 + $0x70] sm:$0xff] %vm9794_vm10, %v3094_v61 }
 0x42f   : > { %3707 = vrot.lane.b32.xlu1 %v7567_v39, %s5678_s21 }
 0x431   : > { %v3100_v14 = vpop.permute.xlu1 %3099  ;;  %3705 = vrot.lane.b32.xlu0 %v7571_v34, %s5678_s21 }
 0x432   : > { %3178 = vst.msk [vmem:[#allocation3 + $0x88] sm:$0xff] %vm9805_vm14, %v3100_v14  ;;  %vm9807_vm14 = vmmov %vm9794_vm10  ;;  %v3486_v14 = vsel %vm9762_vm12, %v7634_v53, %v7845_v7 }
 0x433   : > { %3867 = vrot.lane.b32.xlu1 %v3482_v16, %s5679_s22  ;;  %v3098_v62 = vpop.permute.xlu0 %3097 }
 0x434   : > { %3177 = vst.msk [vmem:[#allocation3 + $0x80] sm:$0xff] %vm9806_vm15, %v3098_v62  ;;  %vm9808_vm15 = vmmov %vm9794_vm10 }
 0x435   : > { %v3104_v39 = vpop.permute.xlu1 %3103  ;;  %3865 = vrot.lane.b32.xlu0 %v7593_v31, %s5679_s22  ;;  %v4669_v31 = vld [vmem:[%s9088_s2 + $0x20] sm:$0xf]  ;;  %vm9811_vm13 = vmmov %vm9808_vm15 }
 0x436   : > { %3180 = vst.msk [vmem:[#allocation3 + $0x98] sm:$0xff] %vm9794_vm10, %v3104_v39  ;;  %vm9809_vm10 = vcmask 1043456   ;;  %vm9812_vm1 = vmmov %vm9811_vm13  ;;  %v4093_v39 = vsel %vm5988_vm3, %v7645_v51, %v7643_v29 }
 0x437   : > { %4187 = vrot.lane.b32.xlu1 %v7620_v43, %s5680_s27  ;;  %v3102_v34 = vpop.permute.xlu0 %3101  ;;  %5564 = vmatprep.subr.msk.mxu1 %vm9809_vm10, %v4669_v31  ;;  %vm9819_vm9 = vmmov %vm9812_vm1 }
 0x438   : > { %3179 = vst.msk [vmem:[#allocation3 + $0x90] sm:$0xff] %vm9807_vm14, %v3102_v34  ;;  %vm9810_vm14 = vmmov %vm9809_vm10 }
 0x439   : > { %v3108_v25 = vpop.permute.xlu1 %3107  ;;  %4185 = vrot.lane.b32.xlu0 %v4089_v8, %s5680_s27  ;;  %5565 = vmatpush3.msk.msra.mxu1 %vm9810_vm14, %v4669_v31  ;;  %vm9815_vm10 = vmmov %vm9812_vm1  ;;  %v3488_v8 = vsel %vm9764_vm11, %v7654_v2, %v7854_v40 }
 0x43a   : > { %3182 = vst.msk [vmem:[#allocation3 + $0xa8] sm:$0xff] %vm9808_vm15, %v3108_v25  ;;  %5566 = vmatprep.subr.mxu1 %v4668_v56  ;;  %vm9814_vm15 = vmmov %vm9812_vm1 }
 0x43b   : > { %3709 = vrot.lane.b32.xlu1 %v7579_v21, %s5678_s21  ;;  %v3106_v38 = vpop.permute.xlu0 %3105  ;;  %5567 = vmatpush3.msra.mxu1 %v4668_v56  ;;  %vm9816_vm14 = vmmov %vm9812_vm1 }
 0x43c   : > { %3181 = vst.msk [vmem:[#allocation3 + $0xa0] sm:$0xff] %vm9811_vm13, %v3106_v38  ;;  %5568 = vmatprep.subr.mxu1 %v4667_v22  ;;  %vm9813_vm13 = vmmov %vm9812_vm1 }
 0x43d   : > { %v3112_v63 = vpop.permute.xlu1 %3111  ;;  %4345 = vrot.lane.b32.xlu0 %v7579_v21, %s5681_s5  ;;  %5569 = vmatpush3.msra.mxu1 %v4667_v22  ;;  %v4666_v21 = vld [vmem:[%s9088_s2 + $0x8] sm:$0xff] }
 0x43e   : > { %3184 = vst.msk [vmem:[#allocation3 + $0xb8] sm:$0xff] %vm9812_vm1, %v3112_v63  ;;  %5570 = vmatprep.subr.mxu1 %v4666_v21 }
 0x43f   : > { %4505 = vrot.lane.b32.xlu1 %v7618_v60, %s5682_s8  ;;  %v3110_v49 = vpop.permute.xlu0 %3109  ;;  %5571 = vmatpush3.msra.mxu1 %v4666_v21  ;;  %v9847_v21 = vld [vmem:[#allocation55_spill] sm:$0xff] }
 0x440   : > { %3183 = vst.msk [vmem:[#allocation3 + $0xb0] sm:$0xff] %vm9813_vm13, %v3110_v49  ;;  %5572 = vmatprep.subr.mxu1 %v4665_v58  ;;  %vm9817_vm13 = vmmov %vm9812_vm1  ;;  %v9843_v49 = vld [vmem:[#allocation46_spill] sm:$0xff] }
 0x441   : > { %v3116_v0 = vpop.permute.xlu1 %3115  ;;  %4347 = vrot.lane.b32.xlu0 %v7575_v41, %s5681_s5  ;;  %5573 = vmatpush3.msra.mxu1 %v4665_v58 }
 0x442   : > { %3186 = vst.msk [vmem:[#allocation3 + $0xc8] sm:$0xff] %vm9814_vm15, %v3116_v0  ;;  %vm9818_vm15 = vmmov %vm9812_vm1 }
 0x443   : > { %3869 = vrot.lane.b32.xlu1 %v7618_v60, %s5679_s22  ;;  %v3114_v28 = vpop.permute.xlu0 %3113 }
 0x444   : > { %3185 = vst.msk [vmem:[#allocation3 + $0xc0] sm:$0xff] %vm9815_vm10, %v3114_v28  ;;  %vm9820_vm10 = vmmov %vm9812_vm1  ;;  %v3490_v28 = vsel %vm9766_vm0, %v7667_v46, %v9847_v21 }
 0x445   : > { %v3120_v11 = vpop.permute.xlu1 %3119  ;;  %3711 = vrot.lane.b32.xlu0 %v7575_v41, %s5678_s21 }
 0x446   : > { %3188 = vst.msk [vmem:[#allocation3 + $0xd8] sm:$0xff] %vm9816_vm14, %v3120_v11  ;;  %vm9821_vm14 = vcmask 97344  }
 0x447   : > { %3871 = vrot.lane.b32.xlu1 %v3484_v18, %s5679_s22  ;;  %v3118_v60 = vpop.permute.xlu0 %3117  ;;  %vm9822_vm2 = vmmov %vm9821_vm14 }
 0x448   : > { %3187 = vst.msk [vmem:[#allocation3 + $0xd0] sm:$0xff] %vm9812_vm1, %v3118_v60  ;;  %vm9823_vm1 = vmmov %vm9822_vm2  ;;  %v9851_v60 = vld [vmem:[#allocation48_spill] sm:$0xff] }
 0x449   : > { %v3124_v6 = vpop.permute.xlu1 %3123  ;;  %4507 = vrot.lane.b32.xlu0 %v4122_v24, %s5682_s8  ;;  %vm9831_vm3 = vmmov %vm9823_vm1 }
 0x44a   : > { %3190 = vst.msk [vmem:[#allocation3 + $0xe8] sm:$0xff] %vm9817_vm13, %v3124_v6  ;;  %vm9824_vm13 = vmmov %vm9823_vm1  ;;  %v3459_v6 = vsel %vm6026_vm6, %v7679_v59, %v9851_v60 }
 0x44b   : > { %4191 = vrot.lane.b32.xlu1 %v7634_v53, %s5680_s27  ;;  %v3122_v41 = vpop.permute.xlu0 %3121 }
 0x44c   : > { %3189 = vst.msk [vmem:[#allocation3 + $0xe0] sm:$0xff] %vm9818_vm15, %v3122_v41  ;;  %vm9825_vm15 = vmmov %vm9823_vm1 }
 0x44d   : > { %v3128_v61 = vpop.permute.xlu1 %3127  ;;  %4189 = vrot.lane.b32.xlu0 %v4091_v23, %s5680_s27  ;;  %v9855_v23 = vld [vmem:[#allocation34_spill] sm:$0xff] }
 0x44e   : > { %3192 = vst.msk [vmem:[#allocation3 + $0xf8] sm:$0xff] %vm9819_vm9, %v3128_v61  ;;  %vm9826_vm9 = vmmov %vm9823_vm1 }
 0x44f   : > { %3713 = vrot.lane.b32.xlu1 %v7597_v26, %s5678_s21  ;;  %v3126_v43 = vpop.permute.xlu0 %3125 }
 0x450   : > { %3191 = vst.msk [vmem:[#allocation3 + $0xf0] sm:$0xff] %vm9820_vm10, %v3126_v43  ;;  %vm9827_vm10 = vmmov %vm9823_vm1 }
 0x451   : > { %v3228_v17 = vpop.permute.xlu1 %3227  ;;  %4349 = vrot.lane.b32.xlu0 %v7597_v26, %s5681_s5 }
 0x452   : > { %3322 = vst.msk [vmem:[#allocation3 + $0x8] sm:$0xff] %vm9821_vm14, %v3228_v17  ;;  %vm9828_vm14 = vmmov %vm9823_vm1 }
 0x453   : > { %4509 = vrot.lane.b32.xlu1 %v7632_v1, %s5682_s8  ;;  %v3226_v48 = vpop.permute.xlu0 %3225 }
 0x454   : > { %3321 = vst.msk [vmem:[#allocation3] sm:$0xff] %vm9822_vm2, %v3226_v48  ;;  %vm9830_vm2 = vmmov %vm9823_vm1 }
 0x455   : > { %v3232_v30 = vpop.permute.xlu1 %3231  ;;  %4351 = vrot.lane.b32.xlu0 %v7583_v5, %s5681_s5 }
 0x456   : > { %3324 = vst.msk [vmem:[#allocation3 + $0x18] sm:$0xff] %vm9823_vm1, %v3232_v30 }
 0x457   : > { %3873 = vrot.lane.b32.xlu1 %v7632_v1, %s5679_s22  ;;  %v3230_v10 = vpop.permute.xlu0 %3229  ;;  %v4124_v1 = vsel %vm9760_vm7, %v7634_v53, %v7845_v7  ;;  %vm9829_vm7 = vmmov %vm9823_vm1 }
 0x458   : > { %3323 = vst.msk [vmem:[#allocation3 + $0x10] sm:$0xff] %vm9824_vm13, %v3230_v10  ;;  %vm9832_vm13 = vmmov %vm9823_vm1  ;;  %v9861_v10 = vld [vmem:[#allocation35_spill] sm:$0xff] }
 0x459   : > { %v3236_v26 = vpop.permute.xlu1 %3235  ;;  %3715 = vrot.lane.b32.xlu0 %v7583_v5, %s5678_s21 }
 0x45a   : > { %3326 = vst.msk [vmem:[#allocation3 + $0x28] sm:$0xff] %vm9825_vm15, %v3236_v26  ;;  %vm9833_vm15 = vmmov %vm9823_vm1 }
 0x45b   : > { %3875 = vrot.lane.b32.xlu1 %v3486_v14, %s5679_s22  ;;  %v3234_v16 = vpop.permute.xlu0 %3233 }
 0x45c   : > { %3325 = vst.msk [vmem:[#allocation3 + $0x20] sm:$0xff] %vm9826_vm9, %v3234_v16  ;;  %vm9834_vm9 = vmmov %vm9823_vm1  ;;  %v9865_v16 = vld [vmem:[#allocation56_spill] sm:$0xff] }
 0x45d   : > { %v3240_v62 = vpop.permute.xlu1 %3239  ;;  %4511 = vrot.lane.b32.xlu0 %v4124_v1, %s5682_s8  ;;  %v9866_v1 = vld [vmem:[#allocation60_spill] sm:$0xff] }
 0x45e   : > { %3328 = vst.msk [vmem:[#allocation3 + $0x38] sm:$0xff] %vm9827_vm10, %v3240_v62  ;;  %vm9835_vm10 = vmmov %vm9823_vm1 }
 0x45f   : > { %4195 = vrot.lane.b32.xlu1 %v7654_v2, %s5680_s27  ;;  %v3238_v5 = vpop.permute.xlu0 %3237 }
 0x460   : > { %3327 = vst.msk [vmem:[#allocation3 + $0x30] sm:$0xff] %vm9828_vm14, %v3238_v5  ;;  %vm9836_vm14 = vmmov %vm9823_vm1 }
 0x461   : > { %v3244_v34 = vpop.permute.xlu1 %3243  ;;  %4193 = vrot.lane.b32.xlu0 %v4093_v39, %s5680_s27 }
 0x462   : > { %3330 = vst.msk [vmem:[#allocation3 + $0x48] sm:$0xff] %vm9829_vm7, %v3244_v34  ;;  %vm9837_vm7 = vmmov %vm9823_vm1  ;;  %v9870_v34 = vld [vmem:[#allocation51_spill] sm:$0xff] }
 0x463   : > { %3717 = vrot.lane.b32.xlu1 %v7647_v15, %s5678_s21  ;;  %v3242_v53 = vpop.permute.xlu0 %3241 }
 0x464   : > { %3329 = vst.msk [vmem:[#allocation3 + $0x40] sm:$0xff] %vm9830_vm2, %v3242_v53  ;;  %vm9839_vm2 = vmmov %vm9823_vm1  ;;  %v9871_v53 = vld [vmem:[#allocation37_spill] sm:$0xff] }
 0x465   : > { %v3248_v44 = vpop.permute.xlu1 %3247  ;;  %4353 = vrot.lane.b32.xlu0 %v7647_v15, %s5681_s5 }
 0x466   : > { %3332 = vst.msk [vmem:[#allocation3 + $0x58] sm:$0xff] %vm9823_vm1, %v3248_v44 }
 0x467   : > { %4513 = vrot.lane.b32.xlu1 %v7645_v51, %s5682_s8  ;;  %v3246_v35 = vpop.permute.xlu0 %3245 }
 0x468   : > { %3331 = vst.msk [vmem:[#allocation3 + $0x50] sm:$0xff] %vm9831_vm3, %v3246_v35  ;;  %vm9841_vm3 = vmmov %vm9823_vm1 }
 0x469   : > { %v3252_v29 = vpop.permute.xlu1 %3251  ;;  %4355 = vrot.lane.b32.xlu0 %v7612_v33, %s5681_s5 }
 0x46a   : > { %3334 = vst.msk [vmem:[#allocation3 + $0x68] sm:$0xff] %vm9832_vm13, %v3252_v29  ;;  %vm9842_vm13 = vmmov %vm9823_vm1 }
 0x46b   : > { %3877 = vrot.lane.b32.xlu1 %v7645_v51, %s5679_s22  ;;  %v3250_v7 = vpop.permute.xlu0 %3249  ;;  %v4126_v51 = vsel %vm9762_vm12, %v7654_v2, %v7854_v40  ;;  %v4095_v2 = vsel %vm6007_vm4, %v7665_v50, %v7656_v9  ;;  %vm9838_vm12 = vmmov %vm9823_vm1 }
 0x46c   : > { %3333 = vst.msk [vmem:[#allocation3 + $0x60] sm:$0xff] %vm9833_vm15, %v3250_v7  ;;  %vm9840_vm4 = vmmov %vm9823_vm1  ;;  %v9875_v7 = vld [vmem:[#allocation71_spill] sm:$0xff] }
 0x46d   : > { %v3256_v15 = vpop.permute.xlu1 %3255  ;;  %3719 = vrot.lane.b32.xlu0 %v7612_v33, %s5678_s21  ;;  %v3457_v33 = vsel %vm6022_vm5, %v7665_v50, %v7656_v9  ;;  %vm9844_vm15 = vmmov %vm9823_vm1 }
 0x46e   : > { %3336 = vst.msk [vmem:[#allocation3 + $0x78] sm:$0xff] %vm9834_vm9, %v3256_v15  ;;  %vm9845_vm9 = vmmov %vm9823_vm1 }
 0x46f   : > { %3879 = vrot.lane.b32.xlu1 %v3488_v8, %s5679_s22  ;;  %v3254_v25 = vpop.permute.xlu0 %3253 }
 0x470   : > { %3335 = vst.msk [vmem:[#allocation3 + $0x70] sm:$0xff] %vm9835_vm10, %v3254_v25  ;;  %vm9846_vm10 = vmmov %vm9823_vm1  ;;  %v9877_v25 = vld [vmem:[#allocation53_spill] sm:$0xff] }
 0x471   : > { %v3260_v31 = vpop.permute.xlu1 %3259  ;;  %4515 = vrot.lane.b32.xlu0 %v4126_v51, %s5682_s8  ;;  %v3397_v51 = vld [vmem:[#allocation2 + $0x78] sm:$0xff] }
 0x472   : > { %3338 = vst.msk [vmem:[#allocation3 + $0x88] sm:$0xff] %vm9836_vm14, %v3260_v31  ;;  %vm9849_vm14 = vmmov %vm9823_vm1 }
 0x473   : > { %3561 = vrot.lane.b32.xlu1 %v3457_v33, %s5677_s20  ;;  %v3258_v38 = vpop.permute.xlu0 %3257 }
 0x474   : > { %3337 = vst.msk [vmem:[#allocation3 + $0x80] sm:$0xff] %vm9837_vm7, %v3258_v38  ;;  %vm9850_vm7 = vmmov %vm9823_vm1 }
 0x475   : > { %v3264_v37 = vpop.permute.xlu1 %3263  ;;  %4197 = vrot.lane.b32.xlu0 %v4095_v2, %s5680_s27  ;;  %v4036_v2 = vld [vmem:[#allocation2 + $0x80] sm:$0xff] }
 0x476   : > { %3340 = vst.msk [vmem:[#allocation3 + $0x98] sm:$0xff] %vm9838_vm12, %v3264_v37  ;;  %vm9853_vm12 = vmmov %vm9823_vm1 }
 0x477   : > { %4357 = vrot.lane.b32.xlu1 %v7694_v3, %s5681_s5  ;;  %v3262_v40 = vpop.permute.xlu0 %3261 }
 0x478   : > { %3339 = vst.msk [vmem:[#allocation3 + $0x90] sm:$0xff] %vm9839_vm2, %v3262_v40  ;;  %vm9856_vm2 = vmmov %vm9823_vm1 }
 0x479   : > { %v3268_v63 = vpop.permute.xlu1 %3267  ;;  %4199 = vrot.lane.b32.xlu0 %v7667_v46, %s5680_s27 }
 0x47a   : > { %3342 = vst.msk [vmem:[#allocation3 + $0xa8] sm:$0xff] %vm9823_vm1, %v3268_v63 }
 0x47b   : > { %3721 = vrot.lane.b32.xlu1 %v7694_v3, %s5678_s21  ;;  %v3266_v27 = vpop.permute.xlu0 %3265 }
 0x47c   : > { %3341 = vst.msk [vmem:[#allocation3 + $0xa0] sm:$0xff] %vm9840_vm4, %v3266_v27  ;;  %v9885_v27 = vld [vmem:[#allocation57_spill] sm:$0xff] }
 0x47d   : > { %v3272_v9 = vpop.permute.xlu1 %3271  ;;  %3563 = vrot.lane.b32.xlu0 %v7667_v46, %s5677_s20 }
 0x47e   : > { %3344 = vst.msk [vmem:[#allocation3 + $0xb8] sm:$0xff] %vm9841_vm3, %v3272_v9  ;;  %v9886_v9 = vld [vmem:[#allocation61_spill] sm:$0xff] }
 0x47f   : > { %4517 = vrot.lane.b32.xlu1 %v7665_v50, %s5682_s8  ;;  %v3270_v56 = vpop.permute.xlu0 %3269 }
 0x480   : > { %3343 = vst.msk [vmem:[#allocation3 + $0xb0] sm:$0xff] %vm9842_vm13, %v3270_v56 }
 0x481   : > { %v3276_v22 = vpop.permute.xlu1 %3275  ;;  %4359 = vrot.lane.b32.xlu0 %v9843_v49, %s5681_s5 }
 0x482   : > { %3346 = vst.msk [vmem:[#allocation3 + $0xc8] sm:$0xff] %vm9844_vm15, %v3276_v22 }
 0x483   : > { %3881 = vrot.lane.b32.xlu1 %v7665_v50, %s5679_s22  ;;  %v3274_v3 = vpop.permute.xlu0 %3273  ;;  %v4128_v50 = vsel %vm9764_vm11, %v7667_v46, %v9847_v21  ;;  %v4097_v46 = vsel %vm6022_vm5, %v7679_v59, %v9851_v60  ;;  %vm9854_vm11 = vmmov %vm9823_vm1  ;;  %vm9857_vm1 = vcmask 130144   ;;  %v9892_v21 = vld [vmem:[#allocation40_spill] sm:$0xff] }
 0x484   : > { %3345 = vst.msk [vmem:[#allocation3 + $0xc0] sm:$0xff] %vm9845_vm9, %v3274_v3  ;;  %vm9858_vm5 = vmmov %vm9857_vm1 }
 0x485   : > { %v3280_v0 = vpop.permute.xlu1 %3279  ;;  %3723 = vrot.lane.b32.xlu0 %v9843_v49, %s5678_s21  ;;  %vm9859_vm4 = vmmov %vm9857_vm1 }
 0x486   : > { %3348 = vst.msk [vmem:[#allocation3 + $0xd8] sm:$0xff] %vm9846_vm10, %v3280_v0  ;;  %vm9860_vm3 = vmmov %vm9857_vm1  ;;  %vm9867_vm10 = vnez %v9866_v1  ;;  %v9891_v0 = vld [vmem:[#allocation45_spill] sm:$0xff] }
 0x487   : > { %3883 = vrot.lane.b32.xlu1 %v3490_v28, %s5679_s22  ;;  %v3278_v11 = vpop.permute.xlu0 %3277  ;;  %vm9862_vm13 = vmmov %vm9857_vm1  ;;  %v3492_v62 = vsel %vm9867_vm10, %v7681_v12, %v9865_v16  ;;  %v9910_v1 = vld [vmem:[#allocation41_spill] sm:$0xff] }
 0x488   : > { %3347 = vst.msk [vmem:[#allocation3 + $0xd0] sm:$0xff] %vm9849_vm14, %v3278_v11  ;;  %vm9863_vm15 = vmmov %vm9857_vm1 }
 0x489   : > { %v3284_v18 = vpop.permute.xlu1 %3283  ;;  %4519 = vrot.lane.b32.xlu0 %v4128_v50, %s5682_s8  ;;  %vm9864_vm9 = vmmov %vm9857_vm1 }
 0x48a   : > { %3350 = vst.msk [vmem:[#allocation3 + $0xe8] sm:$0xff] %vm9850_vm7, %v3284_v18  ;;  %vm9868_vm14 = vmmov %vm9857_vm1  ;;  %vm9869_vm7 = vcmask 162944   ;;  %v4037_v18 = vld [vmem:[#allocation2 + $0x88] sm:$0xff] }
 0x48b   : > { %3565 = vrot.lane.b32.xlu1 %v3459_v6, %s5677_s20  ;;  %v3282_v41 = vpop.permute.xlu0 %3281 }
 0x48c   : > { %3349 = vst.msk [vmem:[#allocation3 + $0xe0] sm:$0xff] %vm9853_vm12, %v3282_v41  ;;  %vm9872_vm12 = vnez %v9871_v53 }
 0x48d   : > { %v3288_v19 = vpop.permute.xlu1 %3287  ;;  %4201 = vrot.lane.b32.xlu0 %v4097_v46, %s5680_s27  ;;  %v3461_v44 = vsel %vm9872_vm12, %v7692_v47, %v9870_v34  ;;  %v4101_v11 = vsel %vm9872_vm12, %v7712_v54, %v9891_v0 }
 0x48e   : > { %3352 = vst.msk [vmem:[#allocation3 + $0xf8] sm:$0xff] %vm9854_vm11, %v3288_v19  ;;  %vm9873_vm11 = vmmov %vm9869_vm7 }
 0x48f   : > { %4361 = vrot.lane.b32.xlu1 %v9855_v23, %s5681_s5  ;;  %v3286_v61 = vpop.permute.xlu0 %3285 }
 0x490   : > { %3351 = vst.msk [vmem:[#allocation3 + $0xf0] sm:$0xff] %vm9856_vm2, %v3286_v61 }
 0x491   : > { %v3548_v43 = vpop.permute.xlu1 %3547  ;;  %4203 = vrot.lane.b32.xlu0 %v7681_v12, %s5680_s27 }
 0x492   : > { %3642 = vst.msk [vmem:[#allocation3 + $0x8] sm:$0xff] %vm9857_vm1, %v3548_v43  ;;  %vm9878_vm1 = vcmask 228544  }
 0x493   : > { %3725 = vrot.lane.b32.xlu1 %v9855_v23, %s5678_s21  ;;  %v3546_v32 = vpop.permute.xlu0 %3545  ;;  %v4038_v23 = vld [vmem:[#allocation2 + $0x90] sm:$0xff] }
 0x494   : > { %3641 = vst.msk [vmem:[#allocation3] sm:$0xff] %vm9858_vm5, %v3546_v32  ;;  %vm9880_vm5 = vmmov %vm9869_vm7 }
 0x495   : > { %v3552_v17 = vpop.permute.xlu1 %3551  ;;  %3567 = vrot.lane.b32.xlu0 %v7681_v12, %s5677_s20 }
 0x496   : > { %3644 = vst.msk [vmem:[#allocation3 + $0x18] sm:$0xff] %vm9859_vm4, %v3552_v17  ;;  %vm9881_vm4 = vcmask 261344  }
 0x497   : > { %4521 = vrot.lane.b32.xlu1 %v7679_v59, %s5682_s8  ;;  %v3550_v48 = vpop.permute.xlu0 %3549  ;;  %vm9897_vm12 = vmmov %vm9881_vm4 }
 0x498   : > { %3643 = vst.msk [vmem:[#allocation3 + $0x10] sm:$0xff] %vm9860_vm3, %v3550_v48  ;;  %vm9882_vm3 = vcmask 294144   ;;  %v9905_v48 = vld [vmem:[#allocation58_spill] sm:$0xff] }
 0x499   : > { %v3556_v30 = vpop.permute.xlu1 %3555  ;;  %4363 = vrot.lane.b32.xlu0 %v9861_v10, %s5681_s5 }
 0x49a   : > { %3646 = vst.msk [vmem:[#allocation3 + $0x28] sm:$0xff] %vm9862_vm13, %v3556_v30  ;;  %vm9883_vm13 = vmmov %vm9881_vm4  ;;  %v9906_v30 = vld [vmem:[#allocation62_spill] sm:$0xff] }
 0x49b   : > { %3885 = vrot.lane.b32.xlu1 %v7679_v59, %s5679_s22  ;;  %v3554_v26 = vpop.permute.xlu0 %3553  ;;  %v4130_v59 = vsel %vm9766_vm0, %v7681_v12, %v9865_v16  ;;  %v4099_v12 = vsel %vm6026_vm6, %v7692_v47, %v9870_v34  ;;  %vm9874_vm0 = vcmask 195744   ;;  %vm9879_vm6 = vmmov %vm9878_vm1  ;;  %v9909_v16 = vld [vmem:[#allocation39_spill] sm:$0xff] }
 0x49c   : > { %3645 = vst.msk [vmem:[#allocation3 + $0x20] sm:$0xff] %vm9863_vm15, %v3554_v26  ;;  %vm9876_vm2 = vmmov %vm9874_vm0 }
 0x49d   : > { %v3560_v14 = vpop.permute.xlu1 %3559  ;;  %3727 = vrot.lane.b32.xlu0 %v9861_v10, %s5678_s21  ;;  %vm9884_vm15 = vmmov %vm9874_vm0 }
 0x49e   : > { %3648 = vst.msk [vmem:[#allocation3 + $0x38] sm:$0xff] %vm9864_vm9, %v3560_v14  ;;  %vm9887_vm9 = vnez %v9886_v9 }
 0x49f   : > { %3887 = vrot.lane.b32.xlu1 %v3492_v62, %s5679_s22  ;;  %v3558_v5 = vpop.permute.xlu0 %3557  ;;  %v3494_v56 = vsel %vm9887_vm9, %v9877_v25, %v9885_v27 }
 0x4a0   : > { %3647 = vst.msk [vmem:[#allocation3 + $0x30] sm:$0xff] %vm9868_vm14, %v3558_v5  ;;  %vm9888_vm14 = vmmov %vm9880_vm5 }
 0x4a1   : > { %v3708_v39 = vpop.permute.xlu1 %3707  ;;  %4523 = vrot.lane.b32.xlu0 %v4130_v59, %s5682_s8 }
 0x4a2   : > { %3802 = vst.msk [vmem:[#allocation3 + $0x8] sm:$0xff] %vm9869_vm7, %v3708_v39  ;;  %vm9889_vm7 = vmmov %vm9874_vm0  ;;  %v4039_v39 = vld [vmem:[#allocation2 + $0x98] sm:$0xff] }
 0x4a3   : > { %3569 = vrot.lane.b32.xlu1 %v3461_v44, %s5677_s20  ;;  %v3706_v35 = vpop.permute.xlu0 %3705 }
 0x4a4   : > { %3801 = vst.msk [vmem:[#allocation3] sm:$0xff] %vm9873_vm11, %v3706_v35  ;;  %vm9890_vm11 = vcmask 293888  }
 0x4a5   : > { %v3868_v29 = vpop.permute.xlu1 %3867  ;;  %4205 = vrot.lane.b32.xlu0 %v4099_v12, %s5680_s27  ;;  %v3370_v12 = vld [vmem:[#allocation2 + $0x9f] sm:$0xff] }
 0x4a6   : > { %3962 = vst.msk [vmem:[#allocation3 + $0x8] sm:$0xff] %vm9874_vm0, %v3868_v29  ;;  %vm9893_vm0 = vnez %v9892_v21 }
 0x4a7   : > { %4365 = vrot.lane.b32.xlu1 %v9875_v7, %s5681_s5  ;;  %v3866_v15 = vpop.permute.xlu0 %3865  ;;  %v3463_v58 = vsel %vm9893_vm0, %v7712_v54, %v9891_v0  ;;  %v4041_v0 = vld [vmem:[#allocation2 + $0xa8] sm:$0xff] }
 0x4a8   : > { %3961 = vst.msk [vmem:[#allocation3] sm:$0xff] %vm9876_vm2, %v3866_v15  ;;  %vm9894_vm2 = vmmov %vm9882_vm3  ;;  %v4040_v15 = vld [vmem:[#allocation2 + $0xa0] sm:$0xff] }
 0x4a9   : > { %v4188_v8 = vpop.permute.xlu1 %4187  ;;  %4207 = vrot.lane.b32.xlu0 %v9877_v25, %s5680_s27 }
 0x4aa   : > { %4282 = vst.msk [vmem:[#allocation3 + $0x8] sm:$0xff] %vm9878_vm1, %v4188_v8 }
 0x4ab   : > { %3729 = vrot.lane.b32.xlu1 %v3397_v51, %s5678_s21  ;;  %v4186_v31 = vpop.permute.xlu0 %4185  ;;  %v5666_v51 = vld [vmem:[#allocation2 + $0x99] sm:$0xff] }
 0x4ac   : > { %4281 = vst.msk [vmem:[#allocation3] sm:$0xff] %vm9879_vm6, %v4186_v31  ;;  %vm9896_vm6 = vmmov %vm9880_vm5  ;;  %v4072_v31 = vld [vmem:[#allocation2 + $0xa1] sm:$0xff] }
 0x4ad   : > { %v3710_v33 = vpop.permute.xlu1 %3709  ;;  %3571 = vrot.lane.b32.xlu0 %v9877_v25, %s5677_s20 }
 0x4ae   : > { %3803 = vst.msk [vmem:[#allocation3 + $0x10] sm:$0xff] %vm9880_vm5, %v3710_v33  ;;  %vm9898_vm5 = vmmov %vm9890_vm11 }
 0x4af   : > { %4525 = vrot.lane.b32.xlu1 %v7692_v47, %s5682_s8  ;;  %v4346_v38 = vpop.permute.xlu0 %4345 }
 0x4b0   : > { %4441 = vst.msk [vmem:[#allocation3] sm:$0xff] %vm9881_vm4, %v4346_v38  ;;  %vm9899_vm4 = vmmov %vm9894_vm2  ;;  %v9923_v38 = vld [vmem:[#allocation63_spill] sm:$0xff] }
 0x4b1   : > { %v4506_v37 = vpop.permute.xlu1 %4505  ;;  %4367 = vrot.lane.b32.xlu0 %v4036_v2, %s5681_s5 }
 0x4b2   : > { %4601 = vst.msk [vmem:[#allocation3] sm:$0xff] %vm9882_vm3, %v4506_v37  ;;  %vm9900_vm3 = vmmov %vm9897_vm12  ;;  %v4009_v37 = vld [vmem:[#allocation2 + $0xa7] sm:$0xff] }
 0x4b3   : > { %3889 = vrot.lane.b32.xlu1 %v7692_v47, %s5679_s22  ;;  %v4348_v40 = vpop.permute.xlu0 %4347  ;;  %v4132_v47 = vsel %vm9867_vm10, %v9877_v25, %v9885_v27  ;;  %vm9895_vm10 = vmmov %vm9878_vm1 }
 0x4b4   : > { %4442 = vst.msk [vmem:[#allocation3 + $0x8] sm:$0xff] %vm9883_vm13, %v4348_v40  ;;  %vm9901_vm13 = vmmov %vm9889_vm7  ;;  %v4073_v40 = vld [vmem:[#allocation2 + $0xa9] sm:$0xff] }
 0x4b5   : > { %v3870_v63 = vpop.permute.xlu1 %3869  ;;  %3731 = vrot.lane.b32.xlu0 %v4036_v2, %s5678_s21 }
 0x4b6   : > { %3963 = vst.msk [vmem:[#allocation3 + $0x10] sm:$0xff] %vm9884_vm15, %v3870_v63  ;;  %vm9902_vm15 = vmmov %vm9896_vm6 }
 0x4b7   : > { %3891 = vrot.lane.b32.xlu1 %v3494_v56, %s5679_s22  ;;  %v3712_v22 = vpop.permute.xlu0 %3711  ;;  %v9926_v56 = vld [vmem:[#allocation42_spill] sm:$0xff] }
 0x4b8   : > { %3804 = vst.msk [vmem:[#allocation3 + $0x18] sm:$0xff] %vm9888_vm14, %v3712_v22  ;;  %vm9903_vm14 = vmmov %vm9889_vm7 }
 0x4b9   : > { %v3872_v49 = vpop.permute.xlu1 %3871  ;;  %v4633_v3 = vld [vmem:[#allocation3] sm:$0xff]  ;;  %4527 = vrot.lane.b32.xlu0 %v4132_v47, %s5682_s8 }
 0x4ba   : > { %3964 = vst.msk [vmem:[#allocation3 + $0x18] sm:$0xff] %vm9889_vm7, %v3872_v49  ;;  %5574 = vmatprep.mubr.msk.f32.mxu1 %vm9890_vm11, %v4633_v3  ;;  %vm9904_vm7 = vmmov %vm9898_vm5  ;;  %vm9907_vm11 = vnez %v9906_v30 }
 0x4bb   : > { %3573 = vrot.lane.b32.xlu1 %v3463_v58, %s5677_s20  ;;  %v4508_v28 = vpop.permute.xlu0 %4507  ;;  %v3496_v10 = vsel %vm9907_vm11, %v7714_v4, %v9905_v48  ;;  %v4136_v27 = vsel %vm9907_vm11, %v7728_v42, %v4072_v31  ;;  %v4010_v58 = vld [vmem:[#allocation2 + $0xaf] sm:$0xff] }
 0x4bc   : > { %4602 = vst.msk [vmem:[#allocation3 + $0x8] sm:$0xff] %vm9894_vm2, %v4508_v28 }
 0x4bd   : > { %v4192_v50 = vpop.permute.xlu1 %4191  ;;  %4209 = vrot.lane.b32.xlu0 %v4101_v11, %s5680_s27 }
 0x4be   : > { %4284 = vst.msk [vmem:[#allocation3 + $0x18] sm:$0xff] %vm9895_vm10, %v4192_v50  ;;  %vm9908_vm10 = vmmov %vm9878_vm1 }
 0x4bf   : > { %4369 = vrot.lane.b32.xlu1 %v4037_v18, %s5681_s5  ;;  %v4190_v60 = vpop.permute.xlu0 %4189 }
 0x4c0   : > { %4283 = vst.msk [vmem:[#allocation3 + $0x10] sm:$0xff] %vm9878_vm1, %v4190_v60  ;;  %vm9911_vm1 = vnez %v9910_v1  ;;  %v4042_v60 = vld [vmem:[#allocation2 + $0xb0] sm:$0xff] }
 0x4c1   : > { %v3714_v24 = vpop.permute.xlu1 %3713  ;;  %4211 = vrot.lane.b32.xlu0 %v7714_v4, %s5680_s27  ;;  %v3465_v62 = vsel %vm9911_vm1, %v7726_v52, %v9909_v16  ;;  %v4105_v3 = vsel %vm9911_vm1, %v4073_v40, %v4009_v37 }
 0x4c2   : > { %3805 = vst.msk [vmem:[#allocation3 + $0x20] sm:$0xff] %vm9896_vm6, %v3714_v24  ;;  %vm9912_vm6 = vmmov %vm9908_vm10 }
 0x4c3   : > { %3733 = vrot.lane.b32.xlu1 %v4037_v18, %s5678_s21  ;;  %v4350_v6 = vpop.permute.xlu0 %4349  ;;  %v4634_v41 = vld [vmem:[#allocation3 + $0x8] sm:$0xff] }
 0x4c4   : > { %4443 = vst.msk [vmem:[#allocation3 + $0x10] sm:$0xff] %vm9897_vm12, %v4350_v6  ;;  %5575 = vmatmul.mubr.msk.f32.vlgmr.msra.gmra.mxu1 %vm9898_vm5, %v4634_v41  ;;  %vm9914_vm12 = vmmov %vm9900_vm3  ;;  %v4074_v41 = vld [vmem:[#allocation2 + $0xb1] sm:$0xff] }
 0x4c5   : > { %v4510_v46 = vpop.permute.xlu1 %4509  ;;  %3575 = vrot.lane.b32.xlu0 %v7714_v4, %s5677_s20 }
 0x4c6   : > { %4603 = vst.msk [vmem:[#allocation3 + $0x10] sm:$0xff] %vm9899_vm4, %v4510_v46  ;;  %vm9915_vm4 = vmmov %vm9894_vm2 }
 0x4c7   : > { %4529 = vrot.lane.b32.xlu1 %v7712_v54, %s5682_s8  ;;  %v4352_v19 = vpop.permute.xlu0 %4351 }
 0x4c8   : > { %4444 = vst.msk [vmem:[#allocation3 + $0x18] sm:$0xff] %vm9900_vm3, %v4352_v19 }
 0x4c9   : > { %v3874_v61 = vpop.permute.xlu1 %3873  ;;  %4371 = vrot.lane.b32.xlu0 %v4038_v23, %s5681_s5 }
 0x4ca   : > { %3965 = vst.msk [vmem:[#allocation3 + $0x20] sm:$0xff] %vm9901_vm13, %v3874_v61 }
 0x4cb   : > { %3893 = vrot.lane.b32.xlu1 %v7712_v54, %s5679_s22  ;;  %v3716_v43 = vpop.permute.xlu0 %3715  ;;  %v4134_v54 = vsel %vm9887_vm9, %v7714_v4, %v9905_v48  ;;  %v4103_v4 = vsel %vm9893_vm0, %v7726_v52, %v9909_v16  ;;  %vm9913_vm9 = vmmov %vm9902_vm15 }
 0x4cc   : > { %3806 = vst.msk [vmem:[#allocation3 + $0x28] sm:$0xff] %vm9902_vm15, %v3716_v43  ;;  %vm9916_vm0 = vmmov %vm9900_vm3  ;;  %v4011_v43 = vld [vmem:[#allocation2 + $0xb7] sm:$0xff] }
 0x4cd   : > { %v3876_v32 = vpop.permute.xlu1 %3875  ;;  %v4635_v17 = vld [vmem:[#allocation3 + $0x10] sm:$0xff]  ;;  %3735 = vrot.lane.b32.xlu0 %v4038_v23, %s5678_s21  ;;  %vm9917_vm3 = vmmov %vm9901_vm13  ;;  %v9940_v23 = vld [vmem:[#allocation64_spill] sm:$0xff] }
 0x4ce   : > { %3966 = vst.msk [vmem:[#allocation3 + $0x28] sm:$0xff] %vm9903_vm14, %v3876_v32  ;;  %5577 = vmatprep.mubr.msk.f32.mxu1 %vm9904_vm7, %v4635_v17  ;;  %vm9918_vm13 = vmmov %vm9913_vm9  ;;  %v4075_v32 = vld [vmem:[#allocation2 + $0xb9] sm:$0xff] }
 0x4cf   : > { %3895 = vrot.lane.b32.xlu1 %v3496_v10, %s5679_s22  ;;  %v4512_v26 = vpop.permute.xlu0 %4511  ;;  %vm9919_vm15 = vmmov %vm9917_vm3  ;;  %v9943_v10 = vld [vmem:[#allocation43_spill] sm:$0xff] }
 0x4d0   : > { %4604 = vst.msk [vmem:[#allocation3 + $0x18] sm:$0xff] %vm9894_vm2, %v4512_v26  ;;  %vm9920_vm14 = vmmov %vm9898_vm5 }
 0x4d1   : > { %v4196_v14 = vpop.permute.xlu1 %4195  ;;  %4531 = vrot.lane.b32.xlu0 %v4134_v54, %s5682_s8  ;;  %vm9921_vm7 = vmmov %vm9894_vm2  ;;  %vm9922_vm2 = vcmask 130144  }
 0x4d2   : > { %4286 = vst.msk [vmem:[#allocation3 + $0x28] sm:$0xff] %vm9908_vm10, %v4196_v14  ;;  %vm9924_vm10 = vnez %v9923_v38  ;;  %vm9930_vm11 = vmmov %vm9918_vm13  ;;  %v9959_v38 = vld [vmem:[#allocation44_spill] sm:$0xff] }
 0x4d3   : > { %3577 = vrot.lane.b32.xlu1 %v3465_v62, %s5677_s20  ;;  %v4194_v5 = vpop.permute.xlu0 %4193  ;;  %v3498_v2 = vsel %vm9924_vm10, %v3370_v12, %v4072_v31  ;;  %v4138_v48 = vsel %vm9924_vm10, %v4010_v58, %v4074_v41  ;;  %v4043_v62 = vld [vmem:[#allocation2 + $0xb8] sm:$0xff] }
 0x4d4   : > { %4285 = vst.msk [vmem:[#allocation3 + $0x20] sm:$0xff] %vm9912_vm6, %v4194_v5 }
 0x4d5   : > { %v3718_v59 = vpop.permute.xlu1 %3717  ;;  %4213 = vrot.lane.b32.xlu0 %v4103_v4, %s5680_s27  ;;  %v4012_v4 = vld [vmem:[#allocation2 + $0xbf] sm:$0xff] }
 0x4d6   : > { %3807 = vst.msk [vmem:[#allocation3 + $0x30] sm:$0xff] %vm9913_vm9, %v3718_v59  ;;  %vm9925_vm9 = vmmov %vm9916_vm0 }
 0x4d7   : > { %4373 = vrot.lane.b32.xlu1 %v4039_v39, %s5681_s5  ;;  %v4354_v34 = vpop.permute.xlu0 %4353  ;;  %v4636_v53 = vld [vmem:[#allocation3 + $0x18] sm:$0xff]  ;;  %vm9933_vm1 = vmmov %vm9925_vm9 }
 0x4d8   : > { %4445 = vst.msk [vmem:[#allocation3 + $0x20] sm:$0xff] %vm9914_vm12, %v4354_v34  ;;  %5578 = vmatmul.mubr.msk.f32.gmra.mxu1 %vm9898_vm5, %v4636_v53  ;;  %vm9927_vm12 = vnez %v9926_v56  ;;  %vm9928_vm5 = vmmov %vm9912_vm6 }
 0x4d9   : > { %v4514_v44 = vpop.permute.xlu1 %4513  ;;  %4215 = vrot.lane.b32.xlu0 %v7728_v42, %s5680_s27  ;;  %v3467_v22 = vsel %vm9927_vm12, %v4073_v40, %v4009_v37  ;;  %v4107_v16 = vsel %vm9927_vm12, %v4075_v32, %v4011_v43 }
 0x4da   : > { %4605 = vst.msk [vmem:[#allocation3 + $0x20] sm:$0xff] %vm9915_vm4, %v4514_v44  ;;  %vm9929_vm4 = vmmov %vm9920_vm14  ;;  %v4044_v44 = vld [vmem:[#allocation2 + $0xc0] sm:$0xff] }
 0x4db   : > { %3737 = vrot.lane.b32.xlu1 %v4039_v39, %s5678_s21  ;;  %v4356_v35 = vpop.permute.xlu0 %4355 }
 0x4dc   : > { %4446 = vst.msk [vmem:[#allocation3 + $0x28] sm:$0xff] %vm9916_vm0, %v4356_v35  ;;  %vm9931_vm0 = vmmov %vm9922_vm2 }
 0x4dd   : > { %v3878_v29 = vpop.permute.xlu1 %3877  ;;  %3579 = vrot.lane.b32.xlu0 %v3370_v12, %s5677_s20 }
 0x4de   : > { %3967 = vst.msk [vmem:[#allocation3 + $0x30] sm:$0xff] %vm9917_vm3, %v3878_v29  ;;  %vm9932_vm3 = vmmov %vm9921_vm7  ;;  %v4076_v29 = vld [vmem:[#allocation2 + $0xc1] sm:$0xff] }
 0x4df   : > { %4533 = vrot.lane.b32.xlu1 %v7726_v52, %s5682_s8  ;;  %v3720_v7 = vpop.permute.xlu0 %3719 }
 0x4e0   : > { %3808 = vst.msk [vmem:[#allocation3 + $0x38] sm:$0xff] %vm9918_vm13, %v3720_v7  ;;  %vm9934_vm13 = vmmov %vm9919_vm15 }
 0x4e1   : > { %v3880_v8 = vpop.permute.xlu1 %3879  ;;  %v4637_v25 = vld [vmem:[#allocation3 + $0x20] sm:$0xff]  ;;  %4375 = vrot.lane.b32.xlu0 %v4040_v15, %s5681_s5 }
 0x4e2   : > { %3968 = vst.msk [vmem:[#allocation3 + $0x38] sm:$0xff] %vm9919_vm15, %v3880_v8  ;;  %5580 = vmatprep.mubr.msk.f32.mxu1 %vm9920_vm14, %v4637_v25  ;;  %vm9935_vm15 = vmmov %vm9930_vm11  ;;  %v4013_v25 = vld [vmem:[#allocation2 + $0xc7] sm:$0xff] }
 0x4e3   : > { %3897 = vrot.lane.b32.xlu1 %v5666_v51, %s5679_s22  ;;  %v4516_v33 = vpop.permute.xlu0 %4515  ;;  %vm9936_vm14 = vmmov %vm9934_vm13  ;;  %v4077_v51 = vld [vmem:[#allocation2 + $0xc9] sm:$0xff] }
 0x4e4   : > { %4606 = vst.msk [vmem:[#allocation3 + $0x28] sm:$0xff] %vm9921_vm7, %v4516_v33  ;;  %vm9937_vm7 = vmmov %vm9929_vm4 }
 0x4e5   : > { %v3562_v52 = vpop.permute.xlu1 %3561  ;;  %3739 = vrot.lane.b32.xlu0 %v4040_v15, %s5678_s21  ;;  %vm9947_vm10 = vmmov %vm9935_vm15 }
 0x4e6   : > { %3649 = vst.msk [vmem:[#allocation3 + $0x40] sm:$0xff] %vm9922_vm2, %v3562_v52  ;;  %vm9938_vm2 = vmmov %vm9932_vm3 }
 0x4e7   : > { %3899 = vrot.lane.b32.xlu1 %v3498_v2, %s5679_s22  ;;  %v4198_v63 = vpop.permute.xlu0 %4197 }
 0x4e8   : > { %4287 = vst.msk [vmem:[#allocation3 + $0x30] sm:$0xff] %vm9912_vm6, %v4198_v63  ;;  %vm9939_vm6 = vmmov %vm9931_vm0 }
 0x4e9   : > { %v4358_v9 = vpop.permute.xlu1 %4357  ;;  %4535 = vrot.lane.b32.xlu0 %v4136_v27, %s5682_s8 }
 0x4ea   : > { %4447 = vst.msk [vmem:[#allocation3 + $0x30] sm:$0xff] %vm9925_vm9, %v4358_v9  ;;  %vm9941_vm9 = vnez %v9940_v23  ;;  %v4045_v9 = vld [vmem:[#allocation2 + $0xc8] sm:$0xff] }
 0x4eb   : > { %3581 = vrot.lane.b32.xlu1 %v3467_v22, %s5677_s20  ;;  %v4200_v47 = vpop.permute.xlu0 %4199  ;;  %v4638_v49 = vld [vmem:[#allocation3 + $0x28] sm:$0xff]  ;;  %v3500_v61 = vsel %vm9941_vm9, %v4010_v58, %v4074_v41  ;;  %v4140_v33 = vsel %vm9941_vm9, %v4012_v4, %v4076_v29  ;;  %v4014_v22 = vld [vmem:[#allocation2 + $0xcf] sm:$0xff] }
 0x4ec   : > { %4288 = vst.msk [vmem:[#allocation3 + $0x38] sm:$0xff] %vm9928_vm5, %v4200_v47  ;;  %5581 = vmatmul.mubr.msk.f32.gmra.mxu1 %vm9929_vm4, %v4638_v49  ;;  %vm9942_vm4 = vmmov %vm9933_vm1 }
 0x4ed   : > { %v3722_v42 = vpop.permute.xlu1 %3721  ;;  %4217 = vrot.lane.b32.xlu0 %v4105_v3, %s5680_s27  ;;  %vm9950_vm12 = vmmov %vm9942_vm4 }
 0x4ee   : > { %3809 = vst.msk [vmem:[#allocation3 + $0x40] sm:$0xff] %vm9930_vm11, %v3722_v42  ;;  %vm9944_vm11 = vnez %v9943_v10 }
 0x4ef   : > { %4377 = vrot.lane.b32.xlu1 %v4041_v0, %s5681_s5  ;;  %v3564_v21 = vpop.permute.xlu0 %3563  ;;  %v3469_v26 = vsel %vm9944_vm11, %v4075_v32, %v4011_v43  ;;  %v4109_v63 = vsel %vm9944_vm11, %v4077_v51, %v4013_v25 }
 0x4f0   : > { %3650 = vst.msk [vmem:[#allocation3 + $0x48] sm:$0xff] %vm9931_vm0, %v3564_v21  ;;  %vm9945_vm0 = vmmov %vm9928_vm5 }
 0x4f1   : > { %v4518_v28 = vpop.permute.xlu1 %4517  ;;  %4219 = vrot.lane.b32.xlu0 %v4010_v58, %s5680_s27 }
 0x4f2   : > { %4607 = vst.msk [vmem:[#allocation3 + $0x30] sm:$0xff] %vm9932_vm3, %v4518_v28  ;;  %vm9946_vm3 = vmmov %vm9937_vm7  ;;  %v4078_v28 = vld [vmem:[#allocation2 + $0xd1] sm:$0xff] }
 0x4f3   : > { %3741 = vrot.lane.b32.xlu1 %v4041_v0, %s5678_s21  ;;  %v4360_v11 = vpop.permute.xlu0 %4359  ;;  %v4046_v0 = vld [vmem:[#allocation2 + $0xd0] sm:$0xff] }
 0x4f4   : > { %4448 = vst.msk [vmem:[#allocation3 + $0x38] sm:$0xff] %vm9933_vm1, %v4360_v11  ;;  %vm9948_vm1 = vmmov %vm9939_vm6 }
 0x4f5   : > { %v3882_v50 = vpop.permute.xlu1 %3881  ;;  %3583 = vrot.lane.b32.xlu0 %v4010_v58, %s5677_s20 }
 0x4f6   : > { %3969 = vst.msk [vmem:[#allocation3 + $0x40] sm:$0xff] %vm9934_vm13, %v3882_v50  ;;  %vm9949_vm13 = vmmov %vm9938_vm2 }
 0x4f7   : > { %4537 = vrot.lane.b32.xlu1 %v4073_v40, %s5682_s8  ;;  %v3724_v18 = vpop.permute.xlu0 %3723 }
 0x4f8   : > { %3810 = vst.msk [vmem:[#allocation3 + $0x48] sm:$0xff] %vm9935_vm15, %v3724_v18  ;;  %vm9951_vm15 = vmmov %vm9936_vm14 }
 0x4f9   : > { %v3884_v24 = vpop.permute.xlu1 %3883  ;;  %v4639_v6 = vld [vmem:[#allocation3 + $0x30] sm:$0xff]  ;;  %4379 = vrot.lane.b32.xlu0 %v4042_v60, %s5681_s5 }
 0x4fa   : > { %3970 = vst.msk [vmem:[#allocation3 + $0x48] sm:$0xff] %vm9936_vm14, %v3884_v24  ;;  %5583 = vmatprep.mubr.msk.f32.mxu1 %vm9937_vm7, %v4639_v6  ;;  %vm9952_vm14 = vmmov %vm9947_vm10  ;;  %v4079_v24 = vld [vmem:[#allocation2 + $0xd9] sm:$0xff] }
 0x4fb   : > { %3901 = vrot.lane.b32.xlu1 %v4073_v40, %s5679_s22  ;;  %v4520_v46 = vpop.permute.xlu0 %4519  ;;  %vm9953_vm7 = vmmov %vm9951_vm15 }
 0x4fc   : > { %4608 = vst.msk [vmem:[#allocation3 + $0x38] sm:$0xff] %vm9938_vm2, %v4520_v46  ;;  %vm9954_vm2 = vmmov %vm9946_vm3 }
 0x4fd   : > { %v3566_v19 = vpop.permute.xlu1 %3565  ;;  %3743 = vrot.lane.b32.xlu0 %v4042_v60, %s5678_s21  ;;  %vm9963_vm9 = vmmov %vm9952_vm14  ;;  %v4015_v60 = vld [vmem:[#allocation2 + $0xd7] sm:$0xff] }
 0x4fe   : > { %3651 = vst.msk [vmem:[#allocation3 + $0x50] sm:$0xff] %vm9939_vm6, %v3566_v19  ;;  %vm9955_vm6 = vmmov %vm9949_vm13  ;;  %v9975_v19 = vld [vmem:[#allocation47_spill] sm:$0xff] }
 0x4ff   : > { %3903 = vrot.lane.b32.xlu1 %v3500_v61, %s5679_s22  ;;  %v4202_v17 = vpop.permute.xlu0 %4201 }
 0x500   : > { %4289 = vst.msk [vmem:[#allocation3 + $0x40] sm:$0xff] %vm9928_vm5, %v4202_v17  ;;  %vm9956_vm5 = vmmov %vm9948_vm1  ;;  %v4047_v17 = vld [vmem:[#allocation2 + $0xd8] sm:$0xff] }
 0x501   : > { %v4362_v30 = vpop.permute.xlu1 %4361  ;;  %4539 = vrot.lane.b32.xlu0 %v4138_v48, %s5682_s8 }
 0x502   : > { %4449 = vst.msk [vmem:[#allocation3 + $0x40] sm:$0xff] %vm9942_vm4, %v4362_v30  ;;  %vm9957_vm4 = vnez %v9781_v20  ;;  %v4016_v30 = vld [vmem:[#allocation2 + $0xdf] sm:$0xff] }
 0x503   : > { %3585 = vrot.lane.b32.xlu1 %v3469_v26, %s5677_s20  ;;  %v4204_v54 = vpop.permute.xlu0 %4203  ;;  %v4640_v14 = vld [vmem:[#allocation3 + $0x38] sm:$0xff]  ;;  %v3502_v8 = vsel %vm9957_vm4, %v4012_v4, %v4076_v29  ;;  %v4142_v41 = vsel %vm9957_vm4, %v4014_v22, %v4078_v28  ;;  %v9991_v29 = vld [vmem:[#allocation49_spill] sm:$0xff] }
 0x504   : > { %4290 = vst.msk [vmem:[#allocation3 + $0x48] sm:$0xff] %vm9945_vm0, %v4204_v54  ;;  %5584 = vmatmul.mubr.msk.f32.gmra.mxu1 %vm9946_vm3, %v4640_v14  ;;  %vm9958_vm3 = vmmov %vm9950_vm12 }
 0x505   : > { %v3726_v1 = vpop.permute.xlu1 %3725  ;;  %4221 = vrot.lane.b32.xlu0 %v4107_v16, %s5680_s27  ;;  %vm9966_vm11 = vmmov %vm9958_vm3  ;;  %v4048_v16 = vld [vmem:[#allocation2 + $0xe0] sm:$0xff] }
 0x506   : > { %3811 = vst.msk [vmem:[#allocation3 + $0x50] sm:$0xff] %vm9947_vm10, %v3726_v1  ;;  %vm9960_vm10 = vnez %v9959_v38 }
 0x507   : > { %4381 = vrot.lane.b32.xlu1 %v4043_v62, %s5681_s5  ;;  %v3568_v5 = vpop.permute.xlu0 %3567  ;;  %v3471_v2 = vsel %vm9960_vm10, %v4077_v51, %v4013_v25  ;;  %v4111_v20 = vsel %vm9960_vm10, %v4079_v24, %v4015_v60 }
 0x508   : > { %3652 = vst.msk [vmem:[#allocation3 + $0x58] sm:$0xff] %vm9948_vm1, %v3568_v5  ;;  %vm9961_vm1 = vmmov %vm9945_vm0  ;;  %v4080_v5 = vld [vmem:[#allocation2 + $0xe1] sm:$0xff] }
 0x509   : > { %v4522_v59 = vpop.permute.xlu1 %4521  ;;  %4223 = vrot.lane.b32.xlu0 %v4012_v4, %s5680_s27 }
 0x50a   : > { %4609 = vst.msk [vmem:[#allocation3 + $0x40] sm:$0xff] %vm9949_vm13, %v4522_v59  ;;  %vm9962_vm13 = vmmov %vm9954_vm2 }
 0x50b   : > { %3745 = vrot.lane.b32.xlu1 %v4043_v62, %s5678_s21  ;;  %v4364_v39 = vpop.permute.xlu0 %4363 }
 0x50c   : > { %4450 = vst.msk [vmem:[#allocation3 + $0x48] sm:$0xff] %vm9950_vm12, %v4364_v39  ;;  %vm9964_vm12 = vmmov %vm9956_vm5 }
 0x50d   : > { %v3886_v34 = vpop.permute.xlu1 %3885  ;;  %3587 = vrot.lane.b32.xlu0 %v4012_v4, %s5677_s20 }
 0x50e   : > { %3971 = vst.msk [vmem:[#allocation3 + $0x50] sm:$0xff] %vm9951_vm15, %v3886_v34  ;;  %vm9965_vm15 = vmmov %vm9955_vm6  ;;  %v4017_v34 = vld [vmem:[#allocation2 + $0xe7] sm:$0xff] }
 0x50f   : > { %4541 = vrot.lane.b32.xlu1 %v4075_v32, %s5682_s8  ;;  %v3728_v53 = vpop.permute.xlu0 %3727 }
 0x510   : > { %3812 = vst.msk [vmem:[#allocation3 + $0x58] sm:$0xff] %vm9952_vm14, %v3728_v53  ;;  %vm9967_vm14 = vmmov %vm9953_vm7  ;;  %v4081_v53 = vld [vmem:[#allocation2 + $0xe9] sm:$0xff] }
 0x511   : > { %v3888_v35 = vpop.permute.xlu1 %3887  ;;  %v4641_v12 = vld [vmem:[#allocation3 + $0x40] sm:$0xff]  ;;  %4383 = vrot.lane.b32.xlu0 %v4044_v44, %s5681_s5 }
 0x512   : > { %3972 = vst.msk [vmem:[#allocation3 + $0x58] sm:$0xff] %vm9953_vm7, %v3888_v35  ;;  %5586 = vmatprep.mubr.msk.f32.mxu1 %vm9954_vm2, %v4641_v12  ;;  %vm9968_vm7 = vmmov %vm9963_vm9 }
 0x513   : > { %3905 = vrot.lane.b32.xlu1 %v4075_v32, %s5679_s22  ;;  %v4524_v7 = vpop.permute.xlu0 %4523  ;;  %vm9969_vm2 = vmmov %vm9967_vm14 }
 0x514   : > { %4610 = vst.msk [vmem:[#allocation3 + $0x48] sm:$0xff] %vm9955_vm6, %v4524_v7  ;;  %vm9970_vm6 = vmmov %vm9962_vm13 }
 0x515   : > { %v3570_v15 = vpop.permute.xlu1 %3569  ;;  %3747 = vrot.lane.b32.xlu0 %v4044_v44, %s5678_s21  ;;  %vm9979_vm4 = vmmov %vm9968_vm7 }
 0x516   : > { %3653 = vst.msk [vmem:[#allocation3 + $0x60] sm:$0xff] %vm9956_vm5, %v3570_v15  ;;  %vm9971_vm5 = vmmov %vm9965_vm15 }
 0x517   : > { %3907 = vrot.lane.b32.xlu1 %v3502_v8, %s5679_s22  ;;  %v4206_v31 = vpop.permute.xlu0 %4205 }
 0x518   : > { %4291 = vst.msk [vmem:[#allocation3 + $0x50] sm:$0xff] %vm9945_vm0, %v4206_v31  ;;  %vm9972_vm0 = vmmov %vm9964_vm12 }
 0x519   : > { %v4366_v52 = vpop.permute.xlu1 %4365  ;;  %4543 = vrot.lane.b32.xlu0 %v4140_v33, %s5682_s8  ;;  %v4018_v33 = vld [vmem:[#allocation2 + $0xef] sm:$0xff] }
 0x51a   : > { %4451 = vst.msk [vmem:[#allocation3 + $0x50] sm:$0xff] %vm9958_vm3, %v4366_v52  ;;  %vm9973_vm3 = vnez %v9783_v55 }
 0x51b   : > { %3589 = vrot.lane.b32.xlu1 %v3471_v2, %s5677_s20  ;;  %v4208_v37 = vpop.permute.xlu0 %4207  ;;  %v4642_v40 = vld [vmem:[#allocation3 + $0x48] sm:$0xff]  ;;  %v3504_v18 = vsel %vm9973_vm3, %v4014_v22, %v4078_v28  ;;  %v4144_v35 = vsel %vm9973_vm3, %v4016_v30, %v4080_v5 }
 0x51c   : > { %4292 = vst.msk [vmem:[#allocation3 + $0x58] sm:$0xff] %vm9961_vm1, %v4208_v37  ;;  %5587 = vmatmul.mubr.msk.f32.gmra.mxu1 %vm9962_vm13, %v4642_v40  ;;  %vm9974_vm13 = vmmov %vm9966_vm11  ;;  %v4050_v40 = vld [vmem:[#allocation2 + $0xf0] sm:$0xff] }
 0x51d   : > { %v3730_v27 = vpop.permute.xlu1 %3729  ;;  %4225 = vrot.lane.b32.xlu0 %v4109_v63, %s5680_s27  ;;  %vm9982_vm10 = vmmov %vm9974_vm13 }
 0x51e   : > { %3813 = vst.msk [vmem:[#allocation3 + $0x60] sm:$0xff] %vm9963_vm9, %v3730_v27  ;;  %vm9976_vm9 = vnez %v9975_v19 }
 0x51f   : > { %4385 = vrot.lane.b32.xlu1 %v4045_v9, %s5681_s5  ;;  %v3572_v56 = vpop.permute.xlu0 %3571  ;;  %v3473_v23 = vsel %vm9976_vm9, %v4079_v24, %v4015_v60  ;;  %v4113_v55 = vsel %vm9976_vm9, %v4081_v53, %v4017_v34  ;;  %v4051_v60 = vld [vmem:[#allocation2 + $0xf8] sm:$0xff] }
 0x520   : > { %3654 = vst.msk [vmem:[#allocation3 + $0x68] sm:$0xff] %vm9964_vm12, %v3572_v56  ;;  %vm9977_vm12 = vmmov %vm9961_vm1 }
 0x521   : > { %v4526_v47 = vpop.permute.xlu1 %4525  ;;  %4227 = vrot.lane.b32.xlu0 %v4014_v22, %s5680_s27 }
 0x522   : > { %4611 = vst.msk [vmem:[#allocation3 + $0x50] sm:$0xff] %vm9965_vm15, %v4526_v47  ;;  %vm9978_vm15 = vmmov %vm9970_vm6 }
 0x523   : > { %3749 = vrot.lane.b32.xlu1 %v4045_v9, %s5678_s21  ;;  %v4368_v49 = vpop.permute.xlu0 %4367  ;;  %v4082_v9 = vld [vmem:[#allocation2 + $0xf1] sm:$0xff] }
 0x524   : > { %4452 = vst.msk [vmem:[#allocation3 + $0x58] sm:$0xff] %vm9966_vm11, %v4368_v49  ;;  %vm9980_vm11 = vmmov %vm9972_vm0  ;;  %v4019_v49 = vld [vmem:[#allocation2 + $0xf7] sm:$0xff] }
 0x525   : > { %v3890_v3 = vpop.permute.xlu1 %3889  ;;  %3591 = vrot.lane.b32.xlu0 %v4014_v22, %s5677_s20 }
 0x526   : > { %3973 = vst.msk [vmem:[#allocation3 + $0x60] sm:$0xff] %vm9967_vm14, %v3890_v3  ;;  %vm9981_vm14 = vmmov %vm9971_vm5  ;;  %v4083_v3 = vld [vmem:[#allocation2 + $0xf9] sm:$0xff] }
 0x527   : > { %4545 = vrot.lane.b32.xlu1 %v4077_v51, %s5682_s8  ;;  %v3732_v42 = vpop.permute.xlu0 %3731 }
 0x528   : > { %3814 = vst.msk [vmem:[#allocation3 + $0x68] sm:$0xff] %vm9968_vm7, %v3732_v42  ;;  %vm9983_vm7 = vmmov %vm9969_vm2 }
 0x529   : > { %v3892_v21 = vpop.permute.xlu1 %3891  ;;  %v4643_v58 = vld [vmem:[#allocation3 + $0x50] sm:$0xff]  ;;  %4387 = vrot.lane.b32.xlu0 %v4046_v0, %s5681_s5 }
 0x52a   : > { %3974 = vst.msk [vmem:[#allocation3 + $0x68] sm:$0xff] %vm9969_vm2, %v3892_v21  ;;  %5589 = vmatprep.mubr.msk.f32.mxu1 %vm9970_vm6, %v4643_v58  ;;  %vm9984_vm2 = vmmov %vm9979_vm4  ;;  %v10007_v58 = vld [vmem:[#allocation50_spill] sm:$0xff] }
 0x52b   : > { %3909 = vrot.lane.b32.xlu1 %v4077_v51, %s5679_s22  ;;  %v4528_v11 = vpop.permute.xlu0 %4527  ;;  %vm9985_vm6 = vmmov %vm9983_vm7  ;;  %v4049_v51 = vld [vmem:[#allocation2 + $0xe8] sm:$0xff] }
 0x52c   : > { %4612 = vst.msk [vmem:[#allocation3 + $0x58] sm:$0xff] %vm9971_vm5, %v4528_v11  ;;  %vm9986_vm5 = vmmov %vm9978_vm15 }
 0x52d   : > { %v3574_v50 = vpop.permute.xlu1 %3573  ;;  %3751 = vrot.lane.b32.xlu0 %v4046_v0, %s5678_s21  ;;  %vm9995_vm3 = vmmov %vm9984_vm2 }
 0x52e   : > { %3655 = vst.msk [vmem:[#allocation3 + $0x70] sm:$0xff] %vm9972_vm0, %v3574_v50  ;;  %vm9987_vm0 = vmmov %vm9981_vm14 }
 0x52f   : > { %3911 = vrot.lane.b32.xlu1 %v3504_v18, %s5679_s22  ;;  %v4210_v6 = vpop.permute.xlu0 %4209 }
 0x530   : > { %4293 = vst.msk [vmem:[#allocation3 + $0x60] sm:$0xff] %vm9961_vm1, %v4210_v6  ;;  %vm9988_vm1 = vmmov %vm9980_vm11  ;;  %v4020_v6 = vld [vmem:[#allocation2 + $0xff] sm:$0xff] }
 0x531   : > { %v4370_v46 = vpop.permute.xlu1 %4369  ;;  %4547 = vrot.lane.b32.xlu0 %v4142_v41, %s5682_s8 }
 0x532   : > { %4453 = vst.msk [vmem:[#allocation3 + $0x60] sm:$0xff] %vm9974_vm13, %v4370_v46  ;;  %vm9989_vm13 = vnez %v9785_v57 }
 0x533   : > { %3593 = vrot.lane.b32.xlu1 %v3473_v23, %s5677_s20  ;;  %v4212_v61 = vpop.permute.xlu0 %4211  ;;  %v4644_v43 = vld [vmem:[#allocation3 + $0x58] sm:$0xff]  ;;  %v3506_v39 = vsel %vm9989_vm13, %v4016_v30, %v4080_v5  ;;  %v4146_v0 = vsel %vm9989_vm13, %v4018_v33, %v4082_v9 }
 0x534   : > { %4294 = vst.msk [vmem:[#allocation3 + $0x68] sm:$0xff] %vm9977_vm12, %v4212_v61  ;;  %5590 = vmatmul.mubr.msk.f32.gmra.mxu1 %vm9978_vm15, %v4644_v43  ;;  %vm9990_vm15 = vmmov %vm9982_vm10  ;;  %v4052_v61 = vld [vmem:[#allocation2 + $0x100] sm:$0xff] }
 0x535   : > { %v3734_v32 = vpop.permute.xlu1 %3733  ;;  %4229 = vrot.lane.b32.xlu0 %v4111_v20, %s5680_s27  ;;  %vm9998_vm9 = vmmov %vm9990_vm15 }
 0x536   : > { %3815 = vst.msk [vmem:[#allocation3 + $0x70] sm:$0xff] %vm9979_vm4, %v3734_v32  ;;  %vm9992_vm4 = vnez %v9991_v29  ;;  %v4084_v32 = vld [vmem:[#allocation2 + $0x101] sm:$0xff] }
 0x537   : > { %4389 = vrot.lane.b32.xlu1 %v4047_v17, %s5681_s5  ;;  %v3576_v48 = vpop.permute.xlu0 %3575  ;;  %v3475_v7 = vsel %vm9992_vm4, %v4081_v53, %v4017_v34  ;;  %v4115_v57 = vsel %vm9992_vm4, %v4083_v3, %v4019_v49 }
 0x538   : > { %3656 = vst.msk [vmem:[#allocation3 + $0x78] sm:$0xff] %vm9980_vm11, %v3576_v48  ;;  %vm9993_vm11 = vmmov %vm9977_vm12 }
 0x539   : > { %v4530_v10 = vpop.permute.xlu1 %4529  ;;  %4231 = vrot.lane.b32.xlu0 %v4016_v30, %s5680_s27 }
 0x53a   : > { %4613 = vst.msk [vmem:[#allocation3 + $0x60] sm:$0xff] %vm9981_vm14, %v4530_v10  ;;  %vm9994_vm14 = vmmov %vm9986_vm5  ;;  %v4021_v10 = vld [vmem:[#allocation2 + $0x107] sm:$0xff] }
 0x53b   : > { %3753 = vrot.lane.b32.xlu1 %v4047_v17, %s5678_s21  ;;  %v4372_v26 = vpop.permute.xlu0 %4371 }
 0x53c   : > { %4454 = vst.msk [vmem:[#allocation3 + $0x68] sm:$0xff] %vm9982_vm10, %v4372_v26  ;;  %vm9996_vm10 = vmmov %vm9988_vm1  ;;  %v4085_v26 = vld [vmem:[#allocation2 + $0x109] sm:$0xff] }
 0x53d   : > { %v3894_v54 = vpop.permute.xlu1 %3893  ;;  %3595 = vrot.lane.b32.xlu0 %v4016_v30, %s5677_s20  ;;  %v3510_v30 = vsel %vm9793_vm8, %v4020_v6, %v4084_v32 }
 0x53e   : > { %3975 = vst.msk [vmem:[#allocation3 + $0x70] sm:$0xff] %vm9983_vm7, %v3894_v54  ;;  %vm9997_vm7 = vmmov %vm9987_vm0 }
 0x53f   : > { %4549 = vrot.lane.b32.xlu1 %v4079_v24, %s5682_s8  ;;  %v3736_v14 = vpop.permute.xlu0 %3735 }
 0x540   : > { %3816 = vst.msk [vmem:[#allocation3 + $0x78] sm:$0xff] %vm9984_vm2, %v3736_v14  ;;  %vm9999_vm2 = vmmov %vm9985_vm6 }
 0x541   : > { %v3896_v1 = vpop.permute.xlu1 %3895  ;;  %v4645_v62 = vld [vmem:[#allocation3 + $0x60] sm:$0xff]  ;;  %4391 = vrot.lane.b32.xlu0 %v4048_v16, %s5681_s5 }
 0x542   : > { %3976 = vst.msk [vmem:[#allocation3 + $0x78] sm:$0xff] %vm9985_vm6, %v3896_v1  ;;  %5592 = vmatprep.mubr.msk.f32.mxu1 %vm9986_vm5, %v4645_v62  ;;  %vm10000_vm6 = vmmov %vm9995_vm3  ;;  %v10023_v1 = vld [vmem:[#allocation52_spill] sm:$0xff] }
 0x543   : > { %3913 = vrot.lane.b32.xlu1 %v4079_v24, %s5679_s22  ;;  %v4532_v4 = vpop.permute.xlu0 %4531  ;;  %vm10001_vm5 = vmmov %vm9999_vm2 }
 0x544   : > { %4614 = vst.msk [vmem:[#allocation3 + $0x68] sm:$0xff] %vm9987_vm0, %v4532_v4  ;;  %vm10002_vm0 = vmmov %vm9994_vm14 }
 0x545   : > { %v3578_v59 = vpop.permute.xlu1 %3577  ;;  %3755 = vrot.lane.b32.xlu0 %v4048_v16, %s5678_s21  ;;  %vm10011_vm13 = vmmov %vm10000_vm6 }
 0x546   : > { %3657 = vst.msk [vmem:[#allocation3 + $0x80] sm:$0xff] %vm9988_vm1, %v3578_v59  ;;  %vm10003_vm1 = vmmov %vm9997_vm7 }
 0x547   : > { %3915 = vrot.lane.b32.xlu1 %v3506_v39, %s5679_s22  ;;  %v4214_v44 = vpop.permute.xlu0 %4213  ;;  %v4053_v39 = vld [vmem:[#allocation2 + $0x108] sm:$0xff] }
 0x548   : > { %4295 = vst.msk [vmem:[#allocation3 + $0x70] sm:$0xff] %vm9977_vm12, %v4214_v44  ;;  %vm10004_vm12 = vmmov %vm9996_vm10 }
 0x549   : > { %v4374_v12 = vpop.permute.xlu1 %4373  ;;  %4551 = vrot.lane.b32.xlu0 %v4144_v35, %s5682_s8 }
 0x54a   : > { %4455 = vst.msk [vmem:[#allocation3 + $0x70] sm:$0xff] %vm9990_vm15, %v4374_v12  ;;  %vm10005_vm15 = vnez %v9788_v45 }
 0x54b   : > { %3597 = vrot.lane.b32.xlu1 %v3475_v7, %s5677_s20  ;;  %v4216_v15 = vpop.permute.xlu0 %4215  ;;  %v4646_v8 = vld [vmem:[#allocation3 + $0x68] sm:$0xff]  ;;  %v3508_v47 = vsel %vm10005_vm15, %v4018_v33, %v4082_v9  ;;  %v4148_v14 = vsel %vm10005_vm15, %v4020_v6, %v4084_v32  ;;  %v4054_v7 = vld [vmem:[#allocation2 + $0x110] sm:$0xff] }
 0x54c   : > { %4296 = vst.msk [vmem:[#allocation3 + $0x78] sm:$0xff] %vm9993_vm11, %v4216_v15  ;;  %5593 = vmatmul.mubr.msk.f32.gmra.mxu1 %vm9994_vm14, %v4646_v8  ;;  %vm10006_vm14 = vmmov %vm9998_vm9 }
 0x54d   : > { %v3738_v25 = vpop.permute.xlu1 %3737  ;;  %4233 = vrot.lane.b32.xlu0 %v4113_v55, %s5680_s27  ;;  %vm10014_vm4 = vmmov %vm10006_vm14  ;;  %v4086_v55 = vld [vmem:[#allocation2 + $0x111] sm:$0xff] }
 0x54e   : > { %3817 = vst.msk [vmem:[#allocation3 + $0x80] sm:$0xff] %vm9995_vm3, %v3738_v25  ;;  %vm10008_vm3 = vnez %v10007_v58 }
 0x54f   : > { %4393 = vrot.lane.b32.xlu1 %v4049_v51, %s5681_s5  ;;  %v3580_v31 = vpop.permute.xlu0 %3579  ;;  %v3477_v28 = vsel %vm10008_vm3, %v4083_v3, %v4019_v49  ;;  %v4117_v45 = vsel %vm10008_vm3, %v4085_v26, %v4021_v10  ;;  %v4055_v49 = vld [vmem:[#allocation2 + $0x118] sm:$0xff] }
 0x550   : > { %3658 = vst.msk [vmem:[#allocation3 + $0x88] sm:$0xff] %vm9996_vm10, %v3580_v31  ;;  %vm10009_vm10 = vmmov %vm9993_vm11 }
 0x551   : > { %v4534_v52 = vpop.permute.xlu1 %4533  ;;  %4235 = vrot.lane.b32.xlu0 %v4018_v33, %s5680_s27 }
 0x552   : > { %4615 = vst.msk [vmem:[#allocation3 + $0x70] sm:$0xff] %vm9997_vm7, %v4534_v52  ;;  %vm10010_vm7 = vmmov %vm10002_vm0 }
 0x553   : > { %3757 = vrot.lane.b32.xlu1 %v4049_v51, %s5678_s21  ;;  %v4376_v38 = vpop.permute.xlu0 %4375 }
 0x554   : > { %4456 = vst.msk [vmem:[#allocation3 + $0x78] sm:$0xff] %vm9998_vm9, %v4376_v38  ;;  %vm10012_vm9 = vmmov %vm10004_vm12 }
 0x555   : > { %v3898_v2 = vpop.permute.xlu1 %3897  ;;  %3599 = vrot.lane.b32.xlu0 %v4018_v33, %s5677_s20 }
 0x556   : > { %3977 = vst.msk [vmem:[#allocation3 + $0x80] sm:$0xff] %vm9999_vm2, %v3898_v2  ;;  %vm10013_vm2 = vmmov %vm10003_vm1  ;;  %v4023_v2 = vld [vmem:[#allocation2 + $0x117] sm:$0xff] }
 0x557   : > { %4553 = vrot.lane.b32.xlu1 %v4081_v53, %s5682_s8  ;;  %v3740_v37 = vpop.permute.xlu0 %3739 }
 0x558   : > { %3818 = vst.msk [vmem:[#allocation3 + $0x88] sm:$0xff] %vm10000_vm6, %v3740_v37  ;;  %vm10015_vm6 = vmmov %vm10001_vm5  ;;  %v4087_v37 = vld [vmem:[#allocation2 + $0x119] sm:$0xff] }
 0x559   : > { %v3900_v63 = vpop.permute.xlu1 %3899  ;;  %v4647_v27 = vld [vmem:[#allocation3 + $0x70] sm:$0xff]  ;;  %4395 = vrot.lane.b32.xlu0 %v4050_v40, %s5681_s5 }
 0x55a   : > { %3978 = vst.msk [vmem:[#allocation3 + $0x88] sm:$0xff] %vm10001_vm5, %v3900_v63  ;;  %5595 = vmatprep.mubr.msk.f32.mxu1 %vm10002_vm0, %v4647_v27  ;;  %vm10016_vm5 = vmmov %vm10011_vm13 }
 0x55b   : > { %3917 = vrot.lane.b32.xlu1 %v4081_v53, %s5679_s22  ;;  %v4536_v56 = vpop.permute.xlu0 %4535  ;;  %vm10017_vm0 = vmmov %vm10015_vm6  ;;  %v4022_v53 = vld [vmem:[#allocation2 + $0x10f] sm:$0xff] }
 0x55c   : > { %4616 = vst.msk [vmem:[#allocation3 + $0x78] sm:$0xff] %vm10003_vm1, %v4536_v56  ;;  %vm10018_vm1 = vmmov %vm10010_vm7  ;;  %v4150_v52 = vsel %vm9793_vm8, %v4022_v53, %v4086_v55  ;;  %v4056_v56 = vld [vmem:[#allocation2 + $0x120] sm:$0xff] }
 0x55d   : > { %v3582_v22 = vpop.permute.xlu1 %3581  ;;  %3759 = vrot.lane.b32.xlu0 %v4050_v40, %s5678_s21  ;;  %vm10027_vm15 = vmmov %vm10016_vm5  ;;  %v4024_v40 = vld [vmem:[#allocation2 + $0x11f] sm:$0xff] }
 0x55e   : > { %3659 = vst.msk [vmem:[#allocation3 + $0x90] sm:$0xff] %vm10004_vm12, %v3582_v22  ;;  %vm10019_vm12 = vmmov %vm10013_vm2  ;;  %v4088_v22 = vld [vmem:[#allocation2 + $0x121] sm:$0xff] }
 0x55f   : > { %3919 = vrot.lane.b32.xlu1 %v3508_v47, %s5679_s22  ;;  %v4218_v42 = vpop.permute.xlu0 %4217  ;;  %vm10039_vm8 = vmmov %vm10016_vm5 }
 0x560   : > { %4297 = vst.msk [vmem:[#allocation3 + $0x80] sm:$0xff] %vm9993_vm11, %v4218_v42  ;;  %vm10020_vm11 = vmmov %vm10012_vm9 }
 0x561   : > { %v4378_v21 = vpop.permute.xlu1 %4377  ;;  %4555 = vrot.lane.b32.xlu0 %v4146_v0, %s5682_s8 }
 0x562   : > { %4457 = vst.msk [vmem:[#allocation3 + $0x80] sm:$0xff] %vm10006_vm14, %v4378_v21  ;;  %vm10021_vm14 = vmmov %vm10009_vm10 }
 0x563   : > { %3601 = vrot.lane.b32.xlu1 %v3477_v28, %s5677_s20  ;;  %v4220_v11 = vpop.permute.xlu0 %4219  ;;  %v4648_v50 = vld [vmem:[#allocation3 + $0x78] sm:$0xff] }
 0x564   : > { %4298 = vst.msk [vmem:[#allocation3 + $0x88] sm:$0xff] %vm10009_vm10, %v4220_v11  ;;  %5596 = vmatmul.mubr.msk.f32.gmra.mxu1 %vm10010_vm7, %v4648_v50  ;;  %vm10022_vm10 = vmmov %vm10014_vm4  ;;  %vm10024_vm7 = vnez %v10023_v1 }
 0x565   : > { %v3742_v18 = vpop.permute.xlu1 %3741  ;;  %4237 = vrot.lane.b32.xlu0 %v4115_v57, %s5680_s27  ;;  %v3479_v62 = vsel %vm10024_vm7, %v4085_v26, %v4021_v10  ;;  %vm10030_vm3 = vmmov %vm10022_vm10  ;;  %v4119_v13 = vsel %vm10024_vm7, %v4087_v37, %v4023_v2 }
 0x566   : > { %3819 = vst.msk [vmem:[#allocation3 + $0x90] sm:$0xff] %vm10011_vm13, %v3742_v18  ;;  %vm10025_vm13 = vmmov %vm10021_vm14 }
 0x567   : > { %4397 = vrot.lane.b32.xlu1 %v4051_v60, %s5681_s5  ;;  %v3584_v24 = vpop.permute.xlu0 %3583  ;;  %vm10040_vm7 = vmmov %vm10030_vm3 }
 0x568   : > { %3660 = vst.msk [vmem:[#allocation3 + $0x98] sm:$0xff] %vm10012_vm9, %v3584_v24  ;;  %vm10026_vm9 = vmmov %vm10018_vm1 }
 0x569   : > { %v4538_v41 = vpop.permute.xlu1 %4537  ;;  %4239 = vrot.lane.b32.xlu0 %v4020_v6, %s5680_s27 }
 0x56a   : > { %4617 = vst.msk [vmem:[#allocation3 + $0x80] sm:$0xff] %vm10013_vm2, %v4538_v41  ;;  %vm10028_vm2 = vmmov %vm10020_vm11 }
 0x56b   : > { %3761 = vrot.lane.b32.xlu1 %v4051_v60, %s5678_s21  ;;  %v4380_v46 = vpop.permute.xlu0 %4379 }
 0x56c   : > { %4458 = vst.msk [vmem:[#allocation3 + $0x88] sm:$0xff] %vm10014_vm4, %v4380_v46  ;;  %vm10029_vm4 = vmmov %vm10019_vm12 }
 0x56d   : > { %v3902_v19 = vpop.permute.xlu1 %3901  ;;  %3603 = vrot.lane.b32.xlu0 %v4020_v6, %s5677_s20 }
 0x56e   : > { %3979 = vst.msk [vmem:[#allocation3 + $0x90] sm:$0xff] %vm10015_vm6, %v3902_v19  ;;  %vm10031_vm6 = vmmov %vm10017_vm0 }
 0x56f   : > { %4557 = vrot.lane.b32.xlu1 %v4083_v3, %s5682_s8  ;;  %v3744_v23 = vpop.permute.xlu0 %3743 }
 0x570   : > { %3820 = vst.msk [vmem:[#allocation3 + $0x98] sm:$0xff] %vm10016_vm5, %v3744_v23 }
 0x571   : > { %v3904_v43 = vpop.permute.xlu1 %3903  ;;  %v4649_v20 = vld [vmem:[#allocation3 + $0x80] sm:$0xff]  ;;  %4399 = vrot.lane.b32.xlu0 %v4052_v61, %s5681_s5 }
 0x572   : > { %3980 = vst.msk [vmem:[#allocation3 + $0x98] sm:$0xff] %vm10017_vm0, %v3904_v43  ;;  %5598 = vmatprep.mubr.msk.f32.mxu1 %vm10018_vm1, %v4649_v20 }
 0x573   : > { %3921 = vrot.lane.b32.xlu1 %v4083_v3, %s5679_s22  ;;  %v4540_v17 = vpop.permute.xlu0 %4539 }
 0x574   : > { %4618 = vst.msk [vmem:[#allocation3 + $0x88] sm:$0xff] %vm10019_vm12, %v4540_v17  ;;  %vm10032_vm12 = vmmov %vm10029_vm4 }
 0x575   : > { %v3586_v48 = vpop.permute.xlu1 %3585  ;;  %3763 = vrot.lane.b32.xlu0 %v4052_v61, %s5678_s21 }
 0x576   : > { %3661 = vst.msk [vmem:[#allocation3 + $0xa0] sm:$0xff] %vm10020_vm11, %v3586_v48  ;;  %vm10033_vm11 = vmmov %vm10028_vm2 }
 0x577   : > { %3923 = vrot.lane.b32.xlu1 %v3510_v30, %s5679_s22  ;;  %v4222_v54 = vpop.permute.xlu0 %4221 }
 0x578   : > { %4299 = vst.msk [vmem:[#allocation3 + $0x90] sm:$0xff] %vm10021_vm14, %v4222_v54  ;;  %vm10034_vm14 = vnez %v9796_v36 }
 0x579   : > { %v4382_v16 = vpop.permute.xlu1 %4381  ;;  %4559 = vrot.lane.b32.xlu0 %v4148_v14, %s5682_s8  ;;  %v3512_v31 = vsel %vm10034_vm14, %v4022_v53, %v4086_v55  ;;  %v4152_v42 = vsel %vm10034_vm14, %v4024_v40, %v4088_v22  ;;  %vm10048_vm14 = vmmov %vm10040_vm7 }
 0x57a   : > { %4459 = vst.msk [vmem:[#allocation3 + $0x90] sm:$0xff] %vm10022_vm10, %v4382_v16  ;;  %vm10035_vm10 = vmmov %vm10025_vm13 }
 0x57b   : > { %3605 = vrot.lane.b32.xlu1 %v3479_v62, %s5677_s20  ;;  %v4224_v5 = vpop.permute.xlu0 %4223  ;;  %v4650_v4 = vld [vmem:[#allocation3 + $0x88] sm:$0xff] }
 0x57c   : > { %4300 = vst.msk [vmem:[#allocation3 + $0x98] sm:$0xff] %vm10025_vm13, %v4224_v5  ;;  %5599 = vmatmul.mubr.msk.f32.gmra.mxu1 %vm10026_vm9, %v4650_v4  ;;  %vm10036_vm13 = vmmov %vm10030_vm3 }
 0x57d   : > { %v3746_v59 = vpop.permute.xlu1 %3745  ;;  %4241 = vrot.lane.b32.xlu0 %v4117_v45, %s5680_s27  ;;  %vm10037_vm9 = vmmov %vm10035_vm10 }
 0x57e   : > { %3821 = vst.msk [vmem:[#allocation3 + $0xa0] sm:$0xff] %vm10027_vm15, %v3746_v59  ;;  %vm10038_vm15 = vmmov %vm10018_vm1 }
 0x57f   : > { %4401 = vrot.lane.b32.xlu1 %v4053_v39, %s5681_s5  ;;  %v3588_v34 = vpop.permute.xlu0 %3587 }
 0x580   : > { %3662 = vst.msk [vmem:[#allocation3 + $0xa8] sm:$0xff] %vm10028_vm2, %v3588_v34 }
 0x581   : > { %v4542_v44 = vpop.permute.xlu1 %4541  ;;  %4243 = vrot.lane.b32.xlu0 %v4022_v53, %s5680_s27 }
 0x582   : > { %4619 = vst.msk [vmem:[#allocation3 + $0x90] sm:$0xff] %vm10029_vm4, %v4542_v44 }
 0x583   : > { %3765 = vrot.lane.b32.xlu1 %v4053_v39, %s5678_s21  ;;  %v4384_v35 = vpop.permute.xlu0 %4383 }
 0x584   : > { %4460 = vst.msk [vmem:[#allocation3 + $0x98] sm:$0xff] %vm10030_vm3, %v4384_v35  ;;  %vm10041_vm3 = vmmov %vm10017_vm0 }
 0x585   : > { %v3906_v12 = vpop.permute.xlu1 %3905  ;;  %3607 = vrot.lane.b32.xlu0 %v4022_v53, %s5677_s20 }
 0x586   : > { %3981 = vst.msk [vmem:[#allocation3 + $0xa0] sm:$0xff] %vm10031_vm6, %v3906_v12  ;;  %vm10042_vm6 = vmmov %vm10016_vm5 }
 0x587   : > { %4561 = vrot.lane.b32.xlu1 %v4085_v26, %s5682_s8  ;;  %v3748_v29 = vpop.permute.xlu0 %3747 }
 0x588   : > { %3822 = vst.msk [vmem:[#allocation3 + $0xa8] sm:$0xff] %vm10016_vm5, %v3748_v29  ;;  %vm10043_vm5 = vmmov %vm10017_vm0 }
 0x589   : > { %v3908_v15 = vpop.permute.xlu1 %3907  ;;  %v4651_v8 = vld [vmem:[#allocation3 + $0x90] sm:$0xff]  ;;  %4403 = vrot.lane.b32.xlu0 %v4054_v7, %s5681_s5 }
 0x58a   : > { %3982 = vst.msk [vmem:[#allocation3 + $0xa8] sm:$0xff] %vm10017_vm0, %v3908_v15  ;;  %5601 = vmatprep.mubr.msk.f32.mxu1 %vm10018_vm1, %v4651_v8  ;;  %vm10044_vm0 = vmmov %vm10018_vm1 }
 0x58b   : > { %3925 = vrot.lane.b32.xlu1 %v4085_v26, %s5679_s22  ;;  %v4544_v25 = vpop.permute.xlu0 %4543  ;;  %vm10045_vm1 = vmmov %vm10029_vm4 }
 0x58c   : > { %4620 = vst.msk [vmem:[#allocation3 + $0x98] sm:$0xff] %vm10032_vm12, %v4544_v25  ;;  %vm10046_vm12 = vmmov %vm10028_vm2 }
 0x58d   : > { %v3590_v51 = vpop.permute.xlu1 %3589  ;;  %3767 = vrot.lane.b32.xlu0 %v4054_v7, %s5678_s21 }
 0x58e   : > { %3663 = vst.msk [vmem:[#allocation3 + $0xb0] sm:$0xff] %vm10033_vm11, %v3590_v51  ;;  %vm10047_vm11 = vmmov %vm10037_vm9 }
 0x58f   : > { %3927 = vrot.lane.b32.xlu1 %v3512_v31, %s5679_s22  ;;  %v4226_v33 = vpop.permute.xlu0 %4225  ;;  %s8985_s22 = scalar_lea.vmem %s9089_s3, %s5430_s14 }
 0x590   : > { %4301 = vst.msk [vmem:[#allocation3 + $0xa0] sm:$0xff] %vm10035_vm10, %v4226_v33  ;;  %vm10049_vm10 = vmmov %vm10037_vm9 }
 0x591   : > { %v4386_v38 = vpop.permute.xlu1 %4385  ;;  %4563 = vrot.lane.b32.xlu0 %v4150_v52, %s5682_s8 }
 0x592   : > { %4461 = vst.msk [vmem:[#allocation3 + $0xa0] sm:$0xff] %vm10036_vm13, %v4386_v38  ;;  %vm10050_vm13 = vmmov %vm10044_vm0 }
 0x593   : > { %4247 = vrot.lane.b32.xlu1 %v4024_v40, %s5680_s27  ;;  %v4228_v63 = vpop.permute.xlu0 %4227  ;;  %v4652_v27 = vld [vmem:[#allocation3 + $0x98] sm:$0xff] }
 0x594   : > { %4302 = vst.msk [vmem:[#allocation3 + $0xa8] sm:$0xff] %vm10037_vm9, %v4228_v63  ;;  %5602 = vmatmul.mubr.msk.f32.gmra.mxu1 %vm10038_vm15, %v4652_v27  ;;  %vm10051_vm9 = vmmov %vm10042_vm6 }
 0x595   : > { %v3750_v9 = vpop.permute.xlu1 %3749  ;;  %4245 = vrot.lane.b32.xlu0 %v4119_v13, %s5680_s27  ;;  %vm10052_vm15 = vmmov %vm10028_vm2 }
 0x596   : > { %3823 = vst.msk [vmem:[#allocation3 + $0xb0] sm:$0xff] %vm10039_vm8, %v3750_v9  ;;  %vm10053_vm8 = vmmov %vm10045_vm1 }
 0x597   : > { %4407 = vrot.lane.b32.xlu1 %v4056_v56, %s5681_s5  ;;  %v3592_v47 = vpop.permute.xlu0 %3591 }
 0x598   : > { %3664 = vst.msk [vmem:[#allocation3 + $0xb8] sm:$0xff] %vm10028_vm2, %v3592_v47  ;;  %vm10054_vm2 = vmmov %vm10040_vm7 }
 0x599   : > { %v4546_v3 = vpop.permute.xlu1 %4545  ;;  %4405 = vrot.lane.b32.xlu0 %v4055_v49, %s5681_s5 }
 0x59a   : > { %4621 = vst.msk [vmem:[#allocation3 + $0xa0] sm:$0xff] %vm10029_vm4, %v4546_v3  ;;  %vm10055_vm4 = vmmov %vm10041_vm3 }
 0x59b   : > { %4567 = vrot.lane.b32.xlu1 %v4152_v42, %s5682_s8  ;;  %v4388_v0 = vpop.permute.xlu0 %4387 }
 0x59c   : > { %4462 = vst.msk [vmem:[#allocation3 + $0xa8] sm:$0xff] %vm10040_vm7, %v4388_v0  ;;  %vm10056_vm7 = vmmov %vm10042_vm6 }
 0x59d   : > { %v3910_v21 = vpop.permute.xlu1 %3909  ;;  %4565 = vrot.lane.b32.xlu0 %v4087_v37, %s5682_s8 }
 0x59e   : > { %3983 = vst.msk [vmem:[#allocation3 + $0xb0] sm:$0xff] %vm10041_vm3, %v3910_v21 }
 0x59f   : > { %v3752_v58 = vpop.permute.xlu0 %3751 }
 0x5a0   : > { %3824 = vst.msk [vmem:[#allocation3 + $0xb8] sm:$0xff] %vm10042_vm6, %v3752_v58  ;;  %vm10057_vm6 = vmmov %vm10044_vm0 }
 0x5a1   : > { %v3912_v28 = vpop.permute.xlu1 %3911  ;;  %v4653_v11 = vld [vmem:[#allocation3 + $0xa0] sm:$0xff] }
 0x5a2   : > { %3984 = vst.msk [vmem:[#allocation3 + $0xb8] sm:$0xff] %vm10043_vm5, %v3912_v28  ;;  %5604 = vmatprep.mubr.msk.f32.mxu1 %vm10044_vm0, %v4653_v11  ;;  %vm10058_vm5 = vmmov %vm10045_vm1 }
 0x5a3   : > { %v4548_v36 = vpop.permute.xlu0 %4547  ;;  %vm10059_vm0 = vmmov %vm10046_vm12 }
 0x5a4   : > { %4622 = vst.msk [vmem:[#allocation3 + $0xa8] sm:$0xff] %vm10045_vm1, %v4548_v36  ;;  %vm10060_vm1 = vmmov %vm10049_vm10 }
 0x5a5   : > { %v3594_v50 = vpop.permute.xlu1 %3593 }
 0x5a6   : > { %3665 = vst.msk [vmem:[#allocation3 + $0xc0] sm:$0xff] %vm10046_vm12, %v3594_v50  ;;  %vm10061_vm12 = vmmov %vm10054_vm2 }
 0x5a7   : > { %v4230_v57 = vpop.permute.xlu0 %4229 }
 0x5a8   : > { %4303 = vst.msk [vmem:[#allocation3 + $0xb0] sm:$0xff] %vm10047_vm11, %v4230_v57  ;;  %vm10062_vm11 = vmmov %vm10060_vm1  ;;  %v8688_v57 = vpop.f32.mrf.mxu1 }
 0x5a9   : > { %v4390_v18 = vpop.permute.xlu1 %4389 }
 0x5aa   : > { %4463 = vst.msk [vmem:[#allocation3 + $0xb0] sm:$0xff] %vm10048_vm14, %v4390_v18  ;;  %vm10063_vm14 = vmmov %vm10057_vm6  ;;  %v8690_v18 = vpop.f32.mrf.mxu1 }
 0x5ab   : > { %v4232_v60 = vpop.permute.xlu0 %4231  ;;  %v4654_v24 = vld [vmem:[#allocation3 + $0xa8] sm:$0xff] }
 0x5ac   : > { %4304 = vst.msk [vmem:[#allocation3 + $0xb8] sm:$0xff] %vm10049_vm10, %v4232_v60  ;;  %5605 = vmatmul.mubr.msk.f32.gmra.mxu1 %vm10050_vm13, %v4654_v24  ;;  %vm10064_vm10 = vmmov %vm10056_vm7  ;;  %v8692_v60 = vpop.f32.mrf.mxu1 }
 0x5ad   : > { %v3754_v6 = vpop.permute.xlu1 %3753  ;;  %vm10065_vm13 = vmmov %vm10059_vm0 }
 0x5ae   : > { %3825 = vst.msk [vmem:[#allocation3 + $0xc0] sm:$0xff] %vm10051_vm9, %v3754_v6  ;;  %vm10066_vm9 = vmmov %vm10058_vm5  ;;  %v8694_v24 = vpop.f32.mrf.mxu1  ;;  %v5064_v6 = vmul.f32 %v8690_v18, %v8690_v18 }
 0x5af   : > { %v3596_v41 = vpop.permute.xlu0 %3595 }
 0x5b0   : > { %3666 = vst.msk [vmem:[#allocation3 + $0xc8] sm:$0xff] %vm10052_vm15, %v3596_v41  ;;  %vm10067_vm15 = vmmov %vm10054_vm2  ;;  %v8698_v41 = vpop.f32.mrf.mxu1 }
 0x5b1   : > { %v4550_v46 = vpop.permute.xlu1 %4549 }
 0x5b2   : > { %4623 = vst.msk [vmem:[#allocation3 + $0xb0] sm:$0xff] %vm10053_vm8, %v4550_v46  ;;  %vm10068_vm8 = vmmov %vm10041_vm3  ;;  %v5065_v46 = vmul.f32 %v8688_v57, %v8688_v57 }
 0x5b3   : > { %v4392_v19 = vpop.permute.xlu0 %4391 }
 0x5b4   : > { %4464 = vst.msk [vmem:[#allocation3 + $0xb8] sm:$0xff] %vm10054_vm2, %v4392_v19  ;;  %vm10069_vm2 = vmmov %vm10056_vm7 }
 0x5b5   : > { %v3914_v23 = vpop.permute.xlu1 %3913 }
 0x5b6   : > { %3985 = vst.msk [vmem:[#allocation3 + $0xc0] sm:$0xff] %vm10055_vm4, %v3914_v23  ;;  %vm10070_vm4 = vmmov %vm10041_vm3  ;;  %v5066_v23 = vmul.f32 %v8694_v24, %v8694_v24 }
 0x5b7   : > { %v3756_v61 = vpop.permute.xlu0 %3755 }
 0x5b8   : > { %3826 = vst.msk [vmem:[#allocation3 + $0xc8] sm:$0xff] %vm10056_vm7, %v3756_v61  ;;  %vm10071_vm7 = vmmov %vm10057_vm6 }
 0x5b9   : > { %v3916_v43 = vpop.permute.xlu1 %3915  ;;  %v4655_v20 = vld [vmem:[#allocation3 + $0xb0] sm:$0xff] }
 0x5ba   : > { %3986 = vst.msk [vmem:[#allocation3 + $0xc8] sm:$0xff] %vm10041_vm3, %v3916_v43  ;;  %5607 = vmatprep.mubr.msk.f32.mxu1 %vm10057_vm6, %v4655_v20  ;;  %vm10072_vm3 = vmmov %vm10058_vm5 }
 0x5bb   : > { %v4552_v32 = vpop.permute.xlu0 %4551  ;;  %vm10073_vm6 = vmmov %vm10059_vm0 }
 0x5bc   : > { %4624 = vst.msk [vmem:[#allocation3 + $0xb8] sm:$0xff] %vm10058_vm5, %v4552_v32  ;;  %vm10074_vm5 = vmmov %vm10060_vm1 }
 0x5bd   : > { %v3598_v17 = vpop.permute.xlu1 %3597 }
 0x5be   : > { %3667 = vst.msk [vmem:[#allocation3 + $0xd0] sm:$0xff] %vm10059_vm0, %v3598_v17  ;;  %vm10075_vm0 = vmmov %vm10061_vm12  ;;  %v8711_v17 = vpop.f32.mrf.mxu1 }
 0x5bf   : > { %v4234_v48 = vpop.permute.xlu0 %4233 }
 0x5c0   : > { %4305 = vst.msk [vmem:[#allocation3 + $0xc0] sm:$0xff] %vm10060_vm1, %v4234_v48 }
 0x5c1   : > { %v4394_v30 = vpop.permute.xlu1 %4393 }
 0x5c2   : > { %4465 = vst.msk [vmem:[#allocation3 + $0xc0] sm:$0xff] %vm10061_vm12, %v4394_v30  ;;  %vm10076_vm12 = vmmov %vm10071_vm7 }
 0x5c3   : > { %v4236_v10 = vpop.permute.xlu0 %4235  ;;  %v4656_v26 = vld [vmem:[#allocation3 + $0xb8] sm:$0xff] }
 0x5c4   : > { %4306 = vst.msk [vmem:[#allocation3 + $0xc8] sm:$0xff] %vm10062_vm11, %v4236_v10  ;;  %5608 = vmatmul.mubr.msk.f32.gmra.mxu1 %vm10063_vm14, %v4656_v26  ;;  %vm10077_vm11 = vmmov %vm10069_vm2 }
 0x5c5   : > { %v3758_v54 = vpop.permute.xlu1 %3757  ;;  %vm10078_vm14 = vmmov %vm10073_vm6 }
 0x5c6   : > { %3827 = vst.msk [vmem:[#allocation3 + $0xd0] sm:$0xff] %vm10064_vm10, %v3758_v54  ;;  %vm10079_vm10 = vmmov %vm10072_vm3  ;;  %v8715_v54 = vpop.f32.mrf.mxu1 }
 0x5c7   : > { %v3600_v14 = vpop.permute.xlu0 %3599 }
 0x5c8   : > { %3668 = vst.msk [vmem:[#allocation3 + $0xd8] sm:$0xff] %vm10065_vm13, %v3600_v14  ;;  %vm10080_vm13 = vmmov %vm10075_vm0  ;;  %v5067_v14 = vmul.f32 %v8692_v60, %v8692_v60 }
 0x5c9   : > { %v4554_v16 = vpop.permute.xlu1 %4553 }
 0x5ca   : > { %4625 = vst.msk [vmem:[#allocation3 + $0xc0] sm:$0xff] %vm10066_vm9, %v4554_v16  ;;  %vm10081_vm9 = vmmov %vm10070_vm4  ;;  %v5068_v16 = vmul.f32 %v8711_v17, %v8711_v17 }
 0x5cb   : > { %v4396_v1 = vpop.permute.xlu0 %4395 }
 0x5cc   : > { %4466 = vst.msk [vmem:[#allocation3 + $0xc8] sm:$0xff] %vm10067_vm15, %v4396_v1  ;;  %vm10082_vm15 = vmmov %vm10069_vm2 }
 0x5cd   : > { %v3918_v62 = vpop.permute.xlu1 %3917 }
 0x5ce   : > { %3987 = vst.msk [vmem:[#allocation3 + $0xd0] sm:$0xff] %vm10068_vm8, %v3918_v62  ;;  %vm10083_vm8 = vmmov %vm10070_vm4 }
 0x5cf   : > { %v3760_v5 = vpop.permute.xlu0 %3759 }
 0x5d0   : > { %3828 = vst.msk [vmem:[#allocation3 + $0xd8] sm:$0xff] %vm10069_vm2, %v3760_v5  ;;  %vm10084_vm2 = vmmov %vm10071_vm7 }
 0x5d1   : > { %v3920_v4 = vpop.permute.xlu1 %3919  ;;  %v4657_v45 = vld [vmem:[#allocation3 + $0xc0] sm:$0xff] }
 0x5d2   : > { %3988 = vst.msk [vmem:[#allocation3 + $0xd8] sm:$0xff] %vm10070_vm4, %v3920_v4  ;;  %5610 = vmatprep.mubr.msk.f32.mxu1 %vm10071_vm7, %v4657_v45  ;;  %vm10085_vm4 = vmmov %vm10072_vm3  ;;  %v8725_v45 = vpop.f32.mrf.mxu1 }
 0x5d3   : > { %v4556_v59 = vpop.permute.xlu0 %4555  ;;  %vm10086_vm7 = vmmov %vm10073_vm6 }
 0x5d4   : > { %4626 = vst.msk [vmem:[#allocation3 + $0xc8] sm:$0xff] %vm10072_vm3, %v4556_v59  ;;  %vm10087_vm3 = vmmov %vm10060_vm1 }
 0x5d5   : > { %v3602_v39 = vpop.permute.xlu1 %3601 }
 0x5d6   : > { %3669 = vst.msk [vmem:[#allocation3 + $0xe0] sm:$0xff] %vm10073_vm6, %v3602_v39  ;;  %vm10088_vm6 = vmmov %vm10075_vm0 }
 0x5d7   : > { %v4238_v34 = vpop.permute.xlu0 %4237 }
 0x5d8   : > { %4307 = vst.msk [vmem:[#allocation3 + $0xd0] sm:$0xff] %vm10074_vm5, %v4238_v34  ;;  %vm10089_vm5 = vmmov %vm10060_vm1 }
 0x5d9   : > { %v4398_v53 = vpop.permute.xlu1 %4397 }
 0x5da   : > { %4467 = vst.msk [vmem:[#allocation3 + $0xd0] sm:$0xff] %vm10075_vm0, %v4398_v53  ;;  %vm10090_vm0 = vmmov %vm10084_vm2 }
 0x5db   : > { %v4240_v44 = vpop.permute.xlu0 %4239  ;;  %v4658_v35 = vld [vmem:[#allocation3 + $0xc8] sm:$0xff] }
 0x5dc   : > { %4308 = vst.msk [vmem:[#allocation3 + $0xd8] sm:$0xff] %vm10060_vm1, %v4240_v44  ;;  %5611 = vmatmul.mubr.msk.f32.gmra.mxu1 %vm10076_vm12, %v4658_v35  ;;  %vm10091_vm1 = vmmov %vm10077_vm11  ;;  %v8729_v44 = vpop.f32.mrf.mxu1  ;;  %v5069_v35 = vmul.f32 %v8698_v41, %v8698_v41 }
 0x5dd   : > { %v3762_v12 = vpop.permute.xlu1 %3761  ;;  %vm10092_vm12 = vmmov %vm10086_vm7 }
 0x5de   : > { %3829 = vst.msk [vmem:[#allocation3 + $0xe0] sm:$0xff] %vm10077_vm11, %v3762_v12  ;;  %vm10093_vm11 = vmmov %vm10085_vm4  ;;  %v5070_v12 = vmul.f32 %v8725_v45, %v8725_v45 }
 0x5df   : > { %v3604_v29 = vpop.permute.xlu0 %3603 }
 0x5e0   : > { %3670 = vst.msk [vmem:[#allocation3 + $0xe8] sm:$0xff] %vm10078_vm14, %v3604_v29  ;;  %vm10094_vm14 = vmmov %vm10088_vm6 }
 0x5e1   : > { %v4558_v7 = vpop.permute.xlu1 %4557 }
 0x5e2   : > { %4627 = vst.msk [vmem:[#allocation3 + $0xd0] sm:$0xff] %vm10079_vm10, %v4558_v7  ;;  %vm10095_vm10 = vmmov %vm10083_vm8 }
 0x5e3   : > { %v4400_v15 = vpop.permute.xlu0 %4399 }
 0x5e4   : > { %4468 = vst.msk [vmem:[#allocation3 + $0xd8] sm:$0xff] %vm10080_vm13, %v4400_v15  ;;  %vm10096_vm13 = vmmov %vm10091_vm1 }
 0x5e5   : > { %v3922_v8 = vpop.permute.xlu1 %3921 }
 0x5e6   : > { %3989 = vst.msk [vmem:[#allocation3 + $0xe0] sm:$0xff] %vm10081_vm9, %v3922_v8  ;;  %vm10097_vm9 = vmmov %vm10083_vm8 }
 0x5e7   : > { %v3764_v55 = vpop.permute.xlu0 %3763 }
 0x5e8   : > { %3830 = vst.msk [vmem:[#allocation3 + $0xe8] sm:$0xff] %vm10082_vm15, %v3764_v55  ;;  %vm10098_vm15 = vmmov %vm10090_vm0  ;;  %v8739_v55 = vpop.f32.mrf.mxu1 }
 0x5e9   : > { %v3924_v25 = vpop.permute.xlu1 %3923  ;;  %v4659_v51 = vld [vmem:[#allocation3 + $0xd0] sm:$0xff] }
 0x5ea   : > { %3990 = vst.msk [vmem:[#allocation3 + $0xe8] sm:$0xff] %vm10083_vm8, %v3924_v25  ;;  %5613 = vmatprep.mubr.msk.f32.mxu1 %vm10084_vm2, %v4659_v51  ;;  %vm10099_vm8 = vmmov %vm10085_vm4 }
 0x5eb   : > { %v4560_v31 = vpop.permute.xlu0 %4559  ;;  %vm10100_vm2 = vmmov %vm10087_vm3 }
 0x5ec   : > { %4628 = vst.msk [vmem:[#allocation3 + $0xd8] sm:$0xff] %vm10085_vm4, %v4560_v31  ;;  %vm10101_vm4 = vmmov %vm10100_vm2 }
 0x5ed   : > { %v3606_v33 = vpop.permute.xlu1 %3605 }
 0x5ee   : > { %3671 = vst.msk [vmem:[#allocation3 + $0xf0] sm:$0xff] %vm10086_vm7, %v3606_v33  ;;  %vm10102_vm7 = vmmov %vm10088_vm6 }
 0x5ef   : > { %v4242_v52 = vpop.permute.xlu0 %4241 }
 0x5f0   : > { %4309 = vst.msk [vmem:[#allocation3 + $0xe0] sm:$0xff] %vm10087_vm3, %v4242_v52  ;;  %vm10103_vm3 = vmmov %vm10088_vm6 }
 0x5f1   : > { %v4402_v38 = vpop.permute.xlu1 %4401 }
 0x5f2   : > { %4469 = vst.msk [vmem:[#allocation3 + $0xe0] sm:$0xff] %vm10088_vm6, %v4402_v38  ;;  %vm10104_vm6 = vmmov %vm10090_vm0  ;;  %v5071_v38 = vmul.f32 %v8715_v54, %v8715_v54 }
 0x5f3   : > { %v4244_v2 = vpop.permute.xlu0 %4243  ;;  %v4660_v37 = vld [vmem:[#allocation3 + $0xd8] sm:$0xff] }
 0x5f4   : > { %4310 = vst.msk [vmem:[#allocation3 + $0xe8] sm:$0xff] %vm10089_vm5, %v4244_v2  ;;  %5614 = vmatmul.mubr.msk.f32.gmra.mxu1 %vm10090_vm0, %v4660_v37  ;;  %vm10105_vm5 = vmmov %vm10099_vm8  ;;  %v8743_v52 = vpop.f32.mrf.mxu1  ;;  %v5072_v2 = vmul.f32 %v8739_v55, %v8739_v55 }
 0x5f5   : > { %v3766_v40 = vpop.permute.xlu1 %3765  ;;  %vm10106_vm0 = vmmov %vm10105_vm5 }
 0x5f6   : > { %3831 = vst.msk [vmem:[#allocation3 + $0xf0] sm:$0xff] %vm10091_vm1, %v3766_v40  ;;  %vm10107_vm1 = vmmov %vm10104_vm6 }
 0x5f7   : > { %v3608_v63 = vpop.permute.xlu0 %3607 }
 0x5f8   : > { %3672 = vst.msk [vmem:[#allocation3 + $0xf8] sm:$0xff] %vm10092_vm12, %v3608_v63  ;;  %vm10108_vm12 = vmmov %vm10107_vm1 }
 0x5f9   : > { %v4562_v27 = vpop.permute.xlu1 %4561 }
 0x5fa   : > { %4629 = vst.msk [vmem:[#allocation3 + $0xe0] sm:$0xff] %vm10093_vm11, %v4562_v27  ;;  %vm10109_vm11 = vcmask 31744  }
 0x5fb   : > { %v4404_v13 = vpop.permute.xlu0 %4403  ;;  %v4994_v19 = vsel %vm10109_vm11, %v8690_v18, 0.0 }
 0x5fc   : > { %4470 = vst.msk [vmem:[#allocation3 + $0xe8] sm:$0xff] %vm10094_vm14, %v4404_v13  ;;  %vm10110_vm14 = vmmov %vm10109_vm11  ;;  %v8753_v13 = vpop.f32.mrf.mxu1 }
 0x5fd   : > { %v3926_v9 = vpop.permute.xlu1 %3925  ;;  %v4995_v61 = vsel %vm10110_vm14, %v8688_v57, 0.0 }
 0x5fe   : > { %3991 = vst.msk [vmem:[#allocation3 + $0xf0] sm:$0xff] %vm10095_vm10, %v3926_v9  ;;  %vm10111_vm10 = vmmov %vm10109_vm11  ;;  %v4996_v32 = vadd.f32 %v4995_v61, %v4994_v19 }
 0x5ff   : > { %v3768_v56 = vpop.permute.xlu0 %3767  ;;  %v5096_v43 = vsel %vm10111_vm10, %v5064_v6, 0.0 }
 0x600   : > { %3832 = vst.msk [vmem:[#allocation3 + $0xf8] sm:$0xff] %vm10096_vm13, %v3768_v56  ;;  %vm10112_vm13 = vmmov %vm10111_vm10 }
 0x601   : > { %v3928_v22 = vpop.permute.xlu1 %3927  ;;  %v4661_v47 = vld [vmem:[#allocation3 + $0xe0] sm:$0xff]  ;;  %v4997_v20 = vsel %vm10112_vm13, %v8694_v24, 0.0 }
 0x602   : > { %3992 = vst.msk [vmem:[#allocation3 + $0xf8] sm:$0xff] %vm10097_vm9, %v3928_v22  ;;  %5616 = vmatprep.mubr.msk.f32.mxu1 %vm10098_vm15, %v4661_v47  ;;  %vm10113_vm9 = vmmov %vm10111_vm10  ;;  %v4998_v26 = vadd.f32 %v4997_v20, %v4996_v32 }
 0x603   : > { %v4564_v49 = vpop.permute.xlu0 %4563  ;;  %v5097_v48 = vsel %vm10113_vm9, %v5065_v46, 0.0  ;;  %vm10114_vm15 = vmmov %vm10113_vm9 }
 0x604   : > { %4630 = vst.msk [vmem:[#allocation3 + $0xe8] sm:$0xff] %vm10099_vm8, %v4564_v49  ;;  %v5099_v30 = vsel %vm10114_vm15, %v5066_v23, 0.0  ;;  %v5098_v10 = vadd.f32 %v5097_v48, %v5096_v43  ;;  %vm10115_vm8 = vmmov %vm10113_vm9  ;;  %v5075_v23 = vmul.f32 %v8743_v52, %v8743_v52 }
 0x605   : > { %v4248_v3 = vpop.permute.xlu1 %4247  ;;  %v4999_v62 = vsel %vm10115_vm8, %v8692_v60, 0.0 }
 0x606   : > { %4312 = vst.msk [vmem:[#allocation3 + $0xf8] sm:$0xff] %vm10100_vm2, %v4248_v3  ;;  %v5100_v1 = vadd.f32 %v5099_v30, %v5098_v10  ;;  %vm10116_vm2 = vmmov %vm10115_vm8  ;;  %v5000_v4 = vadd.f32 %v4999_v62, %v4998_v26  ;;  %v5073_v3 = vmul.f32 %v8729_v44, %v8729_v44 }
 0x607   : > { %v4246_v42 = vpop.permute.xlu0 %4245  ;;  %v5001_v5 = vsel %vm10116_vm2, %v8711_v17, 0.0 }
 0x608   : > { %4311 = vst.msk [vmem:[#allocation3 + $0xf0] sm:$0xff] %vm10101_vm4, %v4246_v42  ;;  %vm10117_vm4 = vmmov %vm10116_vm2  ;;  %v5002_v34 = vadd.f32 %v5001_v5, %v5000_v4  ;;  %v5074_v42 = vmul.f32 %v8753_v13, %v8753_v13 }
 0x609   : > { %v4408_v0 = vpop.permute.xlu1 %4407  ;;  %v5101_v59 = vsel %vm10117_vm4, %v5067_v14, 0.0 }
 0x60a   : > { %4472 = vst.msk [vmem:[#allocation3 + $0xf8] sm:$0xff] %vm10102_vm7, %v4408_v0  ;;  %vm10118_vm7 = vmmov %vm10116_vm2  ;;  %v5102_v53 = vadd.f32 %v5101_v59, %v5100_v1 }
 0x60b   : > { %v4406_v21 = vpop.permute.xlu0 %4405  ;;  %v4662_v58 = vld [vmem:[#allocation3 + $0xe8] sm:$0xff]  ;;  %v5103_v39 = vsel %vm10118_vm7, %v5068_v16, 0.0 }
 0x60c   : > { %4471 = vst.msk [vmem:[#allocation3 + $0xf0] sm:$0xff] %vm10103_vm3, %v4406_v21  ;;  %5617 = vmatmul.mubr.msk.f32.gmra.mxu1 %vm10104_vm6, %v4662_v58  ;;  %v5104_v29 = vadd.f32 %v5103_v39, %v5102_v53  ;;  %vm10119_vm3 = vmmov %vm10116_vm2  ;;  %v8757_v49 = vpop.f32.mrf.mxu1 }
 0x60d   : > { %v4568_v28 = vpop.permute.xlu1 %4567  ;;  %v5003_v7 = vsel %vm10119_vm3, %v8698_v41, 0.0  ;;  %vm10120_vm6 = vmmov %vm10116_vm2  ;;  %v5077_v62 = vmul.f32 %v8757_v49, %v8757_v49 }
 0x60e   : > { %4632 = vst.msk [vmem:[#allocation3 + $0xf8] sm:$0xff] %vm10105_vm5, %v4568_v28  ;;  %v5005_v15 = vsel %vm10120_vm6, %v8725_v45, 0.0  ;;  %v5004_v8 = vadd.f32 %v5003_v7, %v5002_v34  ;;  %vm10121_vm5 = vmmov %vm10116_vm2 }
 0x60f   : > { %v4566_v11 = vpop.permute.xlu0 %4565  ;;  %v5105_v25 = vsel %vm10121_vm5, %v5069_v35, 0.0 }
 0x610   : > { %4631 = vst.msk [vmem:[#allocation3 + $0xf0] sm:$0xff] %vm10106_vm0, %v4566_v11  ;;  %vm10122_vm0 = vmmov %vm10116_vm2  ;;  %v5006_v31 = vadd.f32 %v5005_v15, %v5004_v8  ;;  %v5106_v33 = vadd.f32 %v5105_v25, %v5104_v29  ;;  %v8767_v11 = vpop.f32.mrf.mxu1 }
 0x611   : > { %v5107_v51 = vsel %vm10122_vm0, %v5070_v12, 0.0  ;;  %vm10125_vm11 = vmmov %vm10122_vm0  ;;  %v5076_v61 = vmul.f32 %v8767_v11, %v8767_v11 }
 0x612   : > { %v5108_v37 = vadd.f32 %v5107_v51, %v5106_v33  ;;  %v5109_v9 = vsel %vm10125_vm11, %v5071_v38, 0.0  ;;  %vm10126_vm14 = vmmov %vm10122_vm0 }
 0x613   : > { %v5111_v56 = vsel %vm10126_vm14, %v5072_v2, 0.0  ;;  %vm10127_vm10 = vmmov %vm10122_vm0 }
 0x614   : > { %v5110_v47 = vadd.f32 %v5109_v9, %v5108_v37  ;;  %v5011_v21 = vsel %vm10127_vm10, %v8729_v44, 0.0  ;;  %vm10128_vm13 = vmmov %vm10122_vm0 }
 0x615   : > { %v4664_v36 = vld [vmem:[#allocation3 + $0xf8] sm:$0xff]  ;;  %v5013_v58 = vsel %vm10128_vm13, %v8753_v13, 0.0  ;;  %vm10129_vm9 = vmmov %vm10122_vm0 }
 0x616   : > { %v5112_v0 = vadd.f32 %v5111_v56, %v5110_v47  ;;  %vm10130_vm15 = vmmov %vm10122_vm0 }
 0x617   : > { %v4663_v50 = vld [vmem:[#allocation3 + $0xf0] sm:$0xff]  ;;  %vm10131_vm8 = vmmov %vm10122_vm0 }
 0x618   : > { %5619 = vmatprep.mubr.msk.f32.mxu1 %vm10107_vm1, %v4663_v50  ;;  %vm10123_vm1 = vmmov %vm10122_vm0  ;;  %v5115_v50 = vsel %vm10130_vm15, %v5074_v42, 0.0  ;;  %v5015_v20 = vsel %vm10131_vm8, %v8743_v52, 0.0 }
 0x619   : > { %5620 = vmatmul.mubr.msk.f32.gmra.mxu1 %vm10108_vm12, %v4664_v36  ;;  %v5007_v40 = vsel %vm10123_vm1, %v8715_v54, 0.0  ;;  %vm10124_vm12 = vmmov %vm10122_vm0  ;;  %v5113_v36 = vsel %vm10129_vm9, %v5073_v3, 0.0 }
 0x61a   : > { %v5009_v63 = vsel %vm10124_vm12, %v8739_v55, 0.0  ;;  %v5008_v27 = vadd.f32 %v5007_v40, %v5006_v31  ;;  %v5114_v46 = vadd.f32 %v5113_v36, %v5112_v0  ;;  %vm10132_vm2 = vmmov %vm10122_vm0 }
 0x61b   : > { %v5017_v32 = vsel %vm10132_vm2, %v8767_v11, 0.0  ;;  %vm10133_vm4 = vmmov %vm10122_vm0 }
 0x61c   : > { %v5010_v22 = vadd.f32 %v5009_v63, %v5008_v27  ;;  %v5116_v43 = vadd.f32 %v5115_v50, %v5114_v46  ;;  %v5117_v10 = vsel %vm10133_vm4, %v5075_v23, 0.0  ;;  %vm10134_vm7 = vmmov %vm10122_vm0 }
 0x61d   : > { %v5119_v26 = vsel %vm10134_vm7, %v5076_v61, 0.0  ;;  %vm10135_vm3 = vmmov %vm10122_vm0 }
 0x61e   : > { %v5012_v28 = vadd.f32 %v5011_v21, %v5010_v22  ;;  %v5118_v16 = vadd.f32 %v5117_v10, %v5116_v43  ;;  %v5019_v59 = vsel %vm10135_vm3, %v8757_v49, 0.0  ;;  %vm10136_vm6 = vmmov %vm10122_vm0 }
 0x61f   : > { %vm10137_vm5 = vmmov %vm10122_vm0 }
 0x620   : > { %v5014_v6 = vadd.f32 %v5013_v58, %v5012_v28  ;;  %v5120_v4 = vadd.f32 %v5119_v26, %v5118_v16  ;;  %v5121_v35 = vsel %vm10137_vm5, %v5077_v62, 0.0  ;;  %vm10138_vm1 = vmmov %vm10122_vm0 }
 0x621   : > { %vm10139_vm12 = vmmov %vm10122_vm0 }
 0x622   : > { %v5016_v48 = vadd.f32 %v5015_v20, %v5014_v6  ;;  %v5122_v7 = vadd.f32 %v5121_v35, %v5120_v4  ;;  %vm10140_vm11 = vmmov %vm10122_vm0 }
 0x623   : > { %vm10141_vm14 = vmmov %vm10122_vm0 }
 0x624   : > { %v8771_v19 = vpop.f32.mrf.mxu1  ;;  %v5018_v14 = vadd.f32 %v5017_v32, %v5016_v48  ;;  %vm10142_vm10 = vmmov %vm10122_vm0 }
 0x625   : > { %v5079_v8 = vmul.f32 %v8771_v19, %v8771_v19  ;;  %v5023_v31 = vsel %vm10138_vm1, %v8771_v19, 0.0  ;;  %vm10143_vm13 = vmmov %vm10122_vm0 }
 0x626   : > { %v8781_v30 = vpop.f32.mrf.mxu1  ;;  %v5020_v34 = vadd.f32 %v5019_v59, %v5018_v14  ;;  %vm10144_vm9 = vmmov %vm10122_vm0 }
 0x627   : > { %v5078_v5 = vmul.f32 %v8781_v30, %v8781_v30  ;;  %v5021_v39 = vsel %vm10136_vm6, %v8781_v30, 0.0  ;;  %v5125_v37 = vsel %vm10140_vm11, %v5079_v8, 0.0  ;;  %vm10145_vm15 = vmmov %vm10122_vm0 }
 0x628   : > { %v5022_v29 = vadd.f32 %v5021_v39, %v5020_v34  ;;  %vm10146_vm8 = vmmov %vm10122_vm0 }
 0x629   : > { %v5123_v12 = vsel %vm10122_vm0, %v5078_v5, 0.0  ;;  %vm10147_vm2 = vmmov %vm10122_vm0 }
 0x62a   : > { %v5124_v51 = vadd.f32 %v5123_v12, %v5122_v7  ;;  %v5024_v38 = vadd.f32 %v5023_v31, %v5022_v29  ;;  %vm10148_vm4 = vmmov %vm10122_vm0 }
 0x62b   : > { %vm10149_vm7 = vmmov %vm10122_vm0 }
 0x62c   : > { %v5126_v27 = vadd.f32 %v5125_v37, %v5124_v51  ;;  %vm10150_vm3 = vmmov %vm10122_vm0 }
 0x62d   : > { %vm10151_vm6 = vmmov %vm10122_vm0 }
 0x62e   : > { %vm10152_vm5 = vmmov %vm10122_vm0 }
 0x62f   : > { %vm10153_vm1 = vmmov %vm10122_vm0 }
 0x630   : > { %vm10155_vm11 = vmmov %vm10122_vm0 }
 0x63c   : > { %v8785_v1 = vpop.f32.mrf.mxu1 }
 0x63d   : > { %v5081_v56 = vmul.f32 %v8785_v1, %v8785_v1  ;;  %v5027_v3 = vsel %vm10142_vm10, %v8785_v1, 0.0  ;;  %vm10157_vm10 = vmmov %vm10122_vm0 }
 0x63e   : > { %v8795_v53 = vpop.f32.mrf.mxu1 }
 0x63f   : > { %v5080_v25 = vmul.f32 %v8795_v53, %v8795_v53  ;;  %v5025_v33 = vsel %vm10139_vm12, %v8795_v53, 0.0  ;;  %v5129_v58 = vsel %vm10144_vm9, %v5081_v56, 0.0  ;;  %vm10154_vm12 = vmmov %vm10122_vm0 }
 0x640   : > { %v5026_v63 = vadd.f32 %v5025_v33, %v5024_v38  ;;  %vm10159_vm9 = vmmov %vm10122_vm0 }
 0x641   : > { %v5127_v40 = vsel %vm10141_vm14, %v5080_v25, 0.0  ;;  %vm10156_vm14 = vmmov %vm10122_vm0 }
 0x642   : > { %v5128_v47 = vadd.f32 %v5127_v40, %v5126_v27  ;;  %v5028_v0 = vadd.f32 %v5027_v3, %v5026_v63 }
 0x644   : > { %v5130_v50 = vadd.f32 %v5129_v58, %v5128_v47 }
 0x654   : > { %v8799_v15 = vpop.f32.mrf.mxu1 }
 0x655   : > { %v5083_v46 = vmul.f32 %v8799_v15, %v8799_v15  ;;  %v5031_v43 = vsel %vm10146_vm8, %v8799_v15, 0.0  ;;  %vm10161_vm8 = vmmov %vm10122_vm0 }
 0x656   : > { %v8809_v2 = vpop.f32.mrf.mxu1 }
 0x657   : > { %v5082_v22 = vmul.f32 %v8809_v2, %v8809_v2  ;;  %v5029_v42 = vsel %vm10143_vm13, %v8809_v2, 0.0  ;;  %v5133_v10 = vsel %vm10148_vm4, %v5083_v46, 0.0  ;;  %vm10158_vm13 = vmmov %vm10122_vm0 }
 0x658   : > { %v5030_v36 = vadd.f32 %v5029_v42, %v5028_v0  ;;  %vm10163_vm4 = vmmov %vm10122_vm0 }
 0x659   : > { %v5131_v28 = vsel %vm10145_vm15, %v5082_v22, 0.0  ;;  %vm10160_vm15 = vmmov %vm10122_vm0 }
 0x65a   : > { %v5132_v61 = vadd.f32 %v5131_v28, %v5130_v50  ;;  %v5032_v32 = vadd.f32 %v5031_v43, %v5030_v36 }
 0x65c   : > { %v5134_v16 = vadd.f32 %v5133_v10, %v5132_v61 }
 0x66c   : > { %v8813_v9 = vpop.f32.mrf.mxu1 }
 0x66d   : > { %v5085_v5 = vmul.f32 %v8813_v9, %v8813_v9  ;;  %v5035_v39 = vsel %vm10150_vm3, %v8813_v9, 0.0  ;;  %vm10165_vm3 = vmmov %vm10122_vm0 }
 0x66e   : > { %v8823_v21 = vpop.f32.mrf.mxu1 }
 0x66f   : > { %v5084_v23 = vmul.f32 %v8823_v21, %v8823_v21  ;;  %v5033_v20 = vsel %vm10147_vm2, %v8823_v21, 0.0  ;;  %v5137_v29 = vsel %vm10152_vm5, %v5085_v5, 0.0  ;;  %vm10162_vm2 = vmmov %vm10122_vm0 }
 0x670   : > { %v5034_v14 = vadd.f32 %v5033_v20, %v5032_v32  ;;  %vm10167_vm5 = vmmov %vm10122_vm0 }
 0x671   : > { %v5135_v26 = vsel %vm10149_vm7, %v5084_v23, 0.0  ;;  %vm10164_vm7 = vmmov %vm10122_vm0 }
 0x672   : > { %v5136_v59 = vadd.f32 %v5135_v26, %v5134_v16  ;;  %v5036_v35 = vadd.f32 %v5035_v39, %v5034_v14 }
 0x674   : > { %v5138_v25 = vadd.f32 %v5137_v29, %v5136_v59 }
 0x684   : > { %v8827_v6 = vpop.f32.mrf.mxu1 }
 0x685   : > { %v5087_v31 = vmul.f32 %v8827_v6, %v8827_v6  ;;  %v5039_v37 = vsel %vm10153_vm1, %v8827_v6, 0.0  ;;  %vm10168_vm1 = vmmov %vm10122_vm0 }
 0x686   : > { %v8837_v48 = vpop.f32.mrf.mxu1 }
 0x687   : > { %v5086_v4 = vmul.f32 %v8837_v48, %v8837_v48  ;;  %v5037_v34 = vsel %vm10151_vm6, %v8837_v48, 0.0  ;;  %v5141_v56 = vsel %vm10155_vm11, %v5087_v31, 0.0  ;;  %vm10166_vm6 = vmmov %vm10122_vm0 }
 0x688   : > { %v5038_v8 = vadd.f32 %v5037_v34, %v5036_v35  ;;  %vm10182_vm11 = vmmov %vm10122_vm0 }
 0x689   : > { %v5139_v7 = vsel %vm10122_vm0, %v5086_v4, 0.0 }
 0x68a   : > { %v5140_v38 = vadd.f32 %v5139_v7, %v5138_v25  ;;  %v5040_v63 = vadd.f32 %v5039_v37, %v5038_v8 }
 0x68c   : > { %v5142_v3 = vadd.f32 %v5141_v56, %v5140_v38 }
 0x69c   : > { %v8841_v62 = vpop.f32.mrf.mxu1 }
 0x69d   : > { %v5089_v42 = vmul.f32 %v8841_v62, %v8841_v62  ;;  %v5043_v36 = vsel %vm10157_vm10, %v8841_v62, 0.0  ;;  %vm10184_vm10 = vmmov %vm10122_vm0 }
 0x69e   : > { %v8851_v12 = vpop.f32.mrf.mxu1 }
 0x69f   : > { %v5088_v33 = vmul.f32 %v8851_v12, %v8851_v12  ;;  %v5041_v40 = vsel %vm10154_vm12, %v8851_v12, 0.0  ;;  %v5145_v61 = vsel %vm10159_vm9, %v5089_v42, 0.0  ;;  %vm10169_vm12 = vmmov %vm10122_vm0 }
 0x6a0   : > { %v5042_v47 = vadd.f32 %v5041_v40, %v5040_v63  ;;  %vm10190_vm9 = vmmov %vm10122_vm0 }
 0x6a1   : > { %v5143_v22 = vsel %vm10156_vm14, %v5088_v33, 0.0  ;;  %vm10183_vm14 = vmmov %vm10122_vm0 }
 0x6a2   : > { %v5144_v28 = vadd.f32 %v5143_v22, %v5142_v3  ;;  %v5044_v46 = vadd.f32 %v5043_v36, %v5042_v47 }
 0x6a4   : > { %v5146_v32 = vadd.f32 %v5145_v61, %v5144_v28 }
 0x6b4   : > { %v8855_v51 = vpop.f32.mrf.mxu1 }
 0x6b5   : > { %v5091_v10 = vmul.f32 %v8855_v51, %v8855_v51  ;;  %v5047_v16 = vsel %vm10161_vm8, %v8855_v51, 0.0  ;;  %vm10192_vm8 = vmmov %vm10122_vm0 }
 0x6b6   : > { %v8865_v27 = vpop.f32.mrf.mxu1 }
 0x6b7   : > { %v5090_v0 = vmul.f32 %v8865_v27, %v8865_v27  ;;  %v5045_v50 = vsel %vm10158_vm13, %v8865_v27, 0.0  ;;  %v5149_v59 = vsel %vm10163_vm4, %v5091_v10, 0.0  ;;  %vm10185_vm13 = vmmov %vm10122_vm0 }
 0x6b8   : > { %v5046_v20 = vadd.f32 %v5045_v50, %v5044_v46  ;;  %vm10198_vm4 = vmmov %vm10122_vm0 }
 0x6b9   : > { %v5147_v43 = vsel %vm10160_vm15, %v5090_v0, 0.0  ;;  %vm10191_vm15 = vmmov %vm10122_vm0 }
 0x6ba   : > { %v5148_v14 = vadd.f32 %v5147_v43, %v5146_v32  ;;  %v5048_v4 = vadd.f32 %v5047_v16, %v5046_v20 }
 0x6bc   : > { %v5150_v35 = vadd.f32 %v5149_v59, %v5148_v14 }
 0x6cc   : > { %v8873_v58 = vpop.f32.mrf.mxu1 }
 0x6cd   : > { %v5093_v29 = vmul.f32 %v8873_v58, %v8873_v58  ;;  %v5051_v25 = vsel %vm10165_vm3, %v8873_v58, 0.0  ;;  %vm10200_vm3 = vmmov %vm10122_vm0 }
 0x6ce   : > { %v8879_v23 = vpop.f32.mrf.mxu1 }
 0x6cf   : > { %v5092_v26 = vmul.f32 %v8879_v23, %v8879_v23  ;;  %v5049_v5 = vsel %vm10162_vm2, %v8879_v23, 0.0  ;;  %v5153_v38 = vsel %vm10166_vm6, %v5093_v29, 0.0  ;;  %vm10193_vm2 = vmmov %vm10122_vm0 }
 0x6d0   : > { %v5050_v34 = vadd.f32 %v5049_v5, %v5048_v4  ;;  %vm10201_vm6 = vmmov %vm10122_vm0 }
 0x6d1   : > { %v5151_v39 = vsel %vm10164_vm7, %v5092_v26, 0.0  ;;  %vm10199_vm7 = vmmov %vm10122_vm0 }
 0x6d2   : > { %v5152_v7 = vadd.f32 %v5151_v39, %v5150_v35  ;;  %v5052_v33 = vadd.f32 %v5051_v25, %v5050_v34 }
 0x6d4   : > { %v5154_v22 = vadd.f32 %v5153_v38, %v5152_v7 }
 0x6d9   : > { %v8895_v8 = vpop.f32.mrf.mxu1 }
 0x6da   : > { %v5095_v37 = vmul.f32 %v8895_v8, %v8895_v8  ;;  %v5055_v47 = vsel %vm10122_vm0, %v8895_v8, 0.0 }
 0x6db   : > { %v8899_v31 = vpop.f32.mrf.mxu1 }
 0x6dc   : > { %v5053_v40 = vsel %vm10167_vm5, %v8899_v31, 0.0  ;;  %v5094_v63 = vmul.f32 %v8899_v31, %v8899_v31  ;;  %v5157_v28 = vsel %vm10169_vm12, %v5095_v37, 0.0  ;;  %vm10206_vm5 = vmmov %vm10122_vm0 }
 0x6dd   : > { %v5054_v56 = vadd.f32 %v5053_v40, %v5052_v33  ;;  %vm10208_vm12 = vmmov %vm10122_vm0 }
 0x6de   : > { %v5155_v3 = vsel %vm10168_vm1, %v5094_v63, 0.0  ;;  %vm10207_vm1 = vmmov %vm10122_vm0 }
 0x6df   : > { %v5056_v42 = vadd.f32 %v5055_v47, %v5054_v56  ;;  %v5156_v0 = vadd.f32 %v5155_v3, %v5154_v22 }
 0x6e1   : > { %v5057_v36 = vrot.slane %v5056_v42, 4  ;;  %v5158_v50 = vadd.f32 %v5157_v28, %v5156_v0 }
 0x6e3   : > { %v5058_v46 = vadd.f32 %v5057_v36, %v5056_v42  ;;  %v5159_v61 = vrot.slane %v5158_v50, 4 }
 0x6e5   : > { %v5059_v43 = vrot.slane %v5058_v46, 2  ;;  %v5160_v20 = vadd.f32 %v5159_v61, %v5158_v50 }
 0x6e7   : > { %v5060_v32 = vadd.f32 %v5059_v43, %v5058_v46  ;;  %v5161_v10 = vrot.slane %v5160_v20, 2 }
 0x6e9   : > { %v5061_v26 = vrot.slane %v5060_v32, 1  ;;  %v5162_v14 = vadd.f32 %v5161_v10, %v5160_v20 }
 0x6eb   : > { %v5062_v16 = vadd.f32 %v5061_v26, %v5060_v32  ;;  %v5163_v5 = vrot.slane %v5162_v14, 1 }
 0x6ed   : > { %v8912_v4 = vmul.f32 0.00390625, %v5062_v16  ;;  %v5164_v59 = vadd.f32 %v5163_v5, %v5162_v14 }
 0x6ef   : > { %v5165_v39 = vmul.f32 0.00390625, %v5164_v59  ;;  %v5166_v34 = vmul.f32 %v8912_v4, %v8912_v4  ;;  %v5168_v7 = vsub.f32 %v8690_v18, %v8912_v4  ;;  %v5169_v25 = vsub.f32 %v8688_v57, %v8912_v4 }
 0x6f0   : > { %v5170_v33 = vsub.f32 %v8694_v24, %v8912_v4  ;;  %v5171_v38 = vsub.f32 %v8692_v60, %v8912_v4  ;;  %v5172_v37 = vsub.f32 %v8711_v17, %v8912_v4  ;;  %v5173_v40 = vsub.f32 %v8698_v41, %v8912_v4 }
 0x6f1   : > { %v5167_v35 = vsub.f32 %v5165_v39, %v5166_v34  ;;  %v5174_v63 = vsub.f32 %v8725_v45, %v8912_v4  ;;  %v5175_v18 = vsub.f32 %v8715_v54, %v8912_v4  ;;  %v5176_v57 = vsub.f32 %v8739_v55, %v8912_v4 }
 0x6f2   : > { %v5177_v24 = vsub.f32 %v8729_v44, %v8912_v4  ;;  %v5178_v60 = vsub.f32 %v8753_v13, %v8912_v4  ;;  %v5179_v17 = vsub.f32 %v8743_v52, %v8912_v4  ;;  %v5180_v41 = vsub.f32 %v8767_v11, %v8912_v4 }
 0x6f3   : > { %v5200_v29 = vadd.f32 1e-05, %v5167_v35  ;;  %v5181_v45 = vsub.f32 %v8757_v49, %v8912_v4  ;;  %v5182_v54 = vsub.f32 %v8781_v30, %v8912_v4  ;;  %v5183_v55 = vsub.f32 %v8771_v19, %v8912_v4 }
 0x6f4   : > { %v5184_v44 = vsub.f32 %v8795_v53, %v8912_v4  ;;  %v5185_v13 = vsub.f32 %v8785_v1, %v8912_v4  ;;  %v5186_v52 = vsub.f32 %v8809_v2, %v8912_v4  ;;  %v5187_v11 = vsub.f32 %v8799_v15, %v8912_v4 }
 0x6f5   : > { %5640 = vrsqrt.f32 %v5200_v29  ;;  %v5188_v49 = vsub.f32 %v8823_v21, %v8912_v4  ;;  %v5189_v30 = vsub.f32 %v8813_v9, %v8912_v4  ;;  %v5190_v19 = vsub.f32 %v8837_v48, %v8912_v4 }
 0x6f6   : > { %v5191_v53 = vsub.f32 %v8827_v6, %v8912_v4  ;;  %v5192_v1 = vsub.f32 %v8851_v12, %v8912_v4  ;;  %v5193_v2 = vsub.f32 %v8841_v62, %v8912_v4  ;;  %v5194_v15 = vsub.f32 %v8865_v27, %v8912_v4 }
 0x6f7   : > { %v5195_v21 = vsub.f32 %v8855_v51, %v8912_v4  ;;  %v5196_v9 = vsub.f32 %v8879_v23, %v8912_v4  ;;  %v5197_v48 = vsub.f32 %v8873_v58, %v8912_v4  ;;  %v5198_v6 = vsub.f32 %v8899_v31, %v8912_v4 }
 0x6f8   : > { %v5199_v12 = vsub.f32 %v8895_v8, %v8912_v4 }
 0x702   : > { %v5641_v56 = vpop.eup %5640 }
 0x703   : > { %v5202_v62 = vmul.f32 %v5641_v56, %v5168_v7  ;;  %v5203_v22 = vmul.f32 %v5641_v56, %v5169_v25  ;;  %v5204_v47 = vmul.f32 %v5641_v56, %v5170_v33  ;;  %v5205_v27 = vmul.f32 %v5641_v56, %v5171_v38  ;;  %v10170_v25 = vld [vmem:[#allocation5_spill] sm:$0xff]  ;;  %v10171_v38 = vld [vmem:[#allocation7_spill] sm:$0xff] }
 0x704   : > { %v5206_v3 = vmul.f32 %v5641_v56, %v5172_v37  ;;  %v5207_v42 = vmul.f32 %v5641_v56, %v5173_v40  ;;  %v5208_v51 = vmul.f32 %v5641_v56, %v5174_v63  ;;  %v5209_v0 = vmul.f32 %v5641_v56, %v5175_v18  ;;  %v10172_v40 = vld [vmem:[#allocation4_spill] sm:$0xff]  ;;  %v10173_v18 = vld [vmem:[#allocation6_spill] sm:$0xff] }
 0x705   : > { %v5210_v28 = vmul.f32 %v5641_v56, %v5176_v57  ;;  %v5211_v36 = vmul.f32 %v5641_v56, %v5177_v24  ;;  %v5212_v23 = vmul.f32 %v5641_v56, %v5178_v60  ;;  %v5213_v50 = vmul.f32 %v5641_v56, %v5179_v17  ;;  %v10174_v24 = vld [vmem:[#allocation8_spill] sm:$0xff]  ;;  %v10175_v17 = vld [vmem:[#allocation9_spill] sm:$0xff] }
 0x706   : > { %v5214_v46 = vmul.f32 %v5641_v56, %v5180_v41  ;;  %v5215_v58 = vmul.f32 %v5641_v56, %v5181_v45  ;;  %v5216_v61 = vmul.f32 %v5641_v56, %v5182_v54  ;;  %v5217_v31 = vmul.f32 %v5641_v56, %v5183_v55  ;;  %v10176_v45 = vld [vmem:[#allocation10_spill] sm:$0xff]  ;;  %v10177_v55 = vld [vmem:[#allocation11_spill] sm:$0xff] }
 0x707   : > { %v5218_v43 = vmul.f32 %v5641_v56, %v5184_v44  ;;  %v5219_v20 = vmul.f32 %v5641_v56, %v5185_v13  ;;  %v5220_v8 = vmul.f32 %v5641_v56, %v5186_v52  ;;  %v5221_v32 = vmul.f32 %v5641_v56, %v5187_v11  ;;  %v10178_v13 = vld [vmem:[#allocation12_spill] sm:$0xff]  ;;  %v10179_v11 = vld [vmem:[#allocation13_spill] sm:$0xff] }
 0x708   : > { %v5222_v10 = vmul.f32 %v5641_v56, %v5188_v49  ;;  %v5223_v26 = vmul.f32 %v5641_v56, %v5189_v30  ;;  %v5224_v14 = vmul.f32 %v5641_v56, %v5190_v19  ;;  %v5225_v16 = vmul.f32 %v5641_v56, %v5191_v53  ;;  %v10180_v30 = vld [vmem:[#allocation14_spill] sm:$0xff]  ;;  %v10181_v53 = vld [vmem:[#allocation15_spill] sm:$0xff] }
 0x709   : > { %v5226_v5 = vmul.f32 %v5641_v56, %v5192_v1  ;;  %v5227_v4 = vmul.f32 %v5641_v56, %v5193_v2  ;;  %v5228_v59 = vmul.f32 %v5641_v56, %v5194_v15  ;;  %v5229_v39 = vmul.f32 %v5641_v56, %v5195_v21  ;;  %v10186_v2 = vld [vmem:[#allocation16_spill] sm:$0xff]  ;;  %v10187_v21 = vld [vmem:[#allocation17_spill] sm:$0xff] }
 0x70a   : > { %v5230_v34 = vmul.f32 %v5641_v56, %v5196_v9  ;;  %v5231_v35 = vmul.f32 %v5641_v56, %v5197_v48  ;;  %v5232_v29 = vmul.f32 %v5641_v56, %v5198_v6  ;;  %v5233_v7 = vmul.f32 %v5641_v56, %v5199_v12  ;;  %v10188_v9 = vld [vmem:[#allocation18_spill] sm:$0xff]  ;;  %v10189_v6 = vld [vmem:[#allocation19_spill] sm:$0xff] }
 0x70b   : > { %v5234_v33 = vadd.f32 %v5202_v62, %v10170_v25  ;;  %v5235_v37 = vadd.f32 %v5203_v22, %v10171_v38  ;;  %v5236_v63 = vadd.f32 %v5204_v47, %v10172_v40  ;;  %v5237_v57 = vadd.f32 %v5205_v27, %v10173_v18  ;;  %v10194_v62 = vld [vmem:[#allocation20_spill] sm:$0xff]  ;;  %v10195_v47 = vld [vmem:[#allocation21_spill] sm:$0xff] }
 0x70c   : > { %v5238_v60 = vadd.f32 %v5206_v3, %v10174_v24  ;;  %v5239_v41 = vadd.f32 %v5207_v42, %v10175_v17  ;;  %v5240_v54 = vadd.f32 %v5208_v51, %v10176_v45  ;;  %v5241_v44 = vadd.f32 %v5209_v0, %v10177_v55  ;;  %v10196_v3 = vld [vmem:[#allocation22_spill] sm:$0xff]  ;;  %v10197_v51 = vld [vmem:[#allocation23_spill] sm:$0xff]  ;;  %v10218_v25 = vld [vmem:[#allocation33_spill] sm:$0xff] }
 0x70d   : > { %v5242_v52 = vadd.f32 %v5210_v28, %v10178_v13  ;;  %v5243_v49 = vadd.f32 %v5211_v36, %v10179_v11  ;;  %v5244_v19 = vadd.f32 %v5212_v23, %v10180_v30  ;;  %v5245_v1 = vadd.f32 %v5213_v50, %v10181_v53  ;;  %5266 = vst.msk [vmem:[%s8985_s22] sm:$0xff] %vm10182_vm11, %v5234_v33  ;;  %v10202_v28 = vld [vmem:[#allocation24_spill] sm:$0xff]  ;;  %v10203_v23 = vld [vmem:[#allocation25_spill] sm:$0xff]  ;;  %vm10213_vm11 = vmmov %vm10122_vm0 }
 0x70e   : > { %5267 = vst.msk [vmem:[%s8985_s22 + $0x8] sm:$0xff] %vm10183_vm14, %v5235_v37  ;;  %v5246_v15 = vadd.f32 %v5214_v46, %v10186_v2  ;;  %v5247_v56 = vadd.f32 %v5215_v58, %v10187_v21  ;;  %v5248_v48 = vadd.f32 %v5216_v61, %v10188_v9  ;;  %v5249_v12 = vadd.f32 %v5217_v31, %v10189_v6  ;;  %v10204_v46 = vld [vmem:[#allocation26_spill] sm:$0xff]  ;;  %v10205_v61 = vld [vmem:[#allocation27_spill] sm:$0xff]  ;;  %vm10214_vm14 = vmmov %vm10122_vm0 }
 0x70f   : > { %5268 = vst.msk [vmem:[%s8985_s22 + $0x10] sm:$0xff] %vm10184_vm10, %v5236_v63  ;;  %v5250_v22 = vadd.f32 %v5218_v43, %v10194_v62  ;;  %v5251_v27 = vadd.f32 %v5219_v20, %v10195_v47  ;;  %v5252_v42 = vadd.f32 %v5220_v8, %v10196_v3  ;;  %v5253_v0 = vadd.f32 %v5221_v32, %v10197_v51  ;;  %v10209_v43 = vld [vmem:[#allocation28_spill] sm:$0xff]  ;;  %v10210_v8 = vld [vmem:[#allocation29_spill] sm:$0xff]  ;;  %vm10215_vm10 = vmmov %vm10122_vm0 }
 0x710   : > { %5269 = vst.msk [vmem:[%s8985_s22 + $0x18] sm:$0xff] %vm10185_vm13, %v5237_v57  ;;  %v5254_v36 = vadd.f32 %v5222_v10, %v10202_v28  ;;  %v5255_v50 = vadd.f32 %v5223_v26, %v10203_v23  ;;  %v5256_v58 = vadd.f32 %v5224_v14, %v10204_v46  ;;  %v5257_v31 = vadd.f32 %v5225_v16, %v10205_v61  ;;  %v10211_v10 = vld [vmem:[#allocation30_spill] sm:$0xff]  ;;  %v10212_v14 = vld [vmem:[#allocation31_spill] sm:$0xff]  ;;  %vm10216_vm13 = vmmov %vm10122_vm0 }
 0x711   : > { %5270 = vst.msk [vmem:[%s8985_s22 + $0x20] sm:$0xff] %vm10190_vm9, %v5238_v60  ;;  %v5258_v20 = vadd.f32 %v5226_v5, %v10209_v43  ;;  %v5259_v32 = vadd.f32 %v5227_v4, %v10210_v8  ;;  %v5260_v26 = vadd.f32 %v5228_v59, %v10211_v10  ;;  %v5261_v16 = vadd.f32 %v5229_v39, %v10212_v14  ;;  %v10217_v5 = vld [vmem:[#allocation32_spill] sm:$0xff]  ;;  %v10219_v33 = vld [vmem:[#allocation38_spill] sm:$0xff]  ;;  %vm10221_vm9 = vmmov %vm10122_vm0 }
 0x712   : > { %5271 = vst.msk [vmem:[%s8985_s22 + $0x28] sm:$0xff] %vm10191_vm15, %v5239_v41  ;;  %v5262_v4 = vadd.f32 %v5230_v34, %v10217_v5  ;;  %v5263_v59 = vadd.f32 %v5231_v35, %v10218_v25  ;;  %v5264_v38 = vadd.f32 %v5232_v29, %v10219_v33  ;;  %v10220_v39 = vld [vmem:[#allocation54_spill] sm:$0xff]  ;;  %vm10222_vm15 = vmmov %vm10122_vm0 }
 0x713   : > { %5272 = vst.msk [vmem:[%s8985_s22 + $0x30] sm:$0xff] %vm10192_vm8, %v5240_v54  ;;  %v5265_v37 = vadd.f32 %v5233_v7, %v10220_v39  ;;  %vm10223_vm8 = vmmov %vm10122_vm0 }
 0x714   : > { %5273 = vst.msk [vmem:[%s8985_s22 + $0x38] sm:$0xff] %vm10193_vm2, %v5241_v44  ;;  %vm10224_vm2 = vmmov %vm10122_vm0 }
 0x715   : > { %5274 = vst.msk [vmem:[%s8985_s22 + $0x40] sm:$0xff] %vm10198_vm4, %v5242_v52  ;;  %vm10225_vm4 = vmmov %vm10122_vm0 }
 0x716   : > { %5275 = vst.msk [vmem:[%s8985_s22 + $0x48] sm:$0xff] %vm10199_vm7, %v5243_v49  ;;  %vm10226_vm7 = vmmov %vm10122_vm0 }
 0x717   : > { %5276 = vst.msk [vmem:[%s8985_s22 + $0x50] sm:$0xff] %vm10200_vm3, %v5244_v19  ;;  %vm10227_vm3 = vmmov %vm10122_vm0 }
 0x718   : > { %5277 = vst.msk [vmem:[%s8985_s22 + $0x58] sm:$0xff] %vm10201_vm6, %v5245_v1  ;;  %vm10228_vm6 = vmmov %vm10122_vm0 }
 0x719   : > { %5278 = vst.msk [vmem:[%s8985_s22 + $0x60] sm:$0xff] %vm10206_vm5, %v5246_v15  ;;  %vm10229_vm5 = vmmov %vm10122_vm0 }
 0x71a   : > { %5279 = vst.msk [vmem:[%s8985_s22 + $0x68] sm:$0xff] %vm10122_vm0, %v5247_v56  ;;  %5295 = vst.msk [vmem:[%s8985_s22 + $0xe8] sm:$0xff] %vm10122_vm0, %v5263_v59 }
 0x71b   : > { %5280 = vst.msk [vmem:[%s8985_s22 + $0x70] sm:$0xff] %vm10207_vm1, %v5248_v48  ;;  %vm10230_vm1 = vmmov %vm10122_vm0 }
 0x71c   : > { %5281 = vst.msk [vmem:[%s8985_s22 + $0x78] sm:$0xff] %vm10208_vm12, %v5249_v12  ;;  %vm10231_vm12 = vmmov %vm10122_vm0 }
 0x71d   : > { %5282 = vst.msk [vmem:[%s8985_s22 + $0x80] sm:$0xff] %vm10213_vm11, %v5250_v22 }
 0x71e   : > { %5283 = vst.msk [vmem:[%s8985_s22 + $0x88] sm:$0xff] %vm10214_vm14, %v5251_v27 }
 0x71f   : > { %5284 = vst.msk [vmem:[%s8985_s22 + $0x90] sm:$0xff] %vm10215_vm10, %v5252_v42 }
 0x720   : > { %5285 = vst.msk [vmem:[%s8985_s22 + $0x98] sm:$0xff] %vm10216_vm13, %v5253_v0 }
 0x721   : > { %5286 = vst.msk [vmem:[%s8985_s22 + $0xa0] sm:$0xff] %vm10221_vm9, %v5254_v36 }
 0x722   : > { %5287 = vst.msk [vmem:[%s8985_s22 + $0xa8] sm:$0xff] %vm10222_vm15, %v5255_v50 }
 0x723   : > { %5288 = vst.msk [vmem:[%s8985_s22 + $0xb0] sm:$0xff] %vm10223_vm8, %v5256_v58 }
 0x724   : > { %5289 = vst.msk [vmem:[%s8985_s22 + $0xb8] sm:$0xff] %vm10224_vm2, %v5257_v31 }
 0x725   : > { %5290 = vst.msk [vmem:[%s8985_s22 + $0xc0] sm:$0xff] %vm10225_vm4, %v5258_v20 }
 0x726   : > { %5291 = vst.msk [vmem:[%s8985_s22 + $0xc8] sm:$0xff] %vm10226_vm7, %v5259_v32 }
 0x727   : > { %5292 = vst.msk [vmem:[%s8985_s22 + $0xd0] sm:$0xff] %vm10227_vm3, %v5260_v26 }
 0x728   : > { %5293 = vst.msk [vmem:[%s8985_s22 + $0xd8] sm:$0xff] %vm10228_vm6, %v5261_v16 }
 0x729   : > { %5294 = vst.msk [vmem:[%s8985_s22 + $0xe0] sm:$0xff] %vm10229_vm5, %v5262_v4 }
 0x72a   : > { %5296 = vst.msk [vmem:[%s8985_s22 + $0xf0] sm:$0xff] %vm10230_vm1, %v5264_v38 }
 0x72b   : > { %5297 = vst.msk [vmem:[%s8985_s22 + $0xf8] sm:$0xff] %vm10231_vm12, %v5265_v37 }
 0x72c PF: > { %s13_s12 = sadd.s32 1, %s5673_s12  }
 0x72d   : > { %p10_p4 = scmp.ge.s32.totalorder %s13_s12, 4  }
 0x72f   :  { %12 = sbr.rel (!%p10_p4) target bundleno = 1 (0x1), region = 62 }

</bundles_post_ra>
